<compile_context>
chip_gen: v7x
topology: tpu7x:2x2x1
jax: 0.10.0
libtpu: 0.0.40
codegen_flags: <defaults>
</compile_context>

<pallas_src>
import math

import jax
import jax.numpy as jnp
from jax import lax
from jax.experimental import pallas as pl
from jax.experimental.pallas import tpu as pltpu


# ------------------------------ fused Pallas kernel ------------------------------

def _head_kernel(H, W, C, WPAD):
    """Fused Head forward for ONE batch element (grid=(B,))."""
    HW = H * W

    def im2col(src_ref, K, col0):
        # src_ref: [1, H+?, W+?, Cin] padded activation; returns [H*W, K*K*Cin]
        Cin = src_ref.shape[3]
        cols = []
        for dy in range(K):
            for dx in range(K):
                cols.append(
                    src_ref[0, dy:dy + H, col0 + dx:col0 + dx + W, :].reshape(HW, Cin))
        return jnp.concatenate(cols, axis=1)

    def store_act(dst_ref, val):
        # interior write at sublane-aligned column offset WPAD; borders stay zero
        dst_ref[0, 1:1 + H, WPAD:WPAD + W, :] = val.reshape(H, W, val.shape[-1])

    def bn_lrelu(y, s, b):
        y = y * s + b
        return jnp.where(y > 0, y, jnp.float32(0.01) * y)

    def kernel(dpad_ref,
               w_up_ref, b_up_ref,
               w_in_ref, s_in_ref, b_in_ref,
               w_reg_ref, s_reg_ref, b_reg_ref,
               w_cls_ref, s_cls_ref, b_cls_ref,
               w_rh_ref, b_rh_ref,
               w_ch_ref, b_ch_ref,
               out_reg_ref, out_cls_ref,
               xpad_r, xpad_c):
        # zero both padded activation buffers (their borders provide conv padding)
        xpad_r[...] = jnp.zeros_like(xpad_r)
        xpad_c[...] = jnp.zeros_like(xpad_c)

        # --- up conv: ConvTranspose2d(k=4, s=2, p=1) as one 4x4 valid-conv matmul
        up = jnp.dot(im2col(dpad_ref, 4, 0), w_up_ref[...],
                     preferred_element_type=jnp.float32) + b_up_ref[...]
        store_act(xpad_r, up)

        # --- in_conv: 3x3, C -> 2C, folded BatchNorm(eval) + LeakyReLU(0.01)
        y = jnp.dot(im2col(xpad_r, 3, WPAD - 1), w_in_ref[...],
                    preferred_element_type=jnp.float32)
        y = bn_lrelu(y, s_in_ref[...], b_in_ref[...])
        # TODO(synk): nn.Dropout(p=0.2) is eval-mode identity here (no train-time mask).
        store_act(xpad_c, y[:, C:])          # feat_cls -> its own padded buffer
        store_act(xpad_r, y[:, :C])          # feat_reg

        # --- regression tower (3x BasicBlock) + regression head (bias only)
        for i in range(3):
            t = jnp.dot(im2col(xpad_r, 3, WPAD - 1), w_reg_ref[i],
                        preferred_element_type=jnp.float32)
            t = bn_lrelu(t, s_reg_ref[i:i + 1, :], b_reg_ref[i:i + 1, :])
            store_act(xpad_r, t)
        out_reg_ref[0] = (
            jnp.dot(im2col(xpad_r, 3, WPAD - 1), w_rh_ref[...],
                    preferred_element_type=jnp.float32) + b_rh_ref[...]
        ).astype(out_reg_ref.dtype)

        # --- classification tower (3x BasicBlock) + classification head (bias only)
        for i in range(3):
            t = jnp.dot(im2col(xpad_c, 3, WPAD - 1), w_cls_ref[i],
                        preferred_element_type=jnp.float32)
            t = bn_lrelu(t, s_cls_ref[i:i + 1, :], b_cls_ref[i:i + 1, :])
            store_act(xpad_c, t)
        out_cls_ref[0] = (
            jnp.dot(im2col(xpad_c, 3, WPAD - 1), w_ch_ref[...],
                    preferred_element_type=jnp.float32) + b_ch_ref[...]
        ).astype(out_cls_ref.dtype)

    return kernel


# ----------------------------------- forward -------------------------------------

def head_forward(x_nchw, kp):
    """x_nchw: [B, C, Hi, Wi] (like the PyTorch module). kp: kernel-ready params."""
    B, C, Hi, Wi = x_nchw.shape
    H, W = 2 * Hi, 2 * Wi
    WPAD = 8                                   # sublane-aligned left pad (pixels)

    x = jnp.transpose(x_nchw, (0, 2, 3, 1))    # NCHW -> NHWC
    # zero-dilate (stride 2) + pad 2: equivalent 4x4 'valid' conv input for the
    # ConvTranspose2d(k=4, s=2, p=1). Tiny tensor; fuses with the transpose above.
    dpad = jnp.zeros((B, 2 * Hi + 3, 2 * Wi + 3, C), x.dtype)
    dpad = dpad.at[:, 2:2 * Hi + 1:2, 2:2 * Wi + 1:2, :].set(x)

    nm4 = kp['w_rh'].shape[-1]                 # n*m*4
    nm = kp['w_ch'].shape[-1]                  # n*m
    kernel = _head_kernel(H, W, C, WPAD)

    def full(a):
        nd = a.ndim
        return pl.BlockSpec(a.shape, lambda b: (0,) * nd)

    out_reg, out_cls = pl.pallas_call(
        kernel,
        out_shape=(jax.ShapeDtypeStruct((B, H * W, nm4), x.dtype),
                   jax.ShapeDtypeStruct((B, H * W, nm), x.dtype)),
        grid=(B,),
        in_specs=[
            pl.BlockSpec((1, 2 * Hi + 3, 2 * Wi + 3, C), lambda b: (b, 0, 0, 0)),
            full(kp['w_up']), full(kp['b_up']),
            full(kp['w_in']), full(kp['s_in']), full(kp['b_in']),
            full(kp['w_reg']), full(kp['s_reg']), full(kp['b_reg']),
            full(kp['w_cls']), full(kp['s_cls']), full(kp['b_cls']),
            full(kp['w_rh']), full(kp['b_rh']),
            full(kp['w_ch']), full(kp['b_ch']),
        ],
        out_specs=(pl.BlockSpec((1, H * W, nm4), lambda b: (b, 0, 0)),
                   pl.BlockSpec((1, H * W, nm), lambda b: (b, 0, 0))),
        scratch_shapes=[
            pltpu.VMEM((1, H + 2, W + 2 * WPAD, C), jnp.float32),   # reg path
            pltpu.VMEM((1, H + 2, W + 2 * WPAD, C), jnp.float32),   # cls path
        ],
        compiler_params=pltpu.CompilerParams(dimension_semantics=("parallel",)),
    )(dpad, kp['w_up'], kp['b_up'], kp['w_in'], kp['s_in'], kp['b_in'],
      kp['w_reg'], kp['s_reg'], kp['b_reg'], kp['w_cls'], kp['s_cls'], kp['b_cls'],
      kp['w_rh'], kp['b_rh'], kp['w_ch'], kp['b_ch'])

    # rearrange 'B (n m c) h w -> B (h w n m) c': channel axis already carries
    # (n, m, c) order in NHWC, so this is a pure reshape.
    out_reg = out_reg.reshape(B, H * W * nm, 4)
    out_cls = out_cls.reshape(B, H * W * nm, 1)
    return out_reg, out_cls


# -------------------------------- parameter init ---------------------------------

def make_params(key, C, n, m):
    keys = jax.random.split(key, 20)

    def nrm(k, shape, std):
        return (jax.random.normal(keys[k], shape) * std).astype(jnp.float32)

    eps = 1e-5
    # BN eval-mode fold with default init: gamma=1, beta=0, running_mean=0, var=1.
    # With real BN stats the fold would be scale=gamma/sqrt(var+eps),
    # bias=(conv_b-mean)*scale+beta (parameter-prep concern, not a kernel concern).
    bn_scale = 1.0 / math.sqrt(1.0 + eps)

    params = {}
    # one up layer (log2(out_res // in_res) == 1), equivalent-conv layout [16, C, C]
    params['up'] = [(nrm(0, (16, C, C), 0.05), nrm(1, (C,), 0.02).reshape(1, -1))]

    # in_conv (C -> 2C)
    in_w = nrm(2, (9, C, 2 * C), 0.05)
    in_b = nrm(3, (2 * C,), 0.02)
    params['in_w'] = in_w
    params['in_s'] = jnp.full((1, 2 * C), bn_scale, jnp.float32)
    params['in_b'] = (in_b * bn_scale).reshape(1, -1)

    params['reg_convs'] = []
    params['cls_convs'] = []
    k = 4
    for _ in range(3):
        w = nrm(k, (9, C, C), 0.05); b = nrm(k + 1, (C,), 0.02); k += 2
        params['reg_convs'].append(
            (w, jnp.full((1, C), bn_scale, jnp.float32), (b * bn_scale).reshape(1, -1)))
    for _ in range(3):
        w = nrm(k, (9, C, C), 0.05); b = nrm(k + 1, (C,), 0.02); k += 2
        params['cls_convs'].append(
            (w, jnp.full((1, C), bn_scale, jnp.float32), (b * bn_scale).reshape(1, -1)))

    # heads: init_weights_conv -> N(0, 1e-6) for weight and bias
    params['reg_head_w'] = nrm(k, (9, C, n * m * 4), 1e-6)
    params['reg_head_b'] = nrm(k + 1, (n * m * 4,), 1e-6).reshape(1, -1)
    k += 2
    params['cls_head_w'] = nrm(k, (9, C, n * m * 1), 1e-6)
    params['cls_head_b'] = nrm(k + 1, (n * m * 1,), 1e-6).reshape(1, -1)
    return params


def prepare_kernel_params(params, C):
    """Reshape module-style params into the 2D / stacked layout the kernel wants."""
    assert len(params['up']) == 1, "fused kernel supports a single up layer"
    kp = {}
    kp['w_up'] = params['up'][0][0].reshape(16 * C, C)
    kp['b_up'] = params['up'][0][1]                             # [1, C]
    kp['w_in'] = params['in_w'].reshape(9 * C, 2 * C)
    kp['s_in'] = params['in_s']                                 # [1, 2C]
    kp['b_in'] = params['in_b']
    kp['w_reg'] = jnp.stack([w.reshape(9 * C, C) for (w, _, _) in params['reg_convs']])
    kp['s_reg'] = jnp.concatenate([s for (_, s, _) in params['reg_convs']], axis=0)
    kp['b_reg'] = jnp.concatenate([b for (_, _, b) in params['reg_convs']], axis=0)
    kp['w_cls'] = jnp.stack([w.reshape(9 * C, C) for (w, _, _) in params['cls_convs']])
    kp['s_cls'] = jnp.concatenate([s for (_, s, _) in params['cls_convs']], axis=0)
    kp['b_cls'] = jnp.concatenate([b for (_, _, b) in params['cls_convs']], axis=0)
    kp['w_rh'] = params['reg_head_w'].reshape(9 * C, -1)
    kp['b_rh'] = params['reg_head_b']
    kp['w_ch'] = params['cls_head_w'].reshape(9 * C, -1)
    kp['b_ch'] = params['cls_head_b']
    return kp


# --------------------------- pure-JAX reference (sanity) --------------------------

def _ref_conv(x, w_kk, scale, bias, lrelu, K, padding, lhs_dilation=(1, 1)):
    w = w_kk.reshape(K, K, w_kk.shape[1], w_kk.shape[2])
    y = lax.conv_general_dilated(x, w, (1, 1), padding, lhs_dilation=lhs_dilation,
                                 dimension_numbers=('NHWC', 'HWIO', 'NHWC'))
    y = y * scale.reshape(1, 1, 1, -1) + bias.reshape(1, 1, 1, -1)
    if lrelu:
        y = jnp.where(y > 0, y, 0.01 * y)
    return y


def head_forward_ref(x_nchw, params, n=4, m=3):
    x = jnp.transpose(x_nchw, (0, 2, 3, 1))
    for (w, b) in params['up']:
        x = _ref_conv(x, w, jnp.ones_like(b), b, False, 4,
                      [(2, 2), (2, 2)], lhs_dilation=(2, 2))
    B, H, W, C = x.shape
    y = _ref_conv(x, params['in_w'], params['in_s'], params['in_b'], True, 3,
                  [(1, 1), (1, 1)])
    fr, fc = y[..., :C], y[..., C:]
    for (w, s, b) in params['reg_convs']:
        fr = _ref_conv(fr, w, s, b, True, 3, [(1, 1), (1, 1)])
    for (w, s, b) in params['cls_convs']:
        fc = _ref_conv(fc, w, s, b, True, 3, [(1, 1), (1, 1)])
    orr = _ref_conv(fr, params['reg_head_w'], jnp.ones((1, n * m * 4)),
                    params['reg_head_b'], False, 3, [(1, 1), (1, 1)])
    occ = _ref_conv(fc, params['cls_head_w'], jnp.ones((1, n * m * 1)),
                    params['cls_head_b'], False, 3, [(1, 1), (1, 1)])
    return orr.reshape(B, H * W * n * m, 4), occ.reshape(B, H * W * n * m, 1)


# ------------------------------------- main ---------------------------------------

if __name__ == "__main__":
    # Small config consistent with the module: one up layer (in_res=4 -> out_res=8),
    # in_dim=32, n=4 base sizes, m=3 aspect ratios.
    B, C, in_res, out_res = 2, 32, 4, 8
    n, m = 4, 3

    key = jax.random.PRNGKey(0)
    kx, kpkey = jax.random.split(key)
    x = jax.random.normal(kx, (B, C, in_res, in_res), jnp.float32)  # NCHW like PyTorch
    params = make_params(kpkey, C, n, m)
    kparams = prepare_kernel_params(params, C)

    fwd = jax.jit(head_forward)
    out_reg, out_cls = fwd(x, kparams)
    jax.block_until_ready((out_reg, out_cls))

    assert out_reg.shape == (B, out_res * out_res * n * m, 4), out_reg.shape
    assert out_cls.shape == (B, out_res * out_res * n * m, 1), out_cls.shape

    ref_reg, ref_cls = head_forward_ref(x, params, n=n, m=m)
    assert jnp.allclose(out_reg, ref_reg, rtol=2e-3, atol=1e-5)
    assert jnp.allclose(out_cls, ref_cls, rtol=2e-3, atol=1e-5)

    print("KERNEL_OK")
</pallas_src>

<mosaic_0001>
module attributes {stable_mosaic.version = 11 : i64} {
  func.func @kernel(%arg0: i32, %arg1: memref<1x11x11x32xf32, #tpu.memory_space<vmem>>, %arg2: memref<512x32xf32, #tpu.memory_space<vmem>>, %arg3: memref<1x32xf32, #tpu.memory_space<vmem>>, %arg4: memref<288x64xf32, #tpu.memory_space<vmem>>, %arg5: memref<1x64xf32, #tpu.memory_space<vmem>>, %arg6: memref<1x64xf32, #tpu.memory_space<vmem>>, %arg7: memref<3x288x32xf32, #tpu.memory_space<vmem>>, %arg8: memref<3x32xf32, #tpu.memory_space<vmem>>, %arg9: memref<3x32xf32, #tpu.memory_space<vmem>>, %arg10: memref<3x288x32xf32, #tpu.memory_space<vmem>>, %arg11: memref<3x32xf32, #tpu.memory_space<vmem>>, %arg12: memref<3x32xf32, #tpu.memory_space<vmem>>, %arg13: memref<288x48xf32, #tpu.memory_space<vmem>>, %arg14: memref<1x48xf32, #tpu.memory_space<vmem>>, %arg15: memref<288x12xf32, #tpu.memory_space<vmem>>, %arg16: memref<1x12xf32, #tpu.memory_space<vmem>>, %arg17: memref<1x64x48xf32, #tpu.memory_space<vmem>>, %arg18: memref<1x64x12xf32, #tpu.memory_space<vmem>>, %arg19: memref<1x10x24x32xf32, #tpu.memory_space<vmem>>, %arg20: memref<1x10x24x32xf32, #tpu.memory_space<vmem>>) attributes {dimension_semantics = [#tpu.dimension_semantics<parallel>], iteration_bounds = array<i64: 2>, scalar_prefetch = 0 : i64, scratch_operands = 2 : i64, tpu.core_type = #tpu.core_type<tc>, window_params = [{transform_indices = @transform_0, window_bounds = array<i64: 1, 11, 11, 32>}, {pipeline_mode = #tpu.pipeline_mode<synchronous>, transform_indices = @transform_1, window_bounds = array<i64: 512, 32>}, {pipeline_mode = #tpu.pipeline_mode<synchronous>, transform_indices = @transform_2, window_bounds = array<i64: 1, 32>}, {pipeline_mode = #tpu.pipeline_mode<synchronous>, transform_indices = @transform_3, window_bounds = array<i64: 288, 64>}, {pipeline_mode = #tpu.pipeline_mode<synchronous>, transform_indices = @transform_4, window_bounds = array<i64: 1, 64>}, {pipeline_mode = #tpu.pipeline_mode<synchronous>, transform_indices = @transform_5, window_bounds = array<i64: 1, 64>}, {pipeline_mode = #tpu.pipeline_mode<synchronous>, transform_indices = @transform_6, window_bounds = array<i64: 3, 288, 32>}, {pipeline_mode = #tpu.pipeline_mode<synchronous>, transform_indices = @transform_7, window_bounds = array<i64: 3, 32>}, {pipeline_mode = #tpu.pipeline_mode<synchronous>, transform_indices = @transform_8, window_bounds = array<i64: 3, 32>}, {pipeline_mode = #tpu.pipeline_mode<synchronous>, transform_indices = @transform_9, window_bounds = array<i64: 3, 288, 32>}, {pipeline_mode = #tpu.pipeline_mode<synchronous>, transform_indices = @transform_10, window_bounds = array<i64: 3, 32>}, {pipeline_mode = #tpu.pipeline_mode<synchronous>, transform_indices = @transform_11, window_bounds = array<i64: 3, 32>}, {pipeline_mode = #tpu.pipeline_mode<synchronous>, transform_indices = @transform_12, window_bounds = array<i64: 288, 48>}, {pipeline_mode = #tpu.pipeline_mode<synchronous>, transform_indices = @transform_13, window_bounds = array<i64: 1, 48>}, {pipeline_mode = #tpu.pipeline_mode<synchronous>, transform_indices = @transform_14, window_bounds = array<i64: 288, 12>}, {pipeline_mode = #tpu.pipeline_mode<synchronous>, transform_indices = @transform_15, window_bounds = array<i64: 1, 12>}, {transform_indices = @transform_16, window_bounds = array<i64: 1, 64, 48>}, {transform_indices = @transform_17, window_bounds = array<i64: 1, 64, 12>}]} {
    %cst = arith.constant 0.000000e+00 : f32
    %0 = vector.broadcast %cst : f32 to vector<1x10x24x32xf32>
    %c0 = arith.constant 0 : index
    %c0_0 = arith.constant 0 : index
    %c0_1 = arith.constant 0 : index
    %c0_2 = arith.constant 0 : index
    %1 = vector.load %arg19[%c0, %c0_0, %c0_1, %c0_2] : memref<1x10x24x32xf32, #tpu.memory_space<vmem>>, vector<1x10x24x32xf32>
    tpu.vector_store %arg19[%c0, %c0_0, %c0_1, %c0_2], %0 {strides = array<i32>} : memref<1x10x24x32xf32, #tpu.memory_space<vmem>>, vector<1x10x24x32xf32>,
    %cst_3 = arith.constant 0.000000e+00 : f32
    %2 = vector.broadcast %cst_3 : f32 to vector<1x10x24x32xf32>
    %c0_4 = arith.constant 0 : index
    %c0_5 = arith.constant 0 : index
    %c0_6 = arith.constant 0 : index
    %c0_7 = arith.constant 0 : index
    %3 = vector.load %arg20[%c0_4, %c0_5, %c0_6, %c0_7] : memref<1x10x24x32xf32, #tpu.memory_space<vmem>>, vector<1x10x24x32xf32>
    tpu.vector_store %arg20[%c0_4, %c0_5, %c0_6, %c0_7], %2 {strides = array<i32>} : memref<1x10x24x32xf32, #tpu.memory_space<vmem>>, vector<1x10x24x32xf32>,
    %c0_8 = arith.constant 0 : index
    %c0_9 = arith.constant 0 : index
    %c0_10 = arith.constant 0 : index
    %c0_11 = arith.constant 0 : index
    %4 = vector.load %arg1[%c0_8, %c0_9, %c0_10, %c0_11] : memref<1x11x11x32xf32, #tpu.memory_space<vmem>>, vector<1x8x8x32xf32>
    %5 = vector.shape_cast %4 : vector<1x8x8x32xf32> to vector<8x8x32xf32>
    %6 = vector.shape_cast %5 : vector<8x8x32xf32> to vector<64x32xf32>
    %c0_12 = arith.constant 0 : index
    %c0_13 = arith.constant 0 : index
    %c1 = arith.constant 1 : index
    %c0_14 = arith.constant 0 : index
    %7 = vector.load %arg1[%c0_12, %c0_13, %c1, %c0_14] : memref<1x11x11x32xf32, #tpu.memory_space<vmem>>, vector<1x8x8x32xf32>
    %8 = vector.shape_cast %7 : vector<1x8x8x32xf32> to vector<8x8x32xf32>
    %9 = vector.shape_cast %8 : vector<8x8x32xf32> to vector<64x32xf32>
    %c0_15 = arith.constant 0 : index
    %c0_16 = arith.constant 0 : index
    %c2 = arith.constant 2 : index
    %c0_17 = arith.constant 0 : index
    %10 = vector.load %arg1[%c0_15, %c0_16, %c2, %c0_17] : memref<1x11x11x32xf32, #tpu.memory_space<vmem>>, vector<1x8x8x32xf32>
    %11 = vector.shape_cast %10 : vector<1x8x8x32xf32> to vector<8x8x32xf32>
    %12 = vector.shape_cast %11 : vector<8x8x32xf32> to vector<64x32xf32>
    %c0_18 = arith.constant 0 : index
    %c0_19 = arith.constant 0 : index
    %c3 = arith.constant 3 : index
    %c0_20 = arith.constant 0 : index
    %13 = vector.load %arg1[%c0_18, %c0_19, %c3, %c0_20] : memref<1x11x11x32xf32, #tpu.memory_space<vmem>>, vector<1x8x8x32xf32>
    %14 = vector.shape_cast %13 : vector<1x8x8x32xf32> to vector<8x8x32xf32>
    %15 = vector.shape_cast %14 : vector<8x8x32xf32> to vector<64x32xf32>
    %c0_21 = arith.constant 0 : index
    %c1_22 = arith.constant 1 : index
    %c0_23 = arith.constant 0 : index
    %c0_24 = arith.constant 0 : index
    %16 = vector.load %arg1[%c0_21, %c1_22, %c0_23, %c0_24] : memref<1x11x11x32xf32, #tpu.memory_space<vmem>>, vector<1x8x8x32xf32>
    %17 = vector.shape_cast %16 : vector<1x8x8x32xf32> to vector<8x8x32xf32>
    %18 = vector.shape_cast %17 : vector<8x8x32xf32> to vector<64x32xf32>
    %c0_25 = arith.constant 0 : index
    %c1_26 = arith.constant 1 : index
    %c1_27 = arith.constant 1 : index
    %c0_28 = arith.constant 0 : index
    %19 = vector.load %arg1[%c0_25, %c1_26, %c1_27, %c0_28] : memref<1x11x11x32xf32, #tpu.memory_space<vmem>>, vector<1x8x8x32xf32>
    %20 = vector.shape_cast %19 : vector<1x8x8x32xf32> to vector<8x8x32xf32>
    %21 = vector.shape_cast %20 : vector<8x8x32xf32> to vector<64x32xf32>
    %c0_29 = arith.constant 0 : index
    %c1_30 = arith.constant 1 : index
    %c2_31 = arith.constant 2 : index
    %c0_32 = arith.constant 0 : index
    %22 = vector.load %arg1[%c0_29, %c1_30, %c2_31, %c0_32] : memref<1x11x11x32xf32, #tpu.memory_space<vmem>>, vector<1x8x8x32xf32>
    %23 = vector.shape_cast %22 : vector<1x8x8x32xf32> to vector<8x8x32xf32>
    %24 = vector.shape_cast %23 : vector<8x8x32xf32> to vector<64x32xf32>
    %c0_33 = arith.constant 0 : index
    %c1_34 = arith.constant 1 : index
    %c3_35 = arith.constant 3 : index
    %c0_36 = arith.constant 0 : index
    %25 = vector.load %arg1[%c0_33, %c1_34, %c3_35, %c0_36] : memref<1x11x11x32xf32, #tpu.memory_space<vmem>>, vector<1x8x8x32xf32>
    %26 = vector.shape_cast %25 : vector<1x8x8x32xf32> to vector<8x8x32xf32>
    %27 = vector.shape_cast %26 : vector<8x8x32xf32> to vector<64x32xf32>
    %c0_37 = arith.constant 0 : index
    %c2_38 = arith.constant 2 : index
    %c0_39 = arith.constant 0 : index
    %c0_40 = arith.constant 0 : index
    %28 = vector.load %arg1[%c0_37, %c2_38, %c0_39, %c0_40] : memref<1x11x11x32xf32, #tpu.memory_space<vmem>>, vector<1x8x8x32xf32>
    %29 = vector.shape_cast %28 : vector<1x8x8x32xf32> to vector<8x8x32xf32>
    %30 = vector.shape_cast %29 : vector<8x8x32xf32> to vector<64x32xf32>
    %c0_41 = arith.constant 0 : index
    %c2_42 = arith.constant 2 : index
    %c1_43 = arith.constant 1 : index
    %c0_44 = arith.constant 0 : index
    %31 = vector.load %arg1[%c0_41, %c2_42, %c1_43, %c0_44] : memref<1x11x11x32xf32, #tpu.memory_space<vmem>>, vector<1x8x8x32xf32>
    %32 = vector.shape_cast %31 : vector<1x8x8x32xf32> to vector<8x8x32xf32>
    %33 = vector.shape_cast %32 : vector<8x8x32xf32> to vector<64x32xf32>
    %c0_45 = arith.constant 0 : index
    %c2_46 = arith.constant 2 : index
    %c2_47 = arith.constant 2 : index
    %c0_48 = arith.constant 0 : index
    %34 = vector.load %arg1[%c0_45, %c2_46, %c2_47, %c0_48] : memref<1x11x11x32xf32, #tpu.memory_space<vmem>>, vector<1x8x8x32xf32>
    %35 = vector.shape_cast %34 : vector<1x8x8x32xf32> to vector<8x8x32xf32>
    %36 = vector.shape_cast %35 : vector<8x8x32xf32> to vector<64x32xf32>
    %c0_49 = arith.constant 0 : index
    %c2_50 = arith.constant 2 : index
    %c3_51 = arith.constant 3 : index
    %c0_52 = arith.constant 0 : index
    %37 = vector.load %arg1[%c0_49, %c2_50, %c3_51, %c0_52] : memref<1x11x11x32xf32, #tpu.memory_space<vmem>>, vector<1x8x8x32xf32>
    %38 = vector.shape_cast %37 : vector<1x8x8x32xf32> to vector<8x8x32xf32>
    %39 = vector.shape_cast %38 : vector<8x8x32xf32> to vector<64x32xf32>
    %c0_53 = arith.constant 0 : index
    %c3_54 = arith.constant 3 : index
    %c0_55 = arith.constant 0 : index
    %c0_56 = arith.constant 0 : index
    %40 = vector.load %arg1[%c0_53, %c3_54, %c0_55, %c0_56] : memref<1x11x11x32xf32, #tpu.memory_space<vmem>>, vector<1x8x8x32xf32>
    %41 = vector.shape_cast %40 : vector<1x8x8x32xf32> to vector<8x8x32xf32>
    %42 = vector.shape_cast %41 : vector<8x8x32xf32> to vector<64x32xf32>
    %c0_57 = arith.constant 0 : index
    %c3_58 = arith.constant 3 : index
    %c1_59 = arith.constant 1 : index
    %c0_60 = arith.constant 0 : index
    %43 = vector.load %arg1[%c0_57, %c3_58, %c1_59, %c0_60] : memref<1x11x11x32xf32, #tpu.memory_space<vmem>>, vector<1x8x8x32xf32>
    %44 = vector.shape_cast %43 : vector<1x8x8x32xf32> to vector<8x8x32xf32>
    %45 = vector.shape_cast %44 : vector<8x8x32xf32> to vector<64x32xf32>
    %c0_61 = arith.constant 0 : index
    %c3_62 = arith.constant 3 : index
    %c2_63 = arith.constant 2 : index
    %c0_64 = arith.constant 0 : index
    %46 = vector.load %arg1[%c0_61, %c3_62, %c2_63, %c0_64] : memref<1x11x11x32xf32, #tpu.memory_space<vmem>>, vector<1x8x8x32xf32>
    %47 = vector.shape_cast %46 : vector<1x8x8x32xf32> to vector<8x8x32xf32>
    %48 = vector.shape_cast %47 : vector<8x8x32xf32> to vector<64x32xf32>
    %c0_65 = arith.constant 0 : index
    %c3_66 = arith.constant 3 : index
    %c3_67 = arith.constant 3 : index
    %c0_68 = arith.constant 0 : index
    %49 = vector.load %arg1[%c0_65, %c3_66, %c3_67, %c0_68] : memref<1x11x11x32xf32, #tpu.memory_space<vmem>>, vector<1x8x8x32xf32>
    %50 = vector.shape_cast %49 : vector<1x8x8x32xf32> to vector<8x8x32xf32>
    %51 = vector.shape_cast %50 : vector<8x8x32xf32> to vector<64x32xf32>
    %52 = tpu.concatenate %6, %9, %12, %15, %18, %21, %24, %27, %30, %33, %36, %39, %42, %45, %48, %51 in 1 : vector<64x32xf32>, vector<64x32xf32>, vector<64x32xf32>, vector<64x32xf32>, vector<64x32xf32>, vector<64x32xf32>, vector<64x32xf32>, vector<64x32xf32>, vector<64x32xf32>, vector<64x32xf32>, vector<64x32xf32>, vector<64x32xf32>, vector<64x32xf32>, vector<64x32xf32>, vector<64x32xf32>, vector<64x32xf32> -> vector<64x512xf32>
    %c0_69 = arith.constant 0 : index
    %c0_70 = arith.constant 0 : index
    %53 = vector.load %arg2[%c0_69, %c0_70] : memref<512x32xf32, #tpu.memory_space<vmem>>, vector<512x32xf32>
    %cst_71 = arith.constant dense<0.000000e+00> : vector<64x32xf32>
    %54 = tpu.matmul %52, %53, %cst_71 {dimension_numbers = #tpu.dot_dimension_numbers<[1], [0], [0], [1], [0, 0, 1, 1], [], []>} : vector<64x512xf32>, vector<512x32xf32>, vector<64x32xf32> -> vector<64x32xf32>
    %c0_72 = arith.constant 0 : index
    %c0_73 = arith.constant 0 : index
    %55 = vector.load %arg3[%c0_72, %c0_73] : memref<1x32xf32, #tpu.memory_space<vmem>>, vector<1x32xf32>
    %56 = vector.broadcast %55 : vector<1x32xf32> to vector<64x32xf32>
    %57 = arith.addf %54, %56 : vector<64x32xf32>
    %58 = vector.shape_cast %57 : vector<64x32xf32> to vector<8x8x32xf32>
    %c0_74 = arith.constant 0 : index
    %c1_75 = arith.constant 1 : index
    %c8 = arith.constant 8 : index
    %c0_76 = arith.constant 0 : index
    %59 = vector.load %arg19[%c0_74, %c1_75, %c8, %c0_76] : memref<1x10x24x32xf32, #tpu.memory_space<vmem>>, vector<1x8x8x32xf32>
    %60 = vector.shape_cast %59 : vector<1x8x8x32xf32> to vector<8x8x32xf32>
    %61 = vector.shape_cast %58 : vector<8x8x32xf32> to vector<1x8x8x32xf32>
    tpu.vector_store %arg19[%c0_74, %c1_75, %c8, %c0_76], %61 {strides = array<i32>} : memref<1x10x24x32xf32, #tpu.memory_space<vmem>>, vector<1x8x8x32xf32>,
    %c0_77 = arith.constant 0 : index
    %c0_78 = arith.constant 0 : index
    %c7 = arith.constant 7 : index
    %c0_79 = arith.constant 0 : index
    %62 = vector.load %arg19[%c0_77, %c0_78, %c7, %c0_79] : memref<1x10x24x32xf32, #tpu.memory_space<vmem>>, vector<1x8x8x32xf32>
    %63 = vector.shape_cast %62 : vector<1x8x8x32xf32> to vector<8x8x32xf32>
    %64 = vector.shape_cast %63 : vector<8x8x32xf32> to vector<64x32xf32>
    %c0_80 = arith.constant 0 : index
    %c0_81 = arith.constant 0 : index
    %c8_82 = arith.constant 8 : index
    %c0_83 = arith.constant 0 : index
    %65 = vector.load %arg19[%c0_80, %c0_81, %c8_82, %c0_83] : memref<1x10x24x32xf32, #tpu.memory_space<vmem>>, vector<1x8x8x32xf32>
    %66 = vector.shape_cast %65 : vector<1x8x8x32xf32> to vector<8x8x32xf32>
    %67 = vector.shape_cast %66 : vector<8x8x32xf32> to vector<64x32xf32>
    %c0_84 = arith.constant 0 : index
    %c0_85 = arith.constant 0 : index
    %c9 = arith.constant 9 : index
    %c0_86 = arith.constant 0 : index
    %68 = vector.load %arg19[%c0_84, %c0_85, %c9, %c0_86] : memref<1x10x24x32xf32, #tpu.memory_space<vmem>>, vector<1x8x8x32xf32>
    %69 = vector.shape_cast %68 : vector<1x8x8x32xf32> to vector<8x8x32xf32>
    %70 = vector.shape_cast %69 : vector<8x8x32xf32> to vector<64x32xf32>
    %c0_87 = arith.constant 0 : index
    %c1_88 = arith.constant 1 : index
    %c7_89 = arith.constant 7 : index
    %c0_90 = arith.constant 0 : index
    %71 = vector.load %arg19[%c0_87, %c1_88, %c7_89, %c0_90] : memref<1x10x24x32xf32, #tpu.memory_space<vmem>>, vector<1x8x8x32xf32>
    %72 = vector.shape_cast %71 : vector<1x8x8x32xf32> to vector<8x8x32xf32>
    %73 = vector.shape_cast %72 : vector<8x8x32xf32> to vector<64x32xf32>
    %c0_91 = arith.constant 0 : index
    %c1_92 = arith.constant 1 : index
    %c8_93 = arith.constant 8 : index
    %c0_94 = arith.constant 0 : index
    %74 = vector.load %arg19[%c0_91, %c1_92, %c8_93, %c0_94] : memref<1x10x24x32xf32, #tpu.memory_space<vmem>>, vector<1x8x8x32xf32>
    %75 = vector.shape_cast %74 : vector<1x8x8x32xf32> to vector<8x8x32xf32>
    %76 = vector.shape_cast %75 : vector<8x8x32xf32> to vector<64x32xf32>
    %c0_95 = arith.constant 0 : index
    %c1_96 = arith.constant 1 : index
    %c9_97 = arith.constant 9 : index
    %c0_98 = arith.constant 0 : index
    %77 = vector.load %arg19[%c0_95, %c1_96, %c9_97, %c0_98] : memref<1x10x24x32xf32, #tpu.memory_space<vmem>>, vector<1x8x8x32xf32>
    %78 = vector.shape_cast %77 : vector<1x8x8x32xf32> to vector<8x8x32xf32>
    %79 = vector.shape_cast %78 : vector<8x8x32xf32> to vector<64x32xf32>
    %c0_99 = arith.constant 0 : index
    %c2_100 = arith.constant 2 : index
    %c7_101 = arith.constant 7 : index
    %c0_102 = arith.constant 0 : index
    %80 = vector.load %arg19[%c0_99, %c2_100, %c7_101, %c0_102] : memref<1x10x24x32xf32, #tpu.memory_space<vmem>>, vector<1x8x8x32xf32>
    %81 = vector.shape_cast %80 : vector<1x8x8x32xf32> to vector<8x8x32xf32>
    %82 = vector.shape_cast %81 : vector<8x8x32xf32> to vector<64x32xf32>
    %c0_103 = arith.constant 0 : index
    %c2_104 = arith.constant 2 : index
    %c8_105 = arith.constant 8 : index
    %c0_106 = arith.constant 0 : index
    %83 = vector.load %arg19[%c0_103, %c2_104, %c8_105, %c0_106] : memref<1x10x24x32xf32, #tpu.memory_space<vmem>>, vector<1x8x8x32xf32>
    %84 = vector.shape_cast %83 : vector<1x8x8x32xf32> to vector<8x8x32xf32>
    %85 = vector.shape_cast %84 : vector<8x8x32xf32> to vector<64x32xf32>
    %c0_107 = arith.constant 0 : index
    %c2_108 = arith.constant 2 : index
    %c9_109 = arith.constant 9 : index
    %c0_110 = arith.constant 0 : index
    %86 = vector.load %arg19[%c0_107, %c2_108, %c9_109, %c0_110] : memref<1x10x24x32xf32, #tpu.memory_space<vmem>>, vector<1x8x8x32xf32>
    %87 = vector.shape_cast %86 : vector<1x8x8x32xf32> to vector<8x8x32xf32>
    %88 = vector.shape_cast %87 : vector<8x8x32xf32> to vector<64x32xf32>
    %89 = tpu.concatenate %64, %67, %70, %73, %76, %79, %82, %85, %88 in 1 : vector<64x32xf32>, vector<64x32xf32>, vector<64x32xf32>, vector<64x32xf32>, vector<64x32xf32>, vector<64x32xf32>, vector<64x32xf32>, vector<64x32xf32>, vector<64x32xf32> -> vector<64x288xf32>
    %c0_111 = arith.constant 0 : index
    %c0_112 = arith.constant 0 : index
    %90 = vector.load %arg4[%c0_111, %c0_112] : memref<288x64xf32, #tpu.memory_space<vmem>>, vector<288x64xf32>
    %cst_113 = arith.constant dense<0.000000e+00> : vector<64x64xf32>
    %91 = tpu.matmul %89, %90, %cst_113 {dimension_numbers = #tpu.dot_dimension_numbers<[1], [0], [0], [1], [0, 0, 1, 1], [], []>} : vector<64x288xf32>, vector<288x64xf32>, vector<64x64xf32> -> vector<64x64xf32>
    %c0_114 = arith.constant 0 : index
    %c0_115 = arith.constant 0 : index
    %92 = vector.load %arg5[%c0_114, %c0_115] : memref<1x64xf32, #tpu.memory_space<vmem>>, vector<1x64xf32>
    %c0_116 = arith.constant 0 : index
    %c0_117 = arith.constant 0 : index
    %93 = vector.load %arg6[%c0_116, %c0_117] : memref<1x64xf32, #tpu.memory_space<vmem>>, vector<1x64xf32>
    %94 = vector.broadcast %92 : vector<1x64xf32> to vector<64x64xf32>
    %95 = arith.mulf %91, %94 : vector<64x64xf32>
    %96 = vector.broadcast %93 : vector<1x64xf32> to vector<64x64xf32>
    %97 = arith.addf %95, %96 : vector<64x64xf32>
    %cst_118 = arith.constant 0.000000e+00 : f32
    %98 = vector.broadcast %cst_118 : f32 to vector<64x64xf32>
    %99 = arith.cmpf ogt, %97, %98 : vector<64x64xf32>
    %cst_119 = arith.constant 0.00999999977 : f32
    %100 = vector.broadcast %cst_119 : f32 to vector<64x64xf32>
    %101 = arith.mulf %100, %97 : vector<64x64xf32>
    %102 = arith.select %99, %97, %101 : vector<64x64xi1>, vector<64x64xf32>
    %103 = vector.extract_strided_slice %102 {offsets = [0, 32], sizes = [64, 32], strides = [1, 1]} : vector<64x64xf32> to vector<64x32xf32>
    %104 = vector.shape_cast %103 : vector<64x32xf32> to vector<8x8x32xf32>
    %c0_120 = arith.constant 0 : index
    %c1_121 = arith.constant 1 : index
    %c8_122 = arith.constant 8 : index
    %c0_123 = arith.constant 0 : index
    %105 = vector.load %arg20[%c0_120, %c1_121, %c8_122, %c0_123] : memref<1x10x24x32xf32, #tpu.memory_space<vmem>>, vector<1x8x8x32xf32>
    %106 = vector.shape_cast %105 : vector<1x8x8x32xf32> to vector<8x8x32xf32>
    %107 = vector.shape_cast %104 : vector<8x8x32xf32> to vector<1x8x8x32xf32>
    tpu.vector_store %arg20[%c0_120, %c1_121, %c8_122, %c0_123], %107 {strides = array<i32>} : memref<1x10x24x32xf32, #tpu.memory_space<vmem>>, vector<1x8x8x32xf32>,
    %108 = vector.extract_strided_slice %102 {offsets = [0, 0], sizes = [64, 32], strides = [1, 1]} : vector<64x64xf32> to vector<64x32xf32>
    %109 = vector.shape_cast %108 : vector<64x32xf32> to vector<8x8x32xf32>
    %c0_124 = arith.constant 0 : index
    %c1_125 = arith.constant 1 : index
    %c8_126 = arith.constant 8 : index
    %c0_127 = arith.constant 0 : index
    %110 = vector.load %arg19[%c0_124, %c1_125, %c8_126, %c0_127] : memref<1x10x24x32xf32, #tpu.memory_space<vmem>>, vector<1x8x8x32xf32>
    %111 = vector.shape_cast %110 : vector<1x8x8x32xf32> to vector<8x8x32xf32>
    %112 = vector.shape_cast %109 : vector<8x8x32xf32> to vector<1x8x8x32xf32>
    tpu.vector_store %arg19[%c0_124, %c1_125, %c8_126, %c0_127], %112 {strides = array<i32>} : memref<1x10x24x32xf32, #tpu.memory_space<vmem>>, vector<1x8x8x32xf32>,
    %c0_128 = arith.constant 0 : index
    %c0_129 = arith.constant 0 : index
    %c7_130 = arith.constant 7 : index
    %c0_131 = arith.constant 0 : index
    %113 = vector.load %arg19[%c0_128, %c0_129, %c7_130, %c0_131] : memref<1x10x24x32xf32, #tpu.memory_space<vmem>>, vector<1x8x8x32xf32>
    %114 = vector.shape_cast %113 : vector<1x8x8x32xf32> to vector<8x8x32xf32>
    %115 = vector.shape_cast %114 : vector<8x8x32xf32> to vector<64x32xf32>
    %c0_132 = arith.constant 0 : index
    %c0_133 = arith.constant 0 : index
    %c8_134 = arith.constant 8 : index
    %c0_135 = arith.constant 0 : index
    %116 = vector.load %arg19[%c0_132, %c0_133, %c8_134, %c0_135] : memref<1x10x24x32xf32, #tpu.memory_space<vmem>>, vector<1x8x8x32xf32>
    %117 = vector.shape_cast %116 : vector<1x8x8x32xf32> to vector<8x8x32xf32>
    %118 = vector.shape_cast %117 : vector<8x8x32xf32> to vector<64x32xf32>
    %c0_136 = arith.constant 0 : index
    %c0_137 = arith.constant 0 : index
    %c9_138 = arith.constant 9 : index
    %c0_139 = arith.constant 0 : index
    %119 = vector.load %arg19[%c0_136, %c0_137, %c9_138, %c0_139] : memref<1x10x24x32xf32, #tpu.memory_space<vmem>>, vector<1x8x8x32xf32>
    %120 = vector.shape_cast %119 : vector<1x8x8x32xf32> to vector<8x8x32xf32>
    %121 = vector.shape_cast %120 : vector<8x8x32xf32> to vector<64x32xf32>
    %c0_140 = arith.constant 0 : index
    %c1_141 = arith.constant 1 : index
    %c7_142 = arith.constant 7 : index
    %c0_143 = arith.constant 0 : index
    %122 = vector.load %arg19[%c0_140, %c1_141, %c7_142, %c0_143] : memref<1x10x24x32xf32, #tpu.memory_space<vmem>>, vector<1x8x8x32xf32>
    %123 = vector.shape_cast %122 : vector<1x8x8x32xf32> to vector<8x8x32xf32>
    %124 = vector.shape_cast %123 : vector<8x8x32xf32> to vector<64x32xf32>
    %c0_144 = arith.constant 0 : index
    %c1_145 = arith.constant 1 : index
    %c8_146 = arith.constant 8 : index
    %c0_147 = arith.constant 0 : index
    %125 = vector.load %arg19[%c0_144, %c1_145, %c8_146, %c0_147] : memref<1x10x24x32xf32, #tpu.memory_space<vmem>>, vector<1x8x8x32xf32>
    %126 = vector.shape_cast %125 : vector<1x8x8x32xf32> to vector<8x8x32xf32>
    %127 = vector.shape_cast %126 : vector<8x8x32xf32> to vector<64x32xf32>
    %c0_148 = arith.constant 0 : index
    %c1_149 = arith.constant 1 : index
    %c9_150 = arith.constant 9 : index
    %c0_151 = arith.constant 0 : index
    %128 = vector.load %arg19[%c0_148, %c1_149, %c9_150, %c0_151] : memref<1x10x24x32xf32, #tpu.memory_space<vmem>>, vector<1x8x8x32xf32>
    %129 = vector.shape_cast %128 : vector<1x8x8x32xf32> to vector<8x8x32xf32>
    %130 = vector.shape_cast %129 : vector<8x8x32xf32> to vector<64x32xf32>
    %c0_152 = arith.constant 0 : index
    %c2_153 = arith.constant 2 : index
    %c7_154 = arith.constant 7 : index
    %c0_155 = arith.constant 0 : index
    %131 = vector.load %arg19[%c0_152, %c2_153, %c7_154, %c0_155] : memref<1x10x24x32xf32, #tpu.memory_space<vmem>>, vector<1x8x8x32xf32>
    %132 = vector.shape_cast %131 : vector<1x8x8x32xf32> to vector<8x8x32xf32>
    %133 = vector.shape_cast %132 : vector<8x8x32xf32> to vector<64x32xf32>
    %c0_156 = arith.constant 0 : index
    %c2_157 = arith.constant 2 : index
    %c8_158 = arith.constant 8 : index
    %c0_159 = arith.constant 0 : index
    %134 = vector.load %arg19[%c0_156, %c2_157, %c8_158, %c0_159] : memref<1x10x24x32xf32, #tpu.memory_space<vmem>>, vector<1x8x8x32xf32>
    %135 = vector.shape_cast %134 : vector<1x8x8x32xf32> to vector<8x8x32xf32>
    %136 = vector.shape_cast %135 : vector<8x8x32xf32> to vector<64x32xf32>
    %c0_160 = arith.constant 0 : index
    %c2_161 = arith.constant 2 : index
    %c9_162 = arith.constant 9 : index
    %c0_163 = arith.constant 0 : index
    %137 = vector.load %arg19[%c0_160, %c2_161, %c9_162, %c0_163] : memref<1x10x24x32xf32, #tpu.memory_space<vmem>>, vector<1x8x8x32xf32>
    %138 = vector.shape_cast %137 : vector<1x8x8x32xf32> to vector<8x8x32xf32>
    %139 = vector.shape_cast %138 : vector<8x8x32xf32> to vector<64x32xf32>
    %140 = tpu.concatenate %115, %118, %121, %124, %127, %130, %133, %136, %139 in 1 : vector<64x32xf32>, vector<64x32xf32>, vector<64x32xf32>, vector<64x32xf32>, vector<64x32xf32>, vector<64x32xf32>, vector<64x32xf32>, vector<64x32xf32>, vector<64x32xf32> -> vector<64x288xf32>
    %c0_164 = arith.constant 0 : index
    %c0_165 = arith.constant 0 : index
    %c0_166 = arith.constant 0 : index
    %141 = vector.load %arg7[%c0_164, %c0_165, %c0_166] : memref<3x288x32xf32, #tpu.memory_space<vmem>>, vector<1x288x32xf32>
    %142 = vector.shape_cast %141 : vector<1x288x32xf32> to vector<288x32xf32>
    %cst_167 = arith.constant dense<0.000000e+00> : vector<64x32xf32>
    %143 = tpu.matmul %140, %142, %cst_167 {dimension_numbers = #tpu.dot_dimension_numbers<[1], [0], [0], [1], [0, 0, 1, 1], [], []>} : vector<64x288xf32>, vector<288x32xf32>, vector<64x32xf32> -> vector<64x32xf32>
    %c0_168 = arith.constant 0 : index
    %c0_169 = arith.constant 0 : index
    %144 = vector.load %arg8[%c0_168, %c0_169] : memref<3x32xf32, #tpu.memory_space<vmem>>, vector<1x32xf32>
    %c0_170 = arith.constant 0 : index
    %c0_171 = arith.constant 0 : index
    %145 = vector.load %arg9[%c0_170, %c0_171] : memref<3x32xf32, #tpu.memory_space<vmem>>, vector<1x32xf32>
    %146 = vector.broadcast %144 : vector<1x32xf32> to vector<64x32xf32>
    %147 = arith.mulf %143, %146 : vector<64x32xf32>
    %148 = vector.broadcast %145 : vector<1x32xf32> to vector<64x32xf32>
    %149 = arith.addf %147, %148 : vector<64x32xf32>
    %cst_172 = arith.constant 0.000000e+00 : f32
    %150 = vector.broadcast %cst_172 : f32 to vector<64x32xf32>
    %151 = arith.cmpf ogt, %149, %150 : vector<64x32xf32>
    %cst_173 = arith.constant 0.00999999977 : f32
    %152 = vector.broadcast %cst_173 : f32 to vector<64x32xf32>
    %153 = arith.mulf %152, %149 : vector<64x32xf32>
    %154 = arith.select %151, %149, %153 : vector<64x32xi1>, vector<64x32xf32>
    %155 = vector.shape_cast %154 : vector<64x32xf32> to vector<8x8x32xf32>
    %c0_174 = arith.constant 0 : index
    %c1_175 = arith.constant 1 : index
    %c8_176 = arith.constant 8 : index
    %c0_177 = arith.constant 0 : index
    %156 = vector.load %arg19[%c0_174, %c1_175, %c8_176, %c0_177] : memref<1x10x24x32xf32, #tpu.memory_space<vmem>>, vector<1x8x8x32xf32>
    %157 = vector.shape_cast %156 : vector<1x8x8x32xf32> to vector<8x8x32xf32>
    %158 = vector.shape_cast %155 : vector<8x8x32xf32> to vector<1x8x8x32xf32>
    tpu.vector_store %arg19[%c0_174, %c1_175, %c8_176, %c0_177], %158 {strides = array<i32>} : memref<1x10x24x32xf32, #tpu.memory_space<vmem>>, vector<1x8x8x32xf32>,
    %c0_178 = arith.constant 0 : index
    %c0_179 = arith.constant 0 : index
    %c7_180 = arith.constant 7 : index
    %c0_181 = arith.constant 0 : index
    %159 = vector.load %arg19[%c0_178, %c0_179, %c7_180, %c0_181] : memref<1x10x24x32xf32, #tpu.memory_space<vmem>>, vector<1x8x8x32xf32>
    %160 = vector.shape_cast %159 : vector<1x8x8x32xf32> to vector<8x8x32xf32>
    %161 = vector.shape_cast %160 : vector<8x8x32xf32> to vector<64x32xf32>
    %c0_182 = arith.constant 0 : index
    %c0_183 = arith.constant 0 : index
    %c8_184 = arith.constant 8 : index
    %c0_185 = arith.constant 0 : index
    %162 = vector.load %arg19[%c0_182, %c0_183, %c8_184, %c0_185] : memref<1x10x24x32xf32, #tpu.memory_space<vmem>>, vector<1x8x8x32xf32>
    %163 = vector.shape_cast %162 : vector<1x8x8x32xf32> to vector<8x8x32xf32>
    %164 = vector.shape_cast %163 : vector<8x8x32xf32> to vector<64x32xf32>
    %c0_186 = arith.constant 0 : index
    %c0_187 = arith.constant 0 : index
    %c9_188 = arith.constant 9 : index
    %c0_189 = arith.constant 0 : index
    %165 = vector.load %arg19[%c0_186, %c0_187, %c9_188, %c0_189] : memref<1x10x24x32xf32, #tpu.memory_space<vmem>>, vector<1x8x8x32xf32>
    %166 = vector.shape_cast %165 : vector<1x8x8x32xf32> to vector<8x8x32xf32>
    %167 = vector.shape_cast %166 : vector<8x8x32xf32> to vector<64x32xf32>
    %c0_190 = arith.constant 0 : index
    %c1_191 = arith.constant 1 : index
    %c7_192 = arith.constant 7 : index
    %c0_193 = arith.constant 0 : index
    %168 = vector.load %arg19[%c0_190, %c1_191, %c7_192, %c0_193] : memref<1x10x24x32xf32, #tpu.memory_space<vmem>>, vector<1x8x8x32xf32>
    %169 = vector.shape_cast %168 : vector<1x8x8x32xf32> to vector<8x8x32xf32>
    %170 = vector.shape_cast %169 : vector<8x8x32xf32> to vector<64x32xf32>
    %c0_194 = arith.constant 0 : index
    %c1_195 = arith.constant 1 : index
    %c8_196 = arith.constant 8 : index
    %c0_197 = arith.constant 0 : index
    %171 = vector.load %arg19[%c0_194, %c1_195, %c8_196, %c0_197] : memref<1x10x24x32xf32, #tpu.memory_space<vmem>>, vector<1x8x8x32xf32>
    %172 = vector.shape_cast %171 : vector<1x8x8x32xf32> to vector<8x8x32xf32>
    %173 = vector.shape_cast %172 : vector<8x8x32xf32> to vector<64x32xf32>
    %c0_198 = arith.constant 0 : index
    %c1_199 = arith.constant 1 : index
    %c9_200 = arith.constant 9 : index
    %c0_201 = arith.constant 0 : index
    %174 = vector.load %arg19[%c0_198, %c1_199, %c9_200, %c0_201] : memref<1x10x24x32xf32, #tpu.memory_space<vmem>>, vector<1x8x8x32xf32>
    %175 = vector.shape_cast %174 : vector<1x8x8x32xf32> to vector<8x8x32xf32>
    %176 = vector.shape_cast %175 : vector<8x8x32xf32> to vector<64x32xf32>
    %c0_202 = arith.constant 0 : index
    %c2_203 = arith.constant 2 : index
    %c7_204 = arith.constant 7 : index
    %c0_205 = arith.constant 0 : index
    %177 = vector.load %arg19[%c0_202, %c2_203, %c7_204, %c0_205] : memref<1x10x24x32xf32, #tpu.memory_space<vmem>>, vector<1x8x8x32xf32>
    %178 = vector.shape_cast %177 : vector<1x8x8x32xf32> to vector<8x8x32xf32>
    %179 = vector.shape_cast %178 : vector<8x8x32xf32> to vector<64x32xf32>
    %c0_206 = arith.constant 0 : index
    %c2_207 = arith.constant 2 : index
    %c8_208 = arith.constant 8 : index
    %c0_209 = arith.constant 0 : index
    %180 = vector.load %arg19[%c0_206, %c2_207, %c8_208, %c0_209] : memref<1x10x24x32xf32, #tpu.memory_space<vmem>>, vector<1x8x8x32xf32>
    %181 = vector.shape_cast %180 : vector<1x8x8x32xf32> to vector<8x8x32xf32>
    %182 = vector.shape_cast %181 : vector<8x8x32xf32> to vector<64x32xf32>
    %c0_210 = arith.constant 0 : index
    %c2_211 = arith.constant 2 : index
    %c9_212 = arith.constant 9 : index
    %c0_213 = arith.constant 0 : index
    %183 = vector.load %arg19[%c0_210, %c2_211, %c9_212, %c0_213] : memref<1x10x24x32xf32, #tpu.memory_space<vmem>>, vector<1x8x8x32xf32>
    %184 = vector.shape_cast %183 : vector<1x8x8x32xf32> to vector<8x8x32xf32>
    %185 = vector.shape_cast %184 : vector<8x8x32xf32> to vector<64x32xf32>
    %186 = tpu.concatenate %161, %164, %167, %170, %173, %176, %179, %182, %185 in 1 : vector<64x32xf32>, vector<64x32xf32>, vector<64x32xf32>, vector<64x32xf32>, vector<64x32xf32>, vector<64x32xf32>, vector<64x32xf32>, vector<64x32xf32>, vector<64x32xf32> -> vector<64x288xf32>
    %c1_214 = arith.constant 1 : index
    %c0_215 = arith.constant 0 : index
    %c0_216 = arith.constant 0 : index
    %187 = vector.load %arg7[%c1_214, %c0_215, %c0_216] : memref<3x288x32xf32, #tpu.memory_space<vmem>>, vector<1x288x32xf32>
    %188 = vector.shape_cast %187 : vector<1x288x32xf32> to vector<288x32xf32>
    %cst_217 = arith.constant dense<0.000000e+00> : vector<64x32xf32>
    %189 = tpu.matmul %186, %188, %cst_217 {dimension_numbers = #tpu.dot_dimension_numbers<[1], [0], [0], [1], [0, 0, 1, 1], [], []>} : vector<64x288xf32>, vector<288x32xf32>, vector<64x32xf32> -> vector<64x32xf32>
    %c1_218 = arith.constant 1 : index
    %c0_219 = arith.constant 0 : index
    %190 = vector.load %arg8[%c1_218, %c0_219] : memref<3x32xf32, #tpu.memory_space<vmem>>, vector<1x32xf32>
    %c1_220 = arith.constant 1 : index
    %c0_221 = arith.constant 0 : index
    %191 = vector.load %arg9[%c1_220, %c0_221] : memref<3x32xf32, #tpu.memory_space<vmem>>, vector<1x32xf32>
    %192 = vector.broadcast %190 : vector<1x32xf32> to vector<64x32xf32>
    %193 = arith.mulf %189, %192 : vector<64x32xf32>
    %194 = vector.broadcast %191 : vector<1x32xf32> to vector<64x32xf32>
    %195 = arith.addf %193, %194 : vector<64x32xf32>
    %cst_222 = arith.constant 0.000000e+00 : f32
    %196 = vector.broadcast %cst_222 : f32 to vector<64x32xf32>
    %197 = arith.cmpf ogt, %195, %196 : vector<64x32xf32>
    %cst_223 = arith.constant 0.00999999977 : f32
    %198 = vector.broadcast %cst_223 : f32 to vector<64x32xf32>
    %199 = arith.mulf %198, %195 : vector<64x32xf32>
    %200 = arith.select %197, %195, %199 : vector<64x32xi1>, vector<64x32xf32>
    %201 = vector.shape_cast %200 : vector<64x32xf32> to vector<8x8x32xf32>
    %c0_224 = arith.constant 0 : index
    %c1_225 = arith.constant 1 : index
    %c8_226 = arith.constant 8 : index
    %c0_227 = arith.constant 0 : index
    %202 = vector.load %arg19[%c0_224, %c1_225, %c8_226, %c0_227] : memref<1x10x24x32xf32, #tpu.memory_space<vmem>>, vector<1x8x8x32xf32>
    %203 = vector.shape_cast %202 : vector<1x8x8x32xf32> to vector<8x8x32xf32>
    %204 = vector.shape_cast %201 : vector<8x8x32xf32> to vector<1x8x8x32xf32>
    tpu.vector_store %arg19[%c0_224, %c1_225, %c8_226, %c0_227], %204 {strides = array<i32>} : memref<1x10x24x32xf32, #tpu.memory_space<vmem>>, vector<1x8x8x32xf32>,
    %c0_228 = arith.constant 0 : index
    %c0_229 = arith.constant 0 : index
    %c7_230 = arith.constant 7 : index
    %c0_231 = arith.constant 0 : index
    %205 = vector.load %arg19[%c0_228, %c0_229, %c7_230, %c0_231] : memref<1x10x24x32xf32, #tpu.memory_space<vmem>>, vector<1x8x8x32xf32>
    %206 = vector.shape_cast %205 : vector<1x8x8x32xf32> to vector<8x8x32xf32>
    %207 = vector.shape_cast %206 : vector<8x8x32xf32> to vector<64x32xf32>
    %c0_232 = arith.constant 0 : index
    %c0_233 = arith.constant 0 : index
    %c8_234 = arith.constant 8 : index
    %c0_235 = arith.constant 0 : index
    %208 = vector.load %arg19[%c0_232, %c0_233, %c8_234, %c0_235] : memref<1x10x24x32xf32, #tpu.memory_space<vmem>>, vector<1x8x8x32xf32>
    %209 = vector.shape_cast %208 : vector<1x8x8x32xf32> to vector<8x8x32xf32>
    %210 = vector.shape_cast %209 : vector<8x8x32xf32> to vector<64x32xf32>
    %c0_236 = arith.constant 0 : index
    %c0_237 = arith.constant 0 : index
    %c9_238 = arith.constant 9 : index
    %c0_239 = arith.constant 0 : index
    %211 = vector.load %arg19[%c0_236, %c0_237, %c9_238, %c0_239] : memref<1x10x24x32xf32, #tpu.memory_space<vmem>>, vector<1x8x8x32xf32>
    %212 = vector.shape_cast %211 : vector<1x8x8x32xf32> to vector<8x8x32xf32>
    %213 = vector.shape_cast %212 : vector<8x8x32xf32> to vector<64x32xf32>
    %c0_240 = arith.constant 0 : index
    %c1_241 = arith.constant 1 : index
    %c7_242 = arith.constant 7 : index
    %c0_243 = arith.constant 0 : index
    %214 = vector.load %arg19[%c0_240, %c1_241, %c7_242, %c0_243] : memref<1x10x24x32xf32, #tpu.memory_space<vmem>>, vector<1x8x8x32xf32>
    %215 = vector.shape_cast %214 : vector<1x8x8x32xf32> to vector<8x8x32xf32>
    %216 = vector.shape_cast %215 : vector<8x8x32xf32> to vector<64x32xf32>
    %c0_244 = arith.constant 0 : index
    %c1_245 = arith.constant 1 : index
    %c8_246 = arith.constant 8 : index
    %c0_247 = arith.constant 0 : index
    %217 = vector.load %arg19[%c0_244, %c1_245, %c8_246, %c0_247] : memref<1x10x24x32xf32, #tpu.memory_space<vmem>>, vector<1x8x8x32xf32>
    %218 = vector.shape_cast %217 : vector<1x8x8x32xf32> to vector<8x8x32xf32>
    %219 = vector.shape_cast %218 : vector<8x8x32xf32> to vector<64x32xf32>
    %c0_248 = arith.constant 0 : index
    %c1_249 = arith.constant 1 : index
    %c9_250 = arith.constant 9 : index
    %c0_251 = arith.constant 0 : index
    %220 = vector.load %arg19[%c0_248, %c1_249, %c9_250, %c0_251] : memref<1x10x24x32xf32, #tpu.memory_space<vmem>>, vector<1x8x8x32xf32>
    %221 = vector.shape_cast %220 : vector<1x8x8x32xf32> to vector<8x8x32xf32>
    %222 = vector.shape_cast %221 : vector<8x8x32xf32> to vector<64x32xf32>
    %c0_252 = arith.constant 0 : index
    %c2_253 = arith.constant 2 : index
    %c7_254 = arith.constant 7 : index
    %c0_255 = arith.constant 0 : index
    %223 = vector.load %arg19[%c0_252, %c2_253, %c7_254, %c0_255] : memref<1x10x24x32xf32, #tpu.memory_space<vmem>>, vector<1x8x8x32xf32>
    %224 = vector.shape_cast %223 : vector<1x8x8x32xf32> to vector<8x8x32xf32>
    %225 = vector.shape_cast %224 : vector<8x8x32xf32> to vector<64x32xf32>
    %c0_256 = arith.constant 0 : index
    %c2_257 = arith.constant 2 : index
    %c8_258 = arith.constant 8 : index
    %c0_259 = arith.constant 0 : index
    %226 = vector.load %arg19[%c0_256, %c2_257, %c8_258, %c0_259] : memref<1x10x24x32xf32, #tpu.memory_space<vmem>>, vector<1x8x8x32xf32>
    %227 = vector.shape_cast %226 : vector<1x8x8x32xf32> to vector<8x8x32xf32>
    %228 = vector.shape_cast %227 : vector<8x8x32xf32> to vector<64x32xf32>
    %c0_260 = arith.constant 0 : index
    %c2_261 = arith.constant 2 : index
    %c9_262 = arith.constant 9 : index
    %c0_263 = arith.constant 0 : index
    %229 = vector.load %arg19[%c0_260, %c2_261, %c9_262, %c0_263] : memref<1x10x24x32xf32, #tpu.memory_space<vmem>>, vector<1x8x8x32xf32>
    %230 = vector.shape_cast %229 : vector<1x8x8x32xf32> to vector<8x8x32xf32>
    %231 = vector.shape_cast %230 : vector<8x8x32xf32> to vector<64x32xf32>
    %232 = tpu.concatenate %207, %210, %213, %216, %219, %222, %225, %228, %231 in 1 : vector<64x32xf32>, vector<64x32xf32>, vector<64x32xf32>, vector<64x32xf32>, vector<64x32xf32>, vector<64x32xf32>, vector<64x32xf32>, vector<64x32xf32>, vector<64x32xf32> -> vector<64x288xf32>
    %c2_264 = arith.constant 2 : index
    %c0_265 = arith.constant 0 : index
    %c0_266 = arith.constant 0 : index
    %233 = vector.load %arg7[%c2_264, %c0_265, %c0_266] : memref<3x288x32xf32, #tpu.memory_space<vmem>>, vector<1x288x32xf32>
    %234 = vector.shape_cast %233 : vector<1x288x32xf32> to vector<288x32xf32>
    %cst_267 = arith.constant dense<0.000000e+00> : vector<64x32xf32>
    %235 = tpu.matmul %232, %234, %cst_267 {dimension_numbers = #tpu.dot_dimension_numbers<[1], [0], [0], [1], [0, 0, 1, 1], [], []>} : vector<64x288xf32>, vector<288x32xf32>, vector<64x32xf32> -> vector<64x32xf32>
    %c2_268 = arith.constant 2 : index
    %c0_269 = arith.constant 0 : index
    %236 = vector.load %arg8[%c2_268, %c0_269] : memref<3x32xf32, #tpu.memory_space<vmem>>, vector<1x32xf32>
    %c2_270 = arith.constant 2 : index
    %c0_271 = arith.constant 0 : index
    %237 = vector.load %arg9[%c2_270, %c0_271] : memref<3x32xf32, #tpu.memory_space<vmem>>, vector<1x32xf32>
    %238 = vector.broadcast %236 : vector<1x32xf32> to vector<64x32xf32>
    %239 = arith.mulf %235, %238 : vector<64x32xf32>
    %240 = vector.broadcast %237 : vector<1x32xf32> to vector<64x32xf32>
    %241 = arith.addf %239, %240 : vector<64x32xf32>
    %cst_272 = arith.constant 0.000000e+00 : f32
    %242 = vector.broadcast %cst_272 : f32 to vector<64x32xf32>
    %243 = arith.cmpf ogt, %241, %242 : vector<64x32xf32>
    %cst_273 = arith.constant 0.00999999977 : f32
    %244 = vector.broadcast %cst_273 : f32 to vector<64x32xf32>
    %245 = arith.mulf %244, %241 : vector<64x32xf32>
    %246 = arith.select %243, %241, %245 : vector<64x32xi1>, vector<64x32xf32>
    %247 = vector.shape_cast %246 : vector<64x32xf32> to vector<8x8x32xf32>
    %c0_274 = arith.constant 0 : index
    %c1_275 = arith.constant 1 : index
    %c8_276 = arith.constant 8 : index
    %c0_277 = arith.constant 0 : index
    %248 = vector.load %arg19[%c0_274, %c1_275, %c8_276, %c0_277] : memref<1x10x24x32xf32, #tpu.memory_space<vmem>>, vector<1x8x8x32xf32>
    %249 = vector.shape_cast %248 : vector<1x8x8x32xf32> to vector<8x8x32xf32>
    %250 = vector.shape_cast %247 : vector<8x8x32xf32> to vector<1x8x8x32xf32>
    tpu.vector_store %arg19[%c0_274, %c1_275, %c8_276, %c0_277], %250 {strides = array<i32>} : memref<1x10x24x32xf32, #tpu.memory_space<vmem>>, vector<1x8x8x32xf32>,
    %c0_278 = arith.constant 0 : index
    %c0_279 = arith.constant 0 : index
    %c7_280 = arith.constant 7 : index
    %c0_281 = arith.constant 0 : index
    %251 = vector.load %arg19[%c0_278, %c0_279, %c7_280, %c0_281] : memref<1x10x24x32xf32, #tpu.memory_space<vmem>>, vector<1x8x8x32xf32>
    %252 = vector.shape_cast %251 : vector<1x8x8x32xf32> to vector<8x8x32xf32>
    %253 = vector.shape_cast %252 : vector<8x8x32xf32> to vector<64x32xf32>
    %c0_282 = arith.constant 0 : index
    %c0_283 = arith.constant 0 : index
    %c8_284 = arith.constant 8 : index
    %c0_285 = arith.constant 0 : index
    %254 = vector.load %arg19[%c0_282, %c0_283, %c8_284, %c0_285] : memref<1x10x24x32xf32, #tpu.memory_space<vmem>>, vector<1x8x8x32xf32>
    %255 = vector.shape_cast %254 : vector<1x8x8x32xf32> to vector<8x8x32xf32>
    %256 = vector.shape_cast %255 : vector<8x8x32xf32> to vector<64x32xf32>
    %c0_286 = arith.constant 0 : index
    %c0_287 = arith.constant 0 : index
    %c9_288 = arith.constant 9 : index
    %c0_289 = arith.constant 0 : index
    %257 = vector.load %arg19[%c0_286, %c0_287, %c9_288, %c0_289] : memref<1x10x24x32xf32, #tpu.memory_space<vmem>>, vector<1x8x8x32xf32>
    %258 = vector.shape_cast %257 : vector<1x8x8x32xf32> to vector<8x8x32xf32>
    %259 = vector.shape_cast %258 : vector<8x8x32xf32> to vector<64x32xf32>
    %c0_290 = arith.constant 0 : index
    %c1_291 = arith.constant 1 : index
    %c7_292 = arith.constant 7 : index
    %c0_293 = arith.constant 0 : index
    %260 = vector.load %arg19[%c0_290, %c1_291, %c7_292, %c0_293] : memref<1x10x24x32xf32, #tpu.memory_space<vmem>>, vector<1x8x8x32xf32>
    %261 = vector.shape_cast %260 : vector<1x8x8x32xf32> to vector<8x8x32xf32>
    %262 = vector.shape_cast %261 : vector<8x8x32xf32> to vector<64x32xf32>
    %c0_294 = arith.constant 0 : index
    %c1_295 = arith.constant 1 : index
    %c8_296 = arith.constant 8 : index
    %c0_297 = arith.constant 0 : index
    %263 = vector.load %arg19[%c0_294, %c1_295, %c8_296, %c0_297] : memref<1x10x24x32xf32, #tpu.memory_space<vmem>>, vector<1x8x8x32xf32>
    %264 = vector.shape_cast %263 : vector<1x8x8x32xf32> to vector<8x8x32xf32>
    %265 = vector.shape_cast %264 : vector<8x8x32xf32> to vector<64x32xf32>
    %c0_298 = arith.constant 0 : index
    %c1_299 = arith.constant 1 : index
    %c9_300 = arith.constant 9 : index
    %c0_301 = arith.constant 0 : index
    %266 = vector.load %arg19[%c0_298, %c1_299, %c9_300, %c0_301] : memref<1x10x24x32xf32, #tpu.memory_space<vmem>>, vector<1x8x8x32xf32>
    %267 = vector.shape_cast %266 : vector<1x8x8x32xf32> to vector<8x8x32xf32>
    %268 = vector.shape_cast %267 : vector<8x8x32xf32> to vector<64x32xf32>
    %c0_302 = arith.constant 0 : index
    %c2_303 = arith.constant 2 : index
    %c7_304 = arith.constant 7 : index
    %c0_305 = arith.constant 0 : index
    %269 = vector.load %arg19[%c0_302, %c2_303, %c7_304, %c0_305] : memref<1x10x24x32xf32, #tpu.memory_space<vmem>>, vector<1x8x8x32xf32>
    %270 = vector.shape_cast %269 : vector<1x8x8x32xf32> to vector<8x8x32xf32>
    %271 = vector.shape_cast %270 : vector<8x8x32xf32> to vector<64x32xf32>
    %c0_306 = arith.constant 0 : index
    %c2_307 = arith.constant 2 : index
    %c8_308 = arith.constant 8 : index
    %c0_309 = arith.constant 0 : index
    %272 = vector.load %arg19[%c0_306, %c2_307, %c8_308, %c0_309] : memref<1x10x24x32xf32, #tpu.memory_space<vmem>>, vector<1x8x8x32xf32>
    %273 = vector.shape_cast %272 : vector<1x8x8x32xf32> to vector<8x8x32xf32>
    %274 = vector.shape_cast %273 : vector<8x8x32xf32> to vector<64x32xf32>
    %c0_310 = arith.constant 0 : index
    %c2_311 = arith.constant 2 : index
    %c9_312 = arith.constant 9 : index
    %c0_313 = arith.constant 0 : index
    %275 = vector.load %arg19[%c0_310, %c2_311, %c9_312, %c0_313] : memref<1x10x24x32xf32, #tpu.memory_space<vmem>>, vector<1x8x8x32xf32>
    %276 = vector.shape_cast %275 : vector<1x8x8x32xf32> to vector<8x8x32xf32>
    %277 = vector.shape_cast %276 : vector<8x8x32xf32> to vector<64x32xf32>
    %278 = tpu.concatenate %253, %256, %259, %262, %265, %268, %271, %274, %277 in 1 : vector<64x32xf32>, vector<64x32xf32>, vector<64x32xf32>, vector<64x32xf32>, vector<64x32xf32>, vector<64x32xf32>, vector<64x32xf32>, vector<64x32xf32>, vector<64x32xf32> -> vector<64x288xf32>
    %c0_314 = arith.constant 0 : index
    %c0_315 = arith.constant 0 : index
    %279 = vector.load %arg13[%c0_314, %c0_315] : memref<288x48xf32, #tpu.memory_space<vmem>>, vector<288x48xf32>
    %cst_316 = arith.constant dense<0.000000e+00> : vector<64x48xf32>
    %280 = tpu.matmul %278, %279, %cst_316 {dimension_numbers = #tpu.dot_dimension_numbers<[1], [0], [0], [1], [0, 0, 1, 1], [], []>} : vector<64x288xf32>, vector<288x48xf32>, vector<64x48xf32> -> vector<64x48xf32>
    %c0_317 = arith.constant 0 : index
    %c0_318 = arith.constant 0 : index
    %281 = vector.load %arg14[%c0_317, %c0_318] : memref<1x48xf32, #tpu.memory_space<vmem>>, vector<1x48xf32>
    %282 = vector.broadcast %281 : vector<1x48xf32> to vector<64x48xf32>
    %283 = arith.addf %280, %282 : vector<64x48xf32>
    %c0_319 = arith.constant 0 : index
    %c0_320 = arith.constant 0 : index
    %c0_321 = arith.constant 0 : index
    %284 = vector.load %arg17[%c0_319, %c0_320, %c0_321] : memref<1x64x48xf32, #tpu.memory_space<vmem>>, vector<1x64x48xf32>
    %285 = vector.shape_cast %284 : vector<1x64x48xf32> to vector<64x48xf32>
    %286 = vector.shape_cast %283 : vector<64x48xf32> to vector<1x64x48xf32>
    tpu.vector_store %arg17[%c0_319, %c0_320, %c0_321], %286 {strides = array<i32>} : memref<1x64x48xf32, #tpu.memory_space<vmem>>, vector<1x64x48xf32>,
    %c0_322 = arith.constant 0 : index
    %c0_323 = arith.constant 0 : index
    %c7_324 = arith.constant 7 : index
    %c0_325 = arith.constant 0 : index
    %287 = vector.load %arg20[%c0_322, %c0_323, %c7_324, %c0_325] : memref<1x10x24x32xf32, #tpu.memory_space<vmem>>, vector<1x8x8x32xf32>
    %288 = vector.shape_cast %287 : vector<1x8x8x32xf32> to vector<8x8x32xf32>
    %289 = vector.shape_cast %288 : vector<8x8x32xf32> to vector<64x32xf32>
    %c0_326 = arith.constant 0 : index
    %c0_327 = arith.constant 0 : index
    %c8_328 = arith.constant 8 : index
    %c0_329 = arith.constant 0 : index
    %290 = vector.load %arg20[%c0_326, %c0_327, %c8_328, %c0_329] : memref<1x10x24x32xf32, #tpu.memory_space<vmem>>, vector<1x8x8x32xf32>
    %291 = vector.shape_cast %290 : vector<1x8x8x32xf32> to vector<8x8x32xf32>
    %292 = vector.shape_cast %291 : vector<8x8x32xf32> to vector<64x32xf32>
    %c0_330 = arith.constant 0 : index
    %c0_331 = arith.constant 0 : index
    %c9_332 = arith.constant 9 : index
    %c0_333 = arith.constant 0 : index
    %293 = vector.load %arg20[%c0_330, %c0_331, %c9_332, %c0_333] : memref<1x10x24x32xf32, #tpu.memory_space<vmem>>, vector<1x8x8x32xf32>
    %294 = vector.shape_cast %293 : vector<1x8x8x32xf32> to vector<8x8x32xf32>
    %295 = vector.shape_cast %294 : vector<8x8x32xf32> to vector<64x32xf32>
    %c0_334 = arith.constant 0 : index
    %c1_335 = arith.constant 1 : index
    %c7_336 = arith.constant 7 : index
    %c0_337 = arith.constant 0 : index
    %296 = vector.load %arg20[%c0_334, %c1_335, %c7_336, %c0_337] : memref<1x10x24x32xf32, #tpu.memory_space<vmem>>, vector<1x8x8x32xf32>
    %297 = vector.shape_cast %296 : vector<1x8x8x32xf32> to vector<8x8x32xf32>
    %298 = vector.shape_cast %297 : vector<8x8x32xf32> to vector<64x32xf32>
    %c0_338 = arith.constant 0 : index
    %c1_339 = arith.constant 1 : index
    %c8_340 = arith.constant 8 : index
    %c0_341 = arith.constant 0 : index
    %299 = vector.load %arg20[%c0_338, %c1_339, %c8_340, %c0_341] : memref<1x10x24x32xf32, #tpu.memory_space<vmem>>, vector<1x8x8x32xf32>
    %300 = vector.shape_cast %299 : vector<1x8x8x32xf32> to vector<8x8x32xf32>
    %301 = vector.shape_cast %300 : vector<8x8x32xf32> to vector<64x32xf32>
    %c0_342 = arith.constant 0 : index
    %c1_343 = arith.constant 1 : index
    %c9_344 = arith.constant 9 : index
    %c0_345 = arith.constant 0 : index
    %302 = vector.load %arg20[%c0_342, %c1_343, %c9_344, %c0_345] : memref<1x10x24x32xf32, #tpu.memory_space<vmem>>, vector<1x8x8x32xf32>
    %303 = vector.shape_cast %302 : vector<1x8x8x32xf32> to vector<8x8x32xf32>
    %304 = vector.shape_cast %303 : vector<8x8x32xf32> to vector<64x32xf32>
    %c0_346 = arith.constant 0 : index
    %c2_347 = arith.constant 2 : index
    %c7_348 = arith.constant 7 : index
    %c0_349 = arith.constant 0 : index
    %305 = vector.load %arg20[%c0_346, %c2_347, %c7_348, %c0_349] : memref<1x10x24x32xf32, #tpu.memory_space<vmem>>, vector<1x8x8x32xf32>
    %306 = vector.shape_cast %305 : vector<1x8x8x32xf32> to vector<8x8x32xf32>
    %307 = vector.shape_cast %306 : vector<8x8x32xf32> to vector<64x32xf32>
    %c0_350 = arith.constant 0 : index
    %c2_351 = arith.constant 2 : index
    %c8_352 = arith.constant 8 : index
    %c0_353 = arith.constant 0 : index
    %308 = vector.load %arg20[%c0_350, %c2_351, %c8_352, %c0_353] : memref<1x10x24x32xf32, #tpu.memory_space<vmem>>, vector<1x8x8x32xf32>
    %309 = vector.shape_cast %308 : vector<1x8x8x32xf32> to vector<8x8x32xf32>
    %310 = vector.shape_cast %309 : vector<8x8x32xf32> to vector<64x32xf32>
    %c0_354 = arith.constant 0 : index
    %c2_355 = arith.constant 2 : index
    %c9_356 = arith.constant 9 : index
    %c0_357 = arith.constant 0 : index
    %311 = vector.load %arg20[%c0_354, %c2_355, %c9_356, %c0_357] : memref<1x10x24x32xf32, #tpu.memory_space<vmem>>, vector<1x8x8x32xf32>
    %312 = vector.shape_cast %311 : vector<1x8x8x32xf32> to vector<8x8x32xf32>
    %313 = vector.shape_cast %312 : vector<8x8x32xf32> to vector<64x32xf32>
    %314 = tpu.concatenate %289, %292, %295, %298, %301, %304, %307, %310, %313 in 1 : vector<64x32xf32>, vector<64x32xf32>, vector<64x32xf32>, vector<64x32xf32>, vector<64x32xf32>, vector<64x32xf32>, vector<64x32xf32>, vector<64x32xf32>, vector<64x32xf32> -> vector<64x288xf32>
    %c0_358 = arith.constant 0 : index
    %c0_359 = arith.constant 0 : index
    %c0_360 = arith.constant 0 : index
    %315 = vector.load %arg10[%c0_358, %c0_359, %c0_360] : memref<3x288x32xf32, #tpu.memory_space<vmem>>, vector<1x288x32xf32>
    %316 = vector.shape_cast %315 : vector<1x288x32xf32> to vector<288x32xf32>
    %cst_361 = arith.constant dense<0.000000e+00> : vector<64x32xf32>
    %317 = tpu.matmul %314, %316, %cst_361 {dimension_numbers = #tpu.dot_dimension_numbers<[1], [0], [0], [1], [0, 0, 1, 1], [], []>} : vector<64x288xf32>, vector<288x32xf32>, vector<64x32xf32> -> vector<64x32xf32>
    %c0_362 = arith.constant 0 : index
    %c0_363 = arith.constant 0 : index
    %318 = vector.load %arg11[%c0_362, %c0_363] : memref<3x32xf32, #tpu.memory_space<vmem>>, vector<1x32xf32>
    %c0_364 = arith.constant 0 : index
    %c0_365 = arith.constant 0 : index
    %319 = vector.load %arg12[%c0_364, %c0_365] : memref<3x32xf32, #tpu.memory_space<vmem>>, vector<1x32xf32>
    %320 = vector.broadcast %318 : vector<1x32xf32> to vector<64x32xf32>
    %321 = arith.mulf %317, %320 : vector<64x32xf32>
    %322 = vector.broadcast %319 : vector<1x32xf32> to vector<64x32xf32>
    %323 = arith.addf %321, %322 : vector<64x32xf32>
    %cst_366 = arith.constant 0.000000e+00 : f32
    %324 = vector.broadcast %cst_366 : f32 to vector<64x32xf32>
    %325 = arith.cmpf ogt, %323, %324 : vector<64x32xf32>
    %cst_367 = arith.constant 0.00999999977 : f32
    %326 = vector.broadcast %cst_367 : f32 to vector<64x32xf32>
    %327 = arith.mulf %326, %323 : vector<64x32xf32>
    %328 = arith.select %325, %323, %327 : vector<64x32xi1>, vector<64x32xf32>
    %329 = vector.shape_cast %328 : vector<64x32xf32> to vector<8x8x32xf32>
    %c0_368 = arith.constant 0 : index
    %c1_369 = arith.constant 1 : index
    %c8_370 = arith.constant 8 : index
    %c0_371 = arith.constant 0 : index
    %330 = vector.load %arg20[%c0_368, %c1_369, %c8_370, %c0_371] : memref<1x10x24x32xf32, #tpu.memory_space<vmem>>, vector<1x8x8x32xf32>
    %331 = vector.shape_cast %330 : vector<1x8x8x32xf32> to vector<8x8x32xf32>
    %332 = vector.shape_cast %329 : vector<8x8x32xf32> to vector<1x8x8x32xf32>
    tpu.vector_store %arg20[%c0_368, %c1_369, %c8_370, %c0_371], %332 {strides = array<i32>} : memref<1x10x24x32xf32, #tpu.memory_space<vmem>>, vector<1x8x8x32xf32>,
    %c0_372 = arith.constant 0 : index
    %c0_373 = arith.constant 0 : index
    %c7_374 = arith.constant 7 : index
    %c0_375 = arith.constant 0 : index
    %333 = vector.load %arg20[%c0_372, %c0_373, %c7_374, %c0_375] : memref<1x10x24x32xf32, #tpu.memory_space<vmem>>, vector<1x8x8x32xf32>
    %334 = vector.shape_cast %333 : vector<1x8x8x32xf32> to vector<8x8x32xf32>
    %335 = vector.shape_cast %334 : vector<8x8x32xf32> to vector<64x32xf32>
    %c0_376 = arith.constant 0 : index
    %c0_377 = arith.constant 0 : index
    %c8_378 = arith.constant 8 : index
    %c0_379 = arith.constant 0 : index
    %336 = vector.load %arg20[%c0_376, %c0_377, %c8_378, %c0_379] : memref<1x10x24x32xf32, #tpu.memory_space<vmem>>, vector<1x8x8x32xf32>
    %337 = vector.shape_cast %336 : vector<1x8x8x32xf32> to vector<8x8x32xf32>
    %338 = vector.shape_cast %337 : vector<8x8x32xf32> to vector<64x32xf32>
    %c0_380 = arith.constant 0 : index
    %c0_381 = arith.constant 0 : index
    %c9_382 = arith.constant 9 : index
    %c0_383 = arith.constant 0 : index
    %339 = vector.load %arg20[%c0_380, %c0_381, %c9_382, %c0_383] : memref<1x10x24x32xf32, #tpu.memory_space<vmem>>, vector<1x8x8x32xf32>
    %340 = vector.shape_cast %339 : vector<1x8x8x32xf32> to vector<8x8x32xf32>
    %341 = vector.shape_cast %340 : vector<8x8x32xf32> to vector<64x32xf32>
    %c0_384 = arith.constant 0 : index
    %c1_385 = arith.constant 1 : index
    %c7_386 = arith.constant 7 : index
    %c0_387 = arith.constant 0 : index
    %342 = vector.load %arg20[%c0_384, %c1_385, %c7_386, %c0_387] : memref<1x10x24x32xf32, #tpu.memory_space<vmem>>, vector<1x8x8x32xf32>
    %343 = vector.shape_cast %342 : vector<1x8x8x32xf32> to vector<8x8x32xf32>
    %344 = vector.shape_cast %343 : vector<8x8x32xf32> to vector<64x32xf32>
    %c0_388 = arith.constant 0 : index
    %c1_389 = arith.constant 1 : index
    %c8_390 = arith.constant 8 : index
    %c0_391 = arith.constant 0 : index
    %345 = vector.load %arg20[%c0_388, %c1_389, %c8_390, %c0_391] : memref<1x10x24x32xf32, #tpu.memory_space<vmem>>, vector<1x8x8x32xf32>
    %346 = vector.shape_cast %345 : vector<1x8x8x32xf32> to vector<8x8x32xf32>
    %347 = vector.shape_cast %346 : vector<8x8x32xf32> to vector<64x32xf32>
    %c0_392 = arith.constant 0 : index
    %c1_393 = arith.constant 1 : index
    %c9_394 = arith.constant 9 : index
    %c0_395 = arith.constant 0 : index
    %348 = vector.load %arg20[%c0_392, %c1_393, %c9_394, %c0_395] : memref<1x10x24x32xf32, #tpu.memory_space<vmem>>, vector<1x8x8x32xf32>
    %349 = vector.shape_cast %348 : vector<1x8x8x32xf32> to vector<8x8x32xf32>
    %350 = vector.shape_cast %349 : vector<8x8x32xf32> to vector<64x32xf32>
    %c0_396 = arith.constant 0 : index
    %c2_397 = arith.constant 2 : index
    %c7_398 = arith.constant 7 : index
    %c0_399 = arith.constant 0 : index
    %351 = vector.load %arg20[%c0_396, %c2_397, %c7_398, %c0_399] : memref<1x10x24x32xf32, #tpu.memory_space<vmem>>, vector<1x8x8x32xf32>
    %352 = vector.shape_cast %351 : vector<1x8x8x32xf32> to vector<8x8x32xf32>
    %353 = vector.shape_cast %352 : vector<8x8x32xf32> to vector<64x32xf32>
    %c0_400 = arith.constant 0 : index
    %c2_401 = arith.constant 2 : index
    %c8_402 = arith.constant 8 : index
    %c0_403 = arith.constant 0 : index
    %354 = vector.load %arg20[%c0_400, %c2_401, %c8_402, %c0_403] : memref<1x10x24x32xf32, #tpu.memory_space<vmem>>, vector<1x8x8x32xf32>
    %355 = vector.shape_cast %354 : vector<1x8x8x32xf32> to vector<8x8x32xf32>
    %356 = vector.shape_cast %355 : vector<8x8x32xf32> to vector<64x32xf32>
    %c0_404 = arith.constant 0 : index
    %c2_405 = arith.constant 2 : index
    %c9_406 = arith.constant 9 : index
    %c0_407 = arith.constant 0 : index
    %357 = vector.load %arg20[%c0_404, %c2_405, %c9_406, %c0_407] : memref<1x10x24x32xf32, #tpu.memory_space<vmem>>, vector<1x8x8x32xf32>
    %358 = vector.shape_cast %357 : vector<1x8x8x32xf32> to vector<8x8x32xf32>
    %359 = vector.shape_cast %358 : vector<8x8x32xf32> to vector<64x32xf32>
    %360 = tpu.concatenate %335, %338, %341, %344, %347, %350, %353, %356, %359 in 1 : vector<64x32xf32>, vector<64x32xf32>, vector<64x32xf32>, vector<64x32xf32>, vector<64x32xf32>, vector<64x32xf32>, vector<64x32xf32>, vector<64x32xf32>, vector<64x32xf32> -> vector<64x288xf32>
    %c1_408 = arith.constant 1 : index
    %c0_409 = arith.constant 0 : index
    %c0_410 = arith.constant 0 : index
    %361 = vector.load %arg10[%c1_408, %c0_409, %c0_410] : memref<3x288x32xf32, #tpu.memory_space<vmem>>, vector<1x288x32xf32>
    %362 = vector.shape_cast %361 : vector<1x288x32xf32> to vector<288x32xf32>
    %cst_411 = arith.constant dense<0.000000e+00> : vector<64x32xf32>
    %363 = tpu.matmul %360, %362, %cst_411 {dimension_numbers = #tpu.dot_dimension_numbers<[1], [0], [0], [1], [0, 0, 1, 1], [], []>} : vector<64x288xf32>, vector<288x32xf32>, vector<64x32xf32> -> vector<64x32xf32>
    %c1_412 = arith.constant 1 : index
    %c0_413 = arith.constant 0 : index
    %364 = vector.load %arg11[%c1_412, %c0_413] : memref<3x32xf32, #tpu.memory_space<vmem>>, vector<1x32xf32>
    %c1_414 = arith.constant 1 : index
    %c0_415 = arith.constant 0 : index
    %365 = vector.load %arg12[%c1_414, %c0_415] : memref<3x32xf32, #tpu.memory_space<vmem>>, vector<1x32xf32>
    %366 = vector.broadcast %364 : vector<1x32xf32> to vector<64x32xf32>
    %367 = arith.mulf %363, %366 : vector<64x32xf32>
    %368 = vector.broadcast %365 : vector<1x32xf32> to vector<64x32xf32>
    %369 = arith.addf %367, %368 : vector<64x32xf32>
    %cst_416 = arith.constant 0.000000e+00 : f32
    %370 = vector.broadcast %cst_416 : f32 to vector<64x32xf32>
    %371 = arith.cmpf ogt, %369, %370 : vector<64x32xf32>
    %cst_417 = arith.constant 0.00999999977 : f32
    %372 = vector.broadcast %cst_417 : f32 to vector<64x32xf32>
    %373 = arith.mulf %372, %369 : vector<64x32xf32>
    %374 = arith.select %371, %369, %373 : vector<64x32xi1>, vector<64x32xf32>
    %375 = vector.shape_cast %374 : vector<64x32xf32> to vector<8x8x32xf32>
    %c0_418 = arith.constant 0 : index
    %c1_419 = arith.constant 1 : index
    %c8_420 = arith.constant 8 : index
    %c0_421 = arith.constant 0 : index
    %376 = vector.load %arg20[%c0_418, %c1_419, %c8_420, %c0_421] : memref<1x10x24x32xf32, #tpu.memory_space<vmem>>, vector<1x8x8x32xf32>
    %377 = vector.shape_cast %376 : vector<1x8x8x32xf32> to vector<8x8x32xf32>
    %378 = vector.shape_cast %375 : vector<8x8x32xf32> to vector<1x8x8x32xf32>
    tpu.vector_store %arg20[%c0_418, %c1_419, %c8_420, %c0_421], %378 {strides = array<i32>} : memref<1x10x24x32xf32, #tpu.memory_space<vmem>>, vector<1x8x8x32xf32>,
    %c0_422 = arith.constant 0 : index
    %c0_423 = arith.constant 0 : index
    %c7_424 = arith.constant 7 : index
    %c0_425 = arith.constant 0 : index
    %379 = vector.load %arg20[%c0_422, %c0_423, %c7_424, %c0_425] : memref<1x10x24x32xf32, #tpu.memory_space<vmem>>, vector<1x8x8x32xf32>
    %380 = vector.shape_cast %379 : vector<1x8x8x32xf32> to vector<8x8x32xf32>
    %381 = vector.shape_cast %380 : vector<8x8x32xf32> to vector<64x32xf32>
    %c0_426 = arith.constant 0 : index
    %c0_427 = arith.constant 0 : index
    %c8_428 = arith.constant 8 : index
    %c0_429 = arith.constant 0 : index
    %382 = vector.load %arg20[%c0_426, %c0_427, %c8_428, %c0_429] : memref<1x10x24x32xf32, #tpu.memory_space<vmem>>, vector<1x8x8x32xf32>
    %383 = vector.shape_cast %382 : vector<1x8x8x32xf32> to vector<8x8x32xf32>
    %384 = vector.shape_cast %383 : vector<8x8x32xf32> to vector<64x32xf32>
    %c0_430 = arith.constant 0 : index
    %c0_431 = arith.constant 0 : index
    %c9_432 = arith.constant 9 : index
    %c0_433 = arith.constant 0 : index
    %385 = vector.load %arg20[%c0_430, %c0_431, %c9_432, %c0_433] : memref<1x10x24x32xf32, #tpu.memory_space<vmem>>, vector<1x8x8x32xf32>
    %386 = vector.shape_cast %385 : vector<1x8x8x32xf32> to vector<8x8x32xf32>
    %387 = vector.shape_cast %386 : vector<8x8x32xf32> to vector<64x32xf32>
    %c0_434 = arith.constant 0 : index
    %c1_435 = arith.constant 1 : index
    %c7_436 = arith.constant 7 : index
    %c0_437 = arith.constant 0 : index
    %388 = vector.load %arg20[%c0_434, %c1_435, %c7_436, %c0_437] : memref<1x10x24x32xf32, #tpu.memory_space<vmem>>, vector<1x8x8x32xf32>
    %389 = vector.shape_cast %388 : vector<1x8x8x32xf32> to vector<8x8x32xf32>
    %390 = vector.shape_cast %389 : vector<8x8x32xf32> to vector<64x32xf32>
    %c0_438 = arith.constant 0 : index
    %c1_439 = arith.constant 1 : index
    %c8_440 = arith.constant 8 : index
    %c0_441 = arith.constant 0 : index
    %391 = vector.load %arg20[%c0_438, %c1_439, %c8_440, %c0_441] : memref<1x10x24x32xf32, #tpu.memory_space<vmem>>, vector<1x8x8x32xf32>
    %392 = vector.shape_cast %391 : vector<1x8x8x32xf32> to vector<8x8x32xf32>
    %393 = vector.shape_cast %392 : vector<8x8x32xf32> to vector<64x32xf32>
    %c0_442 = arith.constant 0 : index
    %c1_443 = arith.constant 1 : index
    %c9_444 = arith.constant 9 : index
    %c0_445 = arith.constant 0 : index
    %394 = vector.load %arg20[%c0_442, %c1_443, %c9_444, %c0_445] : memref<1x10x24x32xf32, #tpu.memory_space<vmem>>, vector<1x8x8x32xf32>
    %395 = vector.shape_cast %394 : vector<1x8x8x32xf32> to vector<8x8x32xf32>
    %396 = vector.shape_cast %395 : vector<8x8x32xf32> to vector<64x32xf32>
    %c0_446 = arith.constant 0 : index
    %c2_447 = arith.constant 2 : index
    %c7_448 = arith.constant 7 : index
    %c0_449 = arith.constant 0 : index
    %397 = vector.load %arg20[%c0_446, %c2_447, %c7_448, %c0_449] : memref<1x10x24x32xf32, #tpu.memory_space<vmem>>, vector<1x8x8x32xf32>
    %398 = vector.shape_cast %397 : vector<1x8x8x32xf32> to vector<8x8x32xf32>
    %399 = vector.shape_cast %398 : vector<8x8x32xf32> to vector<64x32xf32>
    %c0_450 = arith.constant 0 : index
    %c2_451 = arith.constant 2 : index
    %c8_452 = arith.constant 8 : index
    %c0_453 = arith.constant 0 : index
    %400 = vector.load %arg20[%c0_450, %c2_451, %c8_452, %c0_453] : memref<1x10x24x32xf32, #tpu.memory_space<vmem>>, vector<1x8x8x32xf32>
    %401 = vector.shape_cast %400 : vector<1x8x8x32xf32> to vector<8x8x32xf32>
    %402 = vector.shape_cast %401 : vector<8x8x32xf32> to vector<64x32xf32>
    %c0_454 = arith.constant 0 : index
    %c2_455 = arith.constant 2 : index
    %c9_456 = arith.constant 9 : index
    %c0_457 = arith.constant 0 : index
    %403 = vector.load %arg20[%c0_454, %c2_455, %c9_456, %c0_457] : memref<1x10x24x32xf32, #tpu.memory_space<vmem>>, vector<1x8x8x32xf32>
    %404 = vector.shape_cast %403 : vector<1x8x8x32xf32> to vector<8x8x32xf32>
    %405 = vector.shape_cast %404 : vector<8x8x32xf32> to vector<64x32xf32>
    %406 = tpu.concatenate %381, %384, %387, %390, %393, %396, %399, %402, %405 in 1 : vector<64x32xf32>, vector<64x32xf32>, vector<64x32xf32>, vector<64x32xf32>, vector<64x32xf32>, vector<64x32xf32>, vector<64x32xf32>, vector<64x32xf32>, vector<64x32xf32> -> vector<64x288xf32>
    %c2_458 = arith.constant 2 : index
    %c0_459 = arith.constant 0 : index
    %c0_460 = arith.constant 0 : index
    %407 = vector.load %arg10[%c2_458, %c0_459, %c0_460] : memref<3x288x32xf32, #tpu.memory_space<vmem>>, vector<1x288x32xf32>
    %408 = vector.shape_cast %407 : vector<1x288x32xf32> to vector<288x32xf32>
    %cst_461 = arith.constant dense<0.000000e+00> : vector<64x32xf32>
    %409 = tpu.matmul %406, %408, %cst_461 {dimension_numbers = #tpu.dot_dimension_numbers<[1], [0], [0], [1], [0, 0, 1, 1], [], []>} : vector<64x288xf32>, vector<288x32xf32>, vector<64x32xf32> -> vector<64x32xf32>
    %c2_462 = arith.constant 2 : index
    %c0_463 = arith.constant 0 : index
    %410 = vector.load %arg11[%c2_462, %c0_463] : memref<3x32xf32, #tpu.memory_space<vmem>>, vector<1x32xf32>
    %c2_464 = arith.constant 2 : index
    %c0_465 = arith.constant 0 : index
    %411 = vector.load %arg12[%c2_464, %c0_465] : memref<3x32xf32, #tpu.memory_space<vmem>>, vector<1x32xf32>
    %412 = vector.broadcast %410 : vector<1x32xf32> to vector<64x32xf32>
    %413 = arith.mulf %409, %412 : vector<64x32xf32>
    %414 = vector.broadcast %411 : vector<1x32xf32> to vector<64x32xf32>
    %415 = arith.addf %413, %414 : vector<64x32xf32>
    %cst_466 = arith.constant 0.000000e+00 : f32
    %416 = vector.broadcast %cst_466 : f32 to vector<64x32xf32>
    %417 = arith.cmpf ogt, %415, %416 : vector<64x32xf32>
    %cst_467 = arith.constant 0.00999999977 : f32
    %418 = vector.broadcast %cst_467 : f32 to vector<64x32xf32>
    %419 = arith.mulf %418, %415 : vector<64x32xf32>
    %420 = arith.select %417, %415, %419 : vector<64x32xi1>, vector<64x32xf32>
    %421 = vector.shape_cast %420 : vector<64x32xf32> to vector<8x8x32xf32>
    %c0_468 = arith.constant 0 : index
    %c1_469 = arith.constant 1 : index
    %c8_470 = arith.constant 8 : index
    %c0_471 = arith.constant 0 : index
    %422 = vector.load %arg20[%c0_468, %c1_469, %c8_470, %c0_471] : memref<1x10x24x32xf32, #tpu.memory_space<vmem>>, vector<1x8x8x32xf32>
    %423 = vector.shape_cast %422 : vector<1x8x8x32xf32> to vector<8x8x32xf32>
    %424 = vector.shape_cast %421 : vector<8x8x32xf32> to vector<1x8x8x32xf32>
    tpu.vector_store %arg20[%c0_468, %c1_469, %c8_470, %c0_471], %424 {strides = array<i32>} : memref<1x10x24x32xf32, #tpu.memory_space<vmem>>, vector<1x8x8x32xf32>,
    %c0_472 = arith.constant 0 : index
    %c0_473 = arith.constant 0 : index
    %c7_474 = arith.constant 7 : index
    %c0_475 = arith.constant 0 : index
    %425 = vector.load %arg20[%c0_472, %c0_473, %c7_474, %c0_475] : memref<1x10x24x32xf32, #tpu.memory_space<vmem>>, vector<1x8x8x32xf32>
    %426 = vector.shape_cast %425 : vector<1x8x8x32xf32> to vector<8x8x32xf32>
    %427 = vector.shape_cast %426 : vector<8x8x32xf32> to vector<64x32xf32>
    %c0_476 = arith.constant 0 : index
    %c0_477 = arith.constant 0 : index
    %c8_478 = arith.constant 8 : index
    %c0_479 = arith.constant 0 : index
    %428 = vector.load %arg20[%c0_476, %c0_477, %c8_478, %c0_479] : memref<1x10x24x32xf32, #tpu.memory_space<vmem>>, vector<1x8x8x32xf32>
    %429 = vector.shape_cast %428 : vector<1x8x8x32xf32> to vector<8x8x32xf32>
    %430 = vector.shape_cast %429 : vector<8x8x32xf32> to vector<64x32xf32>
    %c0_480 = arith.constant 0 : index
    %c0_481 = arith.constant 0 : index
    %c9_482 = arith.constant 9 : index
    %c0_483 = arith.constant 0 : index
    %431 = vector.load %arg20[%c0_480, %c0_481, %c9_482, %c0_483] : memref<1x10x24x32xf32, #tpu.memory_space<vmem>>, vector<1x8x8x32xf32>
    %432 = vector.shape_cast %431 : vector<1x8x8x32xf32> to vector<8x8x32xf32>
    %433 = vector.shape_cast %432 : vector<8x8x32xf32> to vector<64x32xf32>
    %c0_484 = arith.constant 0 : index
    %c1_485 = arith.constant 1 : index
    %c7_486 = arith.constant 7 : index
    %c0_487 = arith.constant 0 : index
    %434 = vector.load %arg20[%c0_484, %c1_485, %c7_486, %c0_487] : memref<1x10x24x32xf32, #tpu.memory_space<vmem>>, vector<1x8x8x32xf32>
    %435 = vector.shape_cast %434 : vector<1x8x8x32xf32> to vector<8x8x32xf32>
    %436 = vector.shape_cast %435 : vector<8x8x32xf32> to vector<64x32xf32>
    %c0_488 = arith.constant 0 : index
    %c1_489 = arith.constant 1 : index
    %c8_490 = arith.constant 8 : index
    %c0_491 = arith.constant 0 : index
    %437 = vector.load %arg20[%c0_488, %c1_489, %c8_490, %c0_491] : memref<1x10x24x32xf32, #tpu.memory_space<vmem>>, vector<1x8x8x32xf32>
    %438 = vector.shape_cast %437 : vector<1x8x8x32xf32> to vector<8x8x32xf32>
    %439 = vector.shape_cast %438 : vector<8x8x32xf32> to vector<64x32xf32>
    %c0_492 = arith.constant 0 : index
    %c1_493 = arith.constant 1 : index
    %c9_494 = arith.constant 9 : index
    %c0_495 = arith.constant 0 : index
    %440 = vector.load %arg20[%c0_492, %c1_493, %c9_494, %c0_495] : memref<1x10x24x32xf32, #tpu.memory_space<vmem>>, vector<1x8x8x32xf32>
    %441 = vector.shape_cast %440 : vector<1x8x8x32xf32> to vector<8x8x32xf32>
    %442 = vector.shape_cast %441 : vector<8x8x32xf32> to vector<64x32xf32>
    %c0_496 = arith.constant 0 : index
    %c2_497 = arith.constant 2 : index
    %c7_498 = arith.constant 7 : index
    %c0_499 = arith.constant 0 : index
    %443 = vector.load %arg20[%c0_496, %c2_497, %c7_498, %c0_499] : memref<1x10x24x32xf32, #tpu.memory_space<vmem>>, vector<1x8x8x32xf32>
    %444 = vector.shape_cast %443 : vector<1x8x8x32xf32> to vector<8x8x32xf32>
    %445 = vector.shape_cast %444 : vector<8x8x32xf32> to vector<64x32xf32>
    %c0_500 = arith.constant 0 : index
    %c2_501 = arith.constant 2 : index
    %c8_502 = arith.constant 8 : index
    %c0_503 = arith.constant 0 : index
    %446 = vector.load %arg20[%c0_500, %c2_501, %c8_502, %c0_503] : memref<1x10x24x32xf32, #tpu.memory_space<vmem>>, vector<1x8x8x32xf32>
    %447 = vector.shape_cast %446 : vector<1x8x8x32xf32> to vector<8x8x32xf32>
    %448 = vector.shape_cast %447 : vector<8x8x32xf32> to vector<64x32xf32>
    %c0_504 = arith.constant 0 : index
    %c2_505 = arith.constant 2 : index
    %c9_506 = arith.constant 9 : index
    %c0_507 = arith.constant 0 : index
    %449 = vector.load %arg20[%c0_504, %c2_505, %c9_506, %c0_507] : memref<1x10x24x32xf32, #tpu.memory_space<vmem>>, vector<1x8x8x32xf32>
    %450 = vector.shape_cast %449 : vector<1x8x8x32xf32> to vector<8x8x32xf32>
    %451 = vector.shape_cast %450 : vector<8x8x32xf32> to vector<64x32xf32>
    %452 = tpu.concatenate %427, %430, %433, %436, %439, %442, %445, %448, %451 in 1 : vector<64x32xf32>, vector<64x32xf32>, vector<64x32xf32>, vector<64x32xf32>, vector<64x32xf32>, vector<64x32xf32>, vector<64x32xf32>, vector<64x32xf32>, vector<64x32xf32> -> vector<64x288xf32>
    %c0_508 = arith.constant 0 : index
    %c0_509 = arith.constant 0 : index
    %453 = vector.load %arg15[%c0_508, %c0_509] : memref<288x12xf32, #tpu.memory_space<vmem>>, vector<288x12xf32>
    %cst_510 = arith.constant dense<0.000000e+00> : vector<64x12xf32>
    %454 = tpu.matmul %452, %453, %cst_510 {dimension_numbers = #tpu.dot_dimension_numbers<[1], [0], [0], [1], [0, 0, 1, 1], [], []>} : vector<64x288xf32>, vector<288x12xf32>, vector<64x12xf32> -> vector<64x12xf32>
    %c0_511 = arith.constant 0 : index
    %c0_512 = arith.constant 0 : index
    %455 = vector.load %arg16[%c0_511, %c0_512] : memref<1x12xf32, #tpu.memory_space<vmem>>, vector<1x12xf32>
    %456 = vector.broadcast %455 : vector<1x12xf32> to vector<64x12xf32>
    %457 = arith.addf %454, %456 : vector<64x12xf32>
    %c0_513 = arith.constant 0 : index
    %c0_514 = arith.constant 0 : index
    %c0_515 = arith.constant 0 : index
    %458 = vector.load %arg18[%c0_513, %c0_514, %c0_515] : memref<1x64x12xf32, #tpu.memory_space<vmem>>, vector<1x64x12xf32>
    %459 = vector.shape_cast %458 : vector<1x64x12xf32> to vector<64x12xf32>
    %460 = vector.shape_cast %457 : vector<64x12xf32> to vector<1x64x12xf32>
    tpu.vector_store %arg18[%c0_513, %c0_514, %c0_515], %460 {strides = array<i32>} : memref<1x64x12xf32, #tpu.memory_space<vmem>>, vector<1x64x12xf32>,
    return
  }
  func.func @transform_0(%arg0: i32) -> (i32, i32, i32, i32) {
    %c0_i32 = arith.constant 0 : i32
    %c0_i32_0 = arith.constant 0 : i32
    %c0_i32_1 = arith.constant 0 : i32
    %c0_i32_2 = arith.constant 0 : i32
    return %arg0, %c0_i32, %c0_i32_0, %c0_i32_1 : i32, i32, i32, i32
  }
  func.func @transform_1(%arg0: i32) -> (i32, i32) {
    %c0_i32 = arith.constant 0 : i32
    %c0_i32_0 = arith.constant 0 : i32
    %c0_i32_1 = arith.constant 0 : i32
    return %c0_i32, %c0_i32_0 : i32, i32
  }
  func.func @transform_2(%arg0: i32) -> (i32, i32) {
    %c0_i32 = arith.constant 0 : i32
    %c0_i32_0 = arith.constant 0 : i32
    %c0_i32_1 = arith.constant 0 : i32
    return %c0_i32, %c0_i32_0 : i32, i32
  }
  func.func @transform_3(%arg0: i32) -> (i32, i32) {
    %c0_i32 = arith.constant 0 : i32
    %c0_i32_0 = arith.constant 0 : i32
    %c0_i32_1 = arith.constant 0 : i32
    return %c0_i32, %c0_i32_0 : i32, i32
  }
  func.func @transform_4(%arg0: i32) -> (i32, i32) {
    %c0_i32 = arith.constant 0 : i32
    %c0_i32_0 = arith.constant 0 : i32
    %c0_i32_1 = arith.constant 0 : i32
    return %c0_i32, %c0_i32_0 : i32, i32
  }
  func.func @transform_5(%arg0: i32) -> (i32, i32) {
    %c0_i32 = arith.constant 0 : i32
    %c0_i32_0 = arith.constant 0 : i32
    %c0_i32_1 = arith.constant 0 : i32
    return %c0_i32, %c0_i32_0 : i32, i32
  }
  func.func @transform_6(%arg0: i32) -> (i32, i32, i32) {
    %c0_i32 = arith.constant 0 : i32
    %c0_i32_0 = arith.constant 0 : i32
    %c0_i32_1 = arith.constant 0 : i32
    %c0_i32_2 = arith.constant 0 : i32
    return %c0_i32, %c0_i32_0, %c0_i32_1 : i32, i32, i32
  }
  func.func @transform_7(%arg0: i32) -> (i32, i32) {
    %c0_i32 = arith.constant 0 : i32
    %c0_i32_0 = arith.constant 0 : i32
    %c0_i32_1 = arith.constant 0 : i32
    return %c0_i32, %c0_i32_0 : i32, i32
  }
  func.func @transform_8(%arg0: i32) -> (i32, i32) {
    %c0_i32 = arith.constant 0 : i32
    %c0_i32_0 = arith.constant 0 : i32
    %c0_i32_1 = arith.constant 0 : i32
    return %c0_i32, %c0_i32_0 : i32, i32
  }
  func.func @transform_9(%arg0: i32) -> (i32, i32, i32) {
    %c0_i32 = arith.constant 0 : i32
    %c0_i32_0 = arith.constant 0 : i32
    %c0_i32_1 = arith.constant 0 : i32
    %c0_i32_2 = arith.constant 0 : i32
    return %c0_i32, %c0_i32_0, %c0_i32_1 : i32, i32, i32
  }
  func.func @transform_10(%arg0: i32) -> (i32, i32) {
    %c0_i32 = arith.constant 0 : i32
    %c0_i32_0 = arith.constant 0 : i32
    %c0_i32_1 = arith.constant 0 : i32
    return %c0_i32, %c0_i32_0 : i32, i32
  }
  func.func @transform_11(%arg0: i32) -> (i32, i32) {
    %c0_i32 = arith.constant 0 : i32
    %c0_i32_0 = arith.constant 0 : i32
    %c0_i32_1 = arith.constant 0 : i32
    return %c0_i32, %c0_i32_0 : i32, i32
  }
  func.func @transform_12(%arg0: i32) -> (i32, i32) {
    %c0_i32 = arith.constant 0 : i32
    %c0_i32_0 = arith.constant 0 : i32
    %c0_i32_1 = arith.constant 0 : i32
    return %c0_i32, %c0_i32_0 : i32, i32
  }
  func.func @transform_13(%arg0: i32) -> (i32, i32) {
    %c0_i32 = arith.constant 0 : i32
    %c0_i32_0 = arith.constant 0 : i32
    %c0_i32_1 = arith.constant 0 : i32
    return %c0_i32, %c0_i32_0 : i32, i32
  }
  func.func @transform_14(%arg0: i32) -> (i32, i32) {
    %c0_i32 = arith.constant 0 : i32
    %c0_i32_0 = arith.constant 0 : i32
    %c0_i32_1 = arith.constant 0 : i32
    return %c0_i32, %c0_i32_0 : i32, i32
  }
  func.func @transform_15(%arg0: i32) -> (i32, i32) {
    %c0_i32 = arith.constant 0 : i32
    %c0_i32_0 = arith.constant 0 : i32
    %c0_i32_1 = arith.constant 0 : i32
    return %c0_i32, %c0_i32_0 : i32, i32
  }
  func.func @transform_16(%arg0: i32) -> (i32, i32, i32) {
    %c0_i32 = arith.constant 0 : i32
    %c0_i32_0 = arith.constant 0 : i32
    %c0_i32_1 = arith.constant 0 : i32
    return %arg0, %c0_i32, %c0_i32_0 : i32, i32, i32
  }
  func.func @transform_17(%arg0: i32) -> (i32, i32, i32) {
    %c0_i32 = arith.constant 0 : i32
    %c0_i32_0 = arith.constant 0 : i32
    %c0_i32_1 = arith.constant 0 : i32
    return %arg0, %c0_i32, %c0_i32_0 : i32, i32, i32
  }
}

</mosaic_0001>

<bundles_post_ra>
// kernel: head_forward.1
= control target key start
LH: loop header
LB: loop body
LE: loop exit
PB: predicated region body
PF: predicated region fallthrough
CT: control target
= control target key end

     0   :  { %s10465_s24 = smov 0   ;;  %s14032_s0 = inlined_call_operand.vmem [shape: f32[2,11,11,32], index: 0, kind: input, shape index: {}]   ;;  %s14033_s1 = inlined_call_operand.vmem [shape: f32[512,32], index: 1, kind: input, shape index: {}]   ;;  %s14034_s2 = inlined_call_operand.vmem [shape: f32[1,32], index: 2, kind: input, shape index: {}]   ;;  %s14035_s3 = inlined_call_operand.vmem [shape: f32[288,64], index: 3, kind: input, shape index: {}]   ;;  %s14036_s4 = inlined_call_operand.vmem [shape: f32[1,64], index: 4, kind: input, shape index: {}]   ;;  %s14037_s5 = inlined_call_operand.vmem [shape: f32[1,64], index: 5, kind: input, shape index: {}]   ;;  %s14038_s6 = inlined_call_operand.vmem [shape: f32[3,288,32], index: 6, kind: input, shape index: {}]   ;;  %s14039_s7 = inlined_call_operand.vmem [shape: f32[3,32], index: 7, kind: input, shape index: {}]   ;;  %s14040_s8 = inlined_call_operand.vmem [shape: f32[3,32], index: 8, kind: input, shape index: {}]   ;;  %s14041_s9 = inlined_call_operand.vmem [shape: f32[3,288,32], index: 9, kind: input, shape index: {}]   ;;  %s14042_s10 = inlined_call_operand.vmem [shape: f32[3,32], index: 10, kind: input, shape index: {}]   ;;  %s14043_s11 = inlined_call_operand.vmem [shape: f32[3,32], index: 11, kind: input, shape index: {}]   ;;  %s14044_s12 = inlined_call_operand.vmem [shape: f32[288,48], index: 12, kind: input, shape index: {}]   ;;  %s14045_s13 = inlined_call_operand.vmem [shape: f32[1,48], index: 13, kind: input, shape index: {}]   ;;  %s14046_s14 = inlined_call_operand.vmem [shape: f32[288,12], index: 14, kind: input, shape index: {}]   ;;  %s14047_s15 = inlined_call_operand.vmem [shape: f32[1,12], index: 15, kind: input, shape index: {}]   ;;  %s14048_s16 = inlined_call_operand.vmem [shape: f32[2,64,48], index: 16, kind: output, shape index: {0}]   ;;  %s14049_s17 = inlined_call_operand.vmem [shape: f32[2,64,12], index: 17, kind: output, shape index: {1}]  }
   0x1   :  { %14059 = sst [smem:[#allocation5_spill]] %s14032_s0 }
   0x2   :  { %14060 = sst [smem:[#allocation6_spill]] %s14033_s1 }
   0x3   :  { %14061 = sst [smem:[#allocation7_spill]] %s14049_s17 }
   0x4 LB: > { %14062 = sst [smem:[#allocation4_spill]] %s10369_s24  ;;  %s7341_s25 = sadd.s32 4294967295, %s10369_s24   ;;  %s10369_s24 = sphi %s10465_s24, %s28_s24  }
   0x5   : > { %p7345_p0 = scmp.ge.s32.totalorder %s10369_s24, 1  ;;  %p490_p1 = scmp.lt.s32.totalorder %s10369_s24, 3 }
   0x7   : > { %p491_p2 = pnand %p7345_p0, %p490_p1 }
   0x8   : > { %p547_p3 = scmp.lt.s32.totalorder (!%p491_p2), %s7341_s25, 1  ;;  %s14063_s28 = sld [smem:[#allocation6_spill]] (!%p491_p2)  ;;  %vm562_vm0 = vcmask (!%p491_p2), 261120   ;;  %vm1146_vm1 = vcmask (!%p491_p2), 523264   ;;  %vm1155_vm2 = vcmask (!%p491_p2), 785408  }
   0x9   : > { %494 = sbr.rel (%p491_p2) target bundleno = 3411 (0xd53), region = 84  ;;  %s14064_s30 = sld [smem:[#allocation5_spill]] (!%p491_p2) }
   0xa   : > { %s14051_s22 = smov (!%p491_p2), 32   ;;  %s14055_s23 = smov (!%p491_p2), 64  }
   0xb   : > { %s14065_s19 = smov (!%p491_p2), 96   ;;  %s14066_s27 = smov (!%p491_p2), 32  }
   0xc   : > { %s14067_s17 = smov (!%p491_p2), 64  }
   0xe   : > { %v1252_v0 = vld [vmem:[%s14063_s28 + $0x80] sm:$0xff] (!%p491_p2)  ;;  %v1253_v1 = vld [vmem:[%s14063_s28 + $0x88] sm:$0xff] (!%p491_p2)  ;;  %v1254_v5 = vld [vmem:[%s14063_s28 + $0x90] sm:$0xff] (!%p491_p2) }
   0xf   : > { %v1236_v2 = vld [vmem:[%s14063_s28] sm:$0xff] (!%p491_p2)  ;;  %v8588_v3 = vpack.c.bf16 (!%p491_p2), %v1253_v1, %v1252_v0  ;;  %v1237_v4 = vld [vmem:[%s14063_s28 + $0x8] sm:$0xff] (!%p491_p2)  ;;  %v1255_v6 = vld [vmem:[%s14063_s28 + $0x98] sm:$0xff] (!%p491_p2) }
  0x10   : > { %s14072_s25 = smov (!%p547_p3, %s7341_s25), 1  ;;  %v8590_v7 = vpack.c.bf16 %v1237_v4, %v1236_v2  ;;  %v8592_v8 = vpack.c.bf16 %v1255_v6, %v1254_v5  ;;  %v1238_v9 = vld [vmem:[%s14063_s28 + $0x10] sm:$0xff]  ;;  %v1239_v10 = vld [vmem:[%s14063_s28 + $0x18] sm:$0xff]  ;;  %v1284_v11 = vld [vmem:[%s14063_s28 + $0x180] sm:$0xff] }
  0x11   : > { %8589 = vmatprep.subr.bf16.mxu0 %v8588_v3  ;;  %v1285_v12 = vld [vmem:[%s14063_s28 + $0x188] sm:$0xff]  ;;  %v1256_v13 = vld [vmem:[%s14063_s28 + $0xa0] sm:$0xff]  ;;  %s9028_s26 = smul.u32 176, %s14072_s25  ;;  %v8594_v15 = vpack.c.bf16 %v1239_v10, %v1238_v9  ;;  %v1286_v23 = vld [vmem:[%s14063_s28 + $0x190] sm:$0xff]  ;;  %s14058_s1 = sshll.u32 %s14072_s25, 6 }
  0x12   : > { %v1257_v14 = vld [vmem:[%s14063_s28 + $0xa8] sm:$0xff]  ;;  %8591 = vmatpush3.bf16.msra.mxu0 %v8590_v7  ;;  %v8620_v16 = vpack.c.bf16 %v1285_v12, %v1284_v11  ;;  %v1268_v17 = vld [vmem:[%s14063_s28 + $0x100] sm:$0xff]  ;;  %v1287_v24 = vld [vmem:[%s14063_s28 + $0x198] sm:$0xff]  ;;  %s12968_s21 = scalar_lea.vmem %s14048_s16, %s14058_s1  ;;  %s14068_s24 = sshll.u32 %s14072_s25, 6 }
  0x13   : > { %v1269_v18 = vld [vmem:[%s14063_s28 + $0x108] sm:$0xff]  ;;  %v1240_v19 = vld [vmem:[%s14063_s28 + $0x20] sm:$0xff]  ;;  %8593 = vmatprep.subr.bf16.mxu0 %v8592_v8  ;;  %v8596_v20 = vpack.c.bf16 %v1257_v14, %v1256_v13  ;;  %s10533_s18 = scalar_lea.vmem %s14064_s30, %s9028_s26  ;;  %v8624_v25 = vpack.c.bf16 %v1287_v24, %v1286_v23  ;;  %v1258_v26 = vld [vmem:[%s14063_s28 + $0xb0] sm:$0xff]  ;;  %s14053_s26 = smov 96  }
  0x14   : > { %v8622_v21 = vpack.c.bf16 %v1269_v18, %v1268_v17  ;;  %v1241_v22 = vld [vmem:[%s14063_s28 + $0x28] sm:$0xff]  ;;  %8621 = vmatprep.subr.bf16.mxu1 %v8620_v16  ;;  %v1259_v27 = vld [vmem:[%s14063_s28 + $0xb8] sm:$0xff]  ;;  %v1270_v48 = vld [vmem:[%s14063_s28 + $0x110] sm:$0xff]  ;;  %s14069_s30 = sld [smem:[#allocation7_spill]] }
  0x15   : > { %v647_v28 = vld [vmem:[%s10533_s18 + $0x3] sm:$0xff]  ;;  %v10543_v29 = vld [vmem:[%s10533_s18 + $0x13] sm:$0xff]  ;;  %v8598_v35 = vpack.c.bf16 %v1241_v22, %v1240_v19  ;;  %v8600_v39 = vpack.c.bf16 %v1259_v27, %v1258_v26 }
  0x16   : > { %v631_v30 = vld [vmem:[%s10533_s18 + $0x1] sm:$0xff]  ;;  %8623 = vmatpush3.bf16.msra.mxu1 %v8622_v21  ;;  %v9051_v31 = vpack.i.bf16 %v647_v28, %v10543_v29  ;;  %v7359_v32 = vld [vmem:[%s10533_s18 + $0x11] sm:$0xff]  ;;  %8595 = vmatpush3.bf16.msra.mxu0 %v8594_v15 }
  0x17   : > { %v7391_v33 = vld [vmem:[%s10533_s18 + $0x21] sm:$0xff]  ;;  %v7423_v34 = vld [vmem:[%s10533_s18 + $0x31] sm:$0xff]  ;;  %8625 = vmatprep.subr.bf16.mxu1 %v8624_v25  ;;  %v9041_v36 = vpack.i.bf16 %v631_v30, %v7359_v32  ;;  %8597 = vmatprep.subr.bf16.mxu0 %v8596_v20 }
  0x18   : > { %v639_v37 = vld [vmem:[%s10533_s18 + $0x2] sm:$0xff]  ;;  %v7367_v38 = vld [vmem:[%s10533_s18 + $0x12] sm:$0xff]  ;;  %9052 = vrot.lane.b32.xlu1 %v9051_v31, %s14053_s26  ;;  %v10553_v40 = vpack.i.bf16 %v7391_v33, %v7423_v34  ;;  %v9066_v44 = vpack.i.bf16 %v7359_v32, %v7391_v33 }
  0x19   : > { %9042 = vrot.lane.b32.xlu0 %v9041_v36, %s14051_s22  ;;  %v9046_v41 = vpack.i.bf16 %v639_v37, %v7367_v38  ;;  %v7399_v42 = vld [vmem:[%s10533_s18 + $0x22] sm:$0xff]  ;;  %v10558_v43 = vld [vmem:[%s10533_s18 + $0x32] sm:$0xff] }
  0x1a   : > { %8599 = vmatpush3.bf16.msra.mxu0 %v8598_v35  ;;  %v10564_v45 = vpack.i.bf16 %v7399_v42, %v10558_v43  ;;  %v7407_v46 = vld [vmem:[%s10533_s18 + $0x23] sm:$0xff]  ;;  %v10568_v47 = vld [vmem:[%s10533_s18 + $0x33] sm:$0xff]  ;;  %v9076_v50 = vpack.i.bf16 %v7367_v38, %v7399_v42  ;;  %s14011_s20 = scalar_lea.vmem %s14069_s30, %s14068_s24 }
  0x1b   : > { %8601 = vmatprep.subr.bf16.mxu0 %v8600_v39  ;;  %v10574_v49 = vld [vmem:[%s10533_s18 + $0x41] sm:$0xff]  ;;  %v1271_v51 = vld [vmem:[%s14063_s28 + $0x118] sm:$0xff]  ;;  %v1242_v52 = vld [vmem:[%s14063_s28 + $0x30] sm:$0xff]  ;;  %v10589_v54 = vpack.i.bf16 %v7407_v46, %v10568_v47  ;;  %v9081_v11 = vpack.i.bf16 %v10543_v29, %v7407_v46 }
  0x1c   : > { %9057 = vrot.lane.b32.xlu1 %v10553_v40, %s14051_s22  ;;  %v1243_v53 = vld [vmem:[%s14063_s28 + $0x38] sm:$0xff]  ;;  %v8626_v55 = vpack.c.bf16 %v1271_v51, %v1270_v48  ;;  %v1288_v57 = vld [vmem:[%s14063_s28 + $0x1a0] sm:$0xff]  ;;  %v1289_v58 = vld [vmem:[%s14063_s28 + $0x1a8] sm:$0xff]  ;;  %v10620_v5 = vpack.i.bf16 %v7423_v34, %v10574_v49 }
  0x1d   : > { %9047 = vrot.lane.b32.xlu0 %v9046_v41, %s14055_s23  ;;  %v8602_v56 = vpack.c.bf16 %v1243_v53, %v1242_v52  ;;  %v1260_v59 = vld [vmem:[%s14063_s28 + $0xc0] sm:$0xff]  ;;  %v8628_v60 = vpack.c.bf16 %v1289_v58, %v1288_v57  ;;  %v1261_v61 = vld [vmem:[%s14063_s28 + $0xc8] sm:$0xff]  ;;  %v1290_v4 = vld [vmem:[%s14063_s28 + $0x1b0] sm:$0xff] }
  0x1e   : > { %v1272_v62 = vld [vmem:[%s14063_s28 + $0x120] sm:$0xff]  ;;  %v1273_v63 = vld [vmem:[%s14063_s28 + $0x128] sm:$0xff]  ;;  %8627 = vmatpush3.bf16.msra.mxu1 %v8626_v55  ;;  %v8604_v0 = vpack.c.bf16 %v1261_v61, %v1260_v59  ;;  %v1291_v8 = vld [vmem:[%s14063_s28 + $0x1b8] sm:$0xff] }
  0x1f   : > { %8603 = vmatpush3.bf16.msra.mxu0 %v8602_v56  ;;  %v8630_v1 = vpack.c.bf16 %v1273_v63, %v1272_v62  ;;  %v1244_v2 = vld [vmem:[%s14063_s28 + $0x40] sm:$0xff]  ;;  %v1245_v3 = vld [vmem:[%s14063_s28 + $0x48] sm:$0xff]  ;;  %8629 = vmatprep.subr.bf16.mxu1 %v8628_v60  ;;  %v1262_v9 = vld [vmem:[%s14063_s28 + $0xd0] sm:$0xff]  ;;  %v8632_v12 = vpack.c.bf16 %v1291_v8, %v1290_v4 }
  0x20   : > { %9067 = vrot.lane.b32.xlu1 %v9066_v44, %s14051_s22  ;;  %v10623_v6 = vld [vmem:[%s10533_s18 + $0x42] sm:$0xff]  ;;  %v8606_v7 = vpack.c.bf16 %v1245_v3, %v1244_v2  ;;  %v1263_v10 = vld [vmem:[%s14063_s28 + $0xd8] sm:$0xff]  ;;  %8605 = vmatprep.subr.bf16.mxu0 %v8604_v0  ;;  %v1274_v14 = vld [vmem:[%s14063_s28 + $0x130] sm:$0xff] }
  0x21   : > { %9062 = vrot.lane.b32.xlu0 %v10564_v45, %s14055_s23  ;;  %v8608_v13 = vpack.c.bf16 %v1263_v10, %v1262_v9  ;;  %v1275_v15 = vld [vmem:[%s14063_s28 + $0x138] sm:$0xff]  ;;  %v1246_v16 = vld [vmem:[%s14063_s28 + $0x50] sm:$0xff]  ;;  %v1292_v18 = vld [vmem:[%s14063_s28 + $0x1c0] sm:$0xff]  ;;  %v9091_v29 = vpack.i.bf16 %v10558_v43, %v10623_v6 }
  0x22   : > { %v1247_v17 = vld [vmem:[%s14063_s28 + $0x58] sm:$0xff]  ;;  %v1293_v19 = vld [vmem:[%s14063_s28 + $0x1c8] sm:$0xff]  ;;  %8631 = vmatpush3.bf16.msra.mxu1 %v8630_v1  ;;  %v8634_v20 = vpack.c.bf16 %v1275_v15, %v1274_v14  ;;  %v1264_v22 = vld [vmem:[%s14063_s28 + $0xe0] sm:$0xff] }
  0x23   : > { %8607 = vmatpush3.bf16.msra.mxu0 %v8606_v7  ;;  %v8610_v21 = vpack.c.bf16 %v1247_v17, %v1246_v16  ;;  %v1265_v23 = vld [vmem:[%s14063_s28 + $0xe8] sm:$0xff]  ;;  %v1276_v24 = vld [vmem:[%s14063_s28 + $0x140] sm:$0xff]  ;;  %8633 = vmatprep.subr.bf16.mxu1 %v8632_v12  ;;  %v8636_v25 = vpack.c.bf16 %v1293_v19, %v1292_v18  ;;  %v1294_v31 = vld [vmem:[%s14063_s28 + $0x1d0] sm:$0xff] }
  0x24   : > { %9077 = vrot.lane.b32.xlu1 %v9076_v50, %s14055_s23  ;;  %v1277_v26 = vld [vmem:[%s14063_s28 + $0x148] sm:$0xff]  ;;  %v1248_v27 = vld [vmem:[%s14063_s28 + $0x60] sm:$0xff]  ;;  %8609 = vmatprep.subr.bf16.mxu0 %v8608_v13  ;;  %v8612_v30 = vpack.c.bf16 %v1265_v23, %v1264_v22  ;;  %v1295_v32 = vld [vmem:[%s14063_s28 + $0x1d8] sm:$0xff] }
  0x25   : > { %9072 = vrot.lane.b32.xlu0 %v10589_v54, %s14065_s19  ;;  %v1249_v28 = vld [vmem:[%s14063_s28 + $0x68] sm:$0xff]  ;;  %v1266_v34 = vld [vmem:[%s14063_s28 + $0xf0] sm:$0xff]  ;;  %v1267_v35 = vld [vmem:[%s14063_s28 + $0xf8] sm:$0xff]  ;;  %v8638_v36 = vpack.c.bf16 %v1277_v26, %v1276_v24  ;;  %v8640_v39 = vpack.c.bf16 %v1295_v32, %v1294_v31 }
  0x26   : > { %v7440_v33 = vld [vmem:[%s10533_s18 + $0x43] sm:$0xff]  ;;  %8635 = vmatpush3.bf16.msra.mxu1 %v8634_v20  ;;  %v8614_v37 = vpack.c.bf16 %v1249_v28, %v1248_v27  ;;  %v1278_v38 = vld [vmem:[%s14063_s28 + $0x150] sm:$0xff]  ;;  %v1279_v41 = vld [vmem:[%s14063_s28 + $0x158] sm:$0xff] }
  0x27   : > { %8611 = vmatpush3.bf16.msra.mxu0 %v8610_v21  ;;  %8637 = vmatprep.subr.bf16.mxu1 %v8636_v25  ;;  %v1250_v42 = vld [vmem:[%s14063_s28 + $0x70] sm:$0xff]  ;;  %v1251_v43 = vld [vmem:[%s14063_s28 + $0x78] sm:$0xff]  ;;  %v9101_v44 = vpack.i.bf16 %v10568_v47, %v7440_v33  ;;  %v1296_v48 = vld [vmem:[%s14063_s28 + $0x1e0] sm:$0xff]  ;;  %v8642_v51 = vpack.c.bf16 %v1279_v41, %v1278_v38 }
  0x28   : > { %9087 = vrot.lane.b32.xlu1 %v10620_v5, %s14066_s27  ;;  %v7425_v46 = vld [vmem:[%s10533_s18 + $0x51] sm:$0xff]  ;;  %8613 = vmatprep.subr.bf16.mxu0 %v8612_v30  ;;  %v1297_v50 = vld [vmem:[%s14063_s28 + $0x1e8] sm:$0xff]  ;;  %v8618_v52 = vpack.c.bf16 %v1251_v43, %v1250_v42  ;;  %v1280_v55 = vld [vmem:[%s14063_s28 + $0x160] sm:$0xff] }
  0x29   : > { %9082 = vrot.lane.b32.xlu0 %v9081_v11, %s14065_s19  ;;  %v9116_v47 = vpack.i.bf16 %v10574_v49, %v7425_v46  ;;  %v8644_v53 = vpack.c.bf16 %v1297_v50, %v1296_v48  ;;  %v1281_v56 = vld [vmem:[%s14063_s28 + $0x168] sm:$0xff]  ;;  %v1299_v49 = vld [vmem:[%s14063_s28 + $0x1f8] sm:$0xff]  ;;  %v1282_v60 = vld [vmem:[%s14063_s28 + $0x170] sm:$0xff] }
  0x2a   : > { %8639 = vmatpush3.bf16.msra.mxu1 %v8638_v36  ;;  %v7433_v57 = vld [vmem:[%s10533_s18 + $0x52] sm:$0xff]  ;;  %v8646_v58 = vpack.c.bf16 %v1281_v56, %v1280_v55  ;;  %v7426_v2 = vld [vmem:[%s10533_s18 + $0x61] sm:$0xff] }
  0x2b   : > { %8615 = vmatpush3.bf16.msra.mxu0 %v8614_v37  ;;  %8641 = vmatprep.subr.bf16.mxu1 %v8640_v39  ;;  %v1283_v61 = vld [vmem:[%s14063_s28 + $0x178] sm:$0xff]  ;;  %v9121_v62 = vpack.i.bf16 %v10623_v6, %v7433_v57  ;;  %v7434_v3 = vld [vmem:[%s10533_s18 + $0x62] sm:$0xff]  ;;  %v7351_v36 = vld [vmem:[%s10533_s18 + $0x10] sm:$0xff] }
  0x2c   : > { %9097 = vrot.lane.b32.xlu1 %v10553_v40, %s14066_s27  ;;  %v8616_v40 = vpack.c.bf16 %v1267_v35, %v1266_v34  ;;  %v7441_v63 = vld [vmem:[%s10533_s18 + $0x53] sm:$0xff]  ;;  %v8650_v0 = vpack.c.bf16 %v1283_v61, %v1282_v60  ;;  %v9151_v4 = vpack.i.bf16 %v7433_v57, %v7434_v3  ;;  %v7428_v13 = vld [vmem:[%s10533_s18 + $0x81] sm:$0xff] }
  0x2d   : > { %9092 = vrot.lane.b32.xlu0 %v9091_v29, %s14067_s17  ;;  %v9131_v1 = vpack.i.bf16 %v7440_v33, %v7441_v63  ;;  %v7427_v7 = vld [vmem:[%s10533_s18 + $0x71] sm:$0xff]  ;;  %v7436_v15 = vld [vmem:[%s10533_s18 + $0x82] sm:$0xff] }
  0x2e   : > { %8617 = vmatprep.subr.bf16.mxu0 %v8616_v40  ;;  %8643 = vmatpush3.bf16.msra.mxu1 %v8642_v51  ;;  %v9176_v8 = vpack.i.bf16 %v7426_v2, %v7427_v7  ;;  %v7435_v9 = vld [vmem:[%s10533_s18 + $0x72] sm:$0xff]  ;;  %v9206_v14 = vpack.i.bf16 %v7427_v7, %v7428_v13  ;;  %v7444_v17 = vld [vmem:[%s10533_s18 + $0x83] sm:$0xff] }
  0x2f   : > { %8619 = vmatpush3.bf16.msra.mxu0 %v8618_v52  ;;  %8645 = vmatprep.subr.bf16.mxu1 %v8644_v53  ;;  %v9181_v10 = vpack.i.bf16 %v7434_v3, %v7435_v9  ;;  %v7443_v11 = vld [vmem:[%s10533_s18 + $0x73] sm:$0xff]  ;;  %v9211_v16 = vpack.i.bf16 %v7435_v9, %v7436_v15  ;;  %v7430_v25 = vld [vmem:[%s10533_s18 + $0xa1] sm:$0xff] }
  0x30   : > { %9107 = vrot.lane.b32.xlu1 %v10564_v45, %s14067_s17  ;;  %v1298_v45 = vld [vmem:[%s14063_s28 + $0x1f0] sm:$0xff]  ;;  %v9221_v18 = vpack.i.bf16 %v7443_v11, %v7444_v17  ;;  %v7446_v27 = vld [vmem:[%s10533_s18 + $0xa3] sm:$0xff] }
  0x31   : > { %9102 = vrot.lane.b32.xlu0 %v9101_v44, %s14065_s19  ;;  %v8648_v59 = vpack.c.bf16 %v1299_v49, %v1298_v45  ;;  %v7429_v19 = vld [vmem:[%s10533_s18 + $0x91] sm:$0xff]  ;;  %v7438_v28 = vld [vmem:[%s10533_s18 + $0xa2] sm:$0xff] }
  0x32   : > { %8647 = vmatpush3.bf16.msra.mxu1 %v8646_v58  ;;  %v9236_v20 = vpack.i.bf16 %v7428_v13, %v7429_v19  ;;  %v7437_v21 = vld [vmem:[%s10533_s18 + $0x92] sm:$0xff]  ;;  %v9266_v26 = vpack.i.bf16 %v7429_v19, %v7430_v25  ;;  %v623_v37 = vld [vmem:[%s10533_s18] sm:$0xff] }
  0x33   : > { %8649 = vmatprep.subr.bf16.mxu1 %v8648_v59  ;;  %v9241_v22 = vpack.i.bf16 %v7436_v15, %v7437_v21  ;;  %v7445_v23 = vld [vmem:[%s10533_s18 + $0x93] sm:$0xff]  ;;  %v9271_v30 = vpack.i.bf16 %v7437_v21, %v7438_v28  ;;  %v7383_v45 = vld [vmem:[%s10533_s18 + $0x20] sm:$0xff] }
  0x34   : > { %9117 = vrot.lane.b32.xlu1 %v9116_v47, %s14066_s27  ;;  %v9251_v24 = vpack.i.bf16 %v7444_v17, %v7445_v23  ;;  %v10799_v56 = vld [vmem:[%s10533_s18 + $0x30] sm:$0xff]  ;;  %v10816_v21 = vld [vmem:[%s10533_s18 + $0x40] sm:$0xff] }
  0x35   : > { %9112 = vrot.lane.b32.xlu0 %v10589_v54, %s14065_s19  ;;  %v9146_v54 = vpack.i.bf16 %v7425_v46, %v7426_v2 }
  0x36   : > { %8651 = vmatpush3.bf16.msra.mxu1 %v8650_v0 }
  0x38   : > { %9127 = vrot.lane.b32.xlu1 %v10620_v5, %s14066_s27  ;;  %v7442_v5 = vld [vmem:[%s10533_s18 + $0x63] sm:$0xff] }
  0x39   : > { %9122 = vrot.lane.b32.xlu0 %v9121_v62, %s14067_s17  ;;  %v9161_v6 = vpack.i.bf16 %v7441_v63, %v7442_v5  ;;  %v9191_v12 = vpack.i.bf16 %v7442_v5, %v7443_v11 }
  0x3c   : > { %9137 = vrot.lane.b32.xlu1 %v9091_v29, %s14067_s17  ;;  %v9276_v29 = vpack.i.bf16 %v7445_v23, %v7446_v27 }
  0x3d   : > { %9132 = vrot.lane.b32.xlu0 %v9131_v1, %s14065_s19 }
  0x40   : > { %9147 = vrot.lane.b32.xlu1 %v9146_v54, %s14066_s27 }
  0x41   : > { %9142 = vrot.lane.b32.xlu0 %v9101_v44, %s14065_s19 }
  0x44   : > { %9157 = vrot.lane.b32.xlu1 %v9116_v47, %s14066_s27 }
  0x45   : > { %9152 = vrot.lane.b32.xlu0 %v9151_v4, %s14067_s17 }
  0x48   : > { %9167 = vrot.lane.b32.xlu1 %v9121_v62, %s14067_s17 }
  0x49   : > { %9162 = vrot.lane.b32.xlu0 %v9161_v6, %s14065_s19 }
  0x4c   : > { %9177 = vrot.lane.b32.xlu1 %v9176_v8, %s14066_s27 }
  0x4d   : > { %9172 = vrot.lane.b32.xlu0 %v9131_v1, %s14065_s19 }
  0x50   : > { %9187 = vrot.lane.b32.xlu1 %v9146_v54, %s14066_s27 }
  0x51   : > { %9182 = vrot.lane.b32.xlu0 %v9181_v10, %s14067_s17 }
  0x54   : > { %9197 = vrot.lane.b32.xlu1 %v9151_v4, %s14067_s17 }
  0x55   : > { %9192 = vrot.lane.b32.xlu0 %v9191_v12, %s14065_s19 }
  0x58   : > { %9207 = vrot.lane.b32.xlu1 %v9206_v14, %s14066_s27 }
  0x59   : > { %9202 = vrot.lane.b32.xlu0 %v9161_v6, %s14065_s19 }
  0x5c   : > { %9217 = vrot.lane.b32.xlu1 %v9176_v8, %s14066_s27 }
  0x5d   : > { %9212 = vrot.lane.b32.xlu0 %v9211_v16, %s14067_s17 }
  0x60   : > { %9227 = vrot.lane.b32.xlu1 %v9181_v10, %s14067_s17 }
  0x61   : > { %9222 = vrot.lane.b32.xlu0 %v9221_v18, %s14065_s19 }
  0x64   : > { %9237 = vrot.lane.b32.xlu1 %v9236_v20, %s14066_s27 }
  0x65   : > { %9232 = vrot.lane.b32.xlu0 %v9191_v12, %s14065_s19 }
  0x68   : > { %9247 = vrot.lane.b32.xlu1 %v9206_v14, %s14066_s27 }
  0x69   : > { %9242 = vrot.lane.b32.xlu0 %v9241_v22, %s14067_s17 }
  0x6c   : > { %9257 = vrot.lane.b32.xlu1 %v9211_v16, %s14067_s17 }
  0x6d   : > { %9252 = vrot.lane.b32.xlu0 %v9251_v24, %s14065_s19 }
  0x70   : > { %9267 = vrot.lane.b32.xlu1 %v9266_v26, %s14066_s27 }
  0x71   : > { %9262 = vrot.lane.b32.xlu0 %v9221_v18, %s14065_s19 }
  0x74   : > { %9277 = vrot.lane.b32.xlu1 %v9276_v29, %s14065_s19 }
  0x75   : > { %9272 = vrot.lane.b32.xlu0 %v9271_v30, %s14067_s17 }
  0x8a   : > { %v9053_v31 = vpop.permute.xlu1 %9052 }
  0x8b   : > { %v9043_v32 = vpop.permute.xlu0 %9042  ;;  %v9055_v42 = vunpack.i.h.bf16 %v9053_v31  ;;  %v9054_v43 = vunpack.i.l.bf16 %v9053_v31 }
  0x8c   : > { %v9045_v33 = vunpack.i.h.bf16 %v9043_v32  ;;  %v9044_v34 = vunpack.i.l.bf16 %v9043_v32 }
  0x8e   : > { %v9058_v35 = vpop.permute.xlu1 %9057  ;;  %v1164_v44 = vsel %vm562_vm0, %v7351_v36, %v9044_v34  ;;  %v1138_v46 = vsel %vm562_vm0, %v623_v37, %v9045_v33 }
  0x8f   : > { %v9048_v38 = vpop.permute.xlu0 %9047  ;;  %v9060_v51 = vunpack.i.h.bf16 %v9058_v35  ;;  %v9059_v52 = vunpack.i.l.bf16 %v9058_v35 }
  0x90   : > { %v9050_v39 = vunpack.i.h.bf16 %v9048_v38  ;;  %v9049_v41 = vunpack.i.l.bf16 %v9048_v38 }
  0x91   : > { %v1212_v60 = vsel %vm562_vm0, %v10799_v56, %v9059_v52  ;;  %v1188_v61 = vsel %vm562_vm0, %v7383_v45, %v9060_v51 }
  0x92   : > { %v9068_v40 = vpop.permute.xlu1 %9067  ;;  %v1172_v48 = vsel %vm1146_vm1, %v1164_v44, %v9049_v41  ;;  %v1147_v50 = vsel %vm1146_vm1, %v1138_v46, %v9050_v39 }
  0x93   : > { %v9063_v47 = vpop.permute.xlu0 %9062  ;;  %v1180_v53 = vsel %vm1155_vm2, %v1172_v48, %v9054_v43  ;;  %v1156_v55 = vsel %vm1155_vm2, %v1147_v50, %v9055_v42  ;;  %v9070_v62 = vunpack.i.h.bf16 %v9068_v40  ;;  %v9069_v63 = vunpack.i.l.bf16 %v9068_v40 }
  0x94   : > { %1371 = vmatprep.mubr.f32.mxu0 %v1180_v53  ;;  %v9065_v49 = vunpack.i.h.bf16 %v9063_v47  ;;  %v9064_v57 = vunpack.i.l.bf16 %v9063_v47 }
  0x95   : > { %1372 = vmatmul.mubr.f32.vlgmr.msra.gmra.mrb[0].mxu0 %v1156_v55  ;;  %v1165_v11 = vsel %vm562_vm0, %v7383_v45, %v9069_v63  ;;  %v1139_v12 = vsel %vm562_vm0, %v7351_v36, %v9070_v62  ;;  %v10834_v55 = vld [vmem:[%s10533_s18 + $0x50] sm:$0xff] }
  0x96   : > { %v9078_v58 = vpop.permute.xlu1 %9077  ;;  %v1220_v3 = vsel %vm1146_vm1, %v1212_v60, %v9064_v57  ;;  %v1196_v4 = vsel %vm1146_vm1, %v1188_v61, %v9065_v49 }
  0x97   : > { %v9073_v59 = vpop.permute.xlu0 %9072  ;;  %v9080_v2 = vunpack.i.h.bf16 %v9078_v58  ;;  %v9079_v54 = vunpack.i.l.bf16 %v9078_v58 }
  0x98   : > { %v9075_v0 = vunpack.i.h.bf16 %v9073_v59  ;;  %v9074_v1 = vunpack.i.l.bf16 %v9073_v59 }
  0x99   : > { %v1173_v13 = vsel %vm1146_vm1, %v1165_v11, %v9079_v54  ;;  %v1148_v14 = vsel %vm1146_vm1, %v1139_v12, %v9080_v2 }
  0x9a   : > { %v9088_v5 = vpop.permute.xlu1 %9087  ;;  %v1228_v6 = vsel %vm1155_vm2, %v1220_v3, %v9074_v1  ;;  %v1204_v7 = vsel %vm1155_vm2, %v1196_v4, %v9075_v0 }
  0x9b   : > { %v9083_v8 = vpop.permute.xlu0 %9082  ;;  %1476 = vmatprep.mubr.f32.mxu1 %v1228_v6  ;;  %v9090_v18 = vunpack.i.h.bf16 %v9088_v5  ;;  %v9089_v19 = vunpack.i.l.bf16 %v9088_v5 }
  0x9c   : > { %v9085_v9 = vunpack.i.h.bf16 %v9083_v8  ;;  %v9084_v10 = vunpack.i.l.bf16 %v9083_v8  ;;  %1477 = vmatmul.mubr.f32.vlgmr.msra.gmra.mrb[0].mxu1 %v1204_v7 }
  0x9d   : > { %v1213_v26 = vsel %vm562_vm0, %v10816_v21, %v9089_v19  ;;  %v1189_v27 = vsel %vm562_vm0, %v10799_v56, %v9090_v18 }
  0x9e   : > { %v9098_v15 = vpop.permute.xlu1 %9097  ;;  %v1181_v16 = vsel %vm1155_vm2, %v1173_v13, %v9084_v10  ;;  %v1157_v17 = vsel %vm1155_vm2, %v1148_v14, %v9085_v9 }
  0x9f   : > { %v9093_v20 = vpop.permute.xlu0 %9092  ;;  %1376 = vmatprep.mubr.f32.mxu0 %v1181_v16  ;;  %v9100_v28 = vunpack.i.h.bf16 %v9098_v15  ;;  %v9099_v29 = vunpack.i.l.bf16 %v9098_v15 }
  0xa0   : > { %1377 = vmatmul.mubr.f32.gmra.mrb[2].mxu0 %v1157_v17  ;;  %v9095_v22 = vunpack.i.h.bf16 %v9093_v20  ;;  %v9094_v23 = vunpack.i.l.bf16 %v9093_v20  ;;  %v10853_v20 = vld [vmem:[%s10533_s18 + $0x60] sm:$0xff] }
  0xa1   : > { %v1166_v43 = vsel %vm562_vm0, %v10799_v56, %v9099_v29  ;;  %v1140_v44 = vsel %vm562_vm0, %v7383_v45, %v9100_v28 }
  0xa2   : > { %v9108_v24 = vpop.permute.xlu1 %9107  ;;  %v1221_v34 = vsel %vm1146_vm1, %v1213_v26, %v9094_v23  ;;  %v1197_v35 = vsel %vm1146_vm1, %v1189_v27, %v9095_v22 }
  0xa3   : > { %v9103_v25 = vpop.permute.xlu0 %9102  ;;  %v9110_v32 = vunpack.i.h.bf16 %v9108_v24  ;;  %v9109_v33 = vunpack.i.l.bf16 %v9108_v24 }
  0xa4   : > { %v9105_v30 = vunpack.i.h.bf16 %v9103_v25  ;;  %v9104_v31 = vunpack.i.l.bf16 %v9103_v25 }
  0xa5   : > { %v1174_v46 = vsel %vm1146_vm1, %v1166_v43, %v9109_v33  ;;  %v1149_v40 = vsel %vm1146_vm1, %v1140_v44, %v9110_v32 }
  0xa6   : > { %v9118_v36 = vpop.permute.xlu1 %9117  ;;  %v1229_v37 = vsel %vm1155_vm2, %v1221_v34, %v9104_v31  ;;  %v1205_v38 = vsel %vm1155_vm2, %v1197_v35, %v9105_v30 }
  0xa7   : > { %v9113_v39 = vpop.permute.xlu0 %9112  ;;  %1481 = vmatprep.mubr.f32.mxu1 %v1229_v37  ;;  %v9120_v52 = vunpack.i.h.bf16 %v9118_v36  ;;  %v9119_v47 = vunpack.i.l.bf16 %v9118_v36 }
  0xa8   : > { %v9115_v41 = vunpack.i.h.bf16 %v9113_v39  ;;  %v9114_v42 = vunpack.i.l.bf16 %v9113_v39  ;;  %1482 = vmatmul.mubr.f32.gmra.mrb[2].mxu1 %v1205_v38 }
  0xa9   : > { %v1214_v59 = vsel %vm562_vm0, %v10834_v55, %v9119_v47  ;;  %v1190_v60 = vsel %vm562_vm0, %v10816_v21, %v9120_v52 }
  0xaa   : > { %v9128_v48 = vpop.permute.xlu1 %9127  ;;  %v1182_v50 = vsel %vm1155_vm2, %v1174_v46, %v9114_v42  ;;  %v1158_v51 = vsel %vm1155_vm2, %v1149_v40, %v9115_v41 }
  0xab   : > { %v9123_v53 = vpop.permute.xlu0 %9122  ;;  %1381 = vmatprep.mubr.f32.mxu0 %v1182_v50  ;;  %v9130_v61 = vunpack.i.h.bf16 %v9128_v48  ;;  %v9129_v62 = vunpack.i.l.bf16 %v9128_v48 }
  0xac   : > { %1382 = vmatmul.mubr.f32.gmra.mrb[4].mxu0 %v1158_v51  ;;  %v9125_v49 = vunpack.i.h.bf16 %v9123_v53  ;;  %v9124_v57 = vunpack.i.l.bf16 %v9123_v53  ;;  %v10872_v53 = vld [vmem:[%s10533_s18 + $0x70] sm:$0xff] }
  0xad   : > { %v1167_v10 = vsel %vm562_vm0, %v10816_v21, %v9129_v62  ;;  %v1141_v11 = vsel %vm562_vm0, %v10799_v56, %v9130_v61 }
  0xae   : > { %v9138_v58 = vpop.permute.xlu1 %9137  ;;  %v1222_v54 = vsel %vm1146_vm1, %v1214_v59, %v9124_v57  ;;  %v1198_v3 = vsel %vm1146_vm1, %v1190_v60, %v9125_v49 }
  0xaf   : > { %v9133_v45 = vpop.permute.xlu0 %9132  ;;  %v9140_v1 = vunpack.i.h.bf16 %v9138_v58  ;;  %v9139_v2 = vunpack.i.l.bf16 %v9138_v58 }
  0xb0   : > { %v9135_v63 = vunpack.i.h.bf16 %v9133_v45  ;;  %v9134_v0 = vunpack.i.l.bf16 %v9133_v45 }
  0xb1   : > { %v1175_v12 = vsel %vm1146_vm1, %v1167_v10, %v9139_v2  ;;  %v1150_v13 = vsel %vm1146_vm1, %v1141_v11, %v9140_v1 }
  0xb2   : > { %v9148_v4 = vpop.permute.xlu1 %9147  ;;  %v1230_v5 = vsel %vm1155_vm2, %v1222_v54, %v9134_v0  ;;  %v1206_v6 = vsel %vm1155_vm2, %v1198_v3, %v9135_v63 }
  0xb3   : > { %v9143_v7 = vpop.permute.xlu0 %9142  ;;  %1486 = vmatprep.mubr.f32.mxu1 %v1230_v5  ;;  %v9150_v17 = vunpack.i.h.bf16 %v9148_v4  ;;  %v9149_v18 = vunpack.i.l.bf16 %v9148_v4 }
  0xb4   : > { %v9145_v8 = vunpack.i.h.bf16 %v9143_v7  ;;  %v9144_v9 = vunpack.i.l.bf16 %v9143_v7  ;;  %1487 = vmatmul.mubr.f32.gmra.mrb[4].mxu1 %v1206_v6 }
  0xb5   : > { %v1215_v25 = vsel %vm562_vm0, %v10853_v20, %v9149_v18  ;;  %v1191_v26 = vsel %vm562_vm0, %v10834_v55, %v9150_v17 }
  0xb6   : > { %v9158_v14 = vpop.permute.xlu1 %9157  ;;  %v1183_v15 = vsel %vm1155_vm2, %v1175_v12, %v9144_v9  ;;  %v1159_v16 = vsel %vm1155_vm2, %v1150_v13, %v9145_v8 }
  0xb7   : > { %v9153_v19 = vpop.permute.xlu0 %9152  ;;  %1386 = vmatprep.mubr.f32.mxu0 %v1183_v15  ;;  %v9160_v27 = vunpack.i.h.bf16 %v9158_v14  ;;  %v9159_v28 = vunpack.i.l.bf16 %v9158_v14 }
  0xb8   : > { %1387 = vmatmul.mubr.f32.gmra.mrb[6].mxu0 %v1159_v16  ;;  %v9155_v22 = vunpack.i.h.bf16 %v9153_v19  ;;  %v9154_v23 = vunpack.i.l.bf16 %v9153_v19  ;;  %v7420_v19 = vld [vmem:[%s10533_s18 + $0x80] sm:$0xff] }
  0xb9   : > { %v1168_v42 = vsel %vm562_vm0, %v10834_v55, %v9159_v28  ;;  %v1142_v43 = vsel %vm562_vm0, %v10816_v21, %v9160_v27 }
  0xba   : > { %v9168_v24 = vpop.permute.xlu1 %9167  ;;  %v1223_v33 = vsel %vm1146_vm1, %v1215_v25, %v9154_v23  ;;  %v1199_v34 = vsel %vm1146_vm1, %v1191_v26, %v9155_v22 }
  0xbb   : > { %v9163_v56 = vpop.permute.xlu0 %9162  ;;  %v9170_v31 = vunpack.i.h.bf16 %v9168_v24  ;;  %v9169_v32 = vunpack.i.l.bf16 %v9168_v24 }
  0xbc   : > { %v9165_v29 = vunpack.i.h.bf16 %v9163_v56  ;;  %v9164_v30 = vunpack.i.l.bf16 %v9163_v56 }
  0xbd   : > { %v1176_v44 = vsel %vm1146_vm1, %v1168_v42, %v9169_v32  ;;  %v1151_v46 = vsel %vm1146_vm1, %v1142_v43, %v9170_v31 }
  0xbe   : > { %v9178_v35 = vpop.permute.xlu1 %9177  ;;  %v1231_v36 = vsel %vm1155_vm2, %v1223_v33, %v9164_v30  ;;  %v1207_v37 = vsel %vm1155_vm2, %v1199_v34, %v9165_v29 }
  0xbf   : > { %v9173_v38 = vpop.permute.xlu0 %9172  ;;  %1491 = vmatprep.mubr.f32.mxu1 %v1231_v36  ;;  %v9180_v51 = vunpack.i.h.bf16 %v9178_v35  ;;  %v9179_v52 = vunpack.i.l.bf16 %v9178_v35 }
  0xc0   : > { %v9175_v39 = vunpack.i.h.bf16 %v9173_v38  ;;  %v9174_v41 = vunpack.i.l.bf16 %v9173_v38  ;;  %1492 = vmatmul.mubr.f32.gmra.mrb[6].mxu1 %v1207_v37 }
  0xc1   : > { %v1216_v45 = vsel %vm562_vm0, %v10872_v53, %v9179_v52  ;;  %v1192_v59 = vsel %vm562_vm0, %v10853_v20, %v9180_v51 }
  0xc2   : > { %v9188_v40 = vpop.permute.xlu1 %9187  ;;  %v1184_v48 = vsel %vm1155_vm2, %v1176_v44, %v9174_v41  ;;  %v1160_v50 = vsel %vm1155_vm2, %v1151_v46, %v9175_v39 }
  0xc3   : > { %v9183_v47 = vpop.permute.xlu0 %9182  ;;  %1391 = vmatprep.mubr.f32.mxu0 %v1184_v48  ;;  %v9190_v60 = vunpack.i.h.bf16 %v9188_v40  ;;  %v9189_v61 = vunpack.i.l.bf16 %v9188_v40 }
  0xc4   : > { %1392 = vmatmul.mubr.f32.gmra.mrb[8].mxu0 %v1160_v50  ;;  %v9185_v49 = vunpack.i.h.bf16 %v9183_v47  ;;  %v9184_v57 = vunpack.i.l.bf16 %v9183_v47  ;;  %v7421_v47 = vld [vmem:[%s10533_s18 + $0x90] sm:$0xff] }
  0xc5   : > { %v1169_v9 = vsel %vm562_vm0, %v10853_v20, %v9189_v61  ;;  %v1143_v10 = vsel %vm562_vm0, %v10834_v55, %v9190_v60 }
  0xc6   : > { %v9198_v58 = vpop.permute.xlu1 %9197  ;;  %v1224_v2 = vsel %vm1146_vm1, %v1216_v45, %v9184_v57  ;;  %v1200_v54 = vsel %vm1146_vm1, %v1192_v59, %v9185_v49 }
  0xc7   : > { %v9193_v21 = vpop.permute.xlu0 %9192  ;;  %v9200_v0 = vunpack.i.h.bf16 %v9198_v58  ;;  %v9199_v1 = vunpack.i.l.bf16 %v9198_v58 }
  0xc8   : > { %v9195_v62 = vunpack.i.h.bf16 %v9193_v21  ;;  %v9194_v63 = vunpack.i.l.bf16 %v9193_v21 }
  0xc9   : > { %v1177_v11 = vsel %vm1146_vm1, %v1169_v9, %v9199_v1  ;;  %v1152_v12 = vsel %vm1146_vm1, %v1143_v10, %v9200_v0 }
  0xca   : > { %v9208_v3 = vpop.permute.xlu1 %9207  ;;  %v1232_v4 = vsel %vm1155_vm2, %v1224_v2, %v9194_v63  ;;  %v1208_v5 = vsel %vm1155_vm2, %v1200_v54, %v9195_v62 }
  0xcb   : > { %v9203_v6 = vpop.permute.xlu0 %9202  ;;  %1496 = vmatprep.mubr.f32.mxu1 %v1232_v4  ;;  %v9210_v16 = vunpack.i.h.bf16 %v9208_v3  ;;  %v9209_v17 = vunpack.i.l.bf16 %v9208_v3 }
  0xcc   : > { %v9205_v7 = vunpack.i.h.bf16 %v9203_v6  ;;  %v9204_v8 = vunpack.i.l.bf16 %v9203_v6  ;;  %1497 = vmatmul.mubr.f32.gmra.mrb[8].mxu1 %v1208_v5 }
  0xcd   : > { %v1217_v55 = vsel %vm562_vm0, %v7420_v19, %v9209_v17  ;;  %v1193_v25 = vsel %vm562_vm0, %v10872_v53, %v9210_v16  ;;  %v7422_v17 = vld [vmem:[%s10533_s18 + $0xa0] sm:$0xff] }
  0xce   : > { %v9218_v13 = vpop.permute.xlu1 %9217  ;;  %v1185_v14 = vsel %vm1155_vm2, %v1177_v11, %v9204_v8  ;;  %v1161_v15 = vsel %vm1155_vm2, %v1152_v12, %v9205_v7 }
  0xcf   : > { %v9213_v18 = vpop.permute.xlu0 %9212  ;;  %1396 = vmatprep.mubr.f32.mxu0 %v1185_v14  ;;  %v9220_v26 = vunpack.i.h.bf16 %v9218_v13  ;;  %v9219_v27 = vunpack.i.l.bf16 %v9218_v13 }
  0xd0   : > { %1397 = vmatmul.mubr.f32.gmra.mrb[10].mxu0 %v1161_v15  ;;  %v9215_v22 = vunpack.i.h.bf16 %v9213_v18  ;;  %v9214_v23 = vunpack.i.l.bf16 %v9213_v18 }
  0xd1   : > { %v1170_v41 = vsel %vm562_vm0, %v10872_v53, %v9219_v27  ;;  %v1144_v42 = vsel %vm562_vm0, %v10853_v20, %v9220_v26 }
  0xd2   : > { %v9228_v24 = vpop.permute.xlu1 %9227  ;;  %v1225_v32 = vsel %vm1146_vm1, %v1217_v55, %v9214_v23  ;;  %v1201_v33 = vsel %vm1146_vm1, %v1193_v25, %v9215_v22 }
  0xd3   : > { %v9223_v56 = vpop.permute.xlu0 %9222  ;;  %v9230_v30 = vunpack.i.h.bf16 %v9228_v24  ;;  %v9229_v31 = vunpack.i.l.bf16 %v9228_v24 }
  0xd4   : > { %v9225_v28 = vunpack.i.h.bf16 %v9223_v56  ;;  %v9224_v29 = vunpack.i.l.bf16 %v9223_v56 }
  0xd5   : > { %v1178_v43 = vsel %vm1146_vm1, %v1170_v41, %v9229_v31  ;;  %v1153_v44 = vsel %vm1146_vm1, %v1144_v42, %v9230_v30  ;;  %v1872_v30 = vld [vmem:[%s14035_s3 + $0x108] sm:$0xff]  ;;  %v1857_v41 = vld [vmem:[%s14035_s3 + $0x90] sm:$0xff]  ;;  %v1858_v42 = vld [vmem:[%s14035_s3 + $0x98] sm:$0xff] }
  0xd6   : > { %v9238_v34 = vpop.permute.xlu1 %9237  ;;  %v1233_v35 = vsel %vm1155_vm2, %v1225_v32, %v9224_v29  ;;  %v1209_v36 = vsel %vm1155_vm2, %v1201_v33, %v9225_v28  ;;  %v10374_v28 = vmov 0.0   ;;  %v1871_v29 = vld [vmem:[%s14035_s3 + $0x100] sm:$0xff]  ;;  %v1873_v32 = vld [vmem:[%s14035_s3 + $0x110] sm:$0xff]  ;;  %v1874_v33 = vld [vmem:[%s14035_s3 + $0x118] sm:$0xff] }
  0xd7   : > { %v9233_v37 = vpop.permute.xlu0 %9232  ;;  %1501 = vmatprep.mubr.f32.mxu1 %v1233_v35  ;;  %v9240_v50 = vunpack.i.h.bf16 %v9238_v34  ;;  %v9239_v51 = vunpack.i.l.bf16 %v9238_v34  ;;  %567 = vst.msk [vmem:[#allocation2 + $0x20] sm:$0xff] %vm562_vm0, %v10374_v28  ;;  %563 = vst.msk [vmem:[#allocation2] sm:$0xff] %vm562_vm0, %v10374_v28  ;;  %v8684_v31 = vpack.c.bf16 %v1872_v30, %v1871_v29  ;;  %v8688_v34 = vpack.c.bf16 %v1874_v33, %v1873_v32  ;;  %v1855_v35 = vld [vmem:[%s14035_s3 + $0x80] sm:$0xff]  ;;  %v1869_v32 = vld [vmem:[%s14035_s3 + $0xf0] sm:$0xff] }
  0xd8   : > { %v9235_v38 = vunpack.i.h.bf16 %v9233_v37  ;;  %v9234_v39 = vunpack.i.l.bf16 %v9233_v37  ;;  %1502 = vmatmul.mubr.f32.gmra.mrb[10].mxu1 %v1209_v36  ;;  %564 = vst.msk [vmem:[#allocation2 + $0x8] sm:$0xff] %vm562_vm0, %v10374_v28  ;;  %565 = vst.msk [vmem:[#allocation2 + $0x10] sm:$0xff] %vm562_vm0, %v10374_v28  ;;  %v1856_v36 = vld [vmem:[%s14035_s3 + $0x88] sm:$0xff]  ;;  %v1839_v37 = vld [vmem:[%s14035_s3] sm:$0xff] }
  0xd9   : > { %v1218_v20 = vsel %vm562_vm0, %v7421_v47, %v9239_v51  ;;  %v1194_v45 = vsel %vm562_vm0, %v7420_v19, %v9240_v50  ;;  %566 = vst.msk [vmem:[#allocation2 + $0x18] sm:$0xff] %vm562_vm0, %v10374_v28  ;;  %568 = vst.msk [vmem:[#allocation2 + $0x28] sm:$0xff] %vm562_vm0, %v10374_v28  ;;  %8685 = vmatprep.subr.bf16.mxu1 %v8684_v31  ;;  %v1860_v50 = vld [vmem:[%s14035_s3 + $0xa8] sm:$0xff]  ;;  %v1870_v33 = vld [vmem:[%s14035_s3 + $0xf8] sm:$0xff] }
  0xda   : > { %v9248_v46 = vpop.permute.xlu1 %9247  ;;  %v1186_v40 = vsel %vm1155_vm2, %v1178_v43, %v9234_v39  ;;  %v1162_v48 = vsel %vm1155_vm2, %v1153_v44, %v9235_v38  ;;  %569 = vst.msk [vmem:[#allocation2 + $0x30] sm:$0xff] %vm562_vm0, %v10374_v28  ;;  %570 = vst.msk [vmem:[#allocation2 + $0x38] sm:$0xff] %vm562_vm0, %v10374_v28  ;;  %8687 = vmatpush3.bf16.msra.mxu1 %v8684_v31  ;;  %v8652_v38 = vpack.c.bf16 %v1856_v36, %v1855_v35  ;;  %v1840_v39 = vld [vmem:[%s14035_s3 + $0x8] sm:$0xff]  ;;  %v1854_v36 = vld [vmem:[%s14035_s3 + $0x78] sm:$0xff] }
  0xdb   : > { %v9243_v52 = vpop.permute.xlu0 %9242  ;;  %1401 = vmatprep.mubr.f32.mxu0 %v1186_v40  ;;  %v9250_v59 = vunpack.i.h.bf16 %v9248_v46  ;;  %v9249_v60 = vunpack.i.l.bf16 %v9248_v46  ;;  %571 = vst.msk [vmem:[#allocation2 + $0x40] sm:$0xff] %vm562_vm0, %v10374_v28  ;;  %572 = vst.msk [vmem:[#allocation2 + $0x48] sm:$0xff] %vm562_vm0, %v10374_v28  ;;  %8689 = vmatprep.subr.bf16.mxu1 %v8688_v34  ;;  %v8654_v43 = vpack.c.bf16 %v1840_v39, %v1839_v37  ;;  %v1841_v46 = vld [vmem:[%s14035_s3 + $0x10] sm:$0xff]  ;;  %v1842_v40 = vld [vmem:[%s14035_s3 + $0x18] sm:$0xff] }
  0xdc   : > { %1402 = vmatmul.mubr.f32.gmra.mrb[12].mxu0 %v1162_v48  ;;  %v9245_v49 = vunpack.i.h.bf16 %v9243_v52  ;;  %v9244_v57 = vunpack.i.l.bf16 %v9243_v52  ;;  %573 = vst.msk [vmem:[#allocation2 + $0x50] sm:$0xff] %vm562_vm0, %v10374_v28  ;;  %574 = vst.msk [vmem:[#allocation2 + $0x58] sm:$0xff] %vm562_vm0, %v10374_v28  ;;  %v8656_v44 = vpack.c.bf16 %v1858_v42, %v1857_v41  ;;  %v1859_v48 = vld [vmem:[%s14035_s3 + $0xa0] sm:$0xff]  ;;  %8653 = vmatprep.subr.bf16.mxu0 %v8652_v38 }
  0xdd   : > { %v1171_v8 = vsel %vm562_vm0, %v7420_v19, %v9249_v60  ;;  %v1145_v9 = vsel %vm562_vm0, %v10872_v53, %v9250_v59  ;;  %575 = vst.msk [vmem:[#allocation2 + $0x60] sm:$0xff] %vm562_vm0, %v10374_v28  ;;  %576 = vst.msk [vmem:[#allocation2 + $0x68] sm:$0xff] %vm562_vm0, %v10374_v28  ;;  %8655 = vmatpush3.bf16.msra.mxu0 %v8654_v43  ;;  %v8658_v51 = vpack.c.bf16 %v1842_v40, %v1841_v46  ;;  %v1846_v59 = vld [vmem:[%s14035_s3 + $0x38] sm:$0xff] }
  0xde   : > { %v9258_v58 = vpop.permute.xlu1 %9257  ;;  %v1226_v1 = vsel %vm1146_vm1, %v1218_v20, %v9244_v57  ;;  %v1202_v2 = vsel %vm1146_vm1, %v1194_v45, %v9245_v49  ;;  %577 = vst.msk [vmem:[#allocation2 + $0x70] sm:$0xff] %vm562_vm0, %v10374_v28  ;;  %578 = vst.msk [vmem:[#allocation2 + $0x78] sm:$0xff] %vm562_vm0, %v10374_v28  ;;  %8691 = vmatpush3.bf16.msra.mxu1 %v8688_v34  ;;  %8657 = vmatprep.subr.bf16.mxu0 %v8656_v44  ;;  %v1844_v49 = vld [vmem:[%s14035_s3 + $0x28] sm:$0xff]  ;;  %v1861_v57 = vld [vmem:[%s14035_s3 + $0xb0] sm:$0xff] }
  0xdf   : > { %v9253_v21 = vpop.permute.xlu0 %9252  ;;  %v9260_v63 = vunpack.i.h.bf16 %v9258_v58  ;;  %v9259_v0 = vunpack.i.l.bf16 %v9258_v58  ;;  %579 = vst.msk [vmem:[#allocation2 + $0x80] sm:$0xff] %vm562_vm0, %v10374_v28  ;;  %580 = vst.msk [vmem:[#allocation2 + $0x88] sm:$0xff] %vm562_vm0, %v10374_v28  ;;  %v8660_v52 = vpack.c.bf16 %v1860_v50, %v1859_v48  ;;  %v1862_v58 = vld [vmem:[%s14035_s3 + $0xb8] sm:$0xff]  ;;  %v1845_v45 = vld [vmem:[%s14035_s3 + $0x30] sm:$0xff]  ;;  %v8680_v35 = vpack.c.bf16 %v1870_v33, %v1869_v32 }
  0xe0   : > { %v9255_v61 = vunpack.i.h.bf16 %v9253_v21  ;;  %v9254_v62 = vunpack.i.l.bf16 %v9253_v21  ;;  %581 = vst.msk [vmem:[#allocation2 + $0x90] sm:$0xff] %vm562_vm0, %v10374_v28  ;;  %582 = vst.msk [vmem:[#allocation2 + $0x98] sm:$0xff] %vm562_vm0, %v10374_v28  ;;  %v8664_v20 = vpack.c.bf16 %v1862_v58, %v1861_v57  ;;  %v8666_v60 = vpack.c.bf16 %v1846_v59, %v1845_v45  ;;  %v1853_v34 = vld [vmem:[%s14035_s3 + $0x70] sm:$0xff] }
  0xe1   : > { %v1179_v12 = vsel %vm1146_vm1, %v1171_v8, %v9259_v0  ;;  %v1154_v13 = vsel %vm1146_vm1, %v1145_v9, %v9260_v63  ;;  %583 = vst.msk [vmem:[#allocation2 + $0xa0] sm:$0xff] %vm562_vm0, %v10374_v28  ;;  %584 = vst.msk [vmem:[#allocation2 + $0xa8] sm:$0xff] %vm562_vm0, %v10374_v28  ;;  %8659 = vmatpush3.bf16.msra.mxu0 %v8658_v51  ;;  %v11050_v0 = vld [vmem:[%s14034_s2] ss:$0 sm:$0xff]  ;;  %v1848_v8 = vld [vmem:[%s14035_s3 + $0x48] sm:$0xff]  ;;  %v8682_v39 = vpack.c.bf16 %v1854_v36, %v1853_v34 }
  0xe2   : > { %v1234_v54 = vsel %vm1155_vm2, %v1226_v1, %v9254_v62  ;;  %v9268_v3 = vpop.permute.xlu1 %9267  ;;  %v1210_v4 = vsel %vm1155_vm2, %v1202_v2, %v9255_v61  ;;  %585 = vst.msk [vmem:[#allocation2 + $0xb0] sm:$0xff] %vm562_vm0, %v10374_v28  ;;  %586 = vst.msk [vmem:[#allocation2 + $0xb8] sm:$0xff] %vm562_vm0, %v10374_v28  ;;  %8661 = vmatprep.subr.bf16.mxu0 %v8660_v52  ;;  %v11108_v43 = vld [vmem:[#allocation2 + $0x9] sm:$0xff] }
  0xe3   : > { %v9263_v5 = vpop.permute.xlu0 %9262  ;;  %1506 = vmatprep.mubr.f32.mxu1 %v1234_v54  ;;  %v9270_v10 = vunpack.i.h.bf16 %v9268_v3  ;;  %v9269_v11 = vunpack.i.l.bf16 %v9268_v3  ;;  %587 = vst.msk [vmem:[#allocation2 + $0xc0] sm:$0xff] %vm562_vm0, %v10374_v28  ;;  %588 = vst.msk [vmem:[#allocation2 + $0xc8] sm:$0xff] %vm562_vm0, %v10374_v28  ;;  %v1863_v54 = vld [vmem:[%s14035_s3 + $0xc0] sm:$0xff]  ;;  %v1864_v3 = vld [vmem:[%s14035_s3 + $0xc8] sm:$0xff] }
  0xe4   : > { %v9265_v6 = vunpack.i.h.bf16 %v9263_v5  ;;  %v9264_v7 = vunpack.i.l.bf16 %v9263_v5  ;;  %1507 = vmatmul.mubr.f32.gmra.mrb[12].mxu1 %v1210_v4  ;;  %589 = vst.msk [vmem:[#allocation2 + $0xd0] sm:$0xff] %vm562_vm0, %v10374_v28  ;;  %590 = vst.msk [vmem:[#allocation2 + $0xd8] sm:$0xff] %vm562_vm0, %v10374_v28 }
  0xe5   : > { %v1219_v53 = vsel %vm562_vm0, %v7422_v17, %v9269_v11  ;;  %v1195_v56 = vsel %vm562_vm0, %v7421_v47, %v9270_v10  ;;  %591 = vst.msk [vmem:[#allocation2 + $0xe0] sm:$0xff] %vm562_vm0, %v10374_v28  ;;  %592 = vst.msk [vmem:[#allocation2 + $0xe8] sm:$0xff] %vm562_vm0, %v10374_v28  ;;  %v1843_v47 = vld [vmem:[%s14035_s3 + $0x20] sm:$0xff] }
  0xe6   : > { %v1187_v14 = vsel %vm1155_vm2, %v1179_v12, %v9264_v7  ;;  %v9278_v15 = vpop.permute.xlu1 %9277  ;;  %v1163_v16 = vsel %vm1155_vm2, %v1154_v13, %v9265_v6  ;;  %593 = vst.msk [vmem:[#allocation3] sm:$0xff] %vm562_vm0, %v10374_v28  ;;  %594 = vst.msk [vmem:[#allocation3 + $0x8] sm:$0xff] %vm562_vm0, %v10374_v28  ;;  %v8662_v21 = vpack.c.bf16 %v1844_v49, %v1843_v47  ;;  %v1847_v7 = vld [vmem:[%s14035_s3 + $0x40] sm:$0xff]  ;;  %v1865_v13 = vld [vmem:[%s14035_s3 + $0xd0] sm:$0xff] }
  0xe7   : > { %v9273_v18 = vpop.permute.xlu0 %9272  ;;  %1406 = vmatprep.mubr.f32.mxu0 %v1187_v14  ;;  %v9280_v22 = vunpack.i.h.bf16 %v9278_v15  ;;  %v9279_v23 = vunpack.i.l.bf16 %v9278_v15  ;;  %595 = vst.msk [vmem:[#allocation3 + $0x10] sm:$0xff] %vm562_vm0, %v10374_v28  ;;  %596 = vst.msk [vmem:[#allocation3 + $0x18] sm:$0xff] %vm562_vm0, %v10374_v28  ;;  %v8668_v6 = vpack.c.bf16 %v1864_v3, %v1863_v54  ;;  %v8670_v9 = vpack.c.bf16 %v1848_v8, %v1847_v7  ;;  %v1866_v14 = vld [vmem:[%s14035_s3 + $0xd8] sm:$0xff]  ;;  %v1849_v15 = vld [vmem:[%s14035_s3 + $0x50] sm:$0xff] }
  0xe8   : > { %v9275_v19 = vunpack.i.h.bf16 %v9273_v18  ;;  %v9274_v24 = vunpack.i.l.bf16 %v9273_v18  ;;  %1407 = vmatmul.mubr.f32.gmra.mrb[14].mxu0 %v1163_v16  ;;  %597 = vst.msk [vmem:[#allocation3 + $0x20] sm:$0xff] %vm562_vm0, %v10374_v28  ;;  %598 = vst.msk [vmem:[#allocation3 + $0x28] sm:$0xff] %vm562_vm0, %v10374_v28  ;;  %v8672_v17 = vpack.c.bf16 %v1866_v14, %v1865_v13  ;;  %v1850_v18 = vld [vmem:[%s14035_s3 + $0x58] sm:$0xff] }
  0xe9   : > { %599 = vst.msk [vmem:[#allocation3 + $0x30] sm:$0xff] %vm562_vm0, %v10374_v28  ;;  %600 = vst.msk [vmem:[#allocation3 + $0x38] sm:$0xff] %vm562_vm0, %v10374_v28  ;;  %8663 = vmatpush3.bf16.msra.mxu0 %v8662_v21 }
  0xea   : > { %v1227_v55 = vsel %vm1146_vm1, %v1219_v53, %v9274_v24  ;;  %v1203_v25 = vsel %vm1146_vm1, %v1195_v56, %v9275_v19  ;;  %601 = vst.msk [vmem:[#allocation3 + $0x40] sm:$0xff] %vm562_vm0, %v10374_v28  ;;  %602 = vst.msk [vmem:[#allocation3 + $0x48] sm:$0xff] %vm562_vm0, %v10374_v28  ;;  %8665 = vmatprep.subr.bf16.mxu0 %v8664_v20  ;;  %v8674_v19 = vpack.c.bf16 %v1850_v18, %v1849_v15  ;;  %v1851_v53 = vld [vmem:[%s14035_s3 + $0x60] sm:$0xff]  ;;  %v1852_v56 = vld [vmem:[%s14035_s3 + $0x68] sm:$0xff] }
  0xeb   : > { %v1235_v26 = vsel %vm1155_vm2, %v1227_v55, %v9279_v23  ;;  %v1211_v27 = vsel %vm1155_vm2, %v1203_v25, %v9280_v22  ;;  %603 = vst.msk [vmem:[#allocation3 + $0x50] sm:$0xff] %vm562_vm0, %v10374_v28  ;;  %604 = vst.msk [vmem:[#allocation3 + $0x58] sm:$0xff] %vm562_vm0, %v10374_v28  ;;  %v1867_v22 = vld [vmem:[%s14035_s3 + $0xe0] sm:$0xff]  ;;  %v1868_v23 = vld [vmem:[%s14035_s3 + $0xe8] sm:$0xff]  ;;  %v8678_v55 = vpack.c.bf16 %v1852_v56, %v1851_v53 }
  0xec   : > { %1511 = vmatprep.mubr.f32.mxu1 %v1235_v26  ;;  %605 = vst.msk [vmem:[#allocation3 + $0x60] sm:$0xff] %vm562_vm0, %v10374_v28  ;;  %606 = vst.msk [vmem:[#allocation3 + $0x68] sm:$0xff] %vm562_vm0, %v10374_v28  ;;  %v8676_v24 = vpack.c.bf16 %v1868_v23, %v1867_v22  ;;  %v11090_v25 = vld [vmem:[#allocation2 + $0x8] sm:$0xff] }
  0xed   : > { %1512 = vmatmul.mubr.f32.gmra.mrb[14].mxu1 %v1211_v27  ;;  %607 = vst.msk [vmem:[#allocation3 + $0x70] sm:$0xff] %vm562_vm0, %v10374_v28  ;;  %608 = vst.msk [vmem:[#allocation3 + $0x78] sm:$0xff] %vm562_vm0, %v10374_v28  ;;  %8667 = vmatpush3.bf16.msra.mxu0 %v8666_v60 }
  0xee   : > { %609 = vst.msk [vmem:[#allocation3 + $0x80] sm:$0xff] %vm562_vm0, %v10374_v28  ;;  %610 = vst.msk [vmem:[#allocation3 + $0x88] sm:$0xff] %vm562_vm0, %v10374_v28  ;;  %8669 = vmatprep.subr.bf16.mxu0 %v8668_v6 }
  0xef   : > { %611 = vst.msk [vmem:[#allocation3 + $0x90] sm:$0xff] %vm562_vm0, %v10374_v28  ;;  %612 = vst.msk [vmem:[#allocation3 + $0x98] sm:$0xff] %vm562_vm0, %v10374_v28 }
  0xf0   : > { %613 = vst.msk [vmem:[#allocation3 + $0xa0] sm:$0xff] %vm562_vm0, %v10374_v28  ;;  %614 = vst.msk [vmem:[#allocation3 + $0xa8] sm:$0xff] %vm562_vm0, %v10374_v28 }
  0xf1   : > { %615 = vst.msk [vmem:[#allocation3 + $0xb0] sm:$0xff] %vm562_vm0, %v10374_v28  ;;  %616 = vst.msk [vmem:[#allocation3 + $0xb8] sm:$0xff] %vm562_vm0, %v10374_v28  ;;  %8671 = vmatpush3.bf16.msra.mxu0 %v8670_v9 }
  0xf2   : > { %617 = vst.msk [vmem:[#allocation3 + $0xc0] sm:$0xff] %vm562_vm0, %v10374_v28  ;;  %618 = vst.msk [vmem:[#allocation3 + $0xc8] sm:$0xff] %vm562_vm0, %v10374_v28  ;;  %8673 = vmatprep.subr.bf16.mxu0 %v8672_v17 }
  0xf3   : > { %619 = vst.msk [vmem:[#allocation3 + $0xd0] sm:$0xff] %vm562_vm0, %v10374_v28  ;;  %620 = vst.msk [vmem:[#allocation3 + $0xd8] sm:$0xff] %vm562_vm0, %v10374_v28 }
  0xf4   : > { %621 = vst.msk [vmem:[#allocation3 + $0xe0] sm:$0xff] %vm562_vm0, %v10374_v28  ;;  %622 = vst.msk [vmem:[#allocation3 + $0xe8] sm:$0xff] %vm562_vm0, %v10374_v28 }
  0xf5   : > { %8675 = vmatpush3.bf16.msra.mxu0 %v8674_v19 }
  0xf6   : > { %8677 = vmatprep.subr.bf16.mxu0 %v8676_v24 }
  0xf9   : > { %8679 = vmatpush3.bf16.msra.mxu0 %v8678_v55 }
  0xfa   : > { %8681 = vmatprep.subr.bf16.mxu0 %v8680_v35 }
  0xfd   : > { %8683 = vmatpush3.bf16.msra.mxu0 %v8682_v39 }
 0x168   : > { %v7716_v61 = vpop.f32.mrb[0].mxu0 }
 0x169   : > { %v7717_v62 = vpop.f32.mrb[1].mxu0 }
 0x16a   : > { %v7718_v63 = vadd.f32 %v7717_v62, %v7716_v61 }
 0x16c   : > { %v1374_v4 = vadd.f32 %v7718_v63, %v11050_v0 }
 0x16f   : > { %v7772_v1 = vpop.f32.mrb[0].mxu1 }
 0x170   : > { %v7773_v2 = vpop.f32.mrb[1].mxu1 }
 0x171   : > { %v7774_v5 = vadd.f32 %v7773_v2, %v7772_v1 }
 0x173   : > { %v1479_v10 = vadd.f32 %v7774_v5, %v1374_v4  ;;  %v7719_v11 = vpop.f32.mrb[2].mxu0 }
 0x174   : > { %v7720_v12 = vpop.f32.mrb[3].mxu0 }
 0x175   : > { %1518 = vst.msk [vmem:[#allocation2 + $0x20] sm:$0xff] %vm562_vm0, %v1479_v10  ;;  %v7721_v16 = vadd.f32 %v7720_v12, %v7719_v11 }
 0x177   : > { %v1379_v29 = vadd.f32 %v7721_v16, %v11050_v0 }
 0x17b   : > { %v7775_v26 = vpop.f32.mrb[2].mxu1 }
 0x17c   : > { %v7776_v27 = vpop.f32.mrb[3].mxu1  ;;  %v1566_v28 = vld [vmem:[#allocation2 + $0x21] sm:$0xff] }
 0x17d   : > { %v7777_v30 = vadd.f32 %v7776_v27, %v7775_v26  ;;  %v9281_v31 = vpack.i.bf16 %v11090_v25, %v1566_v28  ;;  %v11110_v46 = vld [vmem:[#allocation2 + $0x1f] sm:$0xff] }
 0x17e   : > { %v11124_v45 = vld [vmem:[#allocation2 + $0x20] sm:$0xff] }
 0x17f   : > { %v1484_v37 = vadd.f32 %v7777_v30, %v1379_v29  ;;  %v7722_v38 = vpop.f32.mrb[4].mxu0  ;;  %9282 = vrot.lane.b32.xlu0 %v9281_v31, %s14066_s27 }
 0x180   : > { %v7723_v41 = vpop.f32.mrb[5].mxu0 }
 0x181   : > { %1519 = vst.msk [vmem:[#allocation2 + $0x38] sm:$0xff] %vm562_vm0, %v1484_v37  ;;  %v7724_v42 = vadd.f32 %v7723_v41, %v7722_v38 }
 0x183   : > { %v1384_v52 = vadd.f32 %v7724_v42, %v11050_v0 }
 0x187   : > { %v7778_v44 = vpop.f32.mrb[4].mxu1 }
 0x188   : > { %v7779_v40 = vpop.f32.mrb[5].mxu1  ;;  %v1591_v48 = vld [vmem:[#allocation2 + $0x39] sm:$0xff] }
 0x189   : > { %v11112_v50 = vld [vmem:[#allocation2 + $0x37] sm:$0xff]  ;;  %v7780_v47 = vadd.f32 %v7779_v40, %v7778_v44  ;;  %8416 = vmatprep.mubr.msk.f32.mxu1 %vm562_vm0, %v1591_v48  ;;  %v9296_v60 = vpack.i.bf16 %v11124_v45, %v1591_v48 }
 0x18a   : > { %v11114_v51 = vld [vmem:[#allocation2 + $0x38] sm:$0xff]  ;;  %v9286_v49 = vpack.i.bf16 %v11108_v43, %v11112_v50 }
 0x18b   : > { %v9291_v57 = vpack.i.bf16 %v11110_v46, %v11114_v51  ;;  %v1489_v58 = vadd.f32 %v7780_v47, %v1384_v52  ;;  %v7725_v21 = vpop.f32.mrb[6].mxu0 }
 0x18c   : > { %9287 = vrot.lane.b32.xlu1 %v9286_v49, %s14067_s17  ;;  %v7726_v20 = vpop.f32.mrb[7].mxu0 }
 0x18d   : > { %9292 = vrot.lane.b32.xlu0 %v9291_v57, %s14065_s19  ;;  %1520 = vst.msk [vmem:[#allocation2 + $0x50] sm:$0xff] %vm562_vm0, %v1489_v58  ;;  %v7727_v59 = vadd.f32 %v7726_v20, %v7725_v21 }
 0x18f   : > { %v1389_v54 = vadd.f32 %v7727_v59, %v11050_v0 }
 0x190   : > { %9297 = vrot.lane.b32.xlu1 %v9296_v60, %s14066_s27 }
 0x193   : > { %v7781_v61 = vpop.f32.mrb[6].mxu1 }
 0x194   : > { %v7782_v62 = vpop.f32.mrb[7].mxu1  ;;  %v1592_v63 = vld [vmem:[#allocation2 + $0x51] sm:$0xff] }
 0x195   : > { %v11129_v1 = vld [vmem:[#allocation2 + $0x4f] sm:$0xff]  ;;  %v7783_v3 = vadd.f32 %v7782_v62, %v7781_v61  ;;  %8417 = vmatmul.mubr.msk.f32.vlgmr.msra.gmra.mrb[16].mxu1 %vm562_vm0, %v1592_v63  ;;  %v9311_v10 = vpack.i.bf16 %v11114_v51, %v1592_v63 }
 0x196   : > { %v11131_v2 = vld [vmem:[#allocation2 + $0x50] sm:$0xff]  ;;  %v9301_v4 = vpack.i.bf16 %v1566_v28, %v11129_v1 }
 0x197   : > { %v9306_v5 = vpack.i.bf16 %v11112_v50, %v11131_v2  ;;  %v1494_v6 = vadd.f32 %v7783_v3, %v1389_v54  ;;  %v7728_v7 = vpop.f32.mrb[8].mxu0 }
 0x198   : > { %9302 = vrot.lane.b32.xlu0 %v9301_v4, %s14067_s17  ;;  %v7729_v8 = vpop.f32.mrb[9].mxu0 }
 0x199   : > { %9307 = vrot.lane.b32.xlu1 %v9306_v5, %s14065_s19  ;;  %1521 = vst.msk [vmem:[#allocation2 + $0x68] sm:$0xff] %vm562_vm0, %v1494_v6  ;;  %v7730_v9 = vadd.f32 %v7729_v8, %v7728_v7  ;;  %v11199_v8 = vld [vmem:[#allocation2 + $0xe1] sm:$0xff] }
 0x19b   : > { %v1394_v16 = vadd.f32 %v7730_v9, %v11050_v0 }
 0x19c   : > { %9312 = vrot.lane.b32.xlu0 %v9311_v10, %s14066_s27 }
 0x19f   : > { %v7784_v11 = vpop.f32.mrb[8].mxu1 }
 0x1a0   : > { %v7785_v12 = vpop.f32.mrb[9].mxu1  ;;  %v1593_v13 = vld [vmem:[#allocation2 + $0x69] sm:$0xff] }
 0x1a1   : > { %v11143_v14 = vld [vmem:[#allocation2 + $0x68] sm:$0xff]  ;;  %v7786_v17 = vadd.f32 %v7785_v12, %v7784_v11  ;;  %8419 = vmatprep.mubr.msk.f32.mxu1 %vm562_vm0, %v1593_v13  ;;  %v9326_v56 = vpack.i.bf16 %v11131_v2, %v1593_v13 }
 0x1a2   : > { %v11145_v15 = vld [vmem:[#allocation2 + $0x67] sm:$0xff]  ;;  %v9321_v18 = vpack.i.bf16 %v11129_v1, %v11143_v14 }
 0x1a3   : > { %v9316_v22 = vpack.i.bf16 %v1591_v48, %v11145_v15  ;;  %v1499_v23 = vadd.f32 %v7786_v17, %v1394_v16  ;;  %v7731_v19 = vpop.f32.mrb[10].mxu0  ;;  %v11206_v16 = vld [vmem:[#allocation2 + $0xdf] sm:$0xff] }
 0x1a4   : > { %9322 = vrot.lane.b32.xlu0 %v9321_v18, %s14065_s19  ;;  %v7732_v24 = vpop.f32.mrb[11].mxu0 }
 0x1a5   : > { %9317 = vrot.lane.b32.xlu1 %v9316_v22, %s14067_s17  ;;  %1522 = vst.msk [vmem:[#allocation2 + $0x80] sm:$0xff] %vm562_vm0, %v1499_v23  ;;  %v7733_v53 = vadd.f32 %v7732_v24, %v7731_v19  ;;  %v11214_v22 = vld [vmem:[#allocation2 + $0xe0] sm:$0xff] }
 0x1a7   : > { %v1399_v30 = vadd.f32 %v7733_v53, %v11050_v0 }
 0x1a9   : > { %9327 = vrot.lane.b32.xlu1 %v9326_v56, %s14066_s27  ;;  %v11220_v56 = vld [vmem:[#allocation2 + $0x7] sm:$0xff] }
 0x1ab   : > { %v7787_v55 = vpop.f32.mrb[10].mxu1 }
 0x1ac   : > { %v7788_v26 = vpop.f32.mrb[11].mxu1  ;;  %v1594_v27 = vld [vmem:[#allocation2 + $0x81] sm:$0xff] }
 0x1ad   : > { %v11157_v28 = vld [vmem:[#allocation2 + $0x7f] sm:$0xff]  ;;  %v7789_v31 = vadd.f32 %v7788_v26, %v7787_v55  ;;  %8420 = vmatmul.mubr.msk.f32.gmra.mrb[18].mxu1 %vm562_vm0, %v1594_v27  ;;  %v9341_v38 = vpack.i.bf16 %v11143_v14, %v1594_v27 }
 0x1ae   : > { %v11159_v29 = vld [vmem:[#allocation2 + $0x80] sm:$0xff]  ;;  %v9331_v32 = vpack.i.bf16 %v1592_v63, %v11157_v28 }
 0x1af   : > { %v9336_v33 = vpack.i.bf16 %v11145_v15, %v11159_v29  ;;  %v1504_v34 = vadd.f32 %v7789_v31, %v1399_v30  ;;  %v7734_v35 = vpop.f32.mrb[12].mxu0 }
 0x1b0   : > { %9332 = vrot.lane.b32.xlu0 %v9331_v32, %s14067_s17  ;;  %v7735_v36 = vpop.f32.mrb[13].mxu0 }
 0x1b1   : > { %9337 = vrot.lane.b32.xlu1 %v9336_v33, %s14065_s19  ;;  %1523 = vst.msk [vmem:[#allocation2 + $0x98] sm:$0xff] %vm562_vm0, %v1504_v34  ;;  %v7736_v37 = vadd.f32 %v7735_v36, %v7734_v35 }
 0x1b3   : > { %v1404_v48 = vadd.f32 %v7736_v37, %v11050_v0 }
 0x1b4   : > { %9342 = vrot.lane.b32.xlu0 %v9341_v38, %s14066_s27 }
 0x1b7   : > { %v7790_v39 = vpop.f32.mrb[12].mxu1 }
 0x1b8   : > { %v7791_v41 = vpop.f32.mrb[13].mxu1  ;;  %v1595_v42 = vld [vmem:[#allocation2 + $0x99] sm:$0xff] }
 0x1b9   : > { %v11171_v44 = vld [vmem:[#allocation2 + $0x98] sm:$0xff]  ;;  %v7792_v52 = vadd.f32 %v7791_v41, %v7790_v39  ;;  %8422 = vmatprep.mubr.msk.f32.mxu1 %vm562_vm0, %v1595_v42  ;;  %v9356_v59 = vpack.i.bf16 %v11159_v29, %v1595_v42 }
 0x1ba   : > { %v11173_v40 = vld [vmem:[#allocation2 + $0x97] sm:$0xff]  ;;  %v9351_v47 = vpack.i.bf16 %v11157_v28, %v11171_v44 }
 0x1bb   : > { %v9346_v49 = vpack.i.bf16 %v1593_v13, %v11173_v40  ;;  %v1509_v57 = vadd.f32 %v7792_v52, %v1404_v48  ;;  %v7737_v58 = vpop.f32.mrb[14].mxu0 }
 0x1bc   : > { %9352 = vrot.lane.b32.xlu0 %v9351_v47, %s14065_s19  ;;  %v7738_v21 = vpop.f32.mrb[15].mxu0 }
 0x1bd   : > { %9347 = vrot.lane.b32.xlu1 %v9346_v49, %s14067_s17  ;;  %1524 = vst.msk [vmem:[#allocation2 + $0xb0] sm:$0xff] %vm562_vm0, %v1509_v57  ;;  %v7739_v20 = vadd.f32 %v7738_v21, %v7737_v58 }
 0x1bf   : > { %v1409_v62 = vadd.f32 %v7739_v20, %v11050_v0 }
 0x1c0   : > { %v7793_v60 = vpop.f32.mrb[14].mxu1 }
 0x1c1   : > { %9357 = vrot.lane.b32.xlu1 %v9356_v59, %s14066_s27  ;;  %v7794_v61 = vpop.f32.mrb[15].mxu1 }
 0x1c2   : > { %v7795_v63 = vadd.f32 %v7794_v61, %v7793_v60 }
 0x1c4   : > { %v1514_v54 = vadd.f32 %v7795_v63, %v1409_v62  ;;  %v1596_v3 = vld [vmem:[#allocation2 + $0xb1] sm:$0xff] }
 0x1c5   : > { %v11186_v4 = vld [vmem:[#allocation2 + $0xaf] sm:$0xff]  ;;  %8423 = vmatmul.mubr.msk.f32.gmra.mrb[20].mxu1 %vm562_vm0, %v1596_v3  ;;  %v9371_v0 = vpack.i.bf16 %v11171_v44, %v1596_v3  ;;  %v9386_v17 = vpack.i.bf16 %v1596_v3, %v11206_v16 }
 0x1c6   : > { %v11188_v5 = vld [vmem:[#allocation2 + $0xb0] sm:$0xff]  ;;  %v9361_v6 = vpack.i.bf16 %v1594_v27, %v11186_v4  ;;  %1525 = vst.msk [vmem:[#allocation2 + $0xc8] sm:$0xff] %vm562_vm0, %v1514_v54 }
 0x1c7   : > { %v9366_v7 = vpack.i.bf16 %v11173_v40, %v11188_v5 }
 0x1c8   : > { %9362 = vrot.lane.b32.xlu0 %v9361_v6, %s14067_s17 }
 0x1c9   : > { %9367 = vrot.lane.b32.xlu1 %v9366_v7, %s14065_s19 }
 0x1cc   : > { %9372 = vrot.lane.b32.xlu0 %v9371_v0, %s14066_s27 }
 0x1cd   : > { %v1597_v9 = vld [vmem:[#allocation2 + $0xc9] sm:$0xff] }
 0x1ce   : > { %v11201_v10 = vld [vmem:[#allocation2 + $0xc8] sm:$0xff]  ;;  %8425 = vmatprep.mubr.msk.f32.mxu1 %vm562_vm0, %v1597_v9  ;;  %v9391_v18 = vpack.i.bf16 %v11188_v5, %v1597_v9 }
 0x1cf   : > { %v1581_v11 = vld [vmem:[#allocation2 + $0xc7] sm:$0xff]  ;;  %v9381_v12 = vpack.i.bf16 %v11186_v4, %v11201_v10  ;;  %8426 = vmatmul.mubr.msk.f32.gmra.mrb[22].mxu1 %vm562_vm0, %v11199_v8 }
 0x1d0   : > { %v9376_v13 = vpack.i.bf16 %v1595_v42, %v1581_v11  ;;  %v9396_v23 = vpack.i.bf16 %v1581_v11, %v11214_v22 }
 0x1d1   : > { %9382 = vrot.lane.b32.xlu0 %v9381_v12, %s14065_s19 }
 0x1d2   : > { %9377 = vrot.lane.b32.xlu1 %v9376_v13, %s14067_s17 }
 0x1d5   : > { %9387 = vrot.lane.b32.xlu0 %v9386_v17, %s14067_s17 }
 0x1d6   : > { %9392 = vrot.lane.b32.xlu1 %v9391_v18, %s14066_s27 }
 0x1da   : > { %9397 = vrot.lane.b32.xlu1 %v9396_v23, %s14065_s19 }
 0x1f1   : > { %v9283_v19 = vpop.permute.xlu0 %9282 }
 0x1f2   : > { %v9285_v24 = vunpack.i.h.bf16 %v9283_v19  ;;  %v9284_v53 = vunpack.i.l.bf16 %v9283_v19 }
 0x1f4   : > { %v1791_v33 = vsel %vm562_vm0, %v11220_v56, %v9285_v24  ;;  %v1815_v34 = vsel %vm562_vm0, %v11124_v45, %v9284_v53 }
 0x1fe   : > { %v9288_v55 = vpop.permute.xlu1 %9287 }
 0x1ff   : > { %v9293_v26 = vpop.permute.xlu0 %9292  ;;  %v9290_v27 = vunpack.i.h.bf16 %v9288_v55  ;;  %v9289_v30 = vunpack.i.l.bf16 %v9288_v55 }
 0x200   : > { %v9295_v31 = vunpack.i.h.bf16 %v9293_v26  ;;  %v9294_v32 = vunpack.i.l.bf16 %v9293_v26 }
 0x201   : > { %v1823_v35 = vsel %vm1146_vm1, %v1815_v34, %v9289_v30  ;;  %v1799_v36 = vsel %vm1146_vm1, %v1791_v33, %v9290_v27 }
 0x202   : > { %v1831_v37 = vsel %vm1155_vm2, %v1823_v35, %v9294_v32  ;;  %v1807_v38 = vsel %vm1155_vm2, %v1799_v36, %v9295_v31  ;;  %v9298_v39 = vpop.permute.xlu1 %9297 }
 0x203   : > { %1963 = vmatprep.mubr.f32.mxu0 %v1831_v37  ;;  %v9300_v41 = vunpack.i.h.bf16 %v9298_v39  ;;  %v9299_v42 = vunpack.i.l.bf16 %v9298_v39 }
 0x204   : > { %1964 = vmatmul.mubr.f32.vlgmr.msra.gmra.mrb[16].mxu0 %v1807_v38 }
 0x205   : > { %v1816_v45 = vsel %vm562_vm0, %v11114_v51, %v9299_v42  ;;  %v1792_v21 = vsel %vm562_vm0, %v11110_v46, %v9300_v41 }
 0x20a   : > { %v9303_v48 = vpop.permute.xlu0 %9302 }
 0x20b   : > { %v9308_v52 = vpop.permute.xlu1 %9307  ;;  %v9305_v47 = vunpack.i.h.bf16 %v9303_v48  ;;  %v9304_v49 = vunpack.i.l.bf16 %v9303_v48 }
 0x20c   : > { %v9310_v57 = vunpack.i.h.bf16 %v9308_v52  ;;  %v9309_v58 = vunpack.i.l.bf16 %v9308_v52 }
 0x20d   : > { %v1824_v20 = vsel %vm1146_vm1, %v1816_v45, %v9304_v49  ;;  %v1800_v59 = vsel %vm1146_vm1, %v1792_v21, %v9305_v47 }
 0x20e   : > { %v1832_v60 = vsel %vm1155_vm2, %v1824_v20, %v9309_v58  ;;  %v1808_v61 = vsel %vm1155_vm2, %v1800_v59, %v9310_v57  ;;  %v9313_v62 = vpop.permute.xlu0 %9312 }
 0x20f   : > { %1968 = vmatprep.mubr.f32.mxu0 %v1832_v60  ;;  %v9315_v63 = vunpack.i.h.bf16 %v9313_v62  ;;  %v9314_v54 = vunpack.i.l.bf16 %v9313_v62 }
 0x210   : > { %1969 = vmatmul.mubr.f32.gmra.mrb[18].mxu0 %v1808_v61 }
 0x211   : > { %v1817_v46 = vsel %vm562_vm0, %v11131_v2, %v9314_v54  ;;  %v1793_v11 = vsel %vm562_vm0, %v11112_v50, %v9315_v63 }
 0x216   : > { %v9323_v3 = vpop.permute.xlu0 %9322 }
 0x217   : > { %v9318_v6 = vpop.permute.xlu1 %9317  ;;  %v9325_v7 = vunpack.i.h.bf16 %v9323_v3  ;;  %v9324_v51 = vunpack.i.l.bf16 %v9323_v3 }
 0x218   : > { %v9320_v0 = vunpack.i.h.bf16 %v9318_v6  ;;  %v9319_v9 = vunpack.i.l.bf16 %v9318_v6 }
 0x21a   : > { %v1825_v12 = vsel %vm1146_vm1, %v1817_v46, %v9319_v9  ;;  %v1801_v13 = vsel %vm1146_vm1, %v1793_v11, %v9320_v0 }
 0x21b   : > { %v1833_v17 = vsel %vm1155_vm2, %v1825_v12, %v9324_v51  ;;  %v1809_v18 = vsel %vm1155_vm2, %v1801_v13, %v9325_v7  ;;  %v9328_v23 = vpop.permute.xlu1 %9327 }
 0x21c   : > { %1973 = vmatprep.mubr.f32.mxu0 %v1833_v17  ;;  %v9330_v19 = vunpack.i.h.bf16 %v9328_v23  ;;  %v9329_v24 = vunpack.i.l.bf16 %v9328_v23 }
 0x21d   : > { %1974 = vmatmul.mubr.f32.gmra.mrb[20].mxu0 %v1809_v18 }
 0x21e   : > { %v1818_v50 = vsel %vm562_vm0, %v11143_v14, %v9329_v24  ;;  %v1794_v31 = vsel %vm562_vm0, %v11129_v1, %v9330_v19 }
 0x222   : > { %v9333_v53 = vpop.permute.xlu0 %9332 }
 0x223   : > { %v9338_v55 = vpop.permute.xlu1 %9337  ;;  %v9335_v26 = vunpack.i.h.bf16 %v9333_v53  ;;  %v9334_v2 = vunpack.i.l.bf16 %v9333_v53 }
 0x224   : > { %v9340_v27 = vunpack.i.h.bf16 %v9338_v55  ;;  %v9339_v30 = vunpack.i.l.bf16 %v9338_v55 }
 0x225   : > { %v1826_v32 = vsel %vm1146_vm1, %v1818_v50, %v9334_v2  ;;  %v1802_v33 = vsel %vm1146_vm1, %v1794_v31, %v9335_v26 }
 0x226   : > { %v1834_v34 = vsel %vm1155_vm2, %v1826_v32, %v9339_v30  ;;  %v1810_v35 = vsel %vm1155_vm2, %v1802_v33, %v9340_v27  ;;  %v9343_v36 = vpop.permute.xlu0 %9342 }
 0x227   : > { %1978 = vmatprep.mubr.f32.mxu0 %v1834_v34  ;;  %v9345_v37 = vunpack.i.h.bf16 %v9343_v36  ;;  %v9344_v38 = vunpack.i.l.bf16 %v9343_v36 }
 0x228   : > { %1979 = vmatmul.mubr.f32.gmra.mrb[22].mxu0 %v1810_v35 }
 0x229   : > { %v1819_v1 = vsel %vm562_vm0, %v11159_v29, %v9344_v38  ;;  %v1795_v47 = vsel %vm562_vm0, %v11145_v15, %v9345_v37 }
 0x22e   : > { %v9353_v39 = vpop.permute.xlu0 %9352 }
 0x22f   : > { %v9348_v41 = vpop.permute.xlu1 %9347  ;;  %v9355_v42 = vunpack.i.h.bf16 %v9353_v39  ;;  %v9354_v14 = vunpack.i.l.bf16 %v9353_v39 }
 0x230   : > { %v9350_v48 = vunpack.i.h.bf16 %v9348_v41  ;;  %v9349_v52 = vunpack.i.l.bf16 %v9348_v41 }
 0x232   : > { %v1827_v49 = vsel %vm1146_vm1, %v1819_v1, %v9349_v52  ;;  %v1803_v57 = vsel %vm1146_vm1, %v1795_v47, %v9350_v48  ;;  %v2558_v48 = vld [vmem:[%s14038_s6 + $0x110] sm:$0xff]  ;;  %v2559_v52 = vld [vmem:[%s14038_s6 + $0x118] sm:$0xff] }
 0x233   : > { %v1835_v58 = vsel %vm1155_vm2, %v1827_v49, %v9354_v14  ;;  %v1811_v45 = vsel %vm1155_vm2, %v1803_v57, %v9355_v42  ;;  %v9358_v21 = vpop.permute.xlu1 %9357  ;;  %v8728_v1 = vpack.c.bf16 %v2559_v52, %v2558_v48  ;;  %v2553_v48 = vld [vmem:[%s14038_s6 + $0xe8] sm:$0xff] }
 0x234   : > { %1983 = vmatprep.mubr.f32.mxu0 %v1835_v58  ;;  %v9360_v20 = vunpack.i.h.bf16 %v9358_v21  ;;  %v9359_v59 = vunpack.i.l.bf16 %v9358_v21 }
 0x235   : > { %1984 = vmatmul.mubr.f32.gmra.mrb[24].mxu0 %v1811_v45 }
 0x236   : > { %v1820_v15 = vsel %vm562_vm0, %v11171_v44, %v9359_v59  ;;  %v1796_v3 = vsel %vm562_vm0, %v11157_v28, %v9360_v20  ;;  %v2540_v20 = vld [vmem:[%s14038_s6 + $0x80] sm:$0xff]  ;;  %v2541_v59 = vld [vmem:[%s14038_s6 + $0x88] sm:$0xff] }
 0x23a   : > { %v9363_v60 = vpop.permute.xlu0 %9362 }
 0x23b   : > { %v9368_v61 = vpop.permute.xlu1 %9367  ;;  %v9365_v62 = vunpack.i.h.bf16 %v9363_v60  ;;  %v9364_v29 = vunpack.i.l.bf16 %v9363_v60  ;;  %v2524_v60 = vld [vmem:[%s14038_s6] sm:$0xff] }
 0x23c   : > { %v9370_v63 = vunpack.i.h.bf16 %v9368_v61  ;;  %v9369_v54 = vunpack.i.l.bf16 %v9368_v61  ;;  %v8692_v61 = vpack.c.bf16 %v2541_v59, %v2540_v20  ;;  %v2536_v59 = vld [vmem:[%s14038_s6 + $0x60] sm:$0xff] }
 0x23d   : > { %v1828_v6 = vsel %vm1146_vm1, %v1820_v15, %v9364_v29  ;;  %v1804_v7 = vsel %vm1146_vm1, %v1796_v3, %v9365_v62  ;;  %v2525_v62 = vld [vmem:[%s14038_s6 + $0x8] sm:$0xff]  ;;  %v2542_v29 = vld [vmem:[%s14038_s6 + $0x90] sm:$0xff] }
 0x23e   : > { %v9373_v51 = vpop.permute.xlu0 %9372  ;;  %v1836_v0 = vsel %vm1155_vm2, %v1828_v6, %v9369_v54  ;;  %v1812_v9 = vsel %vm1155_vm2, %v1804_v7, %v9370_v63  ;;  %v2543_v63 = vld [vmem:[%s14038_s6 + $0x98] sm:$0xff]  ;;  %v8694_v54 = vpack.c.bf16 %v2525_v62, %v2524_v60  ;;  %v2526_v3 = vld [vmem:[%s14038_s6 + $0x10] sm:$0xff]  ;;  %v2544_v7 = vld [vmem:[%s14038_s6 + $0xa0] sm:$0xff]  ;;  %8693 = vmatprep.subr.bf16.mxu0 %v8692_v61 }
 0x23f   : > { %1988 = vmatprep.mubr.f32.mxu0 %v1836_v0  ;;  %v9375_v46 = vunpack.i.h.bf16 %v9373_v51  ;;  %v9374_v11 = vunpack.i.l.bf16 %v9373_v51  ;;  %v8696_v15 = vpack.c.bf16 %v2543_v63, %v2542_v29  ;;  %v2527_v6 = vld [vmem:[%s14038_s6 + $0x18] sm:$0xff]  ;;  %v2545_v51 = vld [vmem:[%s14038_s6 + $0xa8] sm:$0xff] }
 0x240   : > { %1989 = vmatmul.mubr.f32.gmra.mrb[26].mxu0 %v1812_v9  ;;  %v8698_v0 = vpack.c.bf16 %v2527_v6, %v2526_v3  ;;  %v8700_v9 = vpack.c.bf16 %v2545_v51, %v2544_v7  ;;  %v2537_v60 = vld [vmem:[%s14038_s6 + $0x68] sm:$0xff]  ;;  %v2554_v3 = vld [vmem:[%s14038_s6 + $0xf0] sm:$0xff]  ;;  %v2555_v6 = vld [vmem:[%s14038_s6 + $0xf8] sm:$0xff] }
 0x241   : > { %v1821_v28 = vsel %vm562_vm0, %v11188_v5, %v9374_v11  ;;  %v1797_v19 = vsel %vm562_vm0, %v11173_v40, %v9375_v46  ;;  %8695 = vmatpush3.bf16.msra.mxu0 %v8694_v54  ;;  %v2528_v46 = vld [vmem:[%s14038_s6 + $0x20] sm:$0xff]  ;;  %v2529_v11 = vld [vmem:[%s14038_s6 + $0x28] sm:$0xff]  ;;  %v8718_v62 = vpack.c.bf16 %v2537_v60, %v2536_v59  ;;  %v8720_v51 = vpack.c.bf16 %v2555_v6, %v2554_v3 }
 0x242   : > { %8697 = vmatprep.subr.bf16.mxu0 %v8696_v15 }
 0x243   : > { %v9383_v12 = vpop.permute.xlu0 %9382 }
 0x244   : > { %v9378_v13 = vpop.permute.xlu1 %9377  ;;  %v9385_v17 = vunpack.i.h.bf16 %v9383_v12  ;;  %v9384_v44 = vunpack.i.l.bf16 %v9383_v12  ;;  %v2546_v12 = vld [vmem:[%s14038_s6 + $0xb0] sm:$0xff] }
 0x245   : > { %v9380_v18 = vunpack.i.h.bf16 %v9378_v13  ;;  %v9379_v23 = vunpack.i.l.bf16 %v9378_v13  ;;  %v2547_v13 = vld [vmem:[%s14038_s6 + $0xb8] sm:$0xff]  ;;  %8699 = vmatpush3.bf16.msra.mxu0 %v8698_v0 }
 0x246   : > { %8701 = vmatprep.subr.bf16.mxu0 %v8700_v9  ;;  %v2539_v0 = vld [vmem:[%s14038_s6 + $0x78] sm:$0xff] }
 0x247   : > { %v1829_v24 = vsel %vm1146_vm1, %v1821_v28, %v9379_v23  ;;  %v1805_v53 = vsel %vm1146_vm1, %v1797_v19, %v9380_v18  ;;  %v9388_v55 = vpop.permute.xlu0 %9387  ;;  %v2530_v18 = vld [vmem:[%s14038_s6 + $0x30] sm:$0xff]  ;;  %v2531_v23 = vld [vmem:[%s14038_s6 + $0x38] sm:$0xff] }
 0x248   : > { %v9393_v26 = vpop.permute.xlu1 %9392  ;;  %v1837_v2 = vsel %vm1155_vm2, %v1829_v24, %v9384_v44  ;;  %v1813_v27 = vsel %vm1155_vm2, %v1805_v53, %v9385_v17  ;;  %v9390_v31 = vunpack.i.h.bf16 %v9388_v55  ;;  %v9389_v32 = vunpack.i.l.bf16 %v9388_v55  ;;  %v11363_v55 = vld [vmem:[%s14036_s4] ss:$0 sm:$0xff] }
 0x249   : > { %v9395_v30 = vunpack.i.h.bf16 %v9393_v26  ;;  %v9394_v50 = vunpack.i.l.bf16 %v9393_v26  ;;  %1993 = vmatprep.mubr.f32.mxu0 %v1837_v2  ;;  %v8702_v17 = vpack.c.bf16 %v2529_v11, %v2528_v46  ;;  %v8704_v44 = vpack.c.bf16 %v2547_v13, %v2546_v12  ;;  %v11368_v2 = vld [vmem:[%s14037_s5] ss:$0 sm:$0xff] }
 0x24a   : > { %1994 = vmatmul.mubr.f32.gmra.mrb[28].mxu0 %v1813_v27  ;;  %v8706_v28 = vpack.c.bf16 %v2531_v23, %v2530_v18 }
 0x24b   : > { %v1822_v5 = vsel %vm562_vm0, %v11201_v10, %v9394_v50  ;;  %v1798_v40 = vsel %vm562_vm0, %v11186_v4, %v9395_v30  ;;  %v2556_v4 = vld [vmem:[%s14038_s6 + $0x100] sm:$0xff]  ;;  %v2557_v10 = vld [vmem:[%s14038_s6 + $0x108] sm:$0xff]  ;;  %8703 = vmatpush3.bf16.msra.mxu0 %v8702_v17 }
 0x24c   : > { %v9398_v33 = vpop.permute.xlu1 %9397  ;;  %v1830_v36 = vsel %vm1146_vm1, %v1822_v5, %v9389_v32  ;;  %v1806_v37 = vsel %vm1146_vm1, %v1798_v40, %v9390_v31  ;;  %v8724_v14 = vpack.c.bf16 %v2557_v10, %v2556_v4  ;;  %8705 = vmatprep.subr.bf16.mxu0 %v8704_v44  ;;  %v2548_v50 = vld [vmem:[%s14038_s6 + $0xc0] sm:$0xff]  ;;  %v2549_v31 = vld [vmem:[%s14038_s6 + $0xc8] sm:$0xff]  ;;  %v2535_v10 = vld [vmem:[%s14038_s6 + $0x58] sm:$0xff] }
 0x24d   : > { %v9400_v34 = vunpack.i.h.bf16 %v9398_v33  ;;  %v9399_v35 = vunpack.i.l.bf16 %v9398_v33  ;;  %v8708_v32 = vpack.c.bf16 %v2549_v31, %v2548_v50  ;;  %v2532_v5 = vld [vmem:[%s14038_s6 + $0x40] sm:$0xff]  ;;  %v2533_v40 = vld [vmem:[%s14038_s6 + $0x48] sm:$0xff] }
 0x24e   : > { %8725 = vmatprep.subr.bf16.mxu1 %v8724_v14 }
 0x24f   : > { %v1838_v38 = vsel %vm1155_vm2, %v1830_v36, %v9399_v35  ;;  %v1814_v39 = vsel %vm1155_vm2, %v1806_v37, %v9400_v34  ;;  %8727 = vmatpush3.bf16.msra.mxu1 %v8724_v14  ;;  %8707 = vmatpush3.bf16.msra.mxu0 %v8706_v28  ;;  %v8710_v34 = vpack.c.bf16 %v2533_v40, %v2532_v5  ;;  %v2550_v37 = vld [vmem:[%s14038_s6 + $0xd0] sm:$0xff]  ;;  %v2552_v14 = vld [vmem:[%s14038_s6 + $0xe0] sm:$0xff] }
 0x250   : > { %1998 = vmatprep.mubr.f32.mxu0 %v1838_v38  ;;  %8729 = vmatprep.subr.bf16.mxu1 %v8728_v1  ;;  %v2551_v38 = vld [vmem:[%s14038_s6 + $0xd8] sm:$0xff]  ;;  %v8716_v20 = vpack.c.bf16 %v2553_v48, %v2552_v14 }
 0x251   : > { %1999 = vmatmul.mubr.f32.gmra.mrb[30].mxu0 %v1814_v39  ;;  %8709 = vmatprep.subr.bf16.mxu0 %v8708_v32  ;;  %v2534_v39 = vld [vmem:[%s14038_s6 + $0x50] sm:$0xff]  ;;  %v8712_v4 = vpack.c.bf16 %v2551_v38, %v2550_v37 }
 0x253   : > { %8731 = vmatpush3.bf16.msra.mxu1 %v8728_v1  ;;  %8711 = vmatpush3.bf16.msra.mxu0 %v8710_v34  ;;  %v8714_v1 = vpack.c.bf16 %v2535_v10, %v2534_v39 }
 0x254   : > { %8713 = vmatprep.subr.bf16.mxu0 %v8712_v4 }
 0x257   : > { %8715 = vmatpush3.bf16.msra.mxu0 %v8714_v1 }
 0x258   : > { %8717 = vmatprep.subr.bf16.mxu0 %v8716_v20 }
 0x25b   : > { %8719 = vmatpush3.bf16.msra.mxu0 %v8718_v62 }
 0x25c   : > { %8721 = vmatprep.subr.bf16.mxu0 %v8720_v51 }
 0x268   : > { %v11286_v41 = vpop.f32.mrb[16].mxu1 }
 0x269   : > { %v2070_v42 = vpop.f32.mrb[17].mxu1 }
 0x280   : > { %v11300_v47 = vpop.f32.mrb[18].mxu1 }
 0x281   : > { %v11302_v49 = vpop.f32.mrb[19].mxu1 }
 0x298   : > { %v11304_v57 = vpop.f32.mrb[20].mxu1 }
 0x299   : > { %v11306_v58 = vpop.f32.mrb[21].mxu1 }
 0x2a2   : > { %v11308_v45 = vpop.f32.mrb[22].mxu1 }
 0x2a3   : > { %v11310_v21 = vpop.f32.mrb[23].mxu1 }
 0x2d7   : > { %v7828_v19 = vpop.f32.mrb[16].mxu0 }
 0x2d8   : > { %v7829_v24 = vpop.f32.mrb[17].mxu0 }
 0x2d9   : > { %v7830_v53 = vadd.f32 %v7829_v24, %v7828_v19 }
 0x2db   : > { %v2071_v26 = vadd.f32 %v7830_v53, %v2070_v42 }
 0x2dd   : > { %v2117_v27 = vmul.f32 %v11363_v55, %v2071_v26 }
 0x2df   : > { %v2131_v30 = vadd.f32 %v11368_v2, %v2117_v27 }
 0x2e1   : > { %vm2139_vm3 = vcmp.gt.f32.partialorder %v2131_v30, 0.0  ;;  %v2147_v33 = vmul.f32 0.01, %v2131_v30 }
 0x2e3   : > { %v11384_v35 = vsel %vm2139_vm3, %v2131_v30, %v2147_v33  ;;  %v7831_v36 = vpop.f32.mrb[18].mxu0 }
 0x2e4   : > { %2204 = vst.msk [vmem:[#allocation2 + $0x20] sm:$0xff] %vm562_vm0, %v11384_v35  ;;  %v7832_v42 = vpop.f32.mrb[19].mxu0 }
 0x2e5   : > { %v7833_v52 = vadd.f32 %v7832_v42, %v7831_v36 }
 0x2e7   : > { %v2076_v61 = vadd.f32 %v11286_v41, %v7833_v52  ;;  %v2538_v41 = vld [vmem:[%s14038_s6 + $0x70] sm:$0xff] }
 0x2e9   : > { %v2118_v29 = vmul.f32 %v11363_v55, %v2076_v61 }
 0x2eb   : > { %v2132_v63 = vadd.f32 %v11368_v2, %v2118_v29  ;;  %v2252_v54 = vld [vmem:[#allocation2 + $0x21] sm:$0xff] }
 0x2ec   : > { %v9401_v15 = vpack.i.bf16 %v11090_v25, %v2252_v54  ;;  %v8722_v25 = vpack.c.bf16 %v2539_v0, %v2538_v41  ;;  %v11435_v44 = vld [vmem:[#allocation2 + $0x1f] sm:$0xff] }
 0x2ed   : > { %vm2140_vm4 = vcmp.gt.f32.partialorder %v2132_v63, 0.0  ;;  %v2148_v7 = vmul.f32 0.01, %v2132_v63  ;;  %v11451_v30 = vld [vmem:[#allocation2 + $0x20] sm:$0xff] }
 0x2ee   : > { %9402 = vrot.lane.b32.xlu0 %v9401_v15, %s14066_s27  ;;  %8723 = vmatpush3.bf16.msra.mxu0 %v8722_v25 }
 0x2ef   : > { %v11429_v9 = vsel %vm2140_vm4, %v2132_v63, %v2148_v7 }
 0x2f0   : > { %v7834_v46 = vpop.f32.mrb[20].mxu0  ;;  %2205 = vst.msk [vmem:[#allocation2 + $0x38] sm:$0xff] %vm562_vm0, %v11429_v9 }
 0x2f1   : > { %v7835_v11 = vpop.f32.mrb[21].mxu0 }
 0x2f2   : > { %v7836_v12 = vadd.f32 %v7835_v11, %v7834_v46 }
 0x2f4   : > { %v2081_v13 = vadd.f32 %v7836_v12, %v11302_v49 }
 0x2f6   : > { %v2119_v17 = vmul.f32 %v11363_v55, %v2081_v13 }
 0x2f7   : > { %v2276_v23 = vld [vmem:[#allocation2 + $0x39] sm:$0xff] }
 0x2f8   : > { %v2133_v18 = vadd.f32 %v11368_v2, %v2119_v17  ;;  %v11438_v28 = vld [vmem:[#allocation2 + $0x38] sm:$0xff]  ;;  %8436 = vmatprep.mubr.msk.f32.mxu1 %vm562_vm0, %v2276_v23  ;;  %v9416_v31 = vpack.i.bf16 %v11451_v30, %v2276_v23 }
 0x2f9   : > { %v11440_v19 = vld [vmem:[#allocation2 + $0x37] sm:$0xff]  ;;  %v9411_v24 = vpack.i.bf16 %v11435_v44, %v11438_v28 }
 0x2fa   : > { %v9406_v53 = vpack.i.bf16 %v11108_v43, %v11440_v19  ;;  %vm2141_vm5 = vcmp.gt.f32.partialorder %v2133_v18, 0.0  ;;  %v2149_v49 = vmul.f32 0.01, %v2133_v18 }
 0x2fb   : > { %9412 = vrot.lane.b32.xlu0 %v9411_v24, %s14065_s19  ;;  %v7837_v27 = vpop.f32.mrb[22].mxu0 }
 0x2fc   : > { %9407 = vrot.lane.b32.xlu1 %v9406_v53, %s14067_s17  ;;  %v11449_v26 = vsel %vm2141_vm5, %v2133_v18, %v2149_v49  ;;  %v7838_v50 = vpop.f32.mrb[23].mxu0 }
 0x2fd   : > { %2206 = vst.msk [vmem:[#allocation2 + $0x50] sm:$0xff] %vm562_vm0, %v11449_v26  ;;  %v7839_v32 = vadd.f32 %v7838_v50, %v7837_v27 }
 0x2ff   : > { %v2086_v43 = vadd.f32 %v11300_v47, %v7839_v32 }
 0x300   : > { %9417 = vrot.lane.b32.xlu1 %v9416_v31, %s14066_s27 }
 0x301   : > { %v2120_v5 = vmul.f32 %v11363_v55, %v2086_v43 }
 0x303   : > { %v2134_v40 = vadd.f32 %v11368_v2, %v2120_v5 }
 0x304   : > { %v2277_v33 = vld [vmem:[#allocation2 + $0x51] sm:$0xff] }
 0x305   : > { %v11460_v34 = vld [vmem:[#allocation2 + $0x4f] sm:$0xff]  ;;  %8437 = vmatmul.mubr.msk.f32.vlgmr.msra.gmra.mrb[24].mxu1 %vm562_vm0, %v2277_v33  ;;  %vm2142_vm6 = vcmp.gt.f32.partialorder %v2134_v40, 0.0  ;;  %v2150_v39 = vmul.f32 0.01, %v2134_v40  ;;  %v9431_v10 = vpack.i.bf16 %v11438_v28, %v2277_v33 }
 0x306   : > { %v11462_v36 = vld [vmem:[#allocation2 + $0x50] sm:$0xff]  ;;  %v9421_v37 = vpack.i.bf16 %v2252_v54, %v11460_v34 }
 0x307   : > { %v9426_v38 = vpack.i.bf16 %v11440_v19, %v11462_v36  ;;  %v11470_v47 = vsel %vm2142_vm6, %v2134_v40, %v2150_v39 }
 0x308   : > { %9422 = vrot.lane.b32.xlu0 %v9421_v37, %s14067_s17  ;;  %v7840_v42 = vpop.f32.mrb[24].mxu0  ;;  %2207 = vst.msk [vmem:[#allocation2 + $0x68] sm:$0xff] %vm562_vm0, %v11470_v47 }
 0x309   : > { %9427 = vrot.lane.b32.xlu1 %v9426_v38, %s14065_s19  ;;  %v7841_v4 = vpop.f32.mrb[25].mxu0 }
 0x30a   : > { %v7842_v14 = vadd.f32 %v7841_v4, %v7840_v42 }
 0x30c   : > { %9432 = vrot.lane.b32.xlu0 %v9431_v10, %s14066_s27  ;;  %v2091_v48 = vadd.f32 %v7842_v14, %v11306_v58 }
 0x30e   : > { %v2121_v52 = vmul.f32 %v11363_v55, %v2091_v48 }
 0x30f   : > { %v2278_v20 = vld [vmem:[#allocation2 + $0x69] sm:$0xff] }
 0x310   : > { %v2135_v1 = vadd.f32 %v11368_v2, %v2121_v52  ;;  %v11479_v59 = vld [vmem:[#allocation2 + $0x67] sm:$0xff]  ;;  %8439 = vmatprep.mubr.msk.f32.mxu1 %vm562_vm0, %v2278_v20  ;;  %v9446_v15 = vpack.i.bf16 %v11462_v36, %v2278_v20 }
 0x311   : > { %v11481_v60 = vld [vmem:[#allocation2 + $0x68] sm:$0xff]  ;;  %v9436_v61 = vpack.i.bf16 %v2276_v23, %v11479_v59 }
 0x312   : > { %v9441_v62 = vpack.i.bf16 %v11460_v34, %v11481_v60  ;;  %vm2143_vm7 = vcmp.gt.f32.partialorder %v2135_v1, 0.0  ;;  %v2151_v29 = vmul.f32 0.01, %v2135_v1 }
 0x313   : > { %9437 = vrot.lane.b32.xlu1 %v9436_v61, %s14067_s17  ;;  %v7843_v63 = vpop.f32.mrb[26].mxu0 }
 0x314   : > { %9442 = vrot.lane.b32.xlu0 %v9441_v62, %s14065_s19  ;;  %v11489_v58 = vsel %vm2143_vm7, %v2135_v1, %v2151_v29  ;;  %v7844_v54 = vpop.f32.mrb[27].mxu0 }
 0x315   : > { %2208 = vst.msk [vmem:[#allocation2 + $0x80] sm:$0xff] %vm562_vm0, %v11489_v58  ;;  %v7845_v3 = vadd.f32 %v7844_v54, %v7843_v63 }
 0x317   : > { %9447 = vrot.lane.b32.xlu1 %v9446_v15, %s14066_s27  ;;  %v2096_v6 = vadd.f32 %v11304_v57, %v7845_v3 }
 0x319   : > { %v2122_v41 = vmul.f32 %v11363_v55, %v2096_v6 }
 0x31b   : > { %v2136_v7 = vadd.f32 %v11368_v2, %v2122_v41 }
 0x31c   : > { %v2279_v51 = vld [vmem:[#allocation2 + $0x81] sm:$0xff] }
 0x31d   : > { %v11498_v0 = vld [vmem:[#allocation2 + $0x80] sm:$0xff]  ;;  %v7846_v46 = vpop.f32.mrb[28].mxu0  ;;  %8440 = vmatmul.mubr.msk.f32.gmra.mrb[26].mxu1 %vm562_vm0, %v2279_v51  ;;  %vm2144_vm8 = vcmp.gt.f32.partialorder %v2136_v7, 0.0  ;;  %v2152_v13 = vmul.f32 0.01, %v2136_v7  ;;  %v9461_v24 = vpack.i.bf16 %v11481_v60, %v2279_v51 }
 0x31e   : > { %v11500_v25 = vld [vmem:[#allocation2 + $0x7f] sm:$0xff]  ;;  %v9456_v11 = vpack.i.bf16 %v11479_v59, %v11498_v0  ;;  %v7847_v57 = vpop.f32.mrb[29].mxu0 }
 0x31f   : > { %v9451_v12 = vpack.i.bf16 %v2277_v33, %v11500_v25  ;;  %v7848_v17 = vadd.f32 %v7847_v57, %v7846_v46  ;;  %v11508_v18 = vsel %vm2144_vm8, %v2136_v7, %v2152_v13 }
 0x320   : > { %9457 = vrot.lane.b32.xlu1 %v9456_v11, %s14065_s19  ;;  %2209 = vst.msk [vmem:[#allocation2 + $0x98] sm:$0xff] %vm562_vm0, %v11508_v18 }
 0x321   : > { %9452 = vrot.lane.b32.xlu0 %v9451_v12, %s14067_s17  ;;  %v2101_v23 = vadd.f32 %v7848_v17, %v11310_v21 }
 0x323   : > { %v2123_v53 = vmul.f32 %v11363_v55, %v2101_v23 }
 0x324   : > { %v7849_v49 = vpop.f32.mrb[30].mxu0 }
 0x325   : > { %9462 = vrot.lane.b32.xlu0 %v9461_v24, %s14066_s27  ;;  %v2137_v27 = vadd.f32 %v11368_v2, %v2123_v53  ;;  %v7850_v50 = vpop.f32.mrb[31].mxu0 }
 0x326   : > { %v7851_v31 = vadd.f32 %v7850_v50, %v7849_v49 }
 0x327   : > { %vm2145_vm9 = vcmp.gt.f32.partialorder %v2137_v27, 0.0  ;;  %v2153_v32 = vmul.f32 0.01, %v2137_v27  ;;  %v2280_v5 = vld [vmem:[#allocation2 + $0x99] sm:$0xff] }
 0x328   : > { %v2106_v43 = vadd.f32 %v11308_v45, %v7851_v31  ;;  %v11518_v40 = vld [vmem:[#allocation2 + $0x97] sm:$0xff]  ;;  %8442 = vmatprep.mubr.msk.f32.mxu1 %vm562_vm0, %v2280_v5  ;;  %v9476_v42 = vpack.i.bf16 %v11498_v0, %v2280_v5 }
 0x329   : > { %v11520_v33 = vld [vmem:[#allocation2 + $0x98] sm:$0xff]  ;;  %v11522_v21 = vsel %vm2145_vm9, %v2137_v27, %v2153_v32  ;;  %v9466_v37 = vpack.i.bf16 %v2278_v20, %v11518_v40 }
 0x32a   : > { %v9471_v38 = vpack.i.bf16 %v11500_v25, %v11520_v33  ;;  %2210 = vst.msk [vmem:[#allocation2 + $0xb0] sm:$0xff] %vm562_vm0, %v11522_v21  ;;  %v2124_v39 = vmul.f32 %v11363_v55, %v2106_v43 }
 0x32b   : > { %9467 = vrot.lane.b32.xlu1 %v9466_v37, %s14067_s17 }
 0x32c   : > { %9472 = vrot.lane.b32.xlu0 %v9471_v38, %s14065_s19  ;;  %v2138_v45 = vadd.f32 %v11368_v2, %v2124_v39 }
 0x32e   : > { %vm2146_vm10 = vcmp.gt.f32.partialorder %v2138_v45, 0.0  ;;  %v2154_v4 = vmul.f32 0.01, %v2138_v45 }
 0x32f   : > { %9477 = vrot.lane.b32.xlu1 %v9476_v42, %s14066_s27 }
 0x330   : > { %v11536_v10 = vsel %vm2146_vm10, %v2138_v45, %v2154_v4 }
 0x331   : > { %2211 = vst.msk [vmem:[#allocation2 + $0xc8] sm:$0xff] %vm562_vm0, %v11536_v10  ;;  %v2281_v14 = vld [vmem:[#allocation2 + $0xb1] sm:$0xff] }
 0x332   : > { %v11540_v48 = vld [vmem:[#allocation2 + $0xb0] sm:$0xff]  ;;  %8443 = vmatmul.mubr.msk.f32.gmra.mrb[28].mxu1 %vm562_vm0, %v2281_v14  ;;  %v9491_v1 = vpack.i.bf16 %v11520_v33, %v2281_v14  ;;  %v9506_v15 = vpack.i.bf16 %v2281_v14, %v11206_v16 }
 0x333   : > { %v11542_v55 = vld [vmem:[#allocation2 + $0xaf] sm:$0xff]  ;;  %v9486_v2 = vpack.i.bf16 %v11518_v40, %v11540_v48 }
 0x334   : > { %v9481_v52 = vpack.i.bf16 %v2279_v51, %v11542_v55 }
 0x335   : > { %9487 = vrot.lane.b32.xlu1 %v9486_v2, %s14065_s19 }
 0x336   : > { %9482 = vrot.lane.b32.xlu0 %v9481_v52, %s14067_s17 }
 0x338   : > { %v2282_v20 = vld [vmem:[#allocation2 + $0xc9] sm:$0xff] }
 0x339   : > { %v2266_v61 = vld [vmem:[#allocation2 + $0xc7] sm:$0xff]  ;;  %8445 = vmatprep.mubr.msk.f32.mxu1 %vm562_vm0, %v2282_v20  ;;  %v9511_v54 = vpack.i.bf16 %v11540_v48, %v2282_v20 }
 0x33a   : > { %9492 = vrot.lane.b32.xlu0 %v9491_v1, %s14066_s27  ;;  %v11552_v62 = vld [vmem:[#allocation2 + $0xc8] sm:$0xff]  ;;  %v9496_v29 = vpack.i.bf16 %v2280_v5, %v2266_v61  ;;  %8446 = vmatmul.mubr.msk.f32.gmra.mrb[30].mxu1 %vm562_vm0, %v11199_v8  ;;  %v9516_v3 = vpack.i.bf16 %v2266_v61, %v11214_v22 }
 0x33b   : > { %v9501_v63 = vpack.i.bf16 %v11542_v55, %v11552_v62 }
 0x33c   : > { %9497 = vrot.lane.b32.xlu1 %v9496_v29, %s14067_s17 }
 0x33e   : > { %9502 = vrot.lane.b32.xlu0 %v9501_v63, %s14065_s19 }
 0x340   : > { %9512 = vrot.lane.b32.xlu1 %v9511_v54, %s14066_s27 }
 0x342   : > { %9507 = vrot.lane.b32.xlu0 %v9506_v15, %s14067_s17 }
 0x344   : > { %9517 = vrot.lane.b32.xlu1 %v9516_v3, %s14065_s19 }
 0x360   : > { %v9403_v6 = vpop.permute.xlu0 %9402 }
 0x361   : > { %v9405_v41 = vunpack.i.h.bf16 %v9403_v6  ;;  %v9404_v7 = vunpack.i.l.bf16 %v9403_v6 }
 0x363   : > { %v2476_v16 = vsel %vm562_vm0, %v11220_v56, %v9405_v41  ;;  %v2500_v57 = vsel %vm562_vm0, %v11451_v30, %v9404_v7 }
 0x36d   : > { %v9413_v8 = vpop.permute.xlu0 %9412 }
 0x36e   : > { %v9408_v51 = vpop.permute.xlu1 %9407  ;;  %v9415_v46 = vunpack.i.h.bf16 %v9413_v8  ;;  %v9414_v11 = vunpack.i.l.bf16 %v9413_v8 }
 0x36f   : > { %v9410_v12 = vunpack.i.h.bf16 %v9408_v51  ;;  %v9409_v13 = vunpack.i.l.bf16 %v9408_v51 }
 0x371   : > { %v2508_v17 = vsel %vm1146_vm1, %v2500_v57, %v9409_v13  ;;  %v2484_v22 = vsel %vm1146_vm1, %v2476_v16, %v9410_v12 }
 0x372   : > { %v2516_v23 = vsel %vm1155_vm2, %v2508_v17, %v9414_v11  ;;  %v2492_v24 = vsel %vm1155_vm2, %v2484_v22, %v9415_v46  ;;  %v9418_v53 = vpop.permute.xlu1 %9417 }
 0x373   : > { %2648 = vmatprep.mubr.f32.mxu0 %v2516_v23  ;;  %v9420_v49 = vunpack.i.h.bf16 %v9418_v53  ;;  %v9419_v27 = vunpack.i.l.bf16 %v9418_v53 }
 0x374   : > { %2649 = vmatmul.mubr.f32.vlgmr.msra.gmra.mrb[32].mxu0 %v2492_v24 }
 0x375   : > { %v2501_v30 = vsel %vm562_vm0, %v11438_v28, %v9419_v27  ;;  %v2477_v37 = vsel %vm562_vm0, %v11435_v44, %v9420_v49 }
 0x37a   : > { %v9423_v50 = vpop.permute.xlu0 %9422 }
 0x37b   : > { %v9428_v31 = vpop.permute.xlu1 %9427  ;;  %v9425_v32 = vunpack.i.h.bf16 %v9423_v50  ;;  %v9424_v56 = vunpack.i.l.bf16 %v9423_v50 }
 0x37c   : > { %v9430_v43 = vunpack.i.h.bf16 %v9428_v31  ;;  %v9429_v5 = vunpack.i.l.bf16 %v9428_v31 }
 0x37d   : > { %v2509_v38 = vsel %vm1146_vm1, %v2501_v30, %v9424_v56  ;;  %v2485_v39 = vsel %vm1146_vm1, %v2477_v37, %v9425_v32 }
 0x37e   : > { %v2517_v45 = vsel %vm1155_vm2, %v2509_v38, %v9429_v5  ;;  %v2493_v42 = vsel %vm1155_vm2, %v2485_v39, %v9430_v43  ;;  %v9433_v4 = vpop.permute.xlu0 %9432 }
 0x37f   : > { %2653 = vmatprep.mubr.f32.mxu0 %v2517_v45  ;;  %v9435_v14 = vunpack.i.h.bf16 %v9433_v4  ;;  %v9434_v2 = vunpack.i.l.bf16 %v9433_v4 }
 0x380   : > { %2654 = vmatmul.mubr.f32.gmra.mrb[34].mxu0 %v2493_v42 }
 0x381   : > { %v2502_v44 = vsel %vm562_vm0, %v11462_v36, %v9434_v2  ;;  %v2478_v63 = vsel %vm562_vm0, %v11440_v19, %v9435_v14 }
 0x385   : > { %v9438_v52 = vpop.permute.xlu1 %9437 }
 0x386   : > { %v9443_v1 = vpop.permute.xlu0 %9442  ;;  %v9440_v20 = vunpack.i.h.bf16 %v9438_v52  ;;  %v9439_v28 = vunpack.i.l.bf16 %v9438_v52 }
 0x387   : > { %v9445_v61 = vunpack.i.h.bf16 %v9443_v1  ;;  %v9444_v29 = vunpack.i.l.bf16 %v9443_v1 }
 0x388   : > { %v2510_v54 = vsel %vm1146_vm1, %v2502_v44, %v9439_v28  ;;  %v2486_v15 = vsel %vm1146_vm1, %v2478_v63, %v9440_v20 }
 0x389   : > { %v2518_v3 = vsel %vm1155_vm2, %v2510_v54, %v9444_v29  ;;  %v2494_v6 = vsel %vm1155_vm2, %v2486_v15, %v9445_v61  ;;  %v9448_v41 = vpop.permute.xlu1 %9447 }
 0x38a   : > { %2658 = vmatprep.mubr.f32.mxu0 %v2518_v3  ;;  %v9450_v7 = vunpack.i.h.bf16 %v9448_v41  ;;  %v9449_v8 = vunpack.i.l.bf16 %v9448_v41 }
 0x38b   : > { %2659 = vmatmul.mubr.f32.gmra.mrb[36].mxu0 %v2494_v6 }
 0x38c   : > { %v2503_v19 = vsel %vm562_vm0, %v11481_v60, %v9449_v8  ;;  %v2479_v16 = vsel %vm562_vm0, %v11460_v34, %v9450_v7 }
 0x392   : > { %v9458_v51 = vpop.permute.xlu1 %9457 }
 0x393   : > { %v9453_v46 = vpop.permute.xlu0 %9452  ;;  %v9460_v11 = vunpack.i.h.bf16 %v9458_v51  ;;  %v9459_v36 = vunpack.i.l.bf16 %v9458_v51 }
 0x394   : > { %v9455_v12 = vunpack.i.h.bf16 %v9453_v46  ;;  %v9454_v13 = vunpack.i.l.bf16 %v9453_v46 }
 0x396   : > { %v2511_v57 = vsel %vm1146_vm1, %v2503_v19, %v9454_v13  ;;  %v2487_v17 = vsel %vm1146_vm1, %v2479_v16, %v9455_v12 }
 0x397   : > { %v2519_v22 = vsel %vm1155_vm2, %v2511_v57, %v9459_v36  ;;  %v2495_v23 = vsel %vm1155_vm2, %v2487_v17, %v9460_v11  ;;  %v9463_v24 = vpop.permute.xlu0 %9462 }
 0x398   : > { %2663 = vmatprep.mubr.f32.mxu0 %v2519_v22  ;;  %v9465_v53 = vunpack.i.h.bf16 %v9463_v24  ;;  %v9464_v49 = vunpack.i.l.bf16 %v9463_v24 }
 0x399   : > { %2664 = vmatmul.mubr.f32.gmra.mrb[38].mxu0 %v2495_v23 }
 0x39a   : > { %v2504_v34 = vsel %vm562_vm0, %v11498_v0, %v9464_v49  ;;  %v2480_v43 = vsel %vm562_vm0, %v11479_v59, %v9465_v53 }
 0x39d   : > { %v9468_v27 = vpop.permute.xlu1 %9467 }
 0x39e   : > { %v9473_v50 = vpop.permute.xlu0 %9472  ;;  %v9470_v31 = vunpack.i.h.bf16 %v9468_v27  ;;  %v9469_v60 = vunpack.i.l.bf16 %v9468_v27 }
 0x39f   : > { %v9475_v32 = vunpack.i.h.bf16 %v9473_v50  ;;  %v9474_v56 = vunpack.i.l.bf16 %v9473_v50 }
 0x3a0   : > { %v2512_v5 = vsel %vm1146_vm1, %v2504_v34, %v9469_v60  ;;  %v2488_v30 = vsel %vm1146_vm1, %v2480_v43, %v9470_v31  ;;  %v7502_v34 = vld [vmem:[%s14038_s6 + $0x230] sm:$0xff]  ;;  %v7503_v43 = vld [vmem:[%s14038_s6 + $0x238] sm:$0xff] }
 0x3a1   : > { %v9478_v37 = vpop.permute.xlu1 %9477  ;;  %v2520_v38 = vsel %vm1155_vm2, %v2512_v5, %v9474_v56  ;;  %v2496_v39 = vsel %vm1155_vm2, %v2488_v30, %v9475_v32  ;;  %v8768_v5 = vpack.c.bf16 %v7503_v43, %v7502_v34  ;;  %v7479_v34 = vld [vmem:[%s14038_s6 + $0x178] sm:$0xff]  ;;  %v7496_v43 = vld [vmem:[%s14038_s6 + $0x200] sm:$0xff] }
 0x3a2   : > { %2668 = vmatprep.mubr.f32.mxu0 %v2520_v38  ;;  %v9480_v45 = vunpack.i.h.bf16 %v9478_v37  ;;  %v9479_v42 = vunpack.i.l.bf16 %v9478_v37 }
 0x3a3   : > { %2669 = vmatmul.mubr.f32.gmra.mrb[40].mxu0 %v2496_v39 }
 0x3a4   : > { %v2505_v59 = vsel %vm562_vm0, %v11520_v33, %v9479_v42  ;;  %v2481_v20 = vsel %vm562_vm0, %v11500_v25, %v9480_v45 }
 0x3a7   : > { %v9488_v4 = vpop.permute.xlu1 %9487 }
 0x3a8   : > { %v9483_v14 = vpop.permute.xlu0 %9482  ;;  %v9490_v2 = vunpack.i.h.bf16 %v9488_v4  ;;  %v9489_v0 = vunpack.i.l.bf16 %v9488_v4  ;;  %v7484_v4 = vld [vmem:[%s14038_s6 + $0x1a0] sm:$0xff] }
 0x3a9   : > { %v9485_v52 = vunpack.i.h.bf16 %v9483_v14  ;;  %v9484_v1 = vunpack.i.l.bf16 %v9483_v14  ;;  %v7485_v14 = vld [vmem:[%s14038_s6 + $0x1a8] sm:$0xff] }
 0x3ab   : > { %v2513_v28 = vsel %vm1146_vm1, %v2505_v59, %v9484_v1  ;;  %v2489_v61 = vsel %vm1146_vm1, %v2481_v20, %v9485_v52  ;;  %v7469_v52 = vld [vmem:[%s14038_s6 + $0x128] sm:$0xff]  ;;  %v7486_v1 = vld [vmem:[%s14038_s6 + $0x1b0] sm:$0xff]  ;;  %v7487_v59 = vld [vmem:[%s14038_s6 + $0x1b8] sm:$0xff] }
 0x3ac   : > { %v9493_v29 = vpop.permute.xlu0 %9492  ;;  %v2521_v44 = vsel %vm1155_vm2, %v2513_v28, %v9489_v0  ;;  %v2497_v63 = vsel %vm1155_vm2, %v2489_v61, %v9490_v2  ;;  %v7468_v2 = vld [vmem:[%s14038_s6 + $0x120] sm:$0xff]  ;;  %v8732_v0 = vpack.c.bf16 %v7485_v14, %v7484_v4  ;;  %v8736_v28 = vpack.c.bf16 %v7487_v59, %v7486_v1  ;;  %v7470_v61 = vld [vmem:[%s14038_s6 + $0x130] sm:$0xff] }
 0x3ad   : > { %v9495_v54 = vunpack.i.h.bf16 %v9493_v29  ;;  %v9494_v15 = vunpack.i.l.bf16 %v9493_v29  ;;  %2673 = vmatprep.mubr.f32.mxu0 %v2521_v44  ;;  %v8734_v20 = vpack.c.bf16 %v7469_v52, %v7468_v2  ;;  %v7471_v29 = vld [vmem:[%s14038_s6 + $0x138] sm:$0xff]  ;;  %v7488_v44 = vld [vmem:[%s14038_s6 + $0x1c0] sm:$0xff]  ;;  %v7481_v52 = vld [vmem:[%s14038_s6 + $0x188] sm:$0xff] }
 0x3ae   : > { %2674 = vmatmul.mubr.f32.gmra.mrb[42].mxu0 %v2497_v63  ;;  %v9498_v3 = vpop.permute.xlu1 %9497  ;;  %8733 = vmatprep.subr.bf16.mxu1 %v8732_v0  ;;  %v7489_v63 = vld [vmem:[%s14038_s6 + $0x1c8] sm:$0xff]  ;;  %v7480_v0 = vld [vmem:[%s14038_s6 + $0x180] sm:$0xff] }
 0x3af   : > { %v9500_v6 = vunpack.i.h.bf16 %v9498_v3  ;;  %v9499_v41 = vunpack.i.l.bf16 %v9498_v3  ;;  %v2506_v25 = vsel %vm562_vm0, %v11540_v48, %v9494_v15  ;;  %v2482_v51 = vsel %vm562_vm0, %v11518_v40, %v9495_v54  ;;  %8735 = vmatpush3.bf16.msra.mxu1 %v8734_v20  ;;  %v7472_v3 = vld [vmem:[%s14038_s6 + $0x140] sm:$0xff] }
 0x3b0   : > { %v9503_v33 = vpop.permute.xlu0 %9502  ;;  %v8738_v54 = vpack.c.bf16 %v7471_v29, %v7470_v61  ;;  %8737 = vmatprep.subr.bf16.mxu1 %v8736_v28  ;;  %v8740_v15 = vpack.c.bf16 %v7489_v63, %v7488_v44  ;;  %v8758_v59 = vpack.c.bf16 %v7481_v52, %v7480_v0  ;;  %v11756_v28 = vld [vmem:[#allocation2 + $0x8] sm:$0xff]  ;;  %v7498_v63 = vld [vmem:[%s14038_s6 + $0x210] sm:$0xff] }
 0x3b1   : > { %v9505_v7 = vunpack.i.h.bf16 %v9503_v33  ;;  %v9504_v8 = vunpack.i.l.bf16 %v9503_v33  ;;  %v2514_v46 = vsel %vm1146_vm1, %v2506_v25, %v9499_v41  ;;  %v2490_v11 = vsel %vm1146_vm1, %v2482_v51, %v9500_v6  ;;  %v7473_v6 = vld [vmem:[%s14038_s6 + $0x148] sm:$0xff]  ;;  %v7490_v41 = vld [vmem:[%s14038_s6 + $0x1d0] sm:$0xff]  ;;  %v7491_v33 = vld [vmem:[%s14038_s6 + $0x1d8] sm:$0xff] }
 0x3b2   : > { %v9513_v36 = vpop.permute.xlu1 %9512  ;;  %v7474_v25 = vld [vmem:[%s14038_s6 + $0x150] sm:$0xff]  ;;  %v7475_v51 = vld [vmem:[%s14038_s6 + $0x158] sm:$0xff] }
 0x3b3   : > { %v2522_v12 = vsel %vm1155_vm2, %v2514_v46, %v9504_v8  ;;  %v2498_v13 = vsel %vm1155_vm2, %v2490_v11, %v9505_v7  ;;  %v9515_v19 = vunpack.i.h.bf16 %v9513_v36  ;;  %v9514_v16 = vunpack.i.l.bf16 %v9513_v36  ;;  %8739 = vmatpush3.bf16.msra.mxu1 %v8738_v54  ;;  %v7482_v54 = vld [vmem:[%s14038_s6 + $0x190] sm:$0xff] }
 0x3b4   : > { %v9508_v57 = vpop.permute.xlu0 %9507  ;;  %2678 = vmatprep.mubr.f32.mxu0 %v2522_v12  ;;  %v8742_v7 = vpack.c.bf16 %v7473_v6, %v7472_v3  ;;  %8741 = vmatprep.subr.bf16.mxu1 %v8740_v15  ;;  %v8744_v8 = vpack.c.bf16 %v7491_v33, %v7490_v41  ;;  %v8746_v46 = vpack.c.bf16 %v7475_v51, %v7474_v25  ;;  %v7483_v6 = vld [vmem:[%s14038_s6 + $0x198] sm:$0xff] }
 0x3b5   : > { %v9510_v17 = vunpack.i.h.bf16 %v9508_v57  ;;  %v9509_v22 = vunpack.i.l.bf16 %v9508_v57  ;;  %2679 = vmatmul.mubr.f32.gmra.mrb[44].mxu0 %v2498_v13  ;;  %v2507_v48 = vsel %vm562_vm0, %v11552_v62, %v9514_v16  ;;  %v2483_v40 = vsel %vm562_vm0, %v11542_v55, %v9515_v19  ;;  %v7500_v55 = vld [vmem:[%s14038_s6 + $0x220] sm:$0xff]  ;;  %v7501_v62 = vld [vmem:[%s14038_s6 + $0x228] sm:$0xff] }
 0x3b6   : > { %v9518_v23 = vpop.permute.xlu1 %9517  ;;  %v8764_v56 = vpack.c.bf16 %v7501_v62, %v7500_v55  ;;  %v11708_v13 = vld [vmem:[%s14039_s7] ss:$0 sm:$0xff]  ;;  %v7478_v55 = vld [vmem:[%s14038_s6 + $0x170] sm:$0xff]  ;;  %v8762_v41 = vpack.c.bf16 %v7483_v6, %v7482_v54 }
 0x3b7   : > { %v9520_v24 = vunpack.i.h.bf16 %v9518_v23  ;;  %v9519_v53 = vunpack.i.l.bf16 %v9518_v23  ;;  %v2515_v49 = vsel %vm1146_vm1, %v2507_v48, %v9509_v22  ;;  %v2491_v27 = vsel %vm1146_vm1, %v2483_v40, %v9510_v17  ;;  %8743 = vmatpush3.bf16.msra.mxu1 %v8742_v7  ;;  %v11713_v16 = vld [vmem:[%s14040_s8] ss:$0 sm:$0xff]  ;;  %v7493_v48 = vld [vmem:[%s14038_s6 + $0x1e8] sm:$0xff] }
 0x3b8   : > { %8765 = vmatprep.subr.bf16.mxu0 %v8764_v56  ;;  %8745 = vmatprep.subr.bf16.mxu1 %v8744_v8  ;;  %v7492_v22 = vld [vmem:[%s14038_s6 + $0x1e0] sm:$0xff]  ;;  %v8754_v14 = vpack.c.bf16 %v7479_v34, %v7478_v55 }
 0x3b9   : > { %v2523_v50 = vsel %vm1155_vm2, %v2515_v49, %v9519_v53  ;;  %v2499_v31 = vsel %vm1155_vm2, %v2491_v27, %v9520_v24  ;;  %8767 = vmatpush3.bf16.msra.mxu0 %v8764_v56  ;;  %v8748_v40 = vpack.c.bf16 %v7493_v48, %v7492_v22  ;;  %v7476_v23 = vld [vmem:[%s14038_s6 + $0x160] sm:$0xff]  ;;  %v7477_v24 = vld [vmem:[%s14038_s6 + $0x168] sm:$0xff] }
 0x3ba   : > { %2683 = vmatprep.mubr.f32.mxu0 %v2523_v50  ;;  %8769 = vmatprep.subr.bf16.mxu0 %v8768_v5  ;;  %v8750_v49 = vpack.c.bf16 %v7477_v24, %v7476_v23 }
 0x3bb   : > { %2684 = vmatmul.mubr.f32.gmra.mrb[46].mxu0 %v2499_v31  ;;  %8747 = vmatpush3.bf16.msra.mxu1 %v8746_v46  ;;  %v7494_v31 = vld [vmem:[%s14038_s6 + $0x1f0] sm:$0xff] }
 0x3bc   : > { %8749 = vmatprep.subr.bf16.mxu1 %v8748_v40 }
 0x3bd   : > { %8771 = vmatpush3.bf16.msra.mxu0 %v8768_v5  ;;  %v7497_v5 = vld [vmem:[%s14038_s6 + $0x208] sm:$0xff] }
 0x3be   : > { %v8756_v2 = vpack.c.bf16 %v7497_v5, %v7496_v43 }
 0x3bf   : > { %8751 = vmatpush3.bf16.msra.mxu1 %v8750_v49 }
 0x3d8   : > { %v11631_v60 = vpop.f32.mrb[24].mxu1 }
 0x3d9   : > { %v2755_v32 = vpop.f32.mrb[25].mxu1 }
 0x3f0   : > { %v11645_v30 = vpop.f32.mrb[26].mxu1 }
 0x3f1   : > { %v11647_v37 = vpop.f32.mrb[27].mxu1 }
 0x405   : > { %v11649_v38 = vpop.f32.mrb[28].mxu1 }
 0x406   : > { %v11651_v39 = vpop.f32.mrb[29].mxu1 }
 0x40d   : > { %v11653_v45 = vpop.f32.mrb[30].mxu1 }
 0x40e   : > { %v11655_v42 = vpop.f32.mrb[31].mxu1 }
 0x447   : > { %v7896_v11 = vpop.f32.mrb[32].mxu0 }
 0x448   : > { %v7897_v36 = vpop.f32.mrb[33].mxu0 }
 0x449   : > { %v7898_v12 = vadd.f32 %v7897_v36, %v7896_v11  ;;  %v11776_v11 = vld [vmem:[#allocation2 + $0x9] sm:$0xff] }
 0x44b   : > { %v2756_v19 = vadd.f32 %v7898_v12, %v2755_v32  ;;  %v7495_v32 = vld [vmem:[%s14038_s6 + $0x1f8] sm:$0xff] }
 0x44c   : > { %v8752_v56 = vpack.c.bf16 %v7495_v32, %v7494_v31 }
 0x44d   : > { %v2800_v57 = vmul.f32 %v11708_v13, %v2756_v19 }
 0x44e   : > { %8753 = vmatprep.subr.bf16.mxu1 %v8752_v56 }
 0x44f   : > { %v2812_v17 = vadd.f32 %v11713_v16, %v2800_v57  ;;  %8755 = vmatpush3.bf16.msra.mxu1 %v8754_v14 }
 0x450   : > { %8757 = vmatprep.subr.bf16.mxu1 %v8756_v2 }
 0x451   : > { %vm2820_vm11 = vcmp.gt.f32.partialorder %v2812_v17, 0.0  ;;  %v2828_v53 = vmul.f32 0.01, %v2812_v17 }
 0x453   : > { %v2836_v27 = vsel %vm2820_vm11, %v2812_v17, %v2828_v53  ;;  %v7899_v50 = vpop.f32.mrb[34].mxu0  ;;  %8759 = vmatpush3.bf16.msra.mxu1 %v8758_v59 }
 0x454   : > { %2844 = vst.msk [vmem:[#allocation2 + $0x20] sm:$0xff] %vm562_vm0, %v2836_v27  ;;  %v7900_v62 = vpop.f32.mrb[35].mxu0 }
 0x455   : > { %v7901_v4 = vadd.f32 %v7900_v62, %v7899_v50 }
 0x457   : > { %v2761_v1 = vadd.f32 %v11631_v60, %v7901_v4  ;;  %v7499_v60 = vld [vmem:[%s14038_s6 + $0x218] sm:$0xff] }
 0x458   : > { %v8760_v3 = vpack.c.bf16 %v7499_v60, %v7498_v63 }
 0x459   : > { %v2801_v20 = vmul.f32 %v11708_v13, %v2761_v1 }
 0x45a   : > { %8761 = vmatprep.subr.bf16.mxu1 %v8760_v3 }
 0x45b   : > { %v2813_v61 = vadd.f32 %v11713_v16, %v2801_v20  ;;  %v2892_v29 = vld [vmem:[#allocation2 + $0x21] sm:$0xff]  ;;  %8763 = vmatpush3.bf16.msra.mxu1 %v8762_v41 }
 0x45c   : > { %v9521_v44 = vpack.i.bf16 %v11756_v28, %v2892_v29  ;;  %v11778_v36 = vld [vmem:[#allocation2 + $0x1f] sm:$0xff] }
 0x45d   : > { %vm2821_vm12 = vcmp.gt.f32.partialorder %v2813_v61, 0.0  ;;  %v2829_v15 = vmul.f32 0.01, %v2813_v61  ;;  %v11792_v24 = vld [vmem:[#allocation2 + $0x20] sm:$0xff] }
 0x45e   : > { %9522 = vrot.lane.b32.xlu0 %v9521_v44, %s14066_s27  ;;  %v7902_v7 = vpop.f32.mrb[36].mxu0 }
 0x45f   : > { %v2837_v33 = vsel %vm2821_vm12, %v2813_v61, %v2829_v15  ;;  %v7903_v8 = vpop.f32.mrb[37].mxu0 }
 0x460   : > { %2845 = vst.msk [vmem:[#allocation2 + $0x38] sm:$0xff] %vm562_vm0, %v2837_v33  ;;  %v7904_v25 = vadd.f32 %v7903_v8, %v7902_v7 }
 0x462   : > { %v2766_v51 = vadd.f32 %v7904_v25, %v11647_v37 }
 0x464   : > { %v2802_v46 = vmul.f32 %v11708_v13, %v2766_v51 }
 0x466   : > { %v2814_v12 = vadd.f32 %v11713_v16, %v2802_v46 }
 0x467   : > { %v2916_v19 = vld [vmem:[#allocation2 + $0x39] sm:$0xff] }
 0x468   : > { %v11781_v57 = vld [vmem:[#allocation2 + $0x38] sm:$0xff]  ;;  %8456 = vmatprep.mubr.msk.f32.mxu0 %vm562_vm0, %v2916_v19  ;;  %vm2822_vm13 = vcmp.gt.f32.partialorder %v2814_v12, 0.0  ;;  %v2830_v48 = vmul.f32 0.01, %v2814_v12  ;;  %v9536_v49 = vpack.i.bf16 %v11792_v24, %v2916_v19 }
 0x469   : > { %v11783_v17 = vld [vmem:[#allocation2 + $0x37] sm:$0xff]  ;;  %v9531_v22 = vpack.i.bf16 %v11778_v36, %v11781_v57 }
 0x46a   : > { %v9526_v37 = vpack.i.bf16 %v11776_v11, %v11783_v17  ;;  %v2838_v40 = vsel %vm2822_vm13, %v2814_v12, %v2830_v48 }
 0x46b   : > { %9532 = vrot.lane.b32.xlu0 %v9531_v22, %s14065_s19  ;;  %2846 = vst.msk [vmem:[#allocation2 + $0x50] sm:$0xff] %vm562_vm0, %v2838_v40 }
 0x46c   : > { %9527 = vrot.lane.b32.xlu1 %v9526_v37, %s14067_s17  ;;  %v7905_v23 = vpop.f32.mrb[38].mxu0 }
 0x46d   : > { %v7906_v53 = vpop.f32.mrb[39].mxu0 }
 0x46e   : > { %v7907_v27 = vadd.f32 %v7906_v53, %v7905_v23 }
 0x470   : > { %9537 = vrot.lane.b32.xlu1 %v9536_v49, %s14066_s27  ;;  %v2771_v50 = vadd.f32 %v11645_v30, %v7907_v27 }
 0x472   : > { %v2803_v31 = vmul.f32 %v11708_v13, %v2771_v50  ;;  %v2917_v55 = vld [vmem:[#allocation2 + $0x51] sm:$0xff] }
 0x473   : > { %v11800_v62 = vld [vmem:[#allocation2 + $0x50] sm:$0xff]  ;;  %8457 = vmatmul.mubr.msk.f32.vlgmr.msra.gmra.mrb[48].mxu0 %vm562_vm0, %v2917_v55  ;;  %v9551_v2 = vpack.i.bf16 %v11781_v57, %v2917_v55 }
 0x474   : > { %v2815_v32 = vadd.f32 %v11713_v16, %v2803_v31  ;;  %v11802_v56 = vld [vmem:[#allocation2 + $0x4f] sm:$0xff]  ;;  %v9546_v34 = vpack.i.bf16 %v11783_v17, %v11800_v62 }
 0x475   : > { %v9541_v43 = vpack.i.bf16 %v2892_v29, %v11802_v56 }
 0x476   : > { %vm2823_vm14 = vcmp.gt.f32.partialorder %v2815_v32, 0.0  ;;  %v2831_v5 = vmul.f32 0.01, %v2815_v32  ;;  %9547 = vrot.lane.b32.xlu1 %v9546_v34, %s14065_s19  ;;  %v7908_v4 = vpop.f32.mrb[40].mxu0 }
 0x477   : > { %9542 = vrot.lane.b32.xlu0 %v9541_v43, %s14067_s17  ;;  %v7909_v14 = vpop.f32.mrb[41].mxu0 }
 0x478   : > { %v2839_v30 = vsel %vm2823_vm14, %v2815_v32, %v2831_v5  ;;  %v7910_v0 = vadd.f32 %v7909_v14, %v7908_v4 }
 0x479   : > { %2847 = vst.msk [vmem:[#allocation2 + $0x68] sm:$0xff] %vm562_vm0, %v2839_v30 }
 0x47a   : > { %v2776_v52 = vadd.f32 %v7910_v0, %v11651_v39 }
 0x47b   : > { %9552 = vrot.lane.b32.xlu0 %v9551_v2, %s14066_s27 }
 0x47c   : > { %v2804_v1 = vmul.f32 %v11708_v13, %v2776_v52 }
 0x47e   : > { %v2816_v59 = vadd.f32 %v11713_v16, %v2804_v1 }
 0x480   : > { %v2918_v20 = vld [vmem:[#allocation2 + $0x69] sm:$0xff]  ;;  %vm2824_vm15 = vcmp.gt.f32.partialorder %v2816_v59, 0.0  ;;  %v2832_v54 = vmul.f32 0.01, %v2816_v59 }
 0x481   : > { %v11816_v61 = vld [vmem:[#allocation2 + $0x67] sm:$0xff]  ;;  %v7911_v44 = vpop.f32.mrb[42].mxu0  ;;  %8459 = vmatprep.mubr.msk.f32.mxu0 %vm562_vm0, %v2918_v20  ;;  %v9566_v41 = vpack.i.bf16 %v11800_v62, %v2918_v20 }
 0x482   : > { %v11818_v29 = vld [vmem:[#allocation2 + $0x68] sm:$0xff]  ;;  %v9556_v63 = vpack.i.bf16 %v2916_v19, %v11816_v61  ;;  %v7912_v39 = vpop.f32.mrb[43].mxu0  ;;  %v2840_v3 = vsel %vm2824_vm15, %v2816_v59, %v2832_v54 }
 0x483   : > { %v9561_v60 = vpack.i.bf16 %v11802_v56, %v11818_v29  ;;  %v7913_v15 = vadd.f32 %v7912_v39, %v7911_v44  ;;  %2848 = vst.msk [vmem:[#allocation2 + $0x80] sm:$0xff] %vm562_vm0, %v2840_v3 }
 0x484   : > { %9557 = vrot.lane.b32.xlu1 %v9556_v63, %s14067_s17  ;;  %v11876_v63 = vld [vmem:[#allocation2 + $0xe1] sm:$0xff] }
 0x485   : > { %9562 = vrot.lane.b32.xlu0 %v9561_v60, %s14065_s19  ;;  %v2781_v6 = vadd.f32 %v11649_v38, %v7913_v15 }
 0x487   : > { %v2805_v33 = vmul.f32 %v11708_v13, %v2781_v6  ;;  %v11887_v6 = vld [vmem:[#allocation2 + $0xdf] sm:$0xff] }
 0x488   : > { %9567 = vrot.lane.b32.xlu1 %v9566_v41, %s14066_s27  ;;  %v7914_v7 = vpop.f32.mrb[44].mxu0 }
 0x489   : > { %v2817_v8 = vadd.f32 %v11713_v16, %v2805_v33  ;;  %v7915_v25 = vpop.f32.mrb[45].mxu0 }
 0x48a   : > { %v7916_v51 = vadd.f32 %v7915_v25, %v7914_v7  ;;  %v2919_v19 = vld [vmem:[#allocation2 + $0x81] sm:$0xff] }
 0x48b   : > { %vm2825_vm3 = vcmp.gt.f32.partialorder %v2817_v8, 0.0  ;;  %v2833_v46 = vmul.f32 0.01, %v2817_v8  ;;  %v11833_v22 = vld [vmem:[#allocation2 + $0x7f] sm:$0xff]  ;;  %8460 = vmatmul.mubr.msk.f32.gmra.mrb[50].mxu0 %vm562_vm0, %v2919_v19  ;;  %v9581_v50 = vpack.i.bf16 %v11818_v29, %v2919_v19 }
 0x48c   : > { %v2786_v12 = vadd.f32 %v7916_v51, %v11655_v42  ;;  %v11835_v37 = vld [vmem:[#allocation2 + $0x80] sm:$0xff]  ;;  %v9571_v48 = vpack.i.bf16 %v2917_v55, %v11833_v22 }
 0x48d   : > { %v2841_v38 = vsel %vm2825_vm3, %v2817_v8, %v2833_v46  ;;  %v9576_v40 = vpack.i.bf16 %v11816_v61, %v11835_v37  ;;  %v11892_v7 = vld [vmem:[#allocation2 + $0xe0] sm:$0xff] }
 0x48e   : > { %2849 = vst.msk [vmem:[#allocation2 + $0x98] sm:$0xff] %vm562_vm0, %v2841_v38  ;;  %v2806_v23 = vmul.f32 %v11708_v13, %v2786_v12  ;;  %v7917_v53 = vpop.f32.mrb[46].mxu0  ;;  %9572 = vrot.lane.b32.xlu0 %v9571_v48, %s14067_s17  ;;  %v11898_v12 = vld [vmem:[#allocation2 + $0x7] sm:$0xff] }
 0x48f   : > { %9577 = vrot.lane.b32.xlu1 %v9576_v40, %s14065_s19  ;;  %v7918_v49 = vpop.f32.mrb[47].mxu0 }
 0x490   : > { %v2818_v42 = vadd.f32 %v11713_v16, %v2806_v23  ;;  %v7919_v27 = vadd.f32 %v7918_v49, %v7917_v53 }
 0x492   : > { %vm2826_vm4 = vcmp.gt.f32.partialorder %v2818_v42, 0.0  ;;  %v2834_v31 = vmul.f32 0.01, %v2818_v42  ;;  %v2791_v32 = vadd.f32 %v11653_v45, %v7919_v27  ;;  %9582 = vrot.lane.b32.xlu0 %v9581_v50, %s14066_s27 }
 0x494   : > { %v2842_v55 = vsel %vm2826_vm4, %v2818_v42, %v2834_v31  ;;  %v2807_v34 = vmul.f32 %v11708_v13, %v2791_v32 }
 0x495   : > { %2850 = vst.msk [vmem:[#allocation2 + $0xb0] sm:$0xff] %vm562_vm0, %v2842_v55  ;;  %v2920_v43 = vld [vmem:[#allocation2 + $0x99] sm:$0xff] }
 0x496   : > { %v11851_v5 = vld [vmem:[#allocation2 + $0x98] sm:$0xff]  ;;  %8462 = vmatprep.mubr.msk.f32.mxu0 %vm562_vm0, %v2920_v43  ;;  %v2819_v45 = vadd.f32 %v11713_v16, %v2807_v34  ;;  %v9596_v2 = vpack.i.bf16 %v11835_v37, %v2920_v43 }
 0x497   : > { %v11853_v30 = vld [vmem:[#allocation2 + $0x97] sm:$0xff]  ;;  %v9591_v4 = vpack.i.bf16 %v11833_v22, %v11851_v5 }
 0x498   : > { %v9586_v14 = vpack.i.bf16 %v2918_v20, %v11853_v30  ;;  %vm2827_vm5 = vcmp.gt.f32.partialorder %v2819_v45, 0.0  ;;  %v2835_v13 = vmul.f32 0.01, %v2819_v45 }
 0x499   : > { %9592 = vrot.lane.b32.xlu0 %v9591_v4, %s14065_s19 }
 0x49a   : > { %9587 = vrot.lane.b32.xlu1 %v9586_v14, %s14067_s17  ;;  %v2843_v0 = vsel %vm2827_vm5, %v2819_v45, %v2835_v13 }
 0x49b   : > { %2851 = vst.msk [vmem:[#allocation2 + $0xc8] sm:$0xff] %vm562_vm0, %v2843_v0 }
 0x49c   : > { %v2921_v52 = vld [vmem:[#allocation2 + $0xb1] sm:$0xff] }
 0x49d   : > { %v11865_v1 = vld [vmem:[#allocation2 + $0xaf] sm:$0xff]  ;;  %8463 = vmatmul.mubr.msk.f32.gmra.mrb[52].mxu0 %vm562_vm0, %v2921_v52  ;;  %v9611_v44 = vpack.i.bf16 %v11851_v5, %v2921_v52  ;;  %v9626_v33 = vpack.i.bf16 %v2921_v52, %v11887_v6 }
 0x49e   : > { %9597 = vrot.lane.b32.xlu1 %v9596_v2, %s14066_s27  ;;  %v11867_v59 = vld [vmem:[#allocation2 + $0xb0] sm:$0xff]  ;;  %v9601_v16 = vpack.i.bf16 %v2919_v19, %v11865_v1 }
 0x49f   : > { %v9606_v20 = vpack.i.bf16 %v11853_v30, %v11867_v59 }
 0x4a0   : > { %9602 = vrot.lane.b32.xlu0 %v9601_v16, %s14067_s17 }
 0x4a2   : > { %9607 = vrot.lane.b32.xlu1 %v9606_v20, %s14065_s19  ;;  %v2922_v60 = vld [vmem:[#allocation2 + $0xc9] sm:$0xff] }
 0x4a3   : > { %v2906_v54 = vld [vmem:[#allocation2 + $0xc7] sm:$0xff]  ;;  %8465 = vmatprep.mubr.msk.f32.mxu0 %vm562_vm0, %v2922_v60  ;;  %v9631_v41 = vpack.i.bf16 %v11867_v59, %v2922_v60 }
 0x4a4   : > { %9612 = vrot.lane.b32.xlu0 %v9611_v44, %s14066_s27  ;;  %v11879_v39 = vld [vmem:[#allocation2 + $0xc8] sm:$0xff]  ;;  %v9616_v15 = vpack.i.bf16 %v2920_v43, %v2906_v54  ;;  %8466 = vmatmul.mubr.msk.f32.gmra.mrb[54].mxu0 %vm562_vm0, %v11876_v63  ;;  %v9636_v8 = vpack.i.bf16 %v2906_v54, %v11892_v7 }
 0x4a5   : > { %v9621_v3 = vpack.i.bf16 %v11865_v1, %v11879_v39 }
 0x4a6   : > { %9617 = vrot.lane.b32.xlu1 %v9616_v15, %s14067_s17 }
 0x4a8   : > { %9622 = vrot.lane.b32.xlu0 %v9621_v3, %s14065_s19 }
 0x4aa   : > { %9632 = vrot.lane.b32.xlu1 %v9631_v41, %s14066_s27 }
 0x4ac   : > { %9627 = vrot.lane.b32.xlu0 %v9626_v33, %s14067_s17 }
 0x4ae   : > { %9637 = vrot.lane.b32.xlu1 %v9636_v8, %s14065_s19 }
 0x4d0   : > { %v9523_v25 = vpop.permute.xlu0 %9522 }
 0x4d1   : > { %v9525_v51 = vunpack.i.h.bf16 %v9523_v25  ;;  %v9524_v46 = vunpack.i.l.bf16 %v9523_v25 }
 0x4d3   : > { %v3116_v42 = vsel %vm562_vm0, %v11898_v12, %v9525_v51  ;;  %v3140_v49 = vsel %vm562_vm0, %v11792_v24, %v9524_v46 }
 0x4dd   : > { %v9533_v19 = vpop.permute.xlu0 %9532 }
 0x4de   : > { %v9528_v38 = vpop.permute.xlu1 %9527  ;;  %v9535_v48 = vunpack.i.h.bf16 %v9533_v19  ;;  %v9534_v40 = vunpack.i.l.bf16 %v9533_v19 }
 0x4df   : > { %v9530_v23 = vunpack.i.h.bf16 %v9528_v38  ;;  %v9529_v53 = vunpack.i.l.bf16 %v9528_v38 }
 0x4e1   : > { %v3148_v27 = vsel %vm1146_vm1, %v3140_v49, %v9529_v53  ;;  %v3124_v50 = vsel %vm1146_vm1, %v3116_v42, %v9530_v23 }
 0x4e2   : > { %v3156_v31 = vsel %vm1155_vm2, %v3148_v27, %v9534_v40  ;;  %v3132_v32 = vsel %vm1155_vm2, %v3124_v50, %v9535_v48  ;;  %v9538_v55 = vpop.permute.xlu1 %9537 }
 0x4e3   : > { %3289 = vmatprep.mubr.f32.mxu1 %v3156_v31  ;;  %v9540_v34 = vunpack.i.h.bf16 %v9538_v55  ;;  %v9539_v43 = vunpack.i.l.bf16 %v9538_v55 }
 0x4e4   : > { %3290 = vmatmul.mubr.f32.vlgmr.msra.gmra.mrb[32].mxu1 %v3132_v32 }
 0x4e5   : > { %v3141_v24 = vsel %vm562_vm0, %v11781_v57, %v9539_v43  ;;  %v3117_v52 = vsel %vm562_vm0, %v11778_v36, %v9540_v34 }
 0x4e8   : > { %v9548_v4 = vpop.permute.xlu1 %9547 }
 0x4e9   : > { %v9543_v14 = vpop.permute.xlu0 %9542  ;;  %v9550_v45 = vunpack.i.h.bf16 %v9548_v4  ;;  %v9549_v13 = vunpack.i.l.bf16 %v9548_v4 }
 0x4ea   : > { %v9545_v2 = vunpack.i.h.bf16 %v9543_v14  ;;  %v9544_v0 = vunpack.i.l.bf16 %v9543_v14 }
 0x4ec   : > { %v3149_v16 = vsel %vm1146_vm1, %v3141_v24, %v9544_v0  ;;  %v3125_v20 = vsel %vm1146_vm1, %v3117_v52, %v9545_v2 }
 0x4ed   : > { %v3157_v44 = vsel %vm1155_vm2, %v3149_v16, %v9549_v13  ;;  %v3133_v60 = vsel %vm1155_vm2, %v3125_v20, %v9550_v45  ;;  %v9553_v54 = vpop.permute.xlu0 %9552 }
 0x4ee   : > { %3294 = vmatprep.mubr.f32.mxu1 %v3157_v44  ;;  %v9555_v15 = vunpack.i.h.bf16 %v9553_v54  ;;  %v9554_v3 = vunpack.i.l.bf16 %v9553_v54 }
 0x4ef   : > { %3295 = vmatmul.mubr.f32.gmra.mrb[34].mxu1 %v3133_v60 }
 0x4f0   : > { %v3142_v36 = vsel %vm562_vm0, %v11800_v62, %v9554_v3  ;;  %v3118_v46 = vsel %vm562_vm0, %v11783_v17, %v9555_v15 }
 0x4f6   : > { %v9558_v41 = vpop.permute.xlu1 %9557 }
 0x4f7   : > { %v9563_v33 = vpop.permute.xlu0 %9562  ;;  %v9560_v8 = vunpack.i.h.bf16 %v9558_v41  ;;  %v9559_v57 = vunpack.i.l.bf16 %v9558_v41 }
 0x4f8   : > { %v9565_v25 = vunpack.i.h.bf16 %v9563_v33  ;;  %v9564_v51 = vunpack.i.l.bf16 %v9563_v33 }
 0x4f9   : > { %v3150_v19 = vsel %vm1146_vm1, %v3142_v36, %v9559_v57  ;;  %v3126_v38 = vsel %vm1146_vm1, %v3118_v46, %v9560_v8 }
 0x4fa   : > { %v3158_v48 = vsel %vm1155_vm2, %v3150_v19, %v9564_v51  ;;  %v3134_v40 = vsel %vm1155_vm2, %v3126_v38, %v9565_v25  ;;  %v9568_v23 = vpop.permute.xlu1 %9567 }
 0x4fb   : > { %3299 = vmatprep.mubr.f32.mxu1 %v3158_v48  ;;  %v9570_v53 = vunpack.i.h.bf16 %v9568_v23  ;;  %v9569_v42 = vunpack.i.l.bf16 %v9568_v23 }
 0x4fc   : > { %3300 = vmatmul.mubr.f32.gmra.mrb[36].mxu1 %v3134_v40 }
 0x4fd   : > { %v3143_v17 = vsel %vm562_vm0, %v11818_v29, %v9569_v42  ;;  %v3119_v55 = vsel %vm562_vm0, %v11802_v56, %v9570_v53 }
 0x500   : > { %v9573_v49 = vpop.permute.xlu0 %9572 }
 0x501   : > { %v9578_v27 = vpop.permute.xlu1 %9577  ;;  %v9575_v50 = vunpack.i.h.bf16 %v9573_v49  ;;  %v9574_v62 = vunpack.i.l.bf16 %v9573_v49 }
 0x502   : > { %v9580_v31 = vunpack.i.h.bf16 %v9578_v27  ;;  %v9579_v32 = vunpack.i.l.bf16 %v9578_v27 }
 0x503   : > { %v3151_v34 = vsel %vm1146_vm1, %v3143_v17, %v9574_v62  ;;  %v3127_v43 = vsel %vm1146_vm1, %v3119_v55, %v9575_v50 }
 0x504   : > { %v9583_v4 = vpop.permute.xlu0 %9582  ;;  %v3159_v14 = vsel %vm1155_vm2, %v3151_v34, %v9579_v32  ;;  %v3135_v45 = vsel %vm1155_vm2, %v3127_v43, %v9580_v31 }
 0x505   : > { %3304 = vmatprep.mubr.f32.mxu1 %v3159_v14  ;;  %v9585_v13 = vunpack.i.h.bf16 %v9583_v4  ;;  %v9584_v2 = vunpack.i.l.bf16 %v9583_v4 }
 0x506   : > { %3305 = vmatmul.mubr.f32.gmra.mrb[38].mxu1 %v3135_v45 }
 0x507   : > { %v3144_v56 = vsel %vm562_vm0, %v11835_v37, %v9584_v2  ;;  %v3120_v44 = vsel %vm562_vm0, %v11816_v61, %v9585_v13 }
 0x50b   : > { %v9593_v0 = vpop.permute.xlu0 %9592 }
 0x50c   : > { %v9588_v24 = vpop.permute.xlu1 %9587  ;;  %v9595_v52 = vunpack.i.h.bf16 %v9593_v0  ;;  %v9594_v29 = vunpack.i.l.bf16 %v9593_v0 }
 0x50d   : > { %v9590_v16 = vunpack.i.h.bf16 %v9588_v24  ;;  %v9589_v20 = vunpack.i.l.bf16 %v9588_v24 }
 0x50f   : > { %v3152_v60 = vsel %vm1146_vm1, %v3144_v56, %v9589_v20  ;;  %v3128_v54 = vsel %vm1146_vm1, %v3120_v44, %v9590_v16 }
 0x510   : > { %v9598_v15 = vpop.permute.xlu1 %9597  ;;  %v3160_v3 = vsel %vm1155_vm2, %v3152_v60, %v9594_v29  ;;  %v3136_v41 = vsel %vm1155_vm2, %v3128_v54, %v9595_v52 }
 0x511   : > { %v9600_v33 = vunpack.i.h.bf16 %v9598_v15  ;;  %v9599_v8 = vunpack.i.l.bf16 %v9598_v15  ;;  %3309 = vmatprep.mubr.f32.mxu1 %v3160_v3 }
 0x512   : > { %3310 = vmatmul.mubr.f32.gmra.mrb[40].mxu1 %v3136_v41  ;;  %v9603_v57 = vpop.permute.xlu0 %9602  ;;  %v7548_v41 = vld [vmem:[%s14038_s6 + $0x350] sm:$0xff] }
 0x513   : > { %v9605_v25 = vunpack.i.h.bf16 %v9603_v57  ;;  %v9604_v51 = vunpack.i.l.bf16 %v9603_v57  ;;  %v3145_v61 = vsel %vm562_vm0, %v11851_v5, %v9599_v8  ;;  %v3121_v19 = vsel %vm562_vm0, %v11833_v22, %v9600_v33  ;;  %v7549_v33 = vld [vmem:[%s14038_s6 + $0x358] sm:$0xff] }
 0x514   : > { %v9608_v37 = vpop.permute.xlu1 %9607  ;;  %v8808_v8 = vpack.c.bf16 %v7549_v33, %v7548_v41  ;;  %v7540_v33 = vld [vmem:[%s14038_s6 + $0x310] sm:$0xff] }
 0x515   : > { %v9610_v36 = vunpack.i.h.bf16 %v9608_v37  ;;  %v9609_v46 = vunpack.i.l.bf16 %v9608_v37  ;;  %v3153_v38 = vsel %vm1146_vm1, %v3145_v61, %v9604_v51  ;;  %v3129_v48 = vsel %vm1146_vm1, %v3121_v19, %v9605_v25  ;;  %v7530_v61 = vld [vmem:[%s14038_s6 + $0x2c0] sm:$0xff]  ;;  %v7531_v19 = vld [vmem:[%s14038_s6 + $0x2c8] sm:$0xff] }
 0x516   : > { %v9613_v40 = vpop.permute.xlu0 %9612 }
 0x517   : > { %v3161_v23 = vsel %vm1155_vm2, %v3153_v38, %v9609_v46  ;;  %v3137_v53 = vsel %vm1155_vm2, %v3129_v48, %v9610_v36  ;;  %v9615_v42 = vunpack.i.h.bf16 %v9613_v40  ;;  %v9614_v49 = vunpack.i.l.bf16 %v9613_v40  ;;  %v7514_v38 = vld [vmem:[%s14038_s6 + $0x240] sm:$0xff]  ;;  %v7515_v40 = vld [vmem:[%s14038_s6 + $0x248] sm:$0xff] }
 0x518   : > { %3314 = vmatprep.mubr.f32.mxu1 %v3161_v23  ;;  %v9618_v27 = vpop.permute.xlu1 %9617  ;;  %v8772_v48 = vpack.c.bf16 %v7531_v19, %v7530_v61  ;;  %v7532_v23 = vld [vmem:[%s14038_s6 + $0x2d0] sm:$0xff] }
 0x519   : > { %3315 = vmatmul.mubr.f32.gmra.mrb[42].mxu1 %v3137_v53  ;;  %v9620_v50 = vunpack.i.h.bf16 %v9618_v27  ;;  %v9619_v62 = vunpack.i.l.bf16 %v9618_v27  ;;  %v3146_v22 = vsel %vm562_vm0, %v11867_v59, %v9614_v49  ;;  %v3122_v17 = vsel %vm562_vm0, %v11853_v30, %v9615_v42  ;;  %v7533_v53 = vld [vmem:[%s14038_s6 + $0x2d8] sm:$0xff]  ;;  %v7516_v27 = vld [vmem:[%s14038_s6 + $0x250] sm:$0xff] }
 0x51a   : > { %v9623_v5 = vpop.permute.xlu0 %9622  ;;  %v8774_v42 = vpack.c.bf16 %v7515_v40, %v7514_v38  ;;  %v8776_v49 = vpack.c.bf16 %v7533_v53, %v7532_v23  ;;  %8773 = vmatprep.subr.bf16.mxu1 %v8772_v48  ;;  %v7524_v61 = vld [vmem:[%s14038_s6 + $0x290] sm:$0xff]  ;;  %v7525_v48 = vld [vmem:[%s14038_s6 + $0x298] sm:$0xff]  ;;  %v7542_v40 = vld [vmem:[%s14038_s6 + $0x320] sm:$0xff] }
 0x51b   : > { %v9625_v31 = vunpack.i.h.bf16 %v9623_v5  ;;  %v9624_v32 = vunpack.i.l.bf16 %v9623_v5  ;;  %v3154_v55 = vsel %vm1146_vm1, %v3146_v22, %v9619_v62  ;;  %v3130_v34 = vsel %vm1146_vm1, %v3122_v17, %v9620_v50  ;;  %v7517_v50 = vld [vmem:[%s14038_s6 + $0x258] sm:$0xff]  ;;  %v7534_v62 = vld [vmem:[%s14038_s6 + $0x2e0] sm:$0xff]  ;;  %v7535_v5 = vld [vmem:[%s14038_s6 + $0x2e8] sm:$0xff] }
 0x51c   : > { %v9633_v43 = vpop.permute.xlu1 %9632  ;;  %8775 = vmatpush3.bf16.msra.mxu1 %v8774_v42  ;;  %v7518_v22 = vld [vmem:[%s14038_s6 + $0x260] sm:$0xff]  ;;  %v7519_v17 = vld [vmem:[%s14038_s6 + $0x268] sm:$0xff]  ;;  %v8794_v42 = vpack.c.bf16 %v7525_v48, %v7524_v61 }
 0x51d   : > { %v3162_v4 = vsel %vm1155_vm2, %v3154_v55, %v9624_v32  ;;  %v3138_v14 = vsel %vm1155_vm2, %v3130_v34, %v9625_v31  ;;  %v9635_v45 = vunpack.i.h.bf16 %v9633_v43  ;;  %v9634_v13 = vunpack.i.l.bf16 %v9633_v43  ;;  %8777 = vmatprep.subr.bf16.mxu1 %v8776_v49  ;;  %v7536_v55 = vld [vmem:[%s14038_s6 + $0x2f0] sm:$0xff]  ;;  %v7537_v34 = vld [vmem:[%s14038_s6 + $0x2f8] sm:$0xff]  ;;  %v7543_v23 = vld [vmem:[%s14038_s6 + $0x328] sm:$0xff] }
 0x51e   : > { %v9628_v2 = vpop.permute.xlu0 %9627  ;;  %3319 = vmatprep.mubr.f32.mxu1 %v3162_v4  ;;  %v8778_v31 = vpack.c.bf16 %v7517_v50, %v7516_v27  ;;  %v8780_v32 = vpack.c.bf16 %v7535_v5, %v7534_v62  ;;  %v8782_v43 = vpack.c.bf16 %v7519_v17, %v7518_v22  ;;  %v8784_v4 = vpack.c.bf16 %v7537_v34, %v7536_v55  ;;  %v7526_v27 = vld [vmem:[%s14038_s6 + $0x2a0] sm:$0xff]  ;;  %v7527_v50 = vld [vmem:[%s14038_s6 + $0x2a8] sm:$0xff]  ;;  %v7544_v55 = vld [vmem:[%s14038_s6 + $0x330] sm:$0xff] }
 0x51f   : > { %v9630_v0 = vunpack.i.h.bf16 %v9628_v2  ;;  %v9629_v24 = vunpack.i.l.bf16 %v9628_v2  ;;  %3320 = vmatmul.mubr.f32.gmra.mrb[44].mxu1 %v3138_v14  ;;  %v3147_v59 = vsel %vm562_vm0, %v11879_v39, %v9634_v13  ;;  %v3123_v30 = vsel %vm562_vm0, %v11865_v1, %v9635_v45  ;;  %v7546_v1 = vld [vmem:[%s14038_s6 + $0x340] sm:$0xff]  ;;  %v7547_v39 = vld [vmem:[%s14038_s6 + $0x348] sm:$0xff]  ;;  %v7520_v14 = vld [vmem:[%s14038_s6 + $0x270] sm:$0xff] }
 0x520   : > { %v9638_v52 = vpop.permute.xlu1 %9637  ;;  %v8804_v3 = vpack.c.bf16 %v7547_v39, %v7546_v1  ;;  %8779 = vmatpush3.bf16.msra.mxu1 %v8778_v31  ;;  %v7521_v45 = vld [vmem:[%s14038_s6 + $0x278] sm:$0xff]  ;;  %v8796_v49 = vpack.c.bf16 %v7543_v23, %v7542_v40  ;;  %v8798_v5 = vpack.c.bf16 %v7527_v50, %v7526_v27 }
 0x521   : > { %v9640_v29 = vunpack.i.h.bf16 %v9638_v52  ;;  %v9639_v16 = vunpack.i.l.bf16 %v9638_v52  ;;  %v3155_v20 = vsel %vm1146_vm1, %v3147_v59, %v9629_v24  ;;  %v3131_v56 = vsel %vm1146_vm1, %v3123_v30, %v9630_v0  ;;  %8781 = vmatprep.subr.bf16.mxu1 %v8780_v32  ;;  %v12041_v59 = vld [vmem:[%s14039_s7 + $0x1] ss:$0 sm:$0xff]  ;;  %v7545_v34 = vld [vmem:[%s14038_s6 + $0x338] sm:$0xff] }
 0x522   : > { %8805 = vmatprep.subr.bf16.mxu0 %v8804_v3  ;;  %v8786_v13 = vpack.c.bf16 %v7521_v45, %v7520_v14  ;;  %v12046_v52 = vld [vmem:[%s14040_s8 + $0x1] ss:$0 sm:$0xff]  ;;  %v7529_v14 = vld [vmem:[%s14038_s6 + $0x2b8] sm:$0xff] }
 0x523   : > { %v3163_v44 = vsel %vm1155_vm2, %v3155_v20, %v9639_v16  ;;  %v3139_v60 = vsel %vm1155_vm2, %v3131_v56, %v9640_v29  ;;  %8807 = vmatpush3.bf16.msra.mxu0 %v8804_v3  ;;  %v7538_v20 = vld [vmem:[%s14038_s6 + $0x300] sm:$0xff]  ;;  %v7539_v56 = vld [vmem:[%s14038_s6 + $0x308] sm:$0xff] }
 0x524   : > { %3324 = vmatprep.mubr.f32.mxu1 %v3163_v44  ;;  %8809 = vmatprep.subr.bf16.mxu0 %v8808_v8  ;;  %v8788_v44 = vpack.c.bf16 %v7539_v56, %v7538_v20 }
 0x525   : > { %3325 = vmatmul.mubr.f32.gmra.mrb[46].mxu1 %v3139_v60  ;;  %v7522_v60 = vld [vmem:[%s14038_s6 + $0x280] sm:$0xff] }
 0x526   : > { %8783 = vmatpush3.bf16.msra.mxu1 %v8782_v43 }
 0x527   : > { %8811 = vmatpush3.bf16.msra.mxu0 %v8808_v8  ;;  %8785 = vmatprep.subr.bf16.mxu1 %v8784_v4  ;;  %v7541_v8 = vld [vmem:[%s14038_s6 + $0x318] sm:$0xff]  ;;  %v8800_v4 = vpack.c.bf16 %v7545_v34, %v7544_v55 }
 0x528   : > { %v8792_v38 = vpack.c.bf16 %v7541_v8, %v7540_v33 }
 0x52a   : > { %8787 = vmatpush3.bf16.msra.mxu1 %v8786_v13 }
 0x52b   : > { %8789 = vmatprep.subr.bf16.mxu1 %v8788_v44 }
 0x546   : > { %v11964_v54 = vpop.f32.mrb[48].mxu0 }
 0x547   : > { %v3396_v15 = vpop.f32.mrb[49].mxu0 }
 0x55e   : > { %v11978_v57 = vpop.f32.mrb[50].mxu0 }
 0x55f   : > { %v11980_v25 = vpop.f32.mrb[51].mxu0 }
 0x570   : > { %v11982_v51 = vpop.f32.mrb[52].mxu0 }
 0x571   : > { %v11984_v37 = vpop.f32.mrb[53].mxu0 }
 0x577   : > { %v11986_v36 = vpop.f32.mrb[54].mxu0 }
 0x578   : > { %v11988_v46 = vpop.f32.mrb[55].mxu0 }
 0x5b7   : > { %v7964_v2 = vpop.f32.mrb[32].mxu1 }
 0x5b8   : > { %v7965_v0 = vpop.f32.mrb[33].mxu1 }
 0x5b9   : > { %v7966_v24 = vadd.f32 %v7965_v0, %v7964_v2 }
 0x5bb   : > { %v3397_v30 = vadd.f32 %v7966_v24, %v3396_v15  ;;  %v7523_v15 = vld [vmem:[%s14038_s6 + $0x288] sm:$0xff] }
 0x5bc   : > { %v8790_v39 = vpack.c.bf16 %v7523_v15, %v7522_v60 }
 0x5bd   : > { %v3441_v29 = vmul.f32 %v12041_v59, %v3397_v30 }
 0x5be   : > { %8791 = vmatpush3.bf16.msra.mxu1 %v8790_v39 }
 0x5bf   : > { %v3453_v16 = vadd.f32 %v12046_v52, %v3441_v29  ;;  %8793 = vmatprep.subr.bf16.mxu1 %v8792_v38 }
 0x5c1   : > { %vm3461_vm6 = vcmp.gt.f32.partialorder %v3453_v16, 0.0  ;;  %v3469_v1 = vmul.f32 0.01, %v3453_v16 }
 0x5c2   : > { %v7967_v41 = vpop.f32.mrb[34].mxu1  ;;  %8795 = vmatpush3.bf16.msra.mxu1 %v8794_v42 }
 0x5c3   : > { %v3477_v3 = vsel %vm3461_vm6, %v3453_v16, %v3469_v1  ;;  %v7968_v19 = vpop.f32.mrb[35].mxu1  ;;  %8797 = vmatprep.subr.bf16.mxu1 %v8796_v49 }
 0x5c4   : > { %3485 = vst.msk [vmem:[#allocation2 + $0x20] sm:$0xff] %vm562_vm0, %v3477_v3  ;;  %v7969_v53 = vadd.f32 %v7968_v19, %v7967_v41 }
 0x5c6   : > { %v3402_v62 = vadd.f32 %v11964_v54, %v7969_v53  ;;  %8799 = vmatpush3.bf16.msra.mxu1 %v8798_v5  ;;  %v7528_v54 = vld [vmem:[%s14038_s6 + $0x2b0] sm:$0xff] }
 0x5c7   : > { %8801 = vmatprep.subr.bf16.mxu1 %v8800_v4 }
 0x5c8   : > { %v3442_v31 = vmul.f32 %v12041_v59, %v3402_v62 }
 0x5ca   : > { %v3454_v32 = vadd.f32 %v12046_v52, %v3442_v31 }
 0x5cb   : > { %v3533_v22 = vld [vmem:[#allocation2 + $0x21] sm:$0xff] }
 0x5cc   : > { %v9641_v17 = vpack.i.bf16 %v11756_v28, %v3533_v22  ;;  %vm3462_vm7 = vcmp.gt.f32.partialorder %v3454_v32, 0.0  ;;  %v3470_v43 = vmul.f32 0.01, %v3454_v32  ;;  %v8802_v28 = vpack.c.bf16 %v7529_v14, %v7528_v54  ;;  %v12107_v29 = vld [vmem:[#allocation2 + $0x1f] sm:$0xff] }
 0x5cd   : > { %v12121_v3 = vld [vmem:[#allocation2 + $0x20] sm:$0xff] }
 0x5ce   : > { %9642 = vrot.lane.b32.xlu0 %v9641_v17, %s14066_s27  ;;  %v3478_v45 = vsel %vm3462_vm7, %v3454_v32, %v3470_v43  ;;  %8803 = vmatpush3.bf16.msra.mxu1 %v8802_v28 }
 0x5cf   : > { %v7970_v13 = vpop.f32.mrb[36].mxu1  ;;  %3486 = vst.msk [vmem:[#allocation2 + $0x38] sm:$0xff] %vm562_vm0, %v3478_v45 }
 0x5d0   : > { %v7971_v2 = vpop.f32.mrb[37].mxu1 }
 0x5d1   : > { %v7972_v0 = vadd.f32 %v7971_v2, %v7970_v13 }
 0x5d3   : > { %v3407_v24 = vadd.f32 %v7972_v0, %v11980_v25 }
 0x5d5   : > { %v3443_v30 = vmul.f32 %v12041_v59, %v3407_v24 }
 0x5d6   : > { %v3557_v20 = vld [vmem:[#allocation2 + $0x39] sm:$0xff] }
 0x5d7   : > { %v3455_v16 = vadd.f32 %v12046_v52, %v3443_v30  ;;  %v12110_v56 = vld [vmem:[#allocation2 + $0x38] sm:$0xff]  ;;  %8476 = vmatprep.mubr.msk.f32.mxu0 %vm562_vm0, %v3557_v20  ;;  %v9656_v33 = vpack.i.bf16 %v12121_v3, %v3557_v20 }
 0x5d8   : > { %v12112_v44 = vld [vmem:[#allocation2 + $0x37] sm:$0xff]  ;;  %v9651_v60 = vpack.i.bf16 %v12107_v29, %v12110_v56 }
 0x5d9   : > { %v9646_v15 = vpack.i.bf16 %v11776_v11, %v12112_v44  ;;  %vm3463_vm8 = vcmp.gt.f32.partialorder %v3455_v16, 0.0  ;;  %v3471_v25 = vmul.f32 0.01, %v3455_v16  ;;  %v7973_v39 = vpop.f32.mrb[38].mxu1 }
 0x5da   : > { %9652 = vrot.lane.b32.xlu0 %v9651_v60, %s14065_s19  ;;  %v7974_v41 = vpop.f32.mrb[39].mxu1 }
 0x5db   : > { %9647 = vrot.lane.b32.xlu1 %v9646_v15, %s14067_s17  ;;  %v3479_v1 = vsel %vm3463_vm8, %v3455_v16, %v3471_v25  ;;  %v7975_v8 = vadd.f32 %v7974_v41, %v7973_v39 }
 0x5dc   : > { %3487 = vst.msk [vmem:[#allocation2 + $0x50] sm:$0xff] %vm562_vm0, %v3479_v1 }
 0x5dd   : > { %v3412_v11 = vadd.f32 %v11978_v57, %v7975_v8 }
 0x5df   : > { %9657 = vrot.lane.b32.xlu1 %v9656_v33, %s14066_s27  ;;  %v3444_v61 = vmul.f32 %v12041_v59, %v3412_v11 }
 0x5e1   : > { %v3456_v19 = vadd.f32 %v12046_v52, %v3444_v61 }
 0x5e3   : > { %v3558_v38 = vld [vmem:[#allocation2 + $0x51] sm:$0xff]  ;;  %vm3464_vm9 = vcmp.gt.f32.partialorder %v3456_v19, 0.0  ;;  %v3472_v49 = vmul.f32 0.01, %v3456_v19 }
 0x5e4   : > { %v12129_v48 = vld [vmem:[#allocation2 + $0x50] sm:$0xff]  ;;  %8477 = vmatmul.mubr.msk.f32.vlgmr.msra.gmra.mrb[56].mxu0 %vm562_vm0, %v3558_v38  ;;  %v9671_v5 = vpack.i.bf16 %v12110_v56, %v3558_v38 }
 0x5e5   : > { %v12131_v40 = vld [vmem:[#allocation2 + $0x4f] sm:$0xff]  ;;  %v7976_v23 = vpop.f32.mrb[40].mxu1  ;;  %v9666_v53 = vpack.i.bf16 %v12112_v44, %v12129_v48  ;;  %v3480_v50 = vsel %vm3464_vm9, %v3456_v19, %v3472_v49  ;;  %vm4723_vm9 = vcmask 392192  }
 0x5e6   : > { %v9661_v42 = vpack.i.bf16 %v3533_v22, %v12131_v40  ;;  %v7977_v57 = vpop.f32.mrb[41].mxu1  ;;  %3488 = vst.msk [vmem:[#allocation2 + $0x68] sm:$0xff] %vm562_vm0, %v3480_v50 }
 0x5e7   : > { %v7978_v27 = vadd.f32 %v7977_v57, %v7976_v23  ;;  %9667 = vrot.lane.b32.xlu1 %v9666_v53, %s14065_s19 }
 0x5e8   : > { %9662 = vrot.lane.b32.xlu0 %v9661_v42, %s14067_s17 }
 0x5e9   : > { %v3417_v62 = vadd.f32 %v7978_v27, %v11984_v37 }
 0x5eb   : > { %v3445_v31 = vmul.f32 %v12041_v59, %v3417_v62 }
 0x5ec   : > { %9672 = vrot.lane.b32.xlu0 %v9671_v5, %s14066_s27  ;;  %v7979_v32 = vpop.f32.mrb[42].mxu1 }
 0x5ed   : > { %v3457_v22 = vadd.f32 %v12046_v52, %v3445_v31  ;;  %v7980_v17 = vpop.f32.mrb[43].mxu1  ;;  %v3559_v43 = vld [vmem:[#allocation2 + $0x69] sm:$0xff] }
 0x5ee   : > { %v7981_v55 = vadd.f32 %v7980_v17, %v7979_v32  ;;  %v12146_v4 = vld [vmem:[#allocation2 + $0x68] sm:$0xff]  ;;  %8479 = vmatprep.mubr.msk.f32.mxu0 %vm562_vm0, %v3559_v43  ;;  %v9686_v30 = vpack.i.bf16 %v12129_v48, %v3559_v43 }
 0x5ef   : > { %vm3465_vm10 = vcmp.gt.f32.partialorder %v3457_v22, 0.0  ;;  %v3473_v34 = vmul.f32 0.01, %v3457_v22  ;;  %v12148_v14 = vld [vmem:[#allocation2 + $0x67] sm:$0xff]  ;;  %v9681_v28 = vpack.i.bf16 %v12131_v40, %v12146_v4 }
 0x5f0   : > { %v3422_v54 = vadd.f32 %v11982_v51, %v7981_v55  ;;  %v9676_v45 = vpack.i.bf16 %v3557_v20, %v12148_v14 }
 0x5f1   : > { %v3481_v37 = vsel %vm3465_vm10, %v3457_v22, %v3473_v34  ;;  %9682 = vrot.lane.b32.xlu0 %v9681_v28, %s14065_s19 }
 0x5f2   : > { %3489 = vst.msk [vmem:[#allocation2 + $0x80] sm:$0xff] %vm562_vm0, %v3481_v37  ;;  %v3446_v13 = vmul.f32 %v12041_v59, %v3422_v54  ;;  %v7982_v2 = vpop.f32.mrb[44].mxu1  ;;  %9677 = vrot.lane.b32.xlu1 %v9676_v45, %s14067_s17 }
 0x5f3   : > { %v7983_v0 = vpop.f32.mrb[45].mxu1 }
 0x5f4   : > { %v3458_v51 = vadd.f32 %v12046_v52, %v3446_v13  ;;  %v7984_v24 = vadd.f32 %v7983_v0, %v7982_v2 }
 0x5f6   : > { %vm3466_vm11 = vcmp.gt.f32.partialorder %v3458_v51, 0.0  ;;  %v3474_v16 = vmul.f32 0.01, %v3458_v51  ;;  %v3427_v60 = vadd.f32 %v7984_v24, %v11988_v46  ;;  %9687 = vrot.lane.b32.xlu1 %v9686_v30, %s14066_s27 }
 0x5f8   : > { %v3482_v20 = vsel %vm3466_vm11, %v3458_v51, %v3474_v16  ;;  %v3447_v15 = vmul.f32 %v12041_v59, %v3427_v60  ;;  %v7985_v41 = vpop.f32.mrb[46].mxu1 }
 0x5f9   : > { %3490 = vst.msk [vmem:[#allocation2 + $0x98] sm:$0xff] %vm562_vm0, %v3482_v20  ;;  %v3560_v25 = vld [vmem:[#allocation2 + $0x81] sm:$0xff]  ;;  %v7986_v11 = vpop.f32.mrb[47].mxu1 }
 0x5fa   : > { %v12164_v1 = vld [vmem:[#allocation2 + $0x7f] sm:$0xff]  ;;  %8480 = vmatmul.mubr.msk.f32.gmra.mrb[58].mxu0 %vm562_vm0, %v3560_v25  ;;  %v3459_v8 = vadd.f32 %v12046_v52, %v3447_v15  ;;  %v7987_v61 = vadd.f32 %v7986_v11, %v7985_v41  ;;  %v9701_v53 = vpack.i.bf16 %v12146_v4, %v3560_v25 }
 0x5fb   : > { %v12166_v39 = vld [vmem:[#allocation2 + $0x80] sm:$0xff]  ;;  %v9691_v33 = vpack.i.bf16 %v3558_v38, %v12164_v1 }
 0x5fc   : > { %v9696_v46 = vpack.i.bf16 %v12148_v14, %v12166_v39  ;;  %vm3467_vm12 = vcmp.gt.f32.partialorder %v3459_v8, 0.0  ;;  %v3475_v19 = vmul.f32 0.01, %v3459_v8  ;;  %v3432_v23 = vadd.f32 %v11986_v36, %v7987_v61 }
 0x5fd   : > { %9692 = vrot.lane.b32.xlu0 %v9691_v33, %s14067_s17 }
 0x5fe   : > { %9697 = vrot.lane.b32.xlu1 %v9696_v46, %s14065_s19  ;;  %v3483_v42 = vsel %vm3467_vm12, %v3459_v8, %v3475_v19  ;;  %v3448_v38 = vmul.f32 %v12041_v59, %v3432_v23 }
 0x5ff   : > { %3491 = vst.msk [vmem:[#allocation2 + $0xb0] sm:$0xff] %vm562_vm0, %v3483_v42 }
 0x600   : > { %v3561_v49 = vld [vmem:[#allocation2 + $0x99] sm:$0xff]  ;;  %v3460_v62 = vadd.f32 %v12046_v52, %v3448_v38 }
 0x601   : > { %9702 = vrot.lane.b32.xlu0 %v9701_v53, %s14066_s27  ;;  %v12180_v57 = vld [vmem:[#allocation2 + $0x97] sm:$0xff]  ;;  %8482 = vmatprep.mubr.msk.f32.mxu0 %vm562_vm0, %v3561_v49  ;;  %v9716_v5 = vpack.i.bf16 %v12166_v39, %v3561_v49 }
 0x602   : > { %v12182_v27 = vld [vmem:[#allocation2 + $0x98] sm:$0xff]  ;;  %v9706_v50 = vpack.i.bf16 %v3559_v43, %v12180_v57  ;;  %vm3468_vm13 = vcmp.gt.f32.partialorder %v3460_v62, 0.0  ;;  %v3476_v59 = vmul.f32 0.01, %v3460_v62 }
 0x603   : > { %v9711_v36 = vpack.i.bf16 %v12164_v1, %v12182_v27 }
 0x604   : > { %9707 = vrot.lane.b32.xlu1 %v9706_v50, %s14067_s17  ;;  %v3484_v31 = vsel %vm3468_vm13, %v3460_v62, %v3476_v59 }
 0x605   : > { %9712 = vrot.lane.b32.xlu0 %v9711_v36, %s14065_s19  ;;  %3492 = vst.msk [vmem:[#allocation2 + $0xc8] sm:$0xff] %vm562_vm0, %v3484_v31 }
 0x606   : > { %v3562_v32 = vld [vmem:[#allocation2 + $0xb1] sm:$0xff] }
 0x607   : > { %v12194_v22 = vld [vmem:[#allocation2 + $0xaf] sm:$0xff]  ;;  %8483 = vmatmul.mubr.msk.f32.gmra.mrb[60].mxu0 %vm562_vm0, %v3562_v32  ;;  %v9731_v34 = vpack.i.bf16 %v12182_v27, %v3562_v32  ;;  %v9746_v2 = vpack.i.bf16 %v3562_v32, %v11887_v6 }
 0x608   : > { %9717 = vrot.lane.b32.xlu1 %v9716_v5, %s14066_s27  ;;  %v12196_v17 = vld [vmem:[#allocation2 + $0xb0] sm:$0xff]  ;;  %v9721_v52 = vpack.i.bf16 %v3560_v25, %v12194_v22 }
 0x609   : > { %v9726_v55 = vpack.i.bf16 %v12180_v57, %v12196_v17 }
 0x60a   : > { %9722 = vrot.lane.b32.xlu0 %v9721_v52, %s14067_s17 }
 0x60c   : > { %9727 = vrot.lane.b32.xlu1 %v9726_v55, %s14065_s19  ;;  %v3563_v54 = vld [vmem:[#allocation2 + $0xc9] sm:$0xff] }
 0x60d   : > { %v3547_v43 = vld [vmem:[#allocation2 + $0xc7] sm:$0xff]  ;;  %8485 = vmatprep.mubr.msk.f32.mxu0 %vm562_vm0, %v3563_v54  ;;  %v9751_v13 = vpack.i.bf16 %v12196_v17, %v3563_v54 }
 0x60e   : > { %9732 = vrot.lane.b32.xlu0 %v9731_v34, %s14066_s27  ;;  %v12206_v37 = vld [vmem:[#allocation2 + $0xc8] sm:$0xff]  ;;  %v9736_v28 = vpack.i.bf16 %v3561_v49, %v3547_v43  ;;  %8486 = vmatmul.mubr.msk.f32.gmra.mrb[62].mxu0 %vm562_vm0, %v11876_v63  ;;  %v9756_v51 = vpack.i.bf16 %v3547_v43, %v11892_v7 }
 0x60f   : > { %v9741_v45 = vpack.i.bf16 %v12194_v22, %v12206_v37 }
 0x610   : > { %9737 = vrot.lane.b32.xlu1 %v9736_v28, %s14067_s17 }
 0x612   : > { %9742 = vrot.lane.b32.xlu0 %v9741_v45, %s14065_s19 }
 0x614   : > { %9752 = vrot.lane.b32.xlu1 %v9751_v13, %s14066_s27 }
 0x616   : > { %9747 = vrot.lane.b32.xlu0 %v9746_v2, %s14067_s17 }
 0x618   : > { %9757 = vrot.lane.b32.xlu1 %v9756_v51, %s14065_s19 }
 0x61a   : > { %2171 = vrot.lane.b32.xlu0 %v11384_v35, %s14065_s19 }
 0x61c   : > { %2173 = vrot.lane.b32.xlu1 %v11429_v9, %s14065_s19 }
 0x61e   : > { %2175 = vrot.lane.b32.xlu0 %v11449_v26, %s14065_s19 }
 0x620   : > { %2177 = vrot.lane.b32.xlu1 %v11470_v47, %s14065_s19 }
 0x622   : > { %2179 = vrot.lane.b32.xlu0 %v11489_v58, %s14065_s19 }
 0x624   : > { %2181 = vrot.lane.b32.xlu1 %v11508_v18, %s14065_s19 }
 0x626   : > { %2183 = vrot.lane.b32.xlu0 %v11522_v21, %s14065_s19 }
 0x628   : > { %2185 = vrot.lane.b32.xlu1 %v11536_v10, %s14065_s19 }
 0x640   : > { %v9643_v35 = vpop.permute.xlu0 %9642 }
 0x641   : > { %v9645_v9 = vunpack.i.h.bf16 %v9643_v35  ;;  %v9644_v63 = vunpack.i.l.bf16 %v9643_v35 }
 0x643   : > { %v3757_v58 = vsel %vm562_vm0, %v11898_v12, %v9645_v9  ;;  %v3781_v18 = vsel %vm562_vm0, %v12121_v3, %v9644_v63 }
 0x64c   : > { %v9653_v6 = vpop.permute.xlu0 %9652 }
 0x64d   : > { %v9648_v26 = vpop.permute.xlu1 %9647  ;;  %v9655_v7 = vunpack.i.h.bf16 %v9653_v6  ;;  %v9654_v0 = vunpack.i.l.bf16 %v9653_v6 }
 0x64e   : > { %v9650_v47 = vunpack.i.h.bf16 %v9648_v26  ;;  %v9649_v24 = vunpack.i.l.bf16 %v9648_v26 }
 0x650   : > { %v3789_v21 = vsel %vm1146_vm1, %v3781_v18, %v9649_v24  ;;  %v3765_v30 = vsel %vm1146_vm1, %v3757_v58, %v9650_v47 }
 0x651   : > { %v3797_v10 = vsel %vm1155_vm2, %v3789_v21, %v9654_v0  ;;  %v3773_v16 = vsel %vm1155_vm2, %v3765_v30, %v9655_v7  ;;  %v9658_v60 = vpop.permute.xlu1 %9657 }
 0x652   : > { %3930 = vmatprep.mubr.f32.mxu1 %v3797_v10  ;;  %v9660_v20 = vunpack.i.h.bf16 %v9658_v60  ;;  %v9659_v15 = vunpack.i.l.bf16 %v9658_v60 }
 0x653   : > { %3931 = vmatmul.mubr.f32.vlgmr.msra.gmra.mrb[48].mxu1 %v3773_v16 }
 0x654   : > { %v3782_v3 = vsel %vm562_vm0, %v12110_v56, %v9659_v15  ;;  %v3758_v11 = vsel %vm562_vm0, %v12107_v29, %v9660_v20 }
 0x659   : > { %v9668_v25 = vpop.permute.xlu1 %9667 }
 0x65a   : > { %v9663_v41 = vpop.permute.xlu0 %9662  ;;  %v9670_v33 = vunpack.i.h.bf16 %v9668_v25  ;;  %v9669_v12 = vunpack.i.l.bf16 %v9668_v25 }
 0x65b   : > { %v9665_v46 = vunpack.i.h.bf16 %v9663_v41  ;;  %v9664_v8 = vunpack.i.l.bf16 %v9663_v41 }
 0x65d   : > { %v3790_v61 = vsel %vm1146_vm1, %v3782_v3, %v9664_v8  ;;  %v3766_v19 = vsel %vm1146_vm1, %v3758_v11, %v9665_v46 }
 0x65e   : > { %v3798_v23 = vsel %vm1155_vm2, %v3790_v61, %v9669_v12  ;;  %v3774_v53 = vsel %vm1155_vm2, %v3766_v19, %v9670_v33  ;;  %v9673_v42 = vpop.permute.xlu0 %9672 }
 0x65f   : > { %3935 = vmatprep.mubr.f32.mxu1 %v3798_v23  ;;  %v9675_v38 = vunpack.i.h.bf16 %v9673_v42  ;;  %v9674_v49 = vunpack.i.l.bf16 %v9673_v42 }
 0x660   : > { %3936 = vmatmul.mubr.f32.gmra.mrb[50].mxu1 %v3774_v53 }
 0x661   : > { %v3783_v29 = vsel %vm562_vm0, %v12129_v48, %v9674_v49  ;;  %v3759_v31 = vsel %vm562_vm0, %v12112_v44, %v9675_v38 }
 0x663   : > { %v9683_v50 = vpop.permute.xlu0 %9682 }
 0x664   : > { %v9678_v36 = vpop.permute.xlu1 %9677  ;;  %v9685_v62 = vunpack.i.h.bf16 %v9683_v50  ;;  %v9684_v56 = vunpack.i.l.bf16 %v9683_v50 }
 0x665   : > { %v9680_v59 = vunpack.i.h.bf16 %v9678_v36  ;;  %v9679_v5 = vunpack.i.l.bf16 %v9678_v36 }
 0x667   : > { %v3791_v32 = vsel %vm1146_vm1, %v3783_v29, %v9679_v5  ;;  %v3767_v52 = vsel %vm1146_vm1, %v3759_v31, %v9680_v59 }
 0x668   : > { %v9688_v55 = vpop.permute.xlu1 %9687  ;;  %v3799_v34 = vsel %vm1155_vm2, %v3791_v32, %v9684_v56  ;;  %v3775_v54 = vsel %vm1155_vm2, %v3767_v52, %v9685_v62 }
 0x669   : > { %3940 = vmatprep.mubr.f32.mxu1 %v3799_v34  ;;  %v9690_v43 = vunpack.i.h.bf16 %v9688_v55  ;;  %v9689_v28 = vunpack.i.l.bf16 %v9688_v55 }
 0x66a   : > { %3941 = vmatmul.mubr.f32.gmra.mrb[52].mxu1 %v3775_v54 }
 0x66b   : > { %v3784_v44 = vsel %vm562_vm0, %v12146_v4, %v9689_v28  ;;  %v3760_v9 = vsel %vm562_vm0, %v12131_v40, %v9690_v43 }
 0x66f   : > { %v9693_v45 = vpop.permute.xlu0 %9692 }
 0x670   : > { %v9698_v13 = vpop.permute.xlu1 %9697  ;;  %v9695_v2 = vunpack.i.h.bf16 %v9693_v45  ;;  %v9694_v48 = vunpack.i.l.bf16 %v9693_v45 }
 0x671   : > { %v9700_v51 = vunpack.i.h.bf16 %v9698_v13  ;;  %v9699_v35 = vunpack.i.l.bf16 %v9698_v13 }
 0x672   : > { %v3792_v63 = vsel %vm1146_vm1, %v3784_v44, %v9694_v48  ;;  %v3768_v6 = vsel %vm1146_vm1, %v3760_v9, %v9695_v2 }
 0x673   : > { %v9703_v26 = vpop.permute.xlu0 %9702  ;;  %v3800_v7 = vsel %vm1155_vm2, %v3792_v63, %v9699_v35  ;;  %v3776_v0 = vsel %vm1155_vm2, %v3768_v6, %v9700_v51 }
 0x674   : > { %v9705_v47 = vunpack.i.h.bf16 %v9703_v26  ;;  %v9704_v24 = vunpack.i.l.bf16 %v9703_v26  ;;  %3945 = vmatprep.mubr.f32.mxu1 %v3800_v7 }
 0x675   : > { %3946 = vmatmul.mubr.f32.gmra.mrb[54].mxu1 %v3776_v0 }
 0x676   : > { %v9708_v58 = vpop.permute.xlu1 %9707  ;;  %v3785_v40 = vsel %vm562_vm0, %v12166_v39, %v9704_v24  ;;  %v3761_v16 = vsel %vm562_vm0, %v12148_v14, %v9705_v47 }
 0x677   : > { %v9710_v18 = vunpack.i.h.bf16 %v9708_v58  ;;  %v9709_v21 = vunpack.i.l.bf16 %v9708_v58  ;;  %v9713_v4 = vpop.permute.xlu0 %9712 }
 0x678   : > { %v9715_v30 = vunpack.i.h.bf16 %v9713_v4  ;;  %v9714_v10 = vunpack.i.l.bf16 %v9713_v4 }
 0x679   : > { %v3793_v60 = vsel %vm1146_vm1, %v3785_v40, %v9709_v21  ;;  %v3769_v20 = vsel %vm1146_vm1, %v3761_v16, %v9710_v18  ;;  %v4748_v18 = vld [vmem:[#allocation3 + $0x9] sm:$0xff] }
 0x67a   : > { %v9718_v15 = vpop.permute.xlu1 %9717  ;;  %v3801_v25 = vsel %vm1155_vm2, %v3793_v60, %v9714_v10  ;;  %v3777_v41 = vsel %vm1155_vm2, %v3769_v20, %v9715_v30 }
 0x67b   : > { %v9720_v33 = vunpack.i.h.bf16 %v9718_v15  ;;  %v9719_v12 = vunpack.i.l.bf16 %v9718_v15  ;;  %3950 = vmatprep.mubr.f32.mxu1 %v3801_v25 }
 0x67c   : > { %3951 = vmatmul.mubr.f32.gmra.mrb[56].mxu1 %v3777_v41  ;;  %v9723_v46 = vpop.permute.xlu0 %9722 }
 0x67d   : > { %v9725_v8 = vunpack.i.h.bf16 %v9723_v46  ;;  %v9724_v3 = vunpack.i.l.bf16 %v9723_v46  ;;  %v3786_v14 = vsel %vm562_vm0, %v12182_v27, %v9719_v12  ;;  %v3762_v19 = vsel %vm562_vm0, %v12164_v1, %v9720_v33 }
 0x67e   : > { %v9728_v39 = vpop.permute.xlu1 %9727 }
 0x67f   : > { %v9730_v11 = vunpack.i.h.bf16 %v9728_v39  ;;  %v9729_v61 = vunpack.i.l.bf16 %v9728_v39  ;;  %v3794_v23 = vsel %vm1146_vm1, %v3786_v14, %v9724_v3  ;;  %v3770_v53 = vsel %vm1146_vm1, %v3762_v19, %v9725_v8  ;;  %v4480_v19 = vld [vmem:[%s14044_s12 + $0x110] sm:$0xff] }
 0x680   : > { %v9733_v42 = vpop.permute.xlu0 %9732 }
 0x681   : > { %v3802_v38 = vsel %vm1155_vm2, %v3794_v23, %v9729_v61  ;;  %v3778_v49 = vsel %vm1155_vm2, %v3770_v53, %v9730_v11  ;;  %v9735_v50 = vunpack.i.h.bf16 %v9733_v42  ;;  %v9734_v36 = vunpack.i.l.bf16 %v9733_v42  ;;  %v4478_v11 = vld [vmem:[%s14044_s12 + $0x100] sm:$0xff]  ;;  %v4479_v61 = vld [vmem:[%s14044_s12 + $0x108] sm:$0xff]  ;;  %v4481_v23 = vld [vmem:[%s14044_s12 + $0x118] sm:$0xff] }
 0x682   : > { %3955 = vmatprep.mubr.f32.mxu1 %v3802_v38  ;;  %v9738_v62 = vpop.permute.xlu1 %9737  ;;  %v8844_v14 = vpack.c.bf16 %v4479_v61, %v4478_v11  ;;  %v8848_v42 = vpack.c.bf16 %v4481_v23, %v4480_v19  ;;  %v4474_v19 = vld [vmem:[%s14044_s12 + $0xe0] sm:$0xff]  ;;  %v4475_v23 = vld [vmem:[%s14044_s12 + $0xe8] sm:$0xff] }
 0x683   : > { %3956 = vmatmul.mubr.f32.gmra.mrb[58].mxu1 %v3778_v49  ;;  %v9740_v56 = vunpack.i.h.bf16 %v9738_v62  ;;  %v9739_v59 = vunpack.i.l.bf16 %v9738_v62  ;;  %v3787_v1 = vsel %vm562_vm0, %v12196_v17, %v9734_v36  ;;  %v3763_v31 = vsel %vm562_vm0, %v12180_v57, %v9735_v50 }
 0x684   : > { %v9743_v27 = vpop.permute.xlu0 %9742  ;;  %8845 = vmatprep.subr.bf16.mxu1 %v8844_v14 }
 0x685   : > { %v9745_v5 = vunpack.i.h.bf16 %v9743_v27  ;;  %v9744_v29 = vunpack.i.l.bf16 %v9743_v27  ;;  %v3795_v32 = vsel %vm1146_vm1, %v3787_v1, %v9739_v59  ;;  %v3771_v52 = vsel %vm1146_vm1, %v3763_v31, %v9740_v56  ;;  %8847 = vmatpush3.bf16.msra.mxu1 %v8844_v14  ;;  %v5077_v56 = vld [vmem:[%s14041_s9 + $0x100] sm:$0xff]  ;;  %v5078_v59 = vld [vmem:[%s14041_s9 + $0x108] sm:$0xff]  ;;  %v4457_v14 = vld [vmem:[%s14044_s12 + $0x58] sm:$0xff] }
 0x686   : > { %v9753_v55 = vpop.permute.xlu1 %9752  ;;  %8849 = vmatprep.subr.bf16.mxu1 %v8848_v42  ;;  %v12359_v27 = vpack.c.bf16 %v5078_v59, %v5077_v56  ;;  %v4446_v31 = vld [vmem:[%s14044_s12] sm:$0xff]  ;;  %v8836_v59 = vpack.c.bf16 %v4475_v23, %v4474_v19 }
 0x687   : > { %v3803_v34 = vsel %vm1155_vm2, %v3795_v32, %v9744_v29  ;;  %v3779_v54 = vsel %vm1155_vm2, %v3771_v52, %v9745_v5  ;;  %v9755_v43 = vunpack.i.h.bf16 %v9753_v55  ;;  %v9754_v28 = vunpack.i.l.bf16 %v9753_v55  ;;  %v4462_v5 = vld [vmem:[%s14044_s12 + $0x80] sm:$0xff]  ;;  %v4463_v29 = vld [vmem:[%s14044_s12 + $0x88] sm:$0xff]  ;;  %v4464_v55 = vld [vmem:[%s14044_s12 + $0x90] sm:$0xff] }
 0x688   : > { %v9748_v45 = vpop.permute.xlu0 %9747  ;;  %3960 = vmatprep.mubr.f32.mxu1 %v3803_v34  ;;  %v8812_v1 = vpack.c.bf16 %v4463_v29, %v4462_v5  ;;  %v4447_v32 = vld [vmem:[%s14044_s12 + $0x8] sm:$0xff]  ;;  %v4465_v34 = vld [vmem:[%s14044_s12 + $0x98] sm:$0xff]  ;;  %v4458_v5 = vld [vmem:[%s14044_s12 + $0x60] sm:$0xff] }
 0x689   : > { %v9750_v13 = vunpack.i.h.bf16 %v9748_v45  ;;  %v9749_v2 = vunpack.i.l.bf16 %v9748_v45  ;;  %3961 = vmatmul.mubr.f32.gmra.mrb[60].mxu1 %v3779_v54  ;;  %v3788_v17 = vsel %vm562_vm0, %v12206_v37, %v9754_v28  ;;  %v3764_v57 = vsel %vm562_vm0, %v12194_v22, %v9755_v43  ;;  %v4740_v22 = vld [vmem:[#allocation3 + $0x8] sm:$0xff]  ;;  %v4448_v43 = vld [vmem:[%s14044_s12 + $0x10] sm:$0xff]  ;;  %v4459_v29 = vld [vmem:[%s14044_s12 + $0x68] sm:$0xff] }
 0x68a   : > { %v9758_v48 = vpop.permute.xlu1 %9757  ;;  %8851 = vmatpush3.bf16.msra.mxu1 %v8848_v42  ;;  %v8814_v52 = vpack.c.bf16 %v4447_v32, %v4446_v31  ;;  %8813 = vmatprep.subr.bf16.mxu0 %v8812_v1  ;;  %v8816_v54 = vpack.c.bf16 %v4465_v34, %v4464_v55  ;;  %v4449_v28 = vld [vmem:[%s14044_s12 + $0x18] sm:$0xff]  ;;  %v8838_v31 = vpack.c.bf16 %v4459_v29, %v4458_v5 }
 0x68b   : > { %v9760_v51 = vunpack.i.h.bf16 %v9758_v48  ;;  %v9759_v35 = vunpack.i.l.bf16 %v9758_v48  ;;  %v3796_v9 = vsel %vm1146_vm1, %v3788_v17, %v9749_v2  ;;  %v3772_v63 = vsel %vm1146_vm1, %v3764_v57, %v9750_v13  ;;  %8885 = vmatprep.subr.bf16.mxu1 %v12359_v27  ;;  %v4466_v2 = vld [vmem:[%s14044_s12 + $0xa0] sm:$0xff]  ;;  %v4467_v17 = vld [vmem:[%s14044_s12 + $0xa8] sm:$0xff] }
 0x68c   : > { %v2172_v44 = vpop.permute.xlu0 %2171  ;;  %8815 = vmatpush3.bf16.msra.mxu0 %v8814_v52  ;;  %v8818_v45 = vpack.c.bf16 %v4449_v28, %v4448_v43  ;;  %v4450_v57 = vld [vmem:[%s14044_s12 + $0x20] sm:$0xff]  ;;  %v4142_v52 = vld [vmem:[#allocation2 + $0x8] sm:$0xff]  ;;  %v4476_v43 = vld [vmem:[%s14044_s12 + $0xf0] sm:$0xff] }
 0x68d   : > { %2196 = vst.msk [vmem:[#allocation3 + $0x20] sm:$0xff] %vm562_vm0, %v2172_v44  ;;  %v3804_v6 = vsel %vm1155_vm2, %v3796_v9, %v9759_v35  ;;  %v3780_v26 = vsel %vm1155_vm2, %v3772_v63, %v9760_v51  ;;  %8817 = vmatprep.subr.bf16.mxu0 %v8816_v54  ;;  %v8820_v51 = vpack.c.bf16 %v4467_v17, %v4466_v2  ;;  %v4451_v35 = vld [vmem:[%s14044_s12 + $0x28] sm:$0xff]  ;;  %v4468_v44 = vld [vmem:[%s14044_s12 + $0xb0] sm:$0xff]  ;;  %v4469_v9 = vld [vmem:[%s14044_s12 + $0xb8] sm:$0xff] }
 0x68e   : > { %v2174_v7 = vpop.permute.xlu1 %2173  ;;  %3965 = vmatprep.mubr.f32.mxu1 %v3804_v6  ;;  %v8822_v6 = vpack.c.bf16 %v4451_v35, %v4450_v57  ;;  %v4460_v28 = vld [vmem:[%s14044_s12 + $0x70] sm:$0xff]  ;;  %v4461_v2 = vld [vmem:[%s14044_s12 + $0x78] sm:$0xff] }
 0x68f   : > { %2197 = vst.msk [vmem:[#allocation3 + $0x38] sm:$0xff] %vm562_vm0, %v2174_v7  ;;  %3966 = vmatmul.mubr.f32.gmra.mrb[62].mxu1 %v3780_v26  ;;  %v8824_v26 = vpack.c.bf16 %v4469_v9, %v4468_v44  ;;  %v4452_v7 = vld [vmem:[%s14044_s12 + $0x30] sm:$0xff]  ;;  %v8842_v17 = vpack.c.bf16 %v4461_v2, %v4460_v28 }
 0x690   : > { %v2176_v37 = vpop.permute.xlu0 %2175  ;;  %8819 = vmatpush3.bf16.msra.mxu0 %v8818_v45 }
 0x691   : > { %2198 = vst.msk [vmem:[#allocation3 + $0x50] sm:$0xff] %vm562_vm0, %v2176_v37  ;;  %v4453_v37 = vld [vmem:[%s14044_s12 + $0x38] sm:$0xff]  ;;  %8821 = vmatprep.subr.bf16.mxu0 %v8820_v51 }
 0x692   : > { %v2178_v0 = vpop.permute.xlu1 %2177 }
 0x693   : > { %2199 = vst.msk [vmem:[#allocation3 + $0x68] sm:$0xff] %vm562_vm0, %v2178_v0 }
 0x694   : > { %v2180_v47 = vpop.permute.xlu0 %2179  ;;  %v4772_v24 = vld [vmem:[#allocation3 + $0x21] sm:$0xff]  ;;  %8823 = vmatpush3.bf16.msra.mxu0 %v8822_v6 }
 0x695   : > { %2200 = vst.msk [vmem:[#allocation3 + $0x80] sm:$0xff] %vm562_vm0, %v2180_v47  ;;  %v9761_v58 = vpack.i.bf16 %v4740_v22, %v4772_v24  ;;  %v4756_v30 = vld [vmem:[#allocation3 + $0x1f] sm:$0xff]  ;;  %v12413_v22 = vld [vmem:[%s14039_s7 + $0x2] ss:$0 sm:$0xff]  ;;  %v8826_v47 = vpack.c.bf16 %v4453_v37, %v4452_v7  ;;  %8825 = vmatprep.subr.bf16.mxu0 %v8824_v26 }
 0x696   : > { %v2182_v21 = vpop.permute.xlu1 %2181  ;;  %v4781_v4 = vld [vmem:[#allocation3 + $0x37] sm:$0xff]  ;;  %v4741_v41 = vld [vmem:[#allocation3 + $0x20] sm:$0xff] }
 0x697   : > { %9762 = vrot.lane.b32.xlu0 %v9761_v58, %s14066_s27  ;;  %v12307_v10 = vld [vmem:[#allocation3 + $0x38] sm:$0xff]  ;;  %2201 = vst.msk [vmem:[#allocation3 + $0x98] sm:$0xff] %vm562_vm0, %v2182_v21  ;;  %v9766_v16 = vpack.i.bf16 %v4748_v18, %v4781_v4  ;;  %v4470_v21 = vld [vmem:[%s14044_s12 + $0xc0] sm:$0xff] }
 0x698   : > { %v2184_v40 = vpop.permute.xlu0 %2183  ;;  %v9771_v60 = vpack.i.bf16 %v4756_v30, %v12307_v10  ;;  %v12312_v20 = vld [vmem:[#allocation3 + $0x39] sm:$0xff]  ;;  %v12315_v15 = vld [vmem:[#allocation3 + $0x4f] sm:$0xff]  ;;  %8827 = vmatpush3.bf16.msra.mxu0 %v8826_v47 }
 0x699   : > { %2202 = vst.msk [vmem:[#allocation3 + $0xb0] sm:$0xff] %vm562_vm0, %v2184_v40  ;;  %9767 = vrot.lane.b32.xlu1 %v9766_v16, %s14067_s17  ;;  %v9776_v33 = vpack.i.bf16 %v4741_v41, %v12312_v20  ;;  %v9781_v12 = vpack.i.bf16 %v4772_v24, %v12315_v15  ;;  %v12321_v46 = vld [vmem:[#allocation3 + $0x50] sm:$0xff]  ;;  %v4455_v16 = vld [vmem:[%s14044_s12 + $0x48] sm:$0xff] }
 0x69a   : > { %v2186_v25 = vpop.permute.xlu1 %2185  ;;  %v9786_v8 = vpack.i.bf16 %v4781_v4, %v12321_v46  ;;  %v12418_v24 = vld [vmem:[%s14040_s8 + $0x2] ss:$0 sm:$0xff]  ;;  %v4471_v4 = vld [vmem:[%s14044_s12 + $0xc8] sm:$0xff] }
 0x69b   : > { %9772 = vrot.lane.b32.xlu0 %v9771_v60, %s14065_s19  ;;  %2203 = vst.msk [vmem:[#allocation3 + $0xc8] sm:$0xff] %vm562_vm0, %v2186_v25  ;;  %v8828_v30 = vpack.c.bf16 %v4471_v4, %v4470_v21  ;;  %v4454_v40 = vld [vmem:[%s14044_s12 + $0x40] sm:$0xff] }
 0x69c   : > { %v8830_v25 = vpack.c.bf16 %v4455_v16, %v4454_v40 }
 0x69d   : > { %9777 = vrot.lane.b32.xlu1 %v9776_v33, %s14066_s27  ;;  %8829 = vmatprep.subr.bf16.mxu0 %v8828_v30 }
 0x69e   : > { %8831 = vmatpush3.bf16.msra.mxu0 %v8830_v25 }
 0x69f   : > { %9782 = vrot.lane.b32.xlu0 %v9781_v12, %s14067_s17  ;;  %v4472_v12 = vld [vmem:[%s14044_s12 + $0xd0] sm:$0xff] }
 0x6a1   : > { %9787 = vrot.lane.b32.xlu1 %v9786_v8, %s14065_s19  ;;  %v4473_v8 = vld [vmem:[%s14044_s12 + $0xd8] sm:$0xff] }
 0x6a2   : > { %v8832_v61 = vpack.c.bf16 %v4473_v8, %v4472_v12  ;;  %v5079_v8 = vld [vmem:[%s14041_s9 + $0x110] sm:$0xff] }
 0x6a4   : > { %8833 = vmatprep.subr.bf16.mxu0 %v8832_v61 }
 0x6b7   : > { %v12327_v3 = vpop.f32.mrb[56].mxu0 }
 0x6b8   : > { %v4037_v39 = vpop.f32.mrb[57].mxu0 }
 0x6cd   : > { %v12341_v53 = vpop.f32.mrb[58].mxu0 }
 0x6ce   : > { %v12343_v38 = vpop.f32.mrb[59].mxu0 }
 0x6da   : > { %v12345_v49 = vpop.f32.mrb[60].mxu0 }
 0x6db   : > { %v12347_v50 = vpop.f32.mrb[61].mxu0 }
 0x6e1   : > { %v12349_v36 = vpop.f32.mrb[62].mxu0 }
 0x6e2   : > { %v12351_v62 = vpop.f32.mrb[63].mxu0 }
 0x726   : > { %v8032_v13 = vpop.f32.mrb[48].mxu1 }
 0x727   : > { %v8033_v48 = vpop.f32.mrb[49].mxu1 }
 0x728   : > { %v8034_v63 = vadd.f32 %v8033_v48, %v8032_v13 }
 0x72a   : > { %v4038_v0 = vadd.f32 %v8034_v63, %v4037_v39  ;;  %v4456_v39 = vld [vmem:[%s14044_s12 + $0x50] sm:$0xff] }
 0x72b   : > { %v8834_v56 = vpack.c.bf16 %v4457_v14, %v4456_v39  ;;  %v4150_v63 = vld [vmem:[#allocation2 + $0x9] sm:$0xff]  ;;  %v5080_v39 = vld [vmem:[%s14041_s9 + $0x118] sm:$0xff] }
 0x72c   : > { %v4082_v58 = vmul.f32 %v12413_v22, %v4038_v0 }
 0x72d   : > { %8835 = vmatpush3.bf16.msra.mxu0 %v8834_v56 }
 0x72e   : > { %v4094_v18 = vadd.f32 %v12418_v24, %v4082_v58  ;;  %8837 = vmatprep.subr.bf16.mxu0 %v8836_v59 }
 0x730   : > { %vm4102_vm14 = vcmp.gt.f32.partialorder %v4094_v18, 0.0  ;;  %v4110_v60 = vmul.f32 0.01, %v4094_v18 }
 0x731   : > { %8839 = vmatpush3.bf16.msra.mxu0 %v8838_v31 }
 0x732   : > { %v4118_v41 = vsel %vm4102_vm14, %v4094_v18, %v4110_v60 }
 0x733   : > { %v8035_v33 = vpop.f32.mrb[50].mxu1  ;;  %4126 = vst.msk [vmem:[#allocation2 + $0x20] sm:$0xff] %vm562_vm0, %v4118_v41 }
 0x734   : > { %v8036_v11 = vpop.f32.mrb[51].mxu1 }
 0x735   : > { %v8037_v42 = vadd.f32 %v8036_v11, %v8035_v33 }
 0x737   : > { %v4043_v1 = vadd.f32 %v12327_v3, %v8037_v42  ;;  %v4477_v3 = vld [vmem:[%s14044_s12 + $0xf8] sm:$0xff]  ;;  %v8888_v42 = vpack.c.bf16 %v5080_v39, %v5079_v8 }
 0x738   : > { %v8840_v13 = vpack.c.bf16 %v4477_v3, %v4476_v43 }
 0x739   : > { %v4083_v32 = vmul.f32 %v12413_v22, %v4043_v1 }
 0x73a   : > { %v12462_v34 = vld [vmem:[#allocation2 + $0x21] sm:$0xff]  ;;  %8841 = vmatprep.subr.bf16.mxu0 %v8840_v13 }
 0x73b   : > { %v4095_v55 = vadd.f32 %v12418_v24, %v4083_v32  ;;  %v9791_v54 = vpack.i.bf16 %v4142_v52, %v12462_v34  ;;  %8843 = vmatpush3.bf16.msra.mxu0 %v8842_v17  ;;  %v12481_v6 = vld [vmem:[#allocation2 + $0x1f] sm:$0xff] }
 0x73c   : > { %v12497_v40 = vld [vmem:[#allocation2 + $0x20] sm:$0xff] }
 0x73d   : > { %vm4103_vm15 = vcmp.gt.f32.partialorder %v4095_v55, 0.0  ;;  %v4111_v45 = vmul.f32 0.01, %v4095_v55  ;;  %9792 = vrot.lane.b32.xlu0 %v9791_v54, %s14066_s27  ;;  %v8038_v48 = vpop.f32.mrb[52].mxu1 }
 0x73e   : > { %v8039_v51 = vpop.f32.mrb[53].mxu1 }
 0x73f   : > { %v4119_v57 = vsel %vm4103_vm15, %v4095_v55, %v4111_v45  ;;  %v8040_v35 = vadd.f32 %v8039_v51, %v8038_v48  ;;  %v5061_v48 = vld [vmem:[%s14041_s9 + $0x80] sm:$0xff]  ;;  %v5062_v51 = vld [vmem:[%s14041_s9 + $0x88] sm:$0xff] }
 0x740   : > { %4127 = vst.msk [vmem:[#allocation2 + $0x38] sm:$0xff] %vm562_vm0, %v4119_v57 }
 0x741   : > { %v4048_v44 = vadd.f32 %v8040_v35, %v12343_v38 }
 0x743   : > { %v4084_v9 = vmul.f32 %v12413_v22, %v4048_v44  ;;  %v8852_v44 = vpack.c.bf16 %v5062_v51, %v5061_v48  ;;  %v4197_v48 = vld [vmem:[#allocation2 + $0xe0] sm:$0xff]  ;;  %v12621_v51 = vld [vmem:[#allocation3 + $0x68] sm:$0xff] }
 0x745   : > { %v4096_v26 = vadd.f32 %v12418_v24, %v4084_v9  ;;  %8853 = vmatprep.subr.bf16.mxu0 %v8852_v44 }
 0x747   : > { %v12484_v7 = vld [vmem:[#allocation2 + $0x39] sm:$0xff]  ;;  %vm4104_vm3 = vcmp.gt.f32.partialorder %v4096_v26, 0.0  ;;  %v4112_v18 = vmul.f32 0.01, %v4096_v26 }
 0x748   : > { %v12486_v37 = vld [vmem:[#allocation2 + $0x37] sm:$0xff]  ;;  %v8041_v47 = vpop.f32.mrb[54].mxu1  ;;  %8496 = vmatprep.mubr.msk.f32.mxu1 %vm562_vm0, %v12484_v7  ;;  %v9806_v60 = vpack.i.bf16 %v12497_v40, %v12484_v7 }
 0x749   : > { %v12488_v0 = vld [vmem:[#allocation2 + $0x38] sm:$0xff]  ;;  %v9796_v58 = vpack.i.bf16 %v4150_v63, %v12486_v37  ;;  %v8042_v21 = vpop.f32.mrb[55].mxu1  ;;  %v4120_v30 = vsel %vm4104_vm3, %v4096_v26, %v4112_v18 }
 0x74a   : > { %v9801_v38 = vpack.i.bf16 %v12481_v6, %v12488_v0  ;;  %v8043_v4 = vadd.f32 %v8042_v21, %v8041_v47  ;;  %4128 = vst.msk [vmem:[#allocation2 + $0x50] sm:$0xff] %vm562_vm0, %v4120_v30 }
 0x74b   : > { %9797 = vrot.lane.b32.xlu1 %v9796_v58, %s14067_s17 }
 0x74c   : > { %9802 = vrot.lane.b32.xlu0 %v9801_v38, %s14065_s19  ;;  %v4053_v16 = vadd.f32 %v12341_v53, %v8043_v4 }
 0x74e   : > { %v4085_v25 = vmul.f32 %v12413_v22, %v4053_v16 }
 0x74f   : > { %9807 = vrot.lane.b32.xlu1 %v9806_v60, %s14066_s27  ;;  %v8044_v41 = vpop.f32.mrb[56].mxu1 }
 0x750   : > { %v4097_v33 = vadd.f32 %v12418_v24, %v4085_v25  ;;  %v8045_v12 = vpop.f32.mrb[57].mxu1 }
 0x751   : > { %v8046_v53 = vadd.f32 %v8045_v12, %v8044_v41  ;;  %v4199_v14 = vld [vmem:[#allocation2 + $0x51] sm:$0xff] }
 0x752   : > { %vm4105_vm4 = vcmp.gt.f32.partialorder %v4097_v33, 0.0  ;;  %v4113_v11 = vmul.f32 0.01, %v4097_v33  ;;  %v12513_v19 = vld [vmem:[#allocation2 + $0x50] sm:$0xff]  ;;  %8497 = vmatmul.mubr.msk.f32.vlgmr.msra.gmra.mrb[64].mxu1 %vm562_vm0, %v4199_v14  ;;  %v9821_v52 = vpack.i.bf16 %v12488_v0, %v4199_v14 }
 0x753   : > { %v4058_v61 = vadd.f32 %v8046_v53, %v12347_v50  ;;  %v12515_v23 = vld [vmem:[#allocation2 + $0x4f] sm:$0xff]  ;;  %v9816_v59 = vpack.i.bf16 %v12486_v37, %v12513_v19  ;;  %8887 = vmatpush3.bf16.msra.mxu1 %v12359_v27 }
 0x754   : > { %v4121_v56 = vsel %vm4105_vm4, %v4097_v33, %v4113_v11  ;;  %v9811_v5 = vpack.i.bf16 %v12462_v34, %v12515_v23  ;;  %8889 = vmatprep.subr.bf16.mxu1 %v8888_v42 }
 0x755   : > { %4129 = vst.msk [vmem:[#allocation2 + $0x68] sm:$0xff] %vm562_vm0, %v4121_v56  ;;  %v4086_v29 = vmul.f32 %v12413_v22, %v4058_v61  ;;  %9817 = vrot.lane.b32.xlu1 %v9816_v59, %s14065_s19 }
 0x756   : > { %9812 = vrot.lane.b32.xlu0 %v9811_v5, %s14067_s17  ;;  %v8047_v50 = vpop.f32.mrb[58].mxu1 }
 0x757   : > { %v4098_v1 = vadd.f32 %v12418_v24, %v4086_v29  ;;  %v8048_v31 = vpop.f32.mrb[59].mxu1  ;;  %8891 = vmatpush3.bf16.msra.mxu1 %v8888_v42 }
 0x758   : > { %v8049_v32 = vadd.f32 %v8048_v31, %v8047_v50  ;;  %v4189_v31 = vld [vmem:[#allocation2 + $0xdf] sm:$0xff] }
 0x759   : > { %vm4106_vm5 = vcmp.gt.f32.partialorder %v4098_v1, 0.0  ;;  %v4114_v55 = vmul.f32 0.01, %v4098_v1 }
 0x75a   : > { %v4063_v34 = vadd.f32 %v12345_v49, %v8049_v32  ;;  %9822 = vrot.lane.b32.xlu0 %v9821_v52, %s14066_s27 }
 0x75b   : > { %v4122_v27 = vsel %vm4106_vm5, %v4098_v1, %v4114_v55  ;;  %v4205_v1 = vld [vmem:[#allocation2 + $0xe1] sm:$0xff] }
 0x75c   : > { %4130 = vst.msk [vmem:[#allocation2 + $0x80] sm:$0xff] %vm562_vm0, %v4122_v27  ;;  %v4087_v54 = vmul.f32 %v12413_v22, %v4063_v34  ;;  %v4200_v43 = vld [vmem:[#allocation2 + $0x69] sm:$0xff]  ;;  %v8050_v45 = vpop.f32.mrb[60].mxu1  ;;  %v12600_v27 = vld [vmem:[#allocation3 + $0x67] sm:$0xff] }
 0x75d   : > { %v12533_v3 = vld [vmem:[#allocation2 + $0x68] sm:$0xff]  ;;  %8499 = vmatprep.mubr.msk.f32.mxu1 %vm562_vm0, %v4200_v43  ;;  %v8051_v17 = vpop.f32.mrb[61].mxu1  ;;  %v9836_v63 = vpack.i.bf16 %v12513_v19, %v4200_v43 }
 0x75e   : > { %v12535_v28 = vld [vmem:[#allocation2 + $0x67] sm:$0xff]  ;;  %v9831_v13 = vpack.i.bf16 %v12515_v23, %v12533_v3  ;;  %v4099_v2 = vadd.f32 %v12418_v24, %v4087_v54  ;;  %v8052_v57 = vadd.f32 %v8051_v17, %v8050_v45  ;;  %v9906_v45 = vpack.i.bf16 %v12312_v20, %v12600_v27 }
 0x75f   : > { %v9826_v49 = vpack.i.bf16 %v12484_v7, %v12535_v28 }
 0x760   : > { %9832 = vrot.lane.b32.xlu0 %v9831_v13, %s14065_s19  ;;  %vm4107_vm6 = vcmp.gt.f32.partialorder %v4099_v2, 0.0  ;;  %v4115_v35 = vmul.f32 0.01, %v4099_v2  ;;  %v4068_v9 = vadd.f32 %v8052_v57, %v12351_v62  ;;  %v4799_v13 = vld [vmem:[#allocation3 + $0x69] sm:$0xff]  ;;  %v4801_v57 = vld [vmem:[#allocation3 + $0x99] sm:$0xff] }
 0x761   : > { %9827 = vrot.lane.b32.xlu1 %v9826_v49, %s14067_s17 }
 0x762   : > { %v4123_v26 = vsel %vm4107_vm6, %v4099_v2, %v4115_v35  ;;  %v4088_v7 = vmul.f32 %v12413_v22, %v4068_v9  ;;  %v8053_v18 = vpop.f32.mrb[62].mxu1  ;;  %v4800_v2 = vld [vmem:[#allocation3 + $0x81] sm:$0xff]  ;;  %v4802_v35 = vld [vmem:[#allocation3 + $0xb1] sm:$0xff]  ;;  %v4803_v9 = vld [vmem:[#allocation3 + $0xc9] sm:$0xff] }
 0x763   : > { %4131 = vst.msk [vmem:[#allocation2 + $0x98] sm:$0xff] %vm562_vm0, %v4123_v26  ;;  %v4201_v47 = vld [vmem:[#allocation2 + $0x81] sm:$0xff]  ;;  %v8054_v30 = vpop.f32.mrb[63].mxu1  ;;  %v9926_v26 = vpack.i.bf16 %v12321_v46, %v4799_v13 }
 0x764   : > { %v12556_v58 = vld [vmem:[#allocation2 + $0x7f] sm:$0xff]  ;;  %8500 = vmatmul.mubr.msk.f32.gmra.mrb[66].mxu1 %vm562_vm0, %v4201_v47  ;;  %v4100_v4 = vadd.f32 %v12418_v24, %v4088_v7  ;;  %v8055_v16 = vadd.f32 %v8054_v30, %v8053_v18  ;;  %v9851_v41 = vpack.i.bf16 %v12533_v3, %v4201_v47  ;;  %v9941_v18 = vpack.i.bf16 %v12621_v51, %v4800_v2 }
 0x765   : > { %9837 = vrot.lane.b32.xlu1 %v9836_v63, %s14066_s27  ;;  %v12558_v38 = vld [vmem:[#allocation2 + $0x80] sm:$0xff]  ;;  %v9841_v62 = vpack.i.bf16 %v4199_v14, %v12556_v58  ;;  %v9911_v63 = vpack.i.bf16 %v12315_v15, %v12621_v51 }
 0x766   : > { %v9846_v21 = vpack.i.bf16 %v12535_v28, %v12558_v38  ;;  %vm4108_vm7 = vcmp.gt.f32.partialorder %v4100_v4, 0.0  ;;  %v4116_v60 = vmul.f32 0.01, %v4100_v4  ;;  %v4073_v25 = vadd.f32 %v12349_v36, %v8055_v16  ;;  %v12651_v30 = vld [vmem:[#allocation3 + $0xaf] sm:$0xff] }
 0x767   : > { %9842 = vrot.lane.b32.xlu0 %v9841_v62, %s14067_s17  ;;  %v12641_v62 = vld [vmem:[#allocation3 + $0x97] sm:$0xff] }
 0x768   : > { %v4124_v33 = vsel %vm4108_vm7, %v4100_v4, %v4116_v60  ;;  %v4089_v12 = vmul.f32 %v12413_v22, %v4073_v25  ;;  %v9946_v46 = vpack.i.bf16 %v4799_v13, %v12641_v62  ;;  %v9961_v60 = vpack.i.bf16 %v4800_v2, %v12651_v30  ;;  %v12656_v25 = vld [vmem:[#allocation3 + $0xb0] sm:$0xff] }
 0x769   : > { %9847 = vrot.lane.b32.xlu1 %v9846_v21, %s14065_s19  ;;  %4132 = vst.msk [vmem:[#allocation2 + $0xb0] sm:$0xff] %vm562_vm0, %v4124_v33  ;;  %v12644_v21 = vld [vmem:[#allocation3 + $0x98] sm:$0xff] }
 0x76a   : > { %v4202_v8 = vld [vmem:[#allocation2 + $0x99] sm:$0xff]  ;;  %v4101_v61 = vadd.f32 %v12418_v24, %v4089_v12  ;;  %v9971_v33 = vpack.i.bf16 %v12644_v21, %v4802_v35 }
 0x76b   : > { %9852 = vrot.lane.b32.xlu0 %v9851_v41, %s14066_s27  ;;  %v12572_v39 = vld [vmem:[#allocation2 + $0x97] sm:$0xff]  ;;  %8502 = vmatprep.mubr.msk.f32.mxu1 %vm562_vm0, %v4202_v8  ;;  %v9866_v14 = vpack.i.bf16 %v12558_v38, %v4202_v8  ;;  %v9966_v41 = vpack.i.bf16 %v12641_v62, %v12656_v25 }
 0x76c   : > { %v12574_v53 = vld [vmem:[#allocation2 + $0x98] sm:$0xff]  ;;  %v9856_v11 = vpack.i.bf16 %v4200_v43, %v12572_v39  ;;  %vm4109_vm8 = vcmp.gt.f32.partialorder %v4101_v61, 0.0  ;;  %v4117_v22 = vmul.f32 0.01, %v4101_v61  ;;  %v4798_v43 = vld [vmem:[#allocation3 + $0x51] sm:$0xff] }
 0x76d   : > { %v9861_v36 = vpack.i.bf16 %v12556_v58, %v12574_v53  ;;  %v4787_v12 = vld [vmem:[#allocation3 + $0xc7] sm:$0xff] }
 0x76e   : > { %9857 = vrot.lane.b32.xlu1 %v9856_v11, %s14067_s17  ;;  %v4125_v42 = vsel %vm4109_vm8, %v4101_v61, %v4117_v22  ;;  %v12664_v11 = vld [vmem:[#allocation3 + $0xc8] sm:$0xff]  ;;  %v4788_v22 = vld [vmem:[#allocation3 + $0xdf] sm:$0xff] }
 0x76f   : > { %9862 = vrot.lane.b32.xlu0 %v9861_v36, %s14065_s19  ;;  %4133 = vst.msk [vmem:[#allocation2 + $0xc8] sm:$0xff] %vm562_vm0, %v4125_v42  ;;  %v9976_v36 = vpack.i.bf16 %v4801_v57, %v4787_v12  ;;  %v9981_v61 = vpack.i.bf16 %v12651_v30, %v12664_v11  ;;  %v9991_v42 = vpack.i.bf16 %v4802_v35, %v4788_v22  ;;  %v5050_v22 = vld [vmem:[%s14041_s9 + $0x28] sm:$0xff] }
 0x770   : > { %v4203_v56 = vld [vmem:[#allocation2 + $0xb1] sm:$0xff] }
 0x771   : > { %v12586_v59 = vld [vmem:[#allocation2 + $0xaf] sm:$0xff]  ;;  %8503 = vmatmul.mubr.msk.f32.gmra.mrb[68].mxu1 %vm562_vm0, %v4203_v56  ;;  %v9881_v50 = vpack.i.bf16 %v12574_v53, %v4203_v56  ;;  %v9886_v34 = vpack.i.bf16 %v4203_v56, %v4189_v31 }
 0x772   : > { %9867 = vrot.lane.b32.xlu1 %v9866_v14, %s14066_s27  ;;  %v12588_v5 = vld [vmem:[#allocation2 + $0xb0] sm:$0xff]  ;;  %v9871_v24 = vpack.i.bf16 %v4201_v47, %v12586_v59  ;;  %v9986_v14 = vpack.i.bf16 %v12656_v25, %v4803_v9 }
 0x773   : > { %v9876_v29 = vpack.i.bf16 %v12572_v39, %v12588_v5  ;;  %v12634_v47 = vld [vmem:[#allocation3 + $0x80] sm:$0xff] }
 0x774   : > { %9872 = vrot.lane.b32.xlu0 %v9871_v24, %s14067_s17  ;;  %v9936_v15 = vpack.i.bf16 %v12600_v27, %v12634_v47  ;;  %v9956_v16 = vpack.i.bf16 %v12634_v47, %v4801_v57  ;;  %v4796_v56 = vld [vmem:[#allocation3 + $0xe0] sm:$0xff] }
 0x775   : > { %v9996_v24 = vpack.i.bf16 %v4787_v12, %v4796_v56 }
 0x776   : > { %9877 = vrot.lane.b32.xlu1 %v9876_v29, %s14065_s19  ;;  %v4204_v32 = vld [vmem:[#allocation2 + $0xc9] sm:$0xff]  ;;  %v12675_v29 = vpop.permute.xlu0 %9762 }
 0x777   : > { %v4188_v52 = vld [vmem:[#allocation2 + $0xc7] sm:$0xff]  ;;  %8505 = vmatprep.mubr.msk.f32.mxu1 %vm562_vm0, %v4204_v32  ;;  %v9916_v17 = vpack.i.bf16 %v12588_v5, %v4204_v32 }
 0x778   : > { %9882 = vrot.lane.b32.xlu0 %v9881_v50, %s14066_s27  ;;  %v9891_v55 = vpack.i.bf16 %v4202_v8, %v4188_v52  ;;  %8506 = vmatmul.mubr.msk.f32.gmra.mrb[70].mxu1 %vm562_vm0, %v4205_v1  ;;  %v12605_v54 = vld [vmem:[#allocation2 + $0xc8] sm:$0xff]  ;;  %v9921_v44 = vpack.i.bf16 %v4188_v52, %v4197_v48  ;;  %v4804_v8 = vld [vmem:[#allocation3 + $0xe1] sm:$0xff]  ;;  %v12678_v50 = vpop.permute.xlu1 %9767 }
 0x779   : > { %8516 = vmatprep.mubr.msk.f32.mxu1 %vm562_vm0, %v12312_v20  ;;  %v9896_v49 = vpack.i.bf16 %v12586_v59, %v12605_v54  ;;  %v9901_v20 = vpack.i.bf16 %v12307_v10, %v4798_v43  ;;  %v12629_v10 = vld [vmem:[#allocation3 + $0x7f] sm:$0xff] }
 0x77a   : > { %9892 = vrot.lane.b32.xlu1 %v9891_v55, %s14067_s17  ;;  %v9931_v7 = vpack.i.bf16 %v4798_v43, %v12629_v10  ;;  %v9951_v4 = vpack.i.bf16 %v12629_v10, %v12644_v21  ;;  %v12680_v1 = vpop.permute.xlu0 %9772 }
 0x77c   : > { %9887 = vrot.lane.b32.xlu0 %v9886_v34, %s14067_s17  ;;  %8517 = vmatmul.mubr.msk.f32.vlgmr.msra.gmra.mrb[72].mxu1 %vm562_vm0, %v4798_v43  ;;  %v12682_v31 = vpop.permute.xlu1 %9777 }
 0x77d   : > { %8519 = vmatprep.mubr.msk.f32.mxu1 %vm562_vm0, %v4799_v13 }
 0x77e   : > { %9907 = vrot.lane.b32.xlu1 %v9906_v45, %s14067_s17  ;;  %v12684_v32 = vpop.permute.xlu0 %9782  ;;  %v4134_v45 = vld [vmem:[#allocation2 + $0x7] sm:$0xff] }
 0x780   : > { %9897 = vrot.lane.b32.xlu0 %v9896_v49, %s14065_s19  ;;  %8520 = vmatmul.mubr.msk.f32.gmra.mrb[74].mxu1 %vm562_vm0, %v4800_v2  ;;  %v12686_v55 = vpop.permute.xlu1 %9787  ;;  %v5045_v2 = vld [vmem:[%s14041_s9] sm:$0xff] }
 0x781   : > { %8522 = vmatprep.mubr.msk.f32.mxu1 %vm562_vm0, %v4801_v57 }
 0x782   : > { %9917 = vrot.lane.b32.xlu1 %v9916_v17, %s14066_s27  ;;  %v5046_v17 = vld [vmem:[%s14041_s9 + $0x8] sm:$0xff] }
 0x784   : > { %9902 = vrot.lane.b32.xlu0 %v9901_v20, %s14066_s27  ;;  %8523 = vmatmul.mubr.msk.f32.gmra.mrb[76].mxu1 %vm562_vm0, %v4802_v35 }
 0x785   : > { %8525 = vmatprep.mubr.msk.f32.mxu1 %vm562_vm0, %v4803_v9  ;;  %v5064_v9 = vld [vmem:[%s14041_s9 + $0x98] sm:$0xff] }
 0x786   : > { %9922 = vrot.lane.b32.xlu1 %v9921_v44, %s14065_s19  ;;  %v5063_v44 = vld [vmem:[%s14041_s9 + $0x90] sm:$0xff] }
 0x788   : > { %9912 = vrot.lane.b32.xlu0 %v9911_v63, %s14065_s19  ;;  %8526 = vmatmul.mubr.msk.f32.gmra.mrb[78].mxu1 %vm562_vm0, %v4804_v8 }
 0x78a   : > { %9927 = vrot.lane.b32.xlu1 %v9926_v26, %s14066_s27 }
 0x78c   : > { %9932 = vrot.lane.b32.xlu0 %v9931_v7, %s14067_s17 }
 0x78e   : > { %9937 = vrot.lane.b32.xlu1 %v9936_v15, %s14065_s19 }
 0x790   : > { %9942 = vrot.lane.b32.xlu0 %v9941_v18, %s14066_s27  ;;  %v8854_v18 = vpack.c.bf16 %v5046_v17, %v5045_v2 }
 0x792   : > { %9947 = vrot.lane.b32.xlu1 %v9946_v46, %s14067_s17 }
 0x794   : > { %9952 = vrot.lane.b32.xlu0 %v9951_v4, %s14065_s19 }
 0x796   : > { %9957 = vrot.lane.b32.xlu1 %v9956_v16, %s14066_s27  ;;  %v8856_v16 = vpack.c.bf16 %v5064_v9, %v5063_v44 }
 0x798   : > { %9962 = vrot.lane.b32.xlu0 %v9961_v60, %s14067_s17  ;;  %v5047_v60 = vld [vmem:[%s14041_s9 + $0x10] sm:$0xff] }
 0x79a   : > { %9967 = vrot.lane.b32.xlu1 %v9966_v41, %s14065_s19  ;;  %v5048_v41 = vld [vmem:[%s14041_s9 + $0x18] sm:$0xff] }
 0x79b   : > { %v8858_v8 = vpack.c.bf16 %v5048_v41, %v5047_v60  ;;  %v5072_v60 = vld [vmem:[%s14041_s9 + $0xd8] sm:$0xff] }
 0x79c   : > { %9972 = vrot.lane.b32.xlu0 %v9971_v33, %s14066_s27  ;;  %v5066_v33 = vld [vmem:[%s14041_s9 + $0xa8] sm:$0xff] }
 0x79e   : > { %9977 = vrot.lane.b32.xlu1 %v9976_v36, %s14067_s17 }
 0x7a0   : > { %9982 = vrot.lane.b32.xlu0 %v9981_v61, %s14065_s19  ;;  %v5049_v61 = vld [vmem:[%s14041_s9 + $0x20] sm:$0xff] }
 0x7a2   : > { %9987 = vrot.lane.b32.xlu1 %v9986_v14, %s14066_s27  ;;  %v5067_v14 = vld [vmem:[%s14041_s9 + $0xb0] sm:$0xff] }
 0x7a4   : > { %9992 = vrot.lane.b32.xlu0 %v9991_v42, %s14067_s17  ;;  %v5068_v42 = vld [vmem:[%s14041_s9 + $0xb8] sm:$0xff] }
 0x7a6   : > { %9997 = vrot.lane.b32.xlu1 %v9996_v24, %s14065_s19 }
 0x7af   : > { %v9793_v52 = vpop.permute.xlu0 %9792 }
 0x7b0   : > { %v9795_v34 = vunpack.i.h.bf16 %v9793_v52  ;;  %v9794_v43 = vunpack.i.l.bf16 %v9793_v52  ;;  %v8862_v52 = vpack.c.bf16 %v5050_v22, %v5049_v61  ;;  %v5055_v61 = vld [vmem:[%s14041_s9 + $0x50] sm:$0xff]  ;;  %v5056_v22 = vld [vmem:[%s14041_s9 + $0x58] sm:$0xff] }
 0x7b2   : > { %v4398_v63 = vsel %vm562_vm0, %v4134_v45, %v9795_v34  ;;  %v4422_v26 = vsel %vm562_vm0, %v12497_v40, %v9794_v43  ;;  %v5065_v40 = vld [vmem:[%s14041_s9 + $0xa0] sm:$0xff]  ;;  %v8864_v45 = vpack.c.bf16 %v5068_v42, %v5067_v14 }
 0x7b3   : > { %v8860_v36 = vpack.c.bf16 %v5066_v33, %v5065_v40 }
 0x7bd   : > { %v9798_v13 = vpop.permute.xlu1 %9797 }
 0x7be   : > { %v9803_v49 = vpop.permute.xlu0 %9802  ;;  %v9800_v57 = vunpack.i.h.bf16 %v9798_v13  ;;  %v9799_v20 = vunpack.i.l.bf16 %v9798_v13  ;;  %v5051_v13 = vld [vmem:[%s14041_s9 + $0x30] sm:$0xff] }
 0x7bf   : > { %v9805_v48 = vunpack.i.h.bf16 %v9803_v49  ;;  %v9804_v35 = vunpack.i.l.bf16 %v9803_v49  ;;  %v5052_v49 = vld [vmem:[%s14041_s9 + $0x38] sm:$0xff] }
 0x7c0   : > { %v4430_v7 = vsel %vm1146_vm1, %v4422_v26, %v9799_v20  ;;  %v4406_v15 = vsel %vm1146_vm1, %v4398_v63, %v9800_v57 }
 0x7c1   : > { %v4438_v46 = vsel %vm1155_vm2, %v4430_v7, %v9804_v35  ;;  %v4414_v4 = vsel %vm1155_vm2, %v4406_v15, %v9805_v48  ;;  %v9808_v12 = vpop.permute.xlu1 %9807  ;;  %v5069_v48 = vld [vmem:[%s14041_s9 + $0xc0] sm:$0xff]  ;;  %v5070_v35 = vld [vmem:[%s14041_s9 + $0xc8] sm:$0xff]  ;;  %v8866_v7 = vpack.c.bf16 %v5052_v49, %v5051_v13 }
 0x7c2   : > { %4577 = vmatprep.mubr.f32.mxu0 %v4438_v46  ;;  %v9810_v56 = vunpack.i.h.bf16 %v9808_v12  ;;  %v9809_v24 = vunpack.i.l.bf16 %v9808_v12 }
 0x7c3   : > { %4578 = vmatmul.mubr.f32.vlgmr.msra.gmra.mrb[64].mxu0 %v4414_v4  ;;  %v8868_v4 = vpack.c.bf16 %v5070_v35, %v5069_v48 }
 0x7c4   : > { %8855 = vmatpush3.bf16.msra.mxu0 %v8854_v18  ;;  %v4423_v44 = vsel %vm562_vm0, %v12488_v0, %v9809_v24  ;;  %v4399_v9 = vsel %vm562_vm0, %v12481_v6, %v9810_v56  ;;  %v5053_v0 = vld [vmem:[%s14041_s9 + $0x40] sm:$0xff]  ;;  %v5054_v6 = vld [vmem:[%s14041_s9 + $0x48] sm:$0xff] }
 0x7c5   : > { %8857 = vmatprep.subr.bf16.mxu0 %v8856_v16  ;;  %v5071_v16 = vld [vmem:[%s14041_s9 + $0xd0] sm:$0xff]  ;;  %v8870_v33 = vpack.c.bf16 %v5054_v6, %v5053_v0  ;;  %v5060_v6 = vld [vmem:[%s14041_s9 + $0x78] sm:$0xff] }
 0x7c6   : > { %v8872_v12 = vpack.c.bf16 %v5072_v60, %v5071_v16  ;;  %v5059_v0 = vld [vmem:[%s14041_s9 + $0x70] sm:$0xff] }
 0x7c7   : > { %v9818_v34 = vpop.permute.xlu1 %9817 }
 0x7c8   : > { %8859 = vmatpush3.bf16.msra.mxu0 %v8858_v8  ;;  %v9813_v43 = vpop.permute.xlu0 %9812  ;;  %v9820_v2 = vunpack.i.h.bf16 %v9818_v34  ;;  %v9819_v17 = vunpack.i.l.bf16 %v9818_v34  ;;  %v5074_v34 = vld [vmem:[%s14041_s9 + $0xe8] sm:$0xff] }
 0x7c9   : > { %8861 = vmatprep.subr.bf16.mxu0 %v8860_v36  ;;  %v9815_v57 = vunpack.i.h.bf16 %v9813_v43  ;;  %v9814_v20 = vunpack.i.l.bf16 %v9813_v43 }
 0x7cb   : > { %v4431_v63 = vsel %vm1146_vm1, %v4423_v44, %v9814_v20  ;;  %v4407_v26 = vsel %vm1146_vm1, %v4399_v9, %v9815_v57  ;;  %v5075_v9 = vld [vmem:[%s14041_s9 + $0xf0] sm:$0xff] }
 0x7cc   : > { %8863 = vmatpush3.bf16.msra.mxu0 %v8862_v52  ;;  %v9823_v15 = vpop.permute.xlu0 %9822  ;;  %v4439_v18 = vsel %vm1155_vm2, %v4431_v63, %v9819_v17  ;;  %v4415_v46 = vsel %vm1155_vm2, %v4407_v26, %v9820_v2  ;;  %v5073_v52 = vld [vmem:[%s14041_s9 + $0xe0] sm:$0xff]  ;;  %v8874_v2 = vpack.c.bf16 %v5056_v22, %v5055_v61  ;;  %v5076_v63 = vld [vmem:[%s14041_s9 + $0xf8] sm:$0xff]  ;;  %v8882_v22 = vpack.c.bf16 %v5060_v6, %v5059_v0 }
 0x7cd   : > { %8865 = vmatprep.subr.bf16.mxu0 %v8864_v45  ;;  %4582 = vmatprep.mubr.f32.mxu0 %v4439_v18  ;;  %v9825_v41 = vunpack.i.h.bf16 %v9823_v15  ;;  %v9824_v40 = vunpack.i.l.bf16 %v9823_v15  ;;  %v8876_v48 = vpack.c.bf16 %v5074_v34, %v5073_v52 }
 0x7ce   : > { %4583 = vmatmul.mubr.f32.gmra.mrb[66].mxu0 %v4415_v46 }
 0x7cf   : > { %v4424_v43 = vsel %vm562_vm0, %v12513_v19, %v9824_v40  ;;  %v4400_v45 = vsel %vm562_vm0, %v12486_v37, %v9825_v41  ;;  %v5057_v19 = vld [vmem:[%s14041_s9 + $0x60] sm:$0xff]  ;;  %v5058_v37 = vld [vmem:[%s14041_s9 + $0x68] sm:$0xff] }
 0x7d0   : > { %8867 = vmatpush3.bf16.msra.mxu0 %v8866_v7  ;;  %v8878_v7 = vpack.c.bf16 %v5058_v37, %v5057_v19 }
 0x7d1   : > { %8869 = vmatprep.subr.bf16.mxu0 %v8868_v4  ;;  %v8880_v4 = vpack.c.bf16 %v5076_v63, %v5075_v9 }
 0x7d2   : > { %v9833_v8 = vpop.permute.xlu0 %9832 }
 0x7d3   : > { %v9828_v36 = vpop.permute.xlu1 %9827  ;;  %v9835_v14 = vunpack.i.h.bf16 %v9833_v8  ;;  %v9834_v42 = vunpack.i.l.bf16 %v9833_v8 }
 0x7d4   : > { %v9830_v56 = vunpack.i.h.bf16 %v9828_v36  ;;  %v9829_v24 = vunpack.i.l.bf16 %v9828_v36  ;;  %8871 = vmatpush3.bf16.msra.mxu0 %v8870_v33 }
 0x7d5   : > { %8873 = vmatprep.subr.bf16.mxu0 %v8872_v12 }
 0x7d6   : > { %v4432_v13 = vsel %vm1146_vm1, %v4424_v43, %v9829_v24  ;;  %v4408_v49 = vsel %vm1146_vm1, %v4400_v45, %v9830_v56 }
 0x7d7   : > { %v9838_v17 = vpop.permute.xlu1 %9837  ;;  %v4440_v57 = vsel %vm1155_vm2, %v4432_v13, %v9834_v42  ;;  %v4416_v20 = vsel %vm1155_vm2, %v4408_v49, %v9835_v14 }
 0x7d8   : > { %v9840_v35 = vunpack.i.h.bf16 %v9838_v17  ;;  %v9839_v44 = vunpack.i.l.bf16 %v9838_v17  ;;  %4587 = vmatprep.mubr.f32.mxu0 %v4440_v57  ;;  %8875 = vmatpush3.bf16.msra.mxu0 %v8874_v2 }
 0x7d9   : > { %4588 = vmatmul.mubr.f32.gmra.mrb[68].mxu0 %v4416_v20  ;;  %v9843_v26 = vpop.permute.xlu0 %9842  ;;  %8877 = vmatprep.subr.bf16.mxu0 %v8876_v48 }
 0x7da   : > { %v9845_v15 = vunpack.i.h.bf16 %v9843_v26  ;;  %v9844_v18 = vunpack.i.l.bf16 %v9843_v26  ;;  %v4425_v41 = vsel %vm562_vm0, %v12533_v3, %v9839_v44  ;;  %v4401_v40 = vsel %vm562_vm0, %v12515_v23, %v9840_v35 }
 0x7db   : > { %v9848_v46 = vpop.permute.xlu1 %9847 }
 0x7dc   : > { %v9850_v16 = vunpack.i.h.bf16 %v9848_v46  ;;  %v9849_v60 = vunpack.i.l.bf16 %v9848_v46  ;;  %v4433_v33 = vsel %vm1146_vm1, %v4425_v41, %v9844_v18  ;;  %v4409_v12 = vsel %vm1146_vm1, %v4401_v40, %v9845_v15  ;;  %8879 = vmatpush3.bf16.msra.mxu0 %v8878_v7 }
 0x7dd   : > { %v9853_v8 = vpop.permute.xlu0 %9852  ;;  %8881 = vmatprep.subr.bf16.mxu0 %v8880_v4 }
 0x7de   : > { %v4441_v36 = vsel %vm1155_vm2, %v4433_v33, %v9849_v60  ;;  %v4417_v61 = vsel %vm1155_vm2, %v4409_v12, %v9850_v16  ;;  %v9855_v14 = vunpack.i.h.bf16 %v9853_v8  ;;  %v9854_v42 = vunpack.i.l.bf16 %v9853_v8 }
 0x7df   : > { %4592 = vmatprep.mubr.f32.mxu0 %v4441_v36 }
 0x7e0   : > { %4593 = vmatmul.mubr.f32.gmra.mrb[70].mxu0 %v4417_v61  ;;  %v9858_v3 = vpop.permute.xlu1 %9857  ;;  %v4426_v43 = vsel %vm562_vm0, %v12558_v38, %v9854_v42  ;;  %v4402_v45 = vsel %vm562_vm0, %v12535_v28, %v9855_v14 }
 0x7e1   : > { %v9860_v56 = vunpack.i.h.bf16 %v9858_v3  ;;  %v9859_v24 = vunpack.i.l.bf16 %v9858_v3  ;;  %v9863_v23 = vpop.permute.xlu0 %9862  ;;  %8883 = vmatpush3.bf16.msra.mxu0 %v8882_v22  ;;  %v9764_v22 = vunpack.i.l.bf16 %v12675_v29 }
 0x7e2   : > { %v9865_v52 = vunpack.i.h.bf16 %v9863_v23  ;;  %v9864_v34 = vunpack.i.l.bf16 %v9863_v23 }
 0x7e3   : > { %v4434_v13 = vsel %vm1146_vm1, %v4426_v43, %v9859_v24  ;;  %v4410_v49 = vsel %vm1146_vm1, %v4402_v45, %v9860_v56  ;;  %v4764_v43 = vld [vmem:[#allocation3 + $0x20] sm:$0xff] }
 0x7e4   : > { %v9868_v2 = vpop.permute.xlu1 %9867  ;;  %v4442_v17 = vsel %vm1155_vm2, %v4434_v13, %v9864_v34  ;;  %v4418_v57 = vsel %vm1155_vm2, %v4410_v49, %v9865_v52  ;;  %v4732_v45 = vld [vmem:[#allocation3 + $0x7] sm:$0xff]  ;;  %v9770_v13 = vunpack.i.h.bf16 %v12678_v50 }
 0x7e5   : > { %v9870_v20 = vunpack.i.h.bf16 %v9868_v2  ;;  %v9869_v48 = vunpack.i.l.bf16 %v9868_v2  ;;  %4597 = vmatprep.mubr.f32.mxu0 %v4442_v17 }
 0x7e6   : > { %4598 = vmatmul.mubr.f32.gmra.mrb[72].mxu0 %v4418_v57  ;;  %v9873_v19 = vpop.permute.xlu0 %9872  ;;  %v5021_v57 = vsel %vm562_vm0, %v4764_v43, %v9764_v22 }
 0x7e7   : > { %v9875_v37 = vunpack.i.h.bf16 %v9873_v19  ;;  %v9874_v35 = vunpack.i.l.bf16 %v9873_v19  ;;  %v4427_v28 = vsel %vm562_vm0, %v12574_v53, %v9869_v48  ;;  %v4403_v63 = vsel %vm562_vm0, %v12556_v58, %v9870_v20 }
 0x7e8   : > { %v9878_v38 = vpop.permute.xlu1 %9877  ;;  %v9774_v20 = vunpack.i.l.bf16 %v12680_v1  ;;  %v9779_v48 = vunpack.i.l.bf16 %v12682_v31 }
 0x7e9   : > { %v9880_v44 = vunpack.i.h.bf16 %v9878_v38  ;;  %v9879_v9 = vunpack.i.l.bf16 %v9878_v38  ;;  %v4435_v26 = vsel %vm1146_vm1, %v4427_v28, %v9874_v35  ;;  %v4411_v7 = vsel %vm1146_vm1, %v4403_v63, %v9875_v37 }
 0x7ea   : > { %v9883_v15 = vpop.permute.xlu0 %9882  ;;  %v9780_v38 = vunpack.i.h.bf16 %v12682_v31  ;;  %v9775_v28 = vunpack.i.h.bf16 %v12680_v1  ;;  %v9784_v63 = vunpack.i.l.bf16 %v12684_v32  ;;  %v4733_v1 = vld [vmem:[#allocation3 + $0x1f] sm:$0xff] }
 0x7eb   : > { %v4443_v18 = vsel %vm1155_vm2, %v4435_v26, %v9879_v9  ;;  %v4419_v46 = vsel %vm1155_vm2, %v4411_v7, %v9880_v44  ;;  %v9885_v6 = vunpack.i.h.bf16 %v9883_v15  ;;  %v9884_v16 = vunpack.i.l.bf16 %v9883_v15  ;;  %v4765_v15 = vld [vmem:[#allocation3 + $0x38] sm:$0xff] }
 0x7ec   : > { %4602 = vmatprep.mubr.f32.mxu0 %v4443_v18  ;;  %v9893_v4 = vpop.permute.xlu1 %9892  ;;  %v9789_v18 = vunpack.i.l.bf16 %v12686_v55 }
 0x7ed   : > { %4603 = vmatmul.mubr.f32.gmra.mrb[74].mxu0 %v4419_v46  ;;  %v9895_v60 = vunpack.i.h.bf16 %v9893_v4  ;;  %v9894_v53 = vunpack.i.l.bf16 %v9893_v4  ;;  %v4428_v12 = vsel %vm562_vm0, %v12588_v5, %v9884_v16  ;;  %v4404_v8 = vsel %vm562_vm0, %v12572_v39, %v9885_v6 }
 0x7ee   : > { %v9888_v0 = vpop.permute.xlu0 %9887  ;;  %v9769_v5 = vunpack.i.l.bf16 %v12678_v50  ;;  %v9765_v39 = vunpack.i.h.bf16 %v12675_v29  ;;  %v9785_v6 = vunpack.i.h.bf16 %v12684_v32  ;;  %v9790_v16 = vunpack.i.h.bf16 %v12686_v55 }
 0x7ef   : > { %v4436_v36 = vsel %vm1146_vm1, %v4428_v12, %v9894_v53  ;;  %v4412_v61 = vsel %vm1146_vm1, %v4404_v8, %v9895_v60  ;;  %v9890_v49 = vunpack.i.h.bf16 %v9888_v0  ;;  %v9889_v2 = vunpack.i.l.bf16 %v9888_v0  ;;  %v4766_v12 = vld [vmem:[#allocation3 + $0x50] sm:$0xff] }
 0x7f0   : > { %v12825_v41 = vpop.permute.xlu1 %9907  ;;  %v5029_v35 = vsel %vm1146_vm1, %v5021_v57, %v9769_v5  ;;  %v4997_v50 = vsel %vm562_vm0, %v4732_v45, %v9765_v39  ;;  %v5022_v0 = vsel %vm562_vm0, %v4765_v15, %v9779_v48  ;;  %v4998_v53 = vsel %vm562_vm0, %v4733_v1, %v9780_v38 }
 0x7f1   : > { %v5005_v7 = vsel %vm1146_vm1, %v4997_v50, %v9770_v13  ;;  %v5037_v31 = vsel %vm1155_vm2, %v5029_v35, %v9774_v20  ;;  %v5006_v55 = vsel %vm1146_vm1, %v4998_v53, %v9785_v6 }
 0x7f2   : > { %v9898_v58 = vpop.permute.xlu0 %9897 }
 0x7f3   : > { %v9900_v40 = vunpack.i.h.bf16 %v9898_v58  ;;  %v9899_v33 = vunpack.i.l.bf16 %v9898_v58 }
 0x7f4   : > { %v9918_v14 = vpop.permute.xlu1 %9917 }
 0x7f5   : > { %v4444_v42 = vsel %vm1155_vm2, %v4436_v36, %v9899_v33  ;;  %v4420_v3 = vsel %vm1155_vm2, %v4412_v61, %v9900_v40  ;;  %v9920_v56 = vunpack.i.h.bf16 %v9918_v14  ;;  %v9919_v24 = vunpack.i.l.bf16 %v9918_v14 }
 0x7f6   : > { %v9903_v23 = vpop.permute.xlu0 %9902  ;;  %4607 = vmatprep.mubr.f32.mxu0 %v4444_v42  ;;  %v5013_v40 = vsel %vm1155_vm2, %v5005_v7, %v9775_v28  ;;  %v5030_v33 = vsel %vm1146_vm1, %v5022_v0, %v9784_v63  ;;  %v9909_v14 = vunpack.i.l.bf16 %v12825_v41  ;;  %v4734_v42 = vld [vmem:[#allocation3 + $0x37] sm:$0xff] }
 0x7f7   : > { %4608 = vmatmul.mubr.f32.gmra.mrb[76].mxu0 %v4420_v3  ;;  %v4429_v52 = vsel %vm562_vm0, %v12605_v54, %v9919_v24  ;;  %v4405_v34 = vsel %vm562_vm0, %v12586_v59, %v9920_v56  ;;  %v9904_v46 = vunpack.i.l.bf16 %v9903_v23  ;;  %v9905_v60 = vunpack.i.h.bf16 %v9903_v23 }
 0x7f8   : > { %v9923_v17 = vpop.permute.xlu1 %9922  ;;  %v4437_v54 = vsel %vm1146_vm1, %v4429_v52, %v9889_v2  ;;  %v4413_v59 = vsel %vm1146_vm1, %v4405_v34, %v9890_v49  ;;  %v5038_v22 = vsel %vm1155_vm2, %v5030_v33, %v9789_v18  ;;  %v5014_v56 = vsel %vm1155_vm2, %v5006_v55, %v9790_v16 }
 0x7f9   : > { %v9925_v29 = vunpack.i.h.bf16 %v9923_v17  ;;  %v9924_v19 = vunpack.i.l.bf16 %v9923_v17  ;;  %v5023_v32 = vsel %vm562_vm0, %v4766_v12, %v9904_v46  ;;  %v4999_v24 = vsel %vm562_vm0, %v4734_v42, %v9905_v60 }
 0x7fa   : > { %v9913_v37 = vpop.permute.xlu0 %9912  ;;  %v9910_v23 = vunpack.i.h.bf16 %v12825_v41  ;;  %v5031_v34 = vsel %vm1146_vm1, %v5023_v32, %v9909_v14 }
 0x7fb   : > { %v4445_v44 = vsel %vm1155_vm2, %v4437_v54, %v9924_v19  ;;  %v4421_v9 = vsel %vm1155_vm2, %v4413_v59, %v9925_v29  ;;  %v9914_v8 = vunpack.i.l.bf16 %v9913_v37  ;;  %v9915_v3 = vunpack.i.h.bf16 %v9913_v37  ;;  %v4735_v29 = vld [vmem:[#allocation3 + $0x4f] sm:$0xff] }
 0x7fc   : > { %v9928_v26 = vpop.permute.xlu1 %9927  ;;  %4612 = vmatprep.mubr.f32.mxu0 %v4445_v44  ;;  %v5007_v57 = vsel %vm1146_vm1, %v4999_v24, %v9910_v23 }
 0x7fd   : > { %4613 = vmatmul.mubr.f32.gmra.mrb[78].mxu0 %v4421_v9  ;;  %v9929_v36 = vunpack.i.l.bf16 %v9928_v26  ;;  %v9930_v5 = vunpack.i.h.bf16 %v9928_v26  ;;  %v5039_v49 = vsel %vm1155_vm2, %v5031_v34, %v9914_v8  ;;  %v5015_v48 = vsel %vm1155_vm2, %v5007_v57, %v9915_v3 }
 0x7fe   : > { %v9933_v4 = vpop.permute.xlu0 %9932  ;;  %5169 = vmatprep.mubr.f32.mxu0 %v5037_v31 }
 0x7ff   : > { %v9934_v39 = vunpack.i.l.bf16 %v9933_v4  ;;  %v5024_v2 = vsel %vm562_vm0, %v12621_v51, %v9929_v36  ;;  %v9935_v20 = vunpack.i.h.bf16 %v9933_v4  ;;  %v5000_v35 = vsel %vm562_vm0, %v4735_v29, %v9930_v5 }
 0x800   : > { %v9938_v58 = vpop.permute.xlu1 %9937 }
 0x801   : > { %5170 = vmatmul.mubr.f32.vlgmr.msra.gmra.mrb[80].mxu0 %v5013_v40  ;;  %v9939_v43 = vunpack.i.l.bf16 %v9938_v58  ;;  %v9940_v19 = vunpack.i.h.bf16 %v9938_v58  ;;  %v5032_v59 = vsel %vm1146_vm1, %v5024_v2, %v9934_v39  ;;  %v5008_v26 = vsel %vm1146_vm1, %v5000_v35, %v9935_v20 }
 0x802   : > { %v9943_v61 = vpop.permute.xlu0 %9942  ;;  %5174 = vmatprep.mubr.f32.mxu0 %v5038_v22 }
 0x803   : > { %v9944_v45 = vunpack.i.l.bf16 %v9943_v61  ;;  %v9945_v41 = vunpack.i.h.bf16 %v9943_v61  ;;  %v5040_v51 = vsel %vm1155_vm2, %v5032_v59, %v9939_v43  ;;  %v5016_v4 = vsel %vm1155_vm2, %v5008_v26, %v9940_v19 }
 0x804   : > { %v9948_v52 = vpop.permute.xlu1 %9947 }
 0x805   : > { %5175 = vmatmul.mubr.f32.gmra.mrb[82].mxu0 %v5014_v56  ;;  %v9949_v17 = vunpack.i.l.bf16 %v9948_v52  ;;  %v9950_v37 = vunpack.i.h.bf16 %v9948_v52  ;;  %v5025_v9 = vsel %vm562_vm0, %v12634_v47, %v9944_v45  ;;  %v5001_v7 = vsel %vm562_vm0, %v12600_v27, %v9945_v41 }
 0x806   : > { %v9953_v13 = vpop.permute.xlu0 %9952  ;;  %5179 = vmatprep.mubr.f32.mxu0 %v5039_v49 }
 0x807   : > { %v9954_v50 = vunpack.i.l.bf16 %v9953_v13  ;;  %v5033_v28 = vsel %vm1146_vm1, %v5025_v9, %v9949_v17  ;;  %v9955_v63 = vunpack.i.h.bf16 %v9953_v13  ;;  %v5009_v31 = vsel %vm1146_vm1, %v5001_v7, %v9950_v37  ;;  %v7613_v7 = vld [vmem:[%s14041_s9 + $0x230] sm:$0xff] }
 0x808   : > { %v9958_v54 = vpop.permute.xlu1 %9957 }
 0x809   : > { %v9959_v38 = vunpack.i.l.bf16 %v9958_v54  ;;  %5180 = vmatmul.mubr.f32.gmra.mrb[84].mxu0 %v5015_v48  ;;  %v9960_v15 = vunpack.i.h.bf16 %v9958_v54  ;;  %v5041_v47 = vsel %vm1155_vm2, %v5033_v28, %v9954_v50  ;;  %v5017_v27 = vsel %vm1155_vm2, %v5009_v31, %v9955_v63  ;;  %v7611_v28 = vld [vmem:[%s14041_s9 + $0x220] sm:$0xff]  ;;  %v7612_v63 = vld [vmem:[%s14041_s9 + $0x228] sm:$0xff] }
 0x80a   : > { %v9963_v44 = vpop.permute.xlu0 %9962  ;;  %5184 = vmatprep.mubr.f32.mxu0 %v5040_v51  ;;  %v8924_v26 = vpack.c.bf16 %v7612_v63, %v7611_v28 }
 0x80b   : > { %v9964_v18 = vunpack.i.l.bf16 %v9963_v44  ;;  %v5026_v1 = vsel %vm562_vm0, %v12644_v21, %v9959_v38  ;;  %v9965_v60 = vunpack.i.h.bf16 %v9963_v44  ;;  %v5002_v12 = vsel %vm562_vm0, %v12629_v10, %v9960_v15  ;;  %v7614_v15 = vld [vmem:[%s14041_s9 + $0x238] sm:$0xff] }
 0x80c   : > { %v9968_v46 = vpop.permute.xlu1 %9967  ;;  %8925 = vmatprep.subr.bf16.mxu0 %v8924_v26 }
 0x80d   : > { %v9969_v0 = vunpack.i.l.bf16 %v9968_v46  ;;  %5185 = vmatmul.mubr.f32.gmra.mrb[86].mxu0 %v5016_v4  ;;  %v9970_v53 = vunpack.i.h.bf16 %v9968_v46  ;;  %v5034_v33 = vsel %vm1146_vm1, %v5026_v1, %v9964_v18  ;;  %v5010_v14 = vsel %vm1146_vm1, %v5002_v12, %v9965_v60  ;;  %v7595_v60 = vld [vmem:[%s14041_s9 + $0x1a0] sm:$0xff]  ;;  %v7598_v12 = vld [vmem:[%s14041_s9 + $0x1b8] sm:$0xff] }
 0x80e   : > { %v9973_v6 = vpop.permute.xlu0 %9972  ;;  %5189 = vmatprep.mubr.f32.mxu0 %v5041_v47  ;;  %8927 = vmatpush3.bf16.msra.mxu0 %v8924_v26  ;;  %v8928_v18 = vpack.c.bf16 %v7614_v15, %v7613_v7  ;;  %v7589_v7 = vld [vmem:[%s14041_s9 + $0x170] sm:$0xff]  ;;  %v7590_v15 = vld [vmem:[%s14041_s9 + $0x178] sm:$0xff] }
 0x80f   : > { %v9974_v16 = vunpack.i.l.bf16 %v9973_v6  ;;  %v9975_v58 = vunpack.i.h.bf16 %v9973_v6  ;;  %v5042_v22 = vsel %vm1155_vm2, %v5034_v33, %v9969_v0  ;;  %v5018_v56 = vsel %vm1155_vm2, %v5010_v14, %v9970_v53  ;;  %v12959_v0 = vld [vmem:[%s14045_s13] ss:$0 sm:$0xff]  ;;  %v7597_v33 = vld [vmem:[%s14041_s9 + $0x1b0] sm:$0xff] }
 0x810   : > { %v9978_v40 = vpop.permute.xlu1 %9977  ;;  %8929 = vmatprep.subr.bf16.mxu0 %v8928_v18  ;;  %v7579_v53 = vld [vmem:[%s14041_s9 + $0x120] sm:$0xff] }
 0x811   : > { %v9980_v8 = vunpack.i.h.bf16 %v9978_v40  ;;  %v9979_v36 = vunpack.i.l.bf16 %v9978_v40  ;;  %5190 = vmatmul.mubr.f32.gmra.mrb[88].mxu0 %v5017_v27  ;;  %v5027_v32 = vsel %vm562_vm0, %v12656_v25, %v9974_v16  ;;  %v5003_v24 = vsel %vm562_vm0, %v12641_v62, %v9975_v58  ;;  %v7596_v27 = vld [vmem:[%s14041_s9 + $0x1a8] sm:$0xff] }
 0x812   : > { %v9983_v61 = vpop.permute.xlu0 %9982  ;;  %5194 = vmatprep.mubr.f32.mxu0 %v5042_v22  ;;  %8931 = vmatpush3.bf16.msra.mxu0 %v8928_v18  ;;  %v8892_v58 = vpack.c.bf16 %v7596_v27, %v7595_v60  ;;  %v7580_v40 = vld [vmem:[%s14041_s9 + $0x128] sm:$0xff]  ;;  %v7582_v22 = vld [vmem:[%s14041_s9 + $0x138] sm:$0xff] }
 0x813   : > { %v9984_v21 = vunpack.i.l.bf16 %v9983_v61  ;;  %v5035_v55 = vsel %vm1146_vm1, %v5027_v32, %v9979_v36  ;;  %v9985_v42 = vunpack.i.h.bf16 %v9983_v61  ;;  %v5011_v52 = vsel %vm1146_vm1, %v5003_v24, %v9980_v8  ;;  %v7581_v61 = vld [vmem:[%s14041_s9 + $0x130] sm:$0xff]  ;;  %v7600_v32 = vld [vmem:[%s14041_s9 + $0x1c8] sm:$0xff] }
 0x814   : > { %v9988_v3 = vpop.permute.xlu1 %9987  ;;  %v8894_v8 = vpack.c.bf16 %v7580_v40, %v7579_v53  ;;  %v8896_v36 = vpack.c.bf16 %v7598_v12, %v7597_v33  ;;  %8893 = vmatprep.subr.bf16.mxu1 %v8892_v58  ;;  %v8898_v14 = vpack.c.bf16 %v7582_v22, %v7581_v61  ;;  %v7601_v24 = vld [vmem:[%s14041_s9 + $0x1d0] sm:$0xff] }
 0x815   : > { %v5043_v10 = vsel %vm1155_vm2, %v5035_v55, %v9984_v21  ;;  %v9990_v23 = vunpack.i.h.bf16 %v9988_v3  ;;  %v9989_v5 = vunpack.i.l.bf16 %v9988_v3  ;;  %5195 = vmatmul.mubr.f32.gmra.mrb[90].mxu0 %v5018_v56  ;;  %v5019_v49 = vsel %vm1155_vm2, %v5011_v52, %v9985_v42  ;;  %v7599_v21 = vld [vmem:[%s14041_s9 + $0x1c0] sm:$0xff]  ;;  %v7584_v56 = vld [vmem:[%s14041_s9 + $0x148] sm:$0xff] }
 0x816   : > { %v9993_v39 = vpop.permute.xlu0 %9992  ;;  %5199 = vmatprep.mubr.f32.mxu0 %v5043_v10  ;;  %8895 = vmatpush3.bf16.msra.mxu1 %v8894_v8  ;;  %v8900_v42 = vpack.c.bf16 %v7600_v32, %v7599_v21  ;;  %v7583_v3 = vld [vmem:[%s14041_s9 + $0x140] sm:$0xff] }
 0x817   : > { %v9995_v25 = vunpack.i.h.bf16 %v9993_v39  ;;  %v9994_v34 = vunpack.i.l.bf16 %v9993_v39  ;;  %v5028_v43 = vsel %vm562_vm0, %v12664_v11, %v9989_v5  ;;  %v5004_v45 = vsel %vm562_vm0, %v12651_v30, %v9990_v23  ;;  %8897 = vmatprep.subr.bf16.mxu1 %v8896_v36  ;;  %v7602_v23 = vld [vmem:[%s14041_s9 + $0x1d8] sm:$0xff] }
 0x818   : > { %v9998_v13 = vpop.permute.xlu1 %9997  ;;  %v8902_v39 = vpack.c.bf16 %v7584_v56, %v7583_v3 }
 0x819   : > { %v10000_v2 = vunpack.i.h.bf16 %v9998_v13  ;;  %v9999_v62 = vunpack.i.l.bf16 %v9998_v13  ;;  %5200 = vmatmul.mubr.f32.gmra.mrb[92].mxu0 %v5019_v49  ;;  %v5036_v17 = vsel %vm1146_vm1, %v5028_v43, %v9994_v34  ;;  %v5012_v57 = vsel %vm1146_vm1, %v5004_v45, %v9995_v25  ;;  %v7585_v34 = vld [vmem:[%s14041_s9 + $0x150] sm:$0xff]  ;;  %v7586_v43 = vld [vmem:[%s14041_s9 + $0x158] sm:$0xff]  ;;  %v7603_v45 = vld [vmem:[%s14041_s9 + $0x1e0] sm:$0xff] }
 0x81a   : > { %8899 = vmatpush3.bf16.msra.mxu1 %v8898_v14  ;;  %v8904_v25 = vpack.c.bf16 %v7602_v23, %v7601_v24  ;;  %v7604_v13 = vld [vmem:[%s14041_s9 + $0x1e8] sm:$0xff] }
 0x81b   : > { %v5044_v20 = vsel %vm1155_vm2, %v5036_v17, %v9999_v62  ;;  %v5020_v41 = vsel %vm1155_vm2, %v5012_v57, %v10000_v2  ;;  %8901 = vmatprep.subr.bf16.mxu1 %v8900_v42  ;;  %v8906_v2 = vpack.c.bf16 %v7586_v43, %v7585_v34  ;;  %v8908_v62 = vpack.c.bf16 %v7604_v13, %v7603_v45  ;;  %v7587_v17 = vld [vmem:[%s14041_s9 + $0x160] sm:$0xff]  ;;  %v7588_v57 = vld [vmem:[%s14041_s9 + $0x168] sm:$0xff] }
 0x81c   : > { %5204 = vmatprep.mubr.f32.mxu0 %v5044_v20  ;;  %v8910_v63 = vpack.c.bf16 %v7588_v57, %v7587_v17  ;;  %v7608_v17 = vld [vmem:[%s14041_s9 + $0x208] sm:$0xff] }
 0x81d   : > { %5205 = vmatmul.mubr.f32.gmra.mrb[94].mxu0 %v5020_v41  ;;  %v7605_v41 = vld [vmem:[%s14041_s9 + $0x1f0] sm:$0xff] }
 0x81e   : > { %8903 = vmatpush3.bf16.msra.mxu1 %v8902_v39 }
 0x81f   : > { %8905 = vmatprep.subr.bf16.mxu1 %v8904_v25 }
 0x822   : > { %8907 = vmatpush3.bf16.msra.mxu1 %v8906_v2 }
 0x823   : > { %8909 = vmatprep.subr.bf16.mxu1 %v8908_v62  ;;  %v7607_v62 = vld [vmem:[%s14041_s9 + $0x200] sm:$0xff] }
 0x824   : > { %v8916_v57 = vpack.c.bf16 %v7608_v17, %v7607_v62 }
 0x825   : > { %v12914_v11 = vpop.f32.mrb[64].mxu1 }
 0x826   : > { %v4684_v48 = vpop.f32.mrb[65].mxu1  ;;  %8911 = vmatpush3.bf16.msra.mxu1 %v8910_v63 }
 0x837   : > { %v12916_v30 = vpop.f32.mrb[66].mxu1 }
 0x838   : > { %v12918_v29 = vpop.f32.mrb[67].mxu1 }
 0x844   : > { %v12920_v19 = vpop.f32.mrb[68].mxu1 }
 0x845   : > { %v12922_v37 = vpop.f32.mrb[69].mxu1 }
 0x84b   : > { %v12924_v54 = vpop.f32.mrb[70].mxu1 }
 0x84c   : > { %v12926_v59 = vpop.f32.mrb[71].mxu1 }
 0x84f   : > { %v12928_v35 = vpop.f32.mrb[72].mxu1 }
 0x850   : > { %v12930_v50 = vpop.f32.mrb[73].mxu1 }
 0x853   : > { %v12932_v38 = vpop.f32.mrb[74].mxu1 }
 0x854   : > { %v12934_v44 = vpop.f32.mrb[75].mxu1 }
 0x857   : > { %v12936_v51 = vpop.f32.mrb[76].mxu1 }
 0x858   : > { %v12938_v9 = vpop.f32.mrb[77].mxu1 }
 0x85b   : > { %v12952_v46 = vpop.f32.mrb[78].mxu1 }
 0x85c   : > { %v12954_v4 = vpop.f32.mrb[79].mxu1 }
 0x896   : > { %v8100_v31 = vpop.f32.mrb[64].mxu0 }
 0x897   : > { %v8101_v6 = vpop.f32.mrb[65].mxu0 }
 0x898   : > { %v8102_v47 = vadd.f32 %v8101_v6, %v8100_v31  ;;  %v8914_v6 = vpack.c.bf16 %v7590_v15, %v7589_v7 }
 0x89a   : > { %v4580_v1 = vadd.f32 %v8102_v47, %v12959_v0 }
 0x89c   : > { %v4685_v16 = vadd.f32 %v4684_v48, %v4580_v1 }
 0x89e   : > { %4724 = vst.msk [vmem:[%s12968_s21] sm:$0xff] %vm4723_vm9, %v4685_v16 }
 0x8a1   : > { %v8103_v55 = vpop.f32.mrb[66].mxu0 }
 0x8a2   : > { %v8104_v10 = vpop.f32.mrb[67].mxu0 }
 0x8a3   : > { %v8105_v5 = vadd.f32 %v8104_v10, %v8103_v55 }
 0x8a5   : > { %v4585_v52 = vadd.f32 %v8105_v5, %v12959_v0  ;;  %v13073_v5 = vld [vmem:[%s14042_s10] ss:$0 sm:$0xff] }
 0x8a7   : > { %v4690_v49 = vadd.f32 %v12914_v11, %v4585_v52  ;;  %v7606_v11 = vld [vmem:[%s14041_s9 + $0x1f8] sm:$0xff]  ;;  %v13081_v52 = vld [vmem:[%s14043_s11] ss:$0 sm:$0xff] }
 0x8a8   : > { %v8912_v26 = vpack.c.bf16 %v7606_v11, %v7605_v41 }
 0x8a9   : > { %4725 = vst.msk [vmem:[%s12968_s21 + $0x8] sm:$0xff] %vm4723_vm9, %v4690_v49 }
 0x8aa   : > { %8913 = vmatprep.subr.bf16.mxu1 %v8912_v26 }
 0x8ab   : > { %8915 = vmatpush3.bf16.msra.mxu1 %v8914_v6 }
 0x8ac   : > { %v8106_v20 = vpop.f32.mrb[68].mxu0  ;;  %8917 = vmatprep.subr.bf16.mxu1 %v8916_v57 }
 0x8ad   : > { %v8107_v48 = vpop.f32.mrb[69].mxu0 }
 0x8ae   : > { %v8108_v28 = vadd.f32 %v8107_v48, %v8106_v20  ;;  %v7592_v20 = vld [vmem:[%s14041_s9 + $0x188] sm:$0xff] }
 0x8b0   : > { %v4590_v18 = vadd.f32 %v8108_v28, %v12959_v0 }
 0x8b2   : > { %v4695_v31 = vadd.f32 %v12918_v29, %v4590_v18 }
 0x8b3   : > { %v8109_v47 = vpop.f32.mrb[70].mxu0 }
 0x8b4   : > { %4726 = vst.msk [vmem:[%s12968_s21 + $0x10] sm:$0xff] %vm4723_vm9, %v4695_v31  ;;  %v8110_v1 = vpop.f32.mrb[71].mxu0  ;;  %v7609_v31 = vld [vmem:[%s14041_s9 + $0x210] sm:$0xff] }
 0x8b5   : > { %v8111_v16 = vadd.f32 %v8110_v1, %v8109_v47  ;;  %v7593_v47 = vld [vmem:[%s14041_s9 + $0x190] sm:$0xff]  ;;  %v7594_v1 = vld [vmem:[%s14041_s9 + $0x198] sm:$0xff] }
 0x8b7   : > { %v4595_v60 = vadd.f32 %v8111_v16, %v12959_v0 }
 0x8b9   : > { %v4700_v27 = vadd.f32 %v12916_v30, %v4595_v60  ;;  %v8112_v53 = vpop.f32.mrb[72].mxu0 }
 0x8ba   : > { %v8113_v58 = vpop.f32.mrb[73].mxu0 }
 0x8bb   : > { %4727 = vst.msk [vmem:[%s12968_s21 + $0x18] sm:$0xff] %vm4723_vm9, %v4700_v27  ;;  %v8114_v29 = vadd.f32 %v8113_v58, %v8112_v53  ;;  %v8922_v58 = vpack.c.bf16 %v7594_v1, %v7593_v47 }
 0x8bd   : > { %v4600_v40 = vadd.f32 %v8114_v29, %v12959_v0 }
 0x8bf   : > { %v4705_v33 = vadd.f32 %v12922_v37, %v4600_v40 }
 0x8c0   : > { %v8115_v12 = vpop.f32.mrb[74].mxu0 }
 0x8c1   : > { %4728 = vst.msk [vmem:[%s12968_s21 + $0x20] sm:$0xff] %vm4723_vm9, %v4705_v33  ;;  %v8116_v8 = vpop.f32.mrb[75].mxu0 }
 0x8c2   : > { %v8117_v36 = vadd.f32 %v8116_v8, %v8115_v12  ;;  %v13119_v8 = vld [vmem:[#allocation3 + $0x8] sm:$0xff] }
 0x8c4   : > { %v4605_v61 = vadd.f32 %v8117_v36, %v12959_v0 }
 0x8c6   : > { %v4710_v22 = vadd.f32 %v12920_v19, %v4605_v61 }
 0x8c8   : > { %4729 = vst.msk [vmem:[%s12968_s21 + $0x28] sm:$0xff] %vm4723_vm9, %v4710_v22 }
 0x8ca   : > { %v8118_v30 = vpop.f32.mrb[76].mxu0 }
 0x8cb   : > { %v8119_v21 = vpop.f32.mrb[77].mxu0 }
 0x8cc   : > { %v8120_v32 = vadd.f32 %v8119_v21, %v8118_v30 }
 0x8ce   : > { %v4610_v14 = vadd.f32 %v8120_v32, %v12959_v0 }
 0x8d0   : > { %v4715_v55 = vadd.f32 %v12926_v59, %v4610_v14  ;;  %v8121_v37 = vpop.f32.mrb[78].mxu0 }
 0x8d1   : > { %v8122_v42 = vpop.f32.mrb[79].mxu0 }
 0x8d2   : > { %4730 = vst.msk [vmem:[%s12968_s21 + $0x30] sm:$0xff] %vm4723_vm9, %v4715_v55  ;;  %v8123_v3 = vadd.f32 %v8122_v42, %v8121_v37  ;;  %v13126_v42 = vld [vmem:[#allocation3 + $0x9] sm:$0xff] }
 0x8d4   : > { %v4615_v56 = vadd.f32 %v8123_v3, %v12959_v0  ;;  %v8168_v10 = vpop.f32.mrb[80].mxu0 }
 0x8d5   : > { %v8169_v24 = vpop.f32.mrb[81].mxu0 }
 0x8d6   : > { %v4720_v19 = vadd.f32 %v12924_v54, %v4615_v56  ;;  %v8170_v23 = vadd.f32 %v8169_v24, %v8168_v10 }
 0x8d8   : > { %4731 = vst.msk [vmem:[%s12968_s21 + $0x38] sm:$0xff] %vm4723_vm9, %v4720_v19  ;;  %v5277_v59 = vadd.f32 %v8170_v23, %v12930_v50  ;;  %v8171_v39 = vpop.f32.mrb[82].mxu0 }
 0x8d9   : > { %v8172_v0 = vpop.f32.mrb[83].mxu0 }
 0x8da   : > { %v5321_v25 = vmul.f32 %v13073_v5, %v5277_v59  ;;  %v8173_v54 = vadd.f32 %v8172_v0, %v8171_v39 }
 0x8dc   : > { %v5333_v34 = vadd.f32 %v13081_v52, %v5321_v25  ;;  %v5282_v43 = vadd.f32 %v12928_v35, %v8173_v54  ;;  %v8174_v45 = vpop.f32.mrb[84].mxu0  ;;  %v7591_v35 = vld [vmem:[%s14041_s9 + $0x180] sm:$0xff] }
 0x8dd   : > { %v8175_v13 = vpop.f32.mrb[85].mxu0  ;;  %v8918_v63 = vpack.c.bf16 %v7592_v20, %v7591_v35 }
 0x8de   : > { %vm5341_vm10 = vcmp.gt.f32.partialorder %v5333_v34, 0.0  ;;  %v5349_v49 = vmul.f32 0.01, %v5333_v34  ;;  %v5322_v50 = vmul.f32 %v13073_v5, %v5282_v43  ;;  %v8176_v2 = vadd.f32 %v8175_v13, %v8174_v45 }
 0x8df   : > { %8919 = vmatpush3.bf16.msra.mxu1 %v8918_v63 }
 0x8e0   : > { %v5357_v41 = vsel %vm5341_vm10, %v5333_v34, %v5349_v49  ;;  %v5334_v11 = vadd.f32 %v13081_v52, %v5322_v50  ;;  %v5287_v48 = vadd.f32 %v8176_v2, %v12934_v44  ;;  %v8177_v28 = vpop.f32.mrb[86].mxu0  ;;  %v7610_v44 = vld [vmem:[%s14041_s9 + $0x218] sm:$0xff] }
 0x8e1   : > { %5365 = vst.msk [vmem:[#allocation3 + $0x20] sm:$0xff] %vm562_vm0, %v5357_v41  ;;  %v8178_v26 = vpop.f32.mrb[87].mxu0  ;;  %v8920_v6 = vpack.c.bf16 %v7610_v44, %v7609_v31 }
 0x8e2   : > { %vm5342_vm11 = vcmp.gt.f32.partialorder %v5334_v11, 0.0  ;;  %v5350_v7 = vmul.f32 0.01, %v5334_v11  ;;  %v5323_v15 = vmul.f32 %v13073_v5, %v5287_v48  ;;  %v8179_v18 = vadd.f32 %v8178_v26, %v8177_v28 }
 0x8e3   : > { %8921 = vmatprep.subr.bf16.mxu1 %v8920_v6 }
 0x8e4   : > { %v5358_v16 = vsel %vm5342_vm11, %v5334_v11, %v5350_v7  ;;  %v5335_v60 = vadd.f32 %v13081_v52, %v5323_v15  ;;  %v5292_v27 = vadd.f32 %v12932_v38, %v8179_v18  ;;  %v8180_v53 = vpop.f32.mrb[88].mxu0  ;;  %8923 = vmatpush3.bf16.msra.mxu1 %v8922_v58 }
 0x8e5   : > { %5366 = vst.msk [vmem:[#allocation3 + $0x38] sm:$0xff] %vm562_vm0, %v5358_v16  ;;  %v8181_v29 = vpop.f32.mrb[89].mxu0 }
 0x8e6   : > { %vm5343_vm12 = vcmp.gt.f32.partialorder %v5335_v60, 0.0  ;;  %v5351_v40 = vmul.f32 0.01, %v5335_v60  ;;  %v5324_v33 = vmul.f32 %v13073_v5, %v5292_v27  ;;  %v8182_v12 = vadd.f32 %v8181_v29, %v8180_v53 }
 0x8e8   : > { %v5359_v36 = vsel %vm5343_vm12, %v5335_v60, %v5351_v40  ;;  %v5336_v61 = vadd.f32 %v13081_v52, %v5324_v33  ;;  %v5297_v22 = vadd.f32 %v8182_v12, %v12938_v9  ;;  %v8183_v38 = vpop.f32.mrb[90].mxu0  ;;  %v5413_v30 = vld [vmem:[#allocation3 + $0x21] sm:$0xff] }
 0x8e9   : > { %5367 = vst.msk [vmem:[#allocation3 + $0x50] sm:$0xff] %vm562_vm0, %v5359_v36  ;;  %v8184_v21 = vpop.f32.mrb[91].mxu0  ;;  %v10001_v32 = vpack.i.bf16 %v13119_v8, %v5413_v30  ;;  %v13129_v3 = vld [vmem:[#allocation3 + $0x1f] sm:$0xff] }
 0x8ea   : > { %vm5344_vm13 = vcmp.gt.f32.partialorder %v5336_v61, 0.0  ;;  %v5352_v14 = vmul.f32 0.01, %v5336_v61  ;;  %v5325_v55 = vmul.f32 %v13073_v5, %v5297_v22  ;;  %v8185_v37 = vadd.f32 %v8184_v21, %v8183_v38  ;;  %v13150_v62 = vld [vmem:[#allocation3 + $0x20] sm:$0xff] }
 0x8eb   : > { %10002 = vrot.lane.b32.xlu0 %v10001_v32, %s14066_s27 }
 0x8ec   : > { %v5360_v56 = vsel %vm5344_vm13, %v5336_v61, %v5352_v14  ;;  %v5337_v9 = vadd.f32 %v13081_v52, %v5325_v55  ;;  %v5302_v10 = vadd.f32 %v12936_v51, %v8185_v37  ;;  %v8186_v24 = vpop.f32.mrb[92].mxu0  ;;  %v5437_v19 = vld [vmem:[#allocation3 + $0x39] sm:$0xff]  ;;  %v10361_v14 = vld [vmem:[#allocation3 + $0xe1] sm:$0xff] }
 0x8ed   : > { %v13133_v23 = vld [vmem:[#allocation3 + $0x37] sm:$0xff]  ;;  %5368 = vst.msk [vmem:[#allocation3 + $0x68] sm:$0xff] %vm562_vm0, %v5360_v56  ;;  %v8187_v39 = vpop.f32.mrb[93].mxu0  ;;  %8536 = vmatprep.mubr.msk.f32.mxu0 %vm562_vm0, %v5437_v19  ;;  %v10016_v35 = vpack.i.bf16 %v13150_v62, %v5437_v19 }
 0x8ee   : > { %v13135_v59 = vld [vmem:[#allocation3 + $0x38] sm:$0xff]  ;;  %v10006_v0 = vpack.i.bf16 %v13126_v42, %v13133_v23  ;;  %vm5345_vm14 = vcmp.gt.f32.partialorder %v5337_v9, 0.0  ;;  %v5353_v54 = vmul.f32 0.01, %v5337_v9  ;;  %v5326_v51 = vmul.f32 %v13073_v5, %v5302_v10 }
 0x8ef   : > { %v10011_v25 = vpack.i.bf16 %v13129_v3, %v13135_v59  ;;  %v8188_v34 = vadd.f32 %v8187_v39, %v8186_v24 }
 0x8f0   : > { %10007 = vrot.lane.b32.xlu1 %v10006_v0, %s14067_s17  ;;  %v5361_v43 = vsel %vm5345_vm14, %v5337_v9, %v5353_v54  ;;  %v5338_v45 = vadd.f32 %v13081_v52, %v5326_v51  ;;  %v8189_v49 = vpop.f32.mrb[94].mxu0  ;;  %v5438_v50 = vld [vmem:[#allocation3 + $0x51] sm:$0xff] }
 0x8f1   : > { %10012 = vrot.lane.b32.xlu0 %v10011_v25, %s14065_s19  ;;  %v5307_v13 = vadd.f32 %v8188_v34, %v12954_v4  ;;  %v13148_v2 = vld [vmem:[#allocation3 + $0x4f] sm:$0xff]  ;;  %5369 = vst.msk [vmem:[#allocation3 + $0x80] sm:$0xff] %vm562_vm0, %v5361_v43  ;;  %v8190_v17 = vpop.f32.mrb[95].mxu0  ;;  %8537 = vmatmul.mubr.msk.f32.vlgmr.msra.gmra.mrb[96].mxu0 %vm562_vm0, %v5438_v50  ;;  %v10031_v7 = vpack.i.bf16 %v13135_v59, %v5438_v50  ;;  %v13227_v25 = vld [vmem:[#allocation3 + $0xdf] sm:$0xff] }
 0x8f2   : > { %v10021_v57 = vpack.i.bf16 %v5413_v30, %v13148_v2  ;;  %vm5346_vm15 = vcmp.gt.f32.partialorder %v5338_v45, 0.0  ;;  %v5354_v20 = vmul.f32 0.01, %v5338_v45  ;;  %v8191_v4 = vadd.f32 %v8190_v17, %v8189_v49  ;;  %v13157_v11 = vld [vmem:[#allocation3 + $0x50] sm:$0xff]  ;;  %v13233_v34 = vld [vmem:[#allocation3 + $0xe0] sm:$0xff] }
 0x8f3   : > { %v5327_v41 = vmul.f32 %v13073_v5, %v5307_v13  ;;  %v10026_v15 = vpack.i.bf16 %v13133_v23, %v13157_v11 }
 0x8f4   : > { %10017 = vrot.lane.b32.xlu1 %v10016_v35, %s14066_s27  ;;  %v5362_v48 = vsel %vm5346_vm15, %v5338_v45, %v5354_v20  ;;  %v5312_v63 = vadd.f32 %v12952_v46, %v8191_v4  ;;  %v5439_v26 = vld [vmem:[#allocation3 + $0x69] sm:$0xff] }
 0x8f5   : > { %10022 = vrot.lane.b32.xlu0 %v10021_v57, %s14067_s17  ;;  %v5339_v28 = vadd.f32 %v13081_v52, %v5327_v41  ;;  %5370 = vst.msk [vmem:[#allocation3 + $0x98] sm:$0xff] %vm562_vm0, %v5362_v48  ;;  %8539 = vmatprep.mubr.msk.f32.mxu0 %vm562_vm0, %v5439_v26  ;;  %v13169_v44 = vld [vmem:[#allocation3 + $0x68] sm:$0xff]  ;;  %v10046_v29 = vpack.i.bf16 %v13157_v11, %v5439_v26 }
 0x8f6   : > { %v5328_v31 = vmul.f32 %v13073_v5, %v5312_v63  ;;  %v13171_v6 = vld [vmem:[#allocation3 + $0x67] sm:$0xff]  ;;  %v10041_v16 = vpack.i.bf16 %v13148_v2, %v13169_v44 }
 0x8f7   : > { %vm5347_vm3 = vcmp.gt.f32.partialorder %v5339_v28, 0.0  ;;  %v5355_v18 = vmul.f32 0.01, %v5339_v28  ;;  %v10036_v5 = vpack.i.bf16 %v5437_v19, %v13171_v6 }
 0x8f8   : > { %10027 = vrot.lane.b32.xlu1 %v10026_v15, %s14065_s19  ;;  %v5340_v47 = vadd.f32 %v13081_v52, %v5328_v31  ;;  %v5440_v1 = vld [vmem:[#allocation3 + $0x81] sm:$0xff] }
 0x8f9   : > { %10032 = vrot.lane.b32.xlu0 %v10031_v7, %s14066_s27  ;;  %v5363_v46 = vsel %vm5347_vm3, %v5339_v28, %v5355_v18  ;;  %8540 = vmatmul.mubr.msk.f32.gmra.mrb[98].mxu0 %vm562_vm0, %v5440_v1  ;;  %v13181_v27 = vld [vmem:[#allocation3 + $0x7f] sm:$0xff]  ;;  %v10061_v12 = vpack.i.bf16 %v13169_v44, %v5440_v1 }
 0x8fa   : > { %5371 = vst.msk [vmem:[#allocation3 + $0xb0] sm:$0xff] %vm562_vm0, %v5363_v46  ;;  %vm5348_vm4 = vcmp.gt.f32.partialorder %v5340_v47, 0.0  ;;  %v5356_v60 = vmul.f32 0.01, %v5340_v47  ;;  %v10051_v58 = vpack.i.bf16 %v5438_v50, %v13181_v27  ;;  %v13189_v40 = vld [vmem:[#allocation3 + $0x80] sm:$0xff] }
 0x8fb   : > { %v10056_v36 = vpack.i.bf16 %v13171_v6, %v13189_v40  ;;  %v13239_v50 = vld [vmem:[#allocation3 + $0x7] sm:$0xff] }
 0x8fc   : > { %10037 = vrot.lane.b32.xlu1 %v10036_v5, %s14067_s17  ;;  %v5364_v53 = vsel %vm5348_vm4, %v5340_v47, %v5356_v60  ;;  %v5441_v52 = vld [vmem:[#allocation3 + $0x99] sm:$0xff] }
 0x8fd   : > { %10042 = vrot.lane.b32.xlu0 %v10041_v16, %s14065_s19  ;;  %5372 = vst.msk [vmem:[#allocation3 + $0xc8] sm:$0xff] %vm562_vm0, %v5364_v53  ;;  %8542 = vmatprep.mubr.msk.f32.mxu0 %vm562_vm0, %v5441_v52  ;;  %v13197_v61 = vld [vmem:[#allocation3 + $0x98] sm:$0xff]  ;;  %v10076_v37 = vpack.i.bf16 %v13189_v40, %v5441_v52 }
 0x8fe   : > { %v13199_v22 = vld [vmem:[#allocation3 + $0x97] sm:$0xff]  ;;  %v10071_v30 = vpack.i.bf16 %v13181_v27, %v13197_v61 }
 0x8ff   : > { %v10066_v21 = vpack.i.bf16 %v5439_v26, %v13199_v22 }
 0x900   : > { %10047 = vrot.lane.b32.xlu1 %v10046_v29, %s14066_s27 }
 0x901   : > { %10052 = vrot.lane.b32.xlu0 %v10051_v58, %s14067_s17  ;;  %v5442_v33 = vld [vmem:[#allocation3 + $0xb1] sm:$0xff] }
 0x902   : > { %8543 = vmatmul.mubr.msk.f32.gmra.mrb[100].mxu0 %vm562_vm0, %v5442_v33  ;;  %v13207_v32 = vld [vmem:[#allocation3 + $0xaf] sm:$0xff]  ;;  %v10091_v9 = vpack.i.bf16 %v13197_v61, %v5442_v33  ;;  %v10106_v54 = vpack.i.bf16 %v5442_v33, %v13227_v25 }
 0x903   : > { %v10081_v55 = vpack.i.bf16 %v5440_v1, %v13207_v32  ;;  %v13214_v56 = vld [vmem:[#allocation3 + $0xb0] sm:$0xff] }
 0x904   : > { %10057 = vrot.lane.b32.xlu1 %v10056_v36, %s14065_s19  ;;  %v5443_v38 = vld [vmem:[#allocation3 + $0xc9] sm:$0xff]  ;;  %v10086_v10 = vpack.i.bf16 %v13199_v22, %v13214_v56 }
 0x905   : > { %10062 = vrot.lane.b32.xlu0 %v10061_v12, %s14066_s27  ;;  %8545 = vmatprep.mubr.msk.f32.mxu0 %vm562_vm0, %v5443_v38  ;;  %v13221_v24 = vld [vmem:[#allocation3 + $0xc8] sm:$0xff]  ;;  %v10111_v51 = vpack.i.bf16 %v13214_v56, %v5443_v38 }
 0x906   : > { %8546 = vmatmul.mubr.msk.f32.gmra.mrb[102].mxu0 %vm562_vm0, %v10361_v14  ;;  %v5427_v19 = vld [vmem:[#allocation3 + $0xc7] sm:$0xff]  ;;  %v10101_v39 = vpack.i.bf16 %v13207_v32, %v13221_v24 }
 0x907   : > { %v10096_v0 = vpack.i.bf16 %v5441_v52, %v5427_v19  ;;  %v10116_v43 = vpack.i.bf16 %v5427_v19, %v13233_v34 }
 0x908   : > { %10067 = vrot.lane.b32.xlu1 %v10066_v21, %s14067_s17 }
 0x909   : > { %10072 = vrot.lane.b32.xlu0 %v10071_v30, %s14065_s19 }
 0x90c   : > { %10077 = vrot.lane.b32.xlu1 %v10076_v37, %s14066_s27 }
 0x90d   : > { %10082 = vrot.lane.b32.xlu0 %v10081_v55, %s14067_s17 }
 0x910   : > { %10087 = vrot.lane.b32.xlu1 %v10086_v10, %s14065_s19 }
 0x911   : > { %10092 = vrot.lane.b32.xlu0 %v10091_v9, %s14066_s27 }
 0x914   : > { %10097 = vrot.lane.b32.xlu1 %v10096_v0, %s14067_s17 }
 0x915   : > { %10102 = vrot.lane.b32.xlu0 %v10101_v39, %s14065_s19 }
 0x918   : > { %10112 = vrot.lane.b32.xlu1 %v10111_v51, %s14066_s27 }
 0x919   : > { %10107 = vrot.lane.b32.xlu0 %v10106_v54, %s14067_s17 }
 0x91c   : > { %10117 = vrot.lane.b32.xlu1 %v10116_v43, %s14065_s19 }
 0x95d   : > { %v10003_v45 = vpop.permute.xlu0 %10002 }
 0x95e   : > { %v10005_v13 = vunpack.i.h.bf16 %v10003_v45  ;;  %v10004_v49 = vunpack.i.l.bf16 %v10003_v45 }
 0x960   : > { %v5637_v48 = vsel %vm562_vm0, %v13239_v50, %v10005_v13  ;;  %v5661_v28 = vsel %vm562_vm0, %v13150_v62, %v10004_v49 }
 0x962   : > { %v10008_v17 = vpop.permute.xlu1 %10007 }
 0x963   : > { %v10013_v57 = vpop.permute.xlu0 %10012  ;;  %v10010_v35 = vunpack.i.h.bf16 %v10008_v17  ;;  %v10009_v20 = vunpack.i.l.bf16 %v10008_v17 }
 0x964   : > { %v10015_v41 = vunpack.i.h.bf16 %v10013_v57  ;;  %v10014_v4 = vunpack.i.l.bf16 %v10013_v57 }
 0x965   : > { %v5645_v63 = vsel %vm1146_vm1, %v5637_v48, %v10010_v35  ;;  %v5669_v26 = vsel %vm1146_vm1, %v5661_v28, %v10009_v20 }
 0x966   : > { %v10018_v15 = vpop.permute.xlu1 %10017  ;;  %v5677_v18 = vsel %vm1155_vm2, %v5669_v26, %v10014_v4  ;;  %v5653_v31 = vsel %vm1155_vm2, %v5645_v63, %v10015_v41 }
 0x967   : > { %v10023_v7 = vpop.permute.xlu0 %10022  ;;  %v10020_v46 = vunpack.i.h.bf16 %v10018_v15  ;;  %v10019_v47 = vunpack.i.l.bf16 %v10018_v15  ;;  %5810 = vmatprep.mubr.f32.mxu1 %v5677_v18 }
 0x968   : > { %v10025_v1 = vunpack.i.h.bf16 %v10023_v7  ;;  %v10024_v16 = vunpack.i.l.bf16 %v10023_v7  ;;  %5811 = vmatmul.mubr.f32.vlgmr.msra.gmra.mrb[80].mxu1 %v5653_v31 }
 0x969   : > { %v5662_v5 = vsel %vm562_vm0, %v13135_v59, %v10019_v47  ;;  %v5638_v62 = vsel %vm562_vm0, %v13129_v3, %v10020_v46 }
 0x96a   : > { %v10028_v53 = vpop.permute.xlu1 %10027  ;;  %v5670_v12 = vsel %vm1146_vm1, %v5662_v5, %v10024_v16  ;;  %v5646_v36 = vsel %vm1146_vm1, %v5638_v62, %v10025_v1 }
 0x96b   : > { %v10033_v60 = vpop.permute.xlu0 %10032  ;;  %v10030_v52 = vunpack.i.h.bf16 %v10028_v53  ;;  %v10029_v58 = vunpack.i.l.bf16 %v10028_v53 }
 0x96c   : > { %v10035_v29 = vunpack.i.h.bf16 %v10033_v60  ;;  %v10034_v33 = vunpack.i.l.bf16 %v10033_v60 }
 0x96d   : > { %v5678_v38 = vsel %vm1155_vm2, %v5670_v12, %v10029_v58  ;;  %v5654_v30 = vsel %vm1155_vm2, %v5646_v36, %v10030_v52 }
 0x96e   : > { %v10038_v14 = vpop.permute.xlu1 %10037  ;;  %5815 = vmatprep.mubr.f32.mxu1 %v5678_v38  ;;  %v5663_v9 = vsel %vm562_vm0, %v13157_v11, %v10034_v33  ;;  %v5639_v10 = vsel %vm562_vm0, %v13133_v23, %v10035_v29 }
 0x96f   : > { %v10043_v21 = vpop.permute.xlu0 %10042  ;;  %v10040_v3 = vunpack.i.h.bf16 %v10038_v14  ;;  %v10039_v37 = vunpack.i.l.bf16 %v10038_v14  ;;  %5816 = vmatmul.mubr.f32.gmra.mrb[82].mxu1 %v5654_v30 }
 0x970   : > { %v10045_v59 = vunpack.i.h.bf16 %v10043_v21  ;;  %v10044_v55 = vunpack.i.l.bf16 %v10043_v21 }
 0x971   : > { %v5671_v19 = vsel %vm1146_vm1, %v5663_v9, %v10039_v37  ;;  %v5647_v39 = vsel %vm1146_vm1, %v5639_v10, %v10040_v3 }
 0x972   : > { %v10048_v54 = vpop.permute.xlu1 %10047  ;;  %v5679_v51 = vsel %vm1155_vm2, %v5671_v19, %v10044_v55  ;;  %v5655_v43 = vsel %vm1155_vm2, %v5647_v39, %v10045_v59 }
 0x973   : > { %v10053_v0 = vpop.permute.xlu0 %10052  ;;  %v10050_v45 = vunpack.i.h.bf16 %v10048_v54  ;;  %v10049_v13 = vunpack.i.l.bf16 %v10048_v54  ;;  %5820 = vmatprep.mubr.f32.mxu1 %v5679_v51 }
 0x974   : > { %v10055_v49 = vunpack.i.h.bf16 %v10053_v0  ;;  %v10054_v17 = vunpack.i.l.bf16 %v10053_v0  ;;  %5821 = vmatmul.mubr.f32.gmra.mrb[84].mxu1 %v5655_v43 }
 0x975   : > { %v5664_v11 = vsel %vm562_vm0, %v13169_v44, %v10049_v13  ;;  %v5640_v23 = vsel %vm562_vm0, %v13148_v2, %v10050_v45 }
 0x976   : > { %v10058_v35 = vpop.permute.xlu1 %10057  ;;  %v5672_v28 = vsel %vm1146_vm1, %v5664_v11, %v10054_v17  ;;  %v5648_v63 = vsel %vm1146_vm1, %v5640_v23, %v10055_v49 }
 0x977   : > { %v10063_v57 = vpop.permute.xlu0 %10062  ;;  %v10060_v20 = vunpack.i.h.bf16 %v10058_v35  ;;  %v10059_v41 = vunpack.i.l.bf16 %v10058_v35 }
 0x978   : > { %v10065_v4 = vunpack.i.h.bf16 %v10063_v57  ;;  %v10064_v48 = vunpack.i.l.bf16 %v10063_v57 }
 0x979   : > { %v5680_v26 = vsel %vm1155_vm2, %v5672_v28, %v10059_v41  ;;  %v5656_v7 = vsel %vm1155_vm2, %v5648_v63, %v10060_v20 }
 0x97a   : > { %v10068_v18 = vpop.permute.xlu1 %10067  ;;  %5825 = vmatprep.mubr.f32.mxu1 %v5680_v26  ;;  %v5665_v47 = vsel %vm562_vm0, %v13189_v40, %v10064_v48  ;;  %v5641_v1 = vsel %vm562_vm0, %v13171_v6, %v10065_v4 }
 0x97b   : > { %v10073_v15 = vpop.permute.xlu0 %10072  ;;  %v10070_v2 = vunpack.i.h.bf16 %v10068_v18  ;;  %v10069_v46 = vunpack.i.l.bf16 %v10068_v18  ;;  %5826 = vmatmul.mubr.f32.gmra.mrb[86].mxu1 %v5656_v7 }
 0x97c   : > { %v10075_v44 = vunpack.i.h.bf16 %v10073_v15  ;;  %v10074_v31 = vunpack.i.l.bf16 %v10073_v15 }
 0x97d   : > { %v5673_v16 = vsel %vm1146_vm1, %v5665_v47, %v10069_v46  ;;  %v5649_v5 = vsel %vm1146_vm1, %v5641_v1, %v10070_v2  ;;  %v7659_v1 = vld [vmem:[%s14041_s9 + $0x350] sm:$0xff] }
 0x97e   : > { %v10078_v60 = vpop.permute.xlu1 %10077  ;;  %v5681_v53 = vsel %vm1155_vm2, %v5673_v16, %v10074_v31  ;;  %v5657_v52 = vsel %vm1155_vm2, %v5649_v5, %v10075_v44  ;;  %v7658_v31 = vld [vmem:[%s14041_s9 + $0x348] sm:$0xff]  ;;  %v7660_v16 = vld [vmem:[%s14041_s9 + $0x358] sm:$0xff] }
 0x97f   : > { %v10083_v62 = vpop.permute.xlu0 %10082  ;;  %v10080_v58 = vunpack.i.h.bf16 %v10078_v60  ;;  %v10079_v29 = vunpack.i.l.bf16 %v10078_v60  ;;  %5830 = vmatprep.mubr.f32.mxu1 %v5681_v53  ;;  %v8968_v5 = vpack.c.bf16 %v7660_v16, %v7659_v1  ;;  %v7641_v53 = vld [vmem:[%s14041_s9 + $0x2c0] sm:$0xff] }
 0x980   : > { %v10085_v33 = vunpack.i.h.bf16 %v10083_v62  ;;  %v10084_v12 = vunpack.i.l.bf16 %v10083_v62  ;;  %5831 = vmatmul.mubr.f32.gmra.mrb[88].mxu1 %v5657_v52  ;;  %v7642_v52 = vld [vmem:[%s14041_s9 + $0x2c8] sm:$0xff] }
 0x981   : > { %v5666_v40 = vsel %vm562_vm0, %v13197_v61, %v10079_v29  ;;  %v5642_v6 = vsel %vm562_vm0, %v13181_v27, %v10080_v58  ;;  %v7625_v58 = vld [vmem:[%s14041_s9 + $0x240] sm:$0xff]  ;;  %v8932_v29 = vpack.c.bf16 %v7642_v52, %v7641_v53  ;;  %v7654_v53 = vld [vmem:[%s14041_s9 + $0x328] sm:$0xff] }
 0x982   : > { %v10088_v38 = vpop.permute.xlu1 %10087  ;;  %v5674_v55 = vsel %vm1146_vm1, %v5666_v40, %v10084_v12  ;;  %v5650_v3 = vsel %vm1146_vm1, %v5642_v6, %v10085_v33  ;;  %v7626_v33 = vld [vmem:[%s14041_s9 + $0x248] sm:$0xff]  ;;  %v7643_v12 = vld [vmem:[%s14041_s9 + $0x2d0] sm:$0xff]  ;;  %v7644_v40 = vld [vmem:[%s14041_s9 + $0x2d8] sm:$0xff] }
 0x983   : > { %v10093_v36 = vpop.permute.xlu0 %10092  ;;  %v10090_v30 = vunpack.i.h.bf16 %v10088_v38  ;;  %v10089_v21 = vunpack.i.l.bf16 %v10088_v38  ;;  %v8934_v6 = vpack.c.bf16 %v7626_v33, %v7625_v58  ;;  %v7627_v38 = vld [vmem:[%s14041_s9 + $0x250] sm:$0xff]  ;;  %8933 = vmatprep.subr.bf16.mxu1 %v8932_v29  ;;  %v7637_v52 = vld [vmem:[%s14041_s9 + $0x2a0] sm:$0xff]  ;;  %v7638_v33 = vld [vmem:[%s14041_s9 + $0x2a8] sm:$0xff] }
 0x984   : > { %v10095_v14 = vunpack.i.h.bf16 %v10093_v36  ;;  %v10094_v59 = vunpack.i.l.bf16 %v10093_v36  ;;  %v8936_v36 = vpack.c.bf16 %v7644_v40, %v7643_v12  ;;  %v8958_v40 = vpack.c.bf16 %v7638_v33, %v7637_v52 }
 0x985   : > { %v5682_v37 = vsel %vm1155_vm2, %v5674_v55, %v10089_v21  ;;  %v5658_v9 = vsel %vm1155_vm2, %v5650_v3, %v10090_v30  ;;  %v7628_v30 = vld [vmem:[%s14041_s9 + $0x258] sm:$0xff]  ;;  %v7645_v21 = vld [vmem:[%s14041_s9 + $0x2e0] sm:$0xff]  ;;  %8935 = vmatpush3.bf16.msra.mxu1 %v8934_v6 }
 0x986   : > { %v10098_v19 = vpop.permute.xlu1 %10097  ;;  %5835 = vmatprep.mubr.f32.mxu1 %v5682_v37  ;;  %v5667_v54 = vsel %vm562_vm0, %v13214_v56, %v10094_v59  ;;  %v5643_v51 = vsel %vm562_vm0, %v13199_v22, %v10095_v14  ;;  %v7646_v14 = vld [vmem:[%s14041_s9 + $0x2e8] sm:$0xff]  ;;  %v8938_v59 = vpack.c.bf16 %v7628_v30, %v7627_v38  ;;  %8937 = vmatprep.subr.bf16.mxu1 %v8936_v36  ;;  %v7629_v3 = vld [vmem:[%s14041_s9 + $0x260] sm:$0xff]  ;;  %v7655_v30 = vld [vmem:[%s14041_s9 + $0x330] sm:$0xff] }
 0x987   : > { %v10103_v10 = vpop.permute.xlu0 %10102  ;;  %v10100_v27 = vunpack.i.h.bf16 %v10098_v19  ;;  %v10099_v0 = vunpack.i.l.bf16 %v10098_v19  ;;  %5836 = vmatmul.mubr.f32.gmra.mrb[90].mxu1 %v5658_v9  ;;  %v8940_v55 = vpack.c.bf16 %v7646_v14, %v7645_v21  ;;  %v7630_v37 = vld [vmem:[%s14041_s9 + $0x268] sm:$0xff]  ;;  %v7647_v9 = vld [vmem:[%s14041_s9 + $0x2f0] sm:$0xff]  ;;  %v7656_v21 = vld [vmem:[%s14041_s9 + $0x338] sm:$0xff] }
 0x988   : > { %v10105_v61 = vunpack.i.h.bf16 %v10103_v10  ;;  %v10104_v39 = vunpack.i.l.bf16 %v10103_v10  ;;  %v7648_v10 = vld [vmem:[%s14041_s9 + $0x2f8] sm:$0xff]  ;;  %v8942_v19 = vpack.c.bf16 %v7630_v37, %v7629_v3 }
 0x989   : > { %v5675_v43 = vsel %vm1146_vm1, %v5667_v54, %v10099_v0  ;;  %v5651_v45 = vsel %vm1146_vm1, %v5643_v51, %v10100_v27  ;;  %8939 = vmatpush3.bf16.msra.mxu1 %v8938_v59  ;;  %v7632_v27 = vld [vmem:[%s14041_s9 + $0x278] sm:$0xff]  ;;  %v7649_v0 = vld [vmem:[%s14041_s9 + $0x300] sm:$0xff]  ;;  %v7650_v54 = vld [vmem:[%s14041_s9 + $0x308] sm:$0xff]  ;;  %v8960_v59 = vpack.c.bf16 %v7656_v21, %v7655_v30 }
 0x98a   : > { %v10113_v49 = vpop.permute.xlu1 %10112  ;;  %v5683_v17 = vsel %vm1155_vm2, %v5675_v43, %v10104_v39  ;;  %v5659_v11 = vsel %vm1155_vm2, %v5651_v45, %v10105_v61  ;;  %8941 = vmatprep.subr.bf16.mxu1 %v8940_v55  ;;  %v8944_v61 = vpack.c.bf16 %v7648_v10, %v7647_v9  ;;  %v7631_v39 = vld [vmem:[%s14041_s9 + $0x270] sm:$0xff]  ;;  %v8948_v43 = vpack.c.bf16 %v7650_v54, %v7649_v0  ;;  %v7633_v45 = vld [vmem:[%s14041_s9 + $0x280] sm:$0xff] }
 0x98b   : > { %v10108_v13 = vpop.permute.xlu0 %10107  ;;  %v10115_v23 = vunpack.i.h.bf16 %v10113_v49  ;;  %v10114_v57 = vunpack.i.l.bf16 %v10113_v49  ;;  %5840 = vmatprep.mubr.f32.mxu1 %v5683_v17  ;;  %v8946_v51 = vpack.c.bf16 %v7632_v27, %v7631_v39  ;;  %v7639_v55 = vld [vmem:[%s14041_s9 + $0x2b0] sm:$0xff] }
 0x98c   : > { %v10110_v35 = vunpack.i.h.bf16 %v10108_v13  ;;  %v10109_v20 = vunpack.i.l.bf16 %v10108_v13  ;;  %5841 = vmatmul.mubr.f32.gmra.mrb[92].mxu1 %v5659_v11  ;;  %v7634_v13 = vld [vmem:[%s14041_s9 + $0x288] sm:$0xff] }
 0x98d   : > { %v5668_v56 = vsel %vm562_vm0, %v13221_v24, %v10114_v57  ;;  %v5644_v22 = vsel %vm562_vm0, %v13207_v32, %v10115_v23  ;;  %v7657_v32 = vld [vmem:[%s14041_s9 + $0x340] sm:$0xff]  ;;  %8943 = vmatpush3.bf16.msra.mxu1 %v8942_v19  ;;  %v8950_v49 = vpack.c.bf16 %v7634_v13, %v7633_v45 }
 0x98e   : > { %v10118_v41 = vpop.permute.xlu1 %10117  ;;  %v5676_v28 = vsel %vm1146_vm1, %v5668_v56, %v10109_v20  ;;  %v5652_v63 = vsel %vm1146_vm1, %v5644_v22, %v10110_v35  ;;  %v8964_v2 = vpack.c.bf16 %v7658_v31, %v7657_v32  ;;  %8945 = vmatprep.subr.bf16.mxu1 %v8944_v61  ;;  %v13394_v57 = vld [vmem:[%s14042_s10 + $0x1] ss:$0 sm:$0xff]  ;;  %v7636_v32 = vld [vmem:[%s14041_s9 + $0x298] sm:$0xff] }
 0x98f   : > { %v10120_v4 = vunpack.i.h.bf16 %v10118_v41  ;;  %v10119_v48 = vunpack.i.l.bf16 %v10118_v41  ;;  %v13399_v20 = vld [vmem:[%s14043_s11 + $0x1] ss:$0 sm:$0xff] }
 0x990   : > { %8965 = vmatprep.subr.bf16.mxu0 %v8964_v2 }
 0x991   : > { %v5684_v26 = vsel %vm1155_vm2, %v5676_v28, %v10119_v48  ;;  %v5660_v7 = vsel %vm1155_vm2, %v5652_v63, %v10120_v4  ;;  %8967 = vmatpush3.bf16.msra.mxu0 %v8964_v2  ;;  %8947 = vmatpush3.bf16.msra.mxu1 %v8946_v51  ;;  %v7651_v28 = vld [vmem:[%s14041_s9 + $0x310] sm:$0xff]  ;;  %v7652_v63 = vld [vmem:[%s14041_s9 + $0x318] sm:$0xff] }
 0x992   : > { %5845 = vmatprep.mubr.f32.mxu1 %v5684_v26  ;;  %8969 = vmatprep.subr.bf16.mxu0 %v8968_v5 }
 0x993   : > { %5846 = vmatmul.mubr.f32.gmra.mrb[94].mxu1 %v5660_v7  ;;  %8949 = vmatprep.subr.bf16.mxu1 %v8948_v43  ;;  %v8952_v7 = vpack.c.bf16 %v7652_v63, %v7651_v28 }
 0x995   : > { %8971 = vmatpush3.bf16.msra.mxu0 %v8968_v5  ;;  %8951 = vmatpush3.bf16.msra.mxu1 %v8950_v49  ;;  %v7653_v5 = vld [vmem:[%s14041_s9 + $0x320] sm:$0xff] }
 0x996   : > { %8953 = vmatprep.subr.bf16.mxu1 %v8952_v7  ;;  %v8956_v29 = vpack.c.bf16 %v7654_v53, %v7653_v5 }
 0x9c4   : > { %v13305_v15 = vpop.f32.mrb[96].mxu0 }
 0x9c5   : > { %v5917_v18 = vpop.f32.mrb[97].mxu0 }
 0x9cc   : > { %v13307_v24 = vpop.f32.mrb[98].mxu0 }
 0x9cd   : > { %v13309_v44 = vpop.f32.mrb[99].mxu0 }
 0x9d5   : > { %v13317_v46 = vpop.f32.mrb[100].mxu0 }
 0x9d6   : > { %v13319_v47 = vpop.f32.mrb[101].mxu0 }
 0x9d9   : > { %v13327_v62 = vpop.f32.mrb[102].mxu0 }
 0x9da   : > { %v13329_v60 = vpop.f32.mrb[103].mxu0 }
 0xa3b   : > { %v8236_v17 = vpop.f32.mrb[80].mxu1 }
 0xa3c   : > { %v8237_v11 = vpop.f32.mrb[81].mxu1 }
 0xa3d   : > { %v8238_v23 = vadd.f32 %v8237_v11, %v8236_v17 }
 0xa3f   : > { %v5918_v35 = vadd.f32 %v8238_v23, %v5917_v18  ;;  %v7635_v18 = vld [vmem:[%s14041_s9 + $0x290] sm:$0xff] }
 0xa40   : > { %v8954_v2 = vpack.c.bf16 %v7636_v32, %v7635_v18 }
 0xa41   : > { %v5962_v56 = vmul.f32 %v13394_v57, %v5918_v35 }
 0xa42   : > { %v8239_v22 = vpop.f32.mrb[82].mxu1  ;;  %8955 = vmatpush3.bf16.msra.mxu1 %v8954_v2 }
 0xa43   : > { %v5974_v41 = vadd.f32 %v13399_v20, %v5962_v56  ;;  %v8240_v4 = vpop.f32.mrb[83].mxu1  ;;  %8957 = vmatprep.subr.bf16.mxu1 %v8956_v29 }
 0xa44   : > { %v8241_v48 = vadd.f32 %v8240_v4, %v8239_v22 }
 0xa45   : > { %vm5982_vm5 = vcmp.gt.f32.partialorder %v5974_v41, 0.0  ;;  %v5990_v26 = vmul.f32 0.01, %v5974_v41 }
 0xa46   : > { %v5923_v31 = vadd.f32 %v13305_v15, %v8241_v48  ;;  %8959 = vmatpush3.bf16.msra.mxu1 %v8958_v40 }
 0xa47   : > { %v5998_v1 = vsel %vm5982_vm5, %v5974_v41, %v5990_v26  ;;  %v8242_v16 = vpop.f32.mrb[84].mxu1  ;;  %8961 = vmatprep.subr.bf16.mxu1 %v8960_v59 }
 0xa48   : > { %6006 = vst.msk [vmem:[#allocation3 + $0x20] sm:$0xff] %vm562_vm0, %v5998_v1  ;;  %v5963_v15 = vmul.f32 %v13394_v57, %v5923_v31  ;;  %v8243_v58 = vpop.f32.mrb[85].mxu1 }
 0xa49   : > { %v8244_v12 = vadd.f32 %v8243_v58, %v8242_v16 }
 0xa4a   : > { %v5975_v6 = vadd.f32 %v13399_v20, %v5963_v15 }
 0xa4b   : > { %v5928_v36 = vadd.f32 %v8244_v12, %v13309_v44  ;;  %v7640_v44 = vld [vmem:[%s14041_s9 + $0x2b8] sm:$0xff] }
 0xa4c   : > { %vm5983_vm6 = vcmp.gt.f32.partialorder %v5975_v6, 0.0  ;;  %v5991_v38 = vmul.f32 0.01, %v5975_v6  ;;  %v8962_v9 = vpack.c.bf16 %v7640_v44, %v7639_v55 }
 0xa4d   : > { %v5964_v14 = vmul.f32 %v13394_v57, %v5928_v36 }
 0xa4e   : > { %v5999_v3 = vsel %vm5983_vm6, %v5975_v6, %v5991_v38  ;;  %v8245_v37 = vpop.f32.mrb[86].mxu1  ;;  %8963 = vmatpush3.bf16.msra.mxu1 %v8962_v9 }
 0xa4f   : > { %6007 = vst.msk [vmem:[#allocation3 + $0x38] sm:$0xff] %vm562_vm0, %v5999_v3  ;;  %v5976_v10 = vadd.f32 %v13399_v20, %v5964_v14  ;;  %v8246_v19 = vpop.f32.mrb[87].mxu1  ;;  %v6054_v61 = vld [vmem:[#allocation3 + $0x21] sm:$0xff] }
 0xa50   : > { %v8247_v39 = vadd.f32 %v8246_v19, %v8245_v37  ;;  %v10121_v27 = vpack.i.bf16 %v13119_v8, %v6054_v61  ;;  %v13452_v17 = vld [vmem:[#allocation3 + $0x1f] sm:$0xff] }
 0xa51   : > { %vm5984_vm7 = vcmp.gt.f32.partialorder %v5976_v10, 0.0  ;;  %v5992_v0 = vmul.f32 0.01, %v5976_v10  ;;  %v13468_v63 = vld [vmem:[#allocation3 + $0x20] sm:$0xff] }
 0xa52   : > { %v5933_v54 = vadd.f32 %v13307_v24, %v8247_v39  ;;  %10122 = vrot.lane.b32.xlu0 %v10121_v27, %s14066_s27 }
 0xa53   : > { %v6000_v51 = vsel %vm5984_vm7, %v5976_v10, %v5992_v0  ;;  %v8248_v43 = vpop.f32.mrb[88].mxu1 }
 0xa54   : > { %6008 = vst.msk [vmem:[#allocation3 + $0x50] sm:$0xff] %vm562_vm0, %v6000_v51  ;;  %v5965_v45 = vmul.f32 %v13394_v57, %v5933_v54  ;;  %v8249_v13 = vpop.f32.mrb[89].mxu1 }
 0xa55   : > { %v8250_v49 = vadd.f32 %v8249_v13, %v8248_v43 }
 0xa56   : > { %v5977_v11 = vadd.f32 %v13399_v20, %v5965_v45  ;;  %v6078_v8 = vld [vmem:[#allocation3 + $0x39] sm:$0xff] }
 0xa57   : > { %v13455_v23 = vld [vmem:[#allocation3 + $0x38] sm:$0xff]  ;;  %v5938_v24 = vadd.f32 %v8250_v49, %v13319_v47  ;;  %8556 = vmatprep.mubr.msk.f32.mxu0 %vm562_vm0, %v6078_v8 }
 0xa58   : > { %v13457_v35 = vld [vmem:[#allocation3 + $0x37] sm:$0xff]  ;;  %v10131_v56 = vpack.i.bf16 %v13452_v17, %v13455_v23  ;;  %vm5985_vm8 = vcmp.gt.f32.partialorder %v5977_v11, 0.0  ;;  %v5993_v41 = vmul.f32 0.01, %v5977_v11 }
 0xa59   : > { %v10126_v22 = vpack.i.bf16 %v13126_v42, %v13457_v35  ;;  %v5966_v4 = vmul.f32 %v13394_v57, %v5938_v24  ;;  %v10136_v42 = vpack.i.bf16 %v13468_v63, %v6078_v8 }
 0xa5a   : > { %10132 = vrot.lane.b32.xlu0 %v10131_v56, %s14065_s19  ;;  %v6001_v48 = vsel %vm5985_vm8, %v5977_v11, %v5993_v41  ;;  %v8251_v28 = vpop.f32.mrb[90].mxu1 }
 0xa5b   : > { %10127 = vrot.lane.b32.xlu1 %v10126_v22, %s14067_s17  ;;  %6009 = vst.msk [vmem:[#allocation3 + $0x68] sm:$0xff] %vm562_vm0, %v6001_v48  ;;  %v5978_v47 = vadd.f32 %v13399_v20, %v5966_v4  ;;  %v8252_v26 = vpop.f32.mrb[91].mxu1  ;;  %v6079_v7 = vld [vmem:[#allocation3 + $0x51] sm:$0xff] }
 0xa5c   : > { %v13473_v18 = vld [vmem:[#allocation3 + $0x4f] sm:$0xff]  ;;  %v8253_v32 = vadd.f32 %v8252_v26, %v8251_v28  ;;  %8557 = vmatmul.mubr.msk.f32.vlgmr.msra.gmra.mrb[104].mxu0 %vm562_vm0, %v6079_v7  ;;  %v10151_v29 = vpack.i.bf16 %v13455_v23, %v6079_v7 }
 0xa5d   : > { %v10141_v31 = vpack.i.bf16 %v6054_v61, %v13473_v18  ;;  %v13477_v2 = vld [vmem:[#allocation3 + $0x50] sm:$0xff]  ;;  %vm5986_vm9 = vcmp.gt.f32.partialorder %v5978_v47, 0.0  ;;  %v5994_v1 = vmul.f32 0.01, %v5978_v47 }
 0xa5e   : > { %v5943_v16 = vadd.f32 %v13317_v46, %v8253_v32  ;;  %v10146_v52 = vpack.i.bf16 %v13457_v35, %v13477_v2 }
 0xa5f   : > { %10137 = vrot.lane.b32.xlu1 %v10136_v42, %s14066_s27  ;;  %10142 = vrot.lane.b32.xlu0 %v10141_v31, %s14067_s17  ;;  %v6002_v5 = vsel %vm5986_vm9, %v5978_v47, %v5994_v1  ;;  %v8254_v53 = vpop.f32.mrb[92].mxu1  ;;  %v6085_v47 = vld [vmem:[#allocation3 + $0xe1] sm:$0xff] }
 0xa60   : > { %6010 = vst.msk [vmem:[#allocation3 + $0x80] sm:$0xff] %vm562_vm0, %v6002_v5  ;;  %v5967_v15 = vmul.f32 %v13394_v57, %v5943_v16  ;;  %v8255_v58 = vpop.f32.mrb[93].mxu1 }
 0xa61   : > { %v8256_v33 = vadd.f32 %v8255_v58, %v8254_v53 }
 0xa62   : > { %v5979_v12 = vadd.f32 %v13399_v20, %v5967_v15  ;;  %v6080_v46 = vld [vmem:[#allocation3 + $0x69] sm:$0xff] }
 0xa63   : > { %10147 = vrot.lane.b32.xlu1 %v10146_v52, %s14065_s19  ;;  %10152 = vrot.lane.b32.xlu0 %v10151_v29, %s14066_s27  ;;  %v13490_v40 = vld [vmem:[#allocation3 + $0x67] sm:$0xff]  ;;  %v5948_v36 = vadd.f32 %v8256_v33, %v13329_v60  ;;  %v10166_v37 = vpack.i.bf16 %v13477_v2, %v6080_v46 }
 0xa64   : > { %v13492_v6 = vld [vmem:[#allocation3 + $0x68] sm:$0xff]  ;;  %8559 = vmatprep.mubr.msk.f32.mxu0 %vm562_vm0, %v6080_v46  ;;  %v10156_v38 = vpack.i.bf16 %v6078_v8, %v13490_v40  ;;  %vm5987_vm10 = vcmp.gt.f32.partialorder %v5979_v12, 0.0  ;;  %v5995_v21 = vmul.f32 0.01, %v5979_v12 }
 0xa65   : > { %v10161_v30 = vpack.i.bf16 %v13473_v18, %v13492_v6  ;;  %v5968_v14 = vmul.f32 %v13394_v57, %v5948_v36 }
 0xa66   : > { %v6003_v59 = vsel %vm5987_vm10, %v5979_v12, %v5995_v21  ;;  %v8257_v55 = vpop.f32.mrb[94].mxu1 }
 0xa67   : > { %10157 = vrot.lane.b32.xlu1 %v10156_v38, %s14067_s17  ;;  %10162 = vrot.lane.b32.xlu0 %v10161_v30, %s14065_s19  ;;  %6011 = vst.msk [vmem:[#allocation3 + $0x98] sm:$0xff] %vm562_vm0, %v6003_v59  ;;  %v5980_v60 = vadd.f32 %v13399_v20, %v5968_v14  ;;  %v8258_v44 = vpop.f32.mrb[95].mxu1  ;;  %v6081_v3 = vld [vmem:[#allocation3 + $0x81] sm:$0xff] }
 0xa68   : > { %v13505_v9 = vld [vmem:[#allocation3 + $0x7f] sm:$0xff]  ;;  %v8259_v10 = vadd.f32 %v8258_v44, %v8257_v55  ;;  %8560 = vmatmul.mubr.msk.f32.gmra.mrb[106].mxu0 %vm562_vm0, %v6081_v3  ;;  %v10181_v43 = vpack.i.bf16 %v13492_v6, %v6081_v3 }
 0xa69   : > { %v10171_v19 = vpack.i.bf16 %v6079_v7, %v13505_v9  ;;  %v13509_v61 = vld [vmem:[#allocation3 + $0x80] sm:$0xff]  ;;  %vm5988_vm11 = vcmp.gt.f32.partialorder %v5980_v60, 0.0  ;;  %v5996_v39 = vmul.f32 0.01, %v5980_v60 }
 0xa6a   : > { %v5953_v27 = vadd.f32 %v13327_v62, %v8259_v10  ;;  %v10176_v54 = vpack.i.bf16 %v13490_v40, %v13509_v61 }
 0xa6b   : > { %10167 = vrot.lane.b32.xlu1 %v10166_v37, %s14066_s27  ;;  %10172 = vrot.lane.b32.xlu0 %v10171_v19, %s14067_s17  ;;  %v6004_v0 = vsel %vm5988_vm11, %v5980_v60, %v5996_v39 }
 0xa6c   : > { %6012 = vst.msk [vmem:[#allocation3 + $0xb0] sm:$0xff] %vm562_vm0, %v6004_v0  ;;  %v5969_v51 = vmul.f32 %v13394_v57, %v5953_v27 }
 0xa6e   : > { %v5981_v45 = vadd.f32 %v13399_v20, %v5969_v51  ;;  %v6082_v13 = vld [vmem:[#allocation3 + $0x99] sm:$0xff] }
 0xa6f   : > { %10177 = vrot.lane.b32.xlu1 %v10176_v54, %s14065_s19  ;;  %10182 = vrot.lane.b32.xlu0 %v10181_v43, %s14066_s27  ;;  %v13522_v62 = vld [vmem:[#allocation3 + $0x97] sm:$0xff]  ;;  %v10196_v56 = vpack.i.bf16 %v13509_v61, %v6082_v13 }
 0xa70   : > { %v13524_v49 = vld [vmem:[#allocation3 + $0x98] sm:$0xff]  ;;  %8562 = vmatprep.mubr.msk.f32.mxu0 %vm562_vm0, %v6082_v13  ;;  %v10186_v11 = vpack.i.bf16 %v6080_v46, %v13522_v62  ;;  %vm5989_vm12 = vcmp.gt.f32.partialorder %v5981_v45, 0.0  ;;  %v5997_v8 = vmul.f32 0.01, %v5981_v45 }
 0xa71   : > { %v10191_v57 = vpack.i.bf16 %v13505_v9, %v13524_v49 }
 0xa72   : > { %v6005_v24 = vsel %vm5989_vm12, %v5981_v45, %v5997_v8 }
 0xa73   : > { %10187 = vrot.lane.b32.xlu1 %v10186_v11, %s14067_s17  ;;  %10192 = vrot.lane.b32.xlu0 %v10191_v57, %s14065_s19  ;;  %6013 = vst.msk [vmem:[#allocation3 + $0xc8] sm:$0xff] %vm562_vm0, %v6005_v24  ;;  %v6083_v20 = vld [vmem:[#allocation3 + $0xb1] sm:$0xff] }
 0xa74   : > { %v13534_v22 = vld [vmem:[#allocation3 + $0xaf] sm:$0xff]  ;;  %8563 = vmatmul.mubr.msk.f32.gmra.mrb[108].mxu0 %vm562_vm0, %v6083_v20  ;;  %v10211_v28 = vpack.i.bf16 %v13524_v49, %v6083_v20  ;;  %v10226_v16 = vpack.i.bf16 %v6083_v20, %v13227_v25 }
 0xa75   : > { %v10201_v41 = vpack.i.bf16 %v6081_v3, %v13534_v22  ;;  %v13538_v4 = vld [vmem:[#allocation3 + $0xb0] sm:$0xff] }
 0xa76   : > { %v10206_v48 = vpack.i.bf16 %v13522_v62, %v13538_v4 }
 0xa77   : > { %10197 = vrot.lane.b32.xlu1 %v10196_v56, %s14066_s27  ;;  %10202 = vrot.lane.b32.xlu0 %v10201_v41, %s14067_s17 }
 0xa7a   : > { %v6084_v26 = vld [vmem:[#allocation3 + $0xc9] sm:$0xff] }
 0xa7b   : > { %10207 = vrot.lane.b32.xlu1 %v10206_v48, %s14065_s19  ;;  %10212 = vrot.lane.b32.xlu0 %v10211_v28, %s14066_s27  ;;  %v6068_v7 = vld [vmem:[#allocation3 + $0xc7] sm:$0xff]  ;;  %v10231_v1 = vpack.i.bf16 %v13538_v4, %v6084_v26 }
 0xa7c   : > { %v13547_v42 = vld [vmem:[#allocation3 + $0xc8] sm:$0xff]  ;;  %8565 = vmatprep.mubr.msk.f32.mxu0 %vm562_vm0, %v6084_v26  ;;  %v10216_v32 = vpack.i.bf16 %v6082_v13, %v6068_v7  ;;  %v10236_v5 = vpack.i.bf16 %v6068_v7, %v13233_v34 }
 0xa7d   : > { %v10221_v31 = vpack.i.bf16 %v13534_v22, %v13547_v42  ;;  %8566 = vmatmul.mubr.msk.f32.gmra.mrb[110].mxu0 %vm562_vm0, %v6085_v47 }
 0xa7f   : > { %10217 = vrot.lane.b32.xlu1 %v10216_v32, %s14067_s17  ;;  %10222 = vrot.lane.b32.xlu0 %v10221_v31, %s14065_s19 }
 0xa83   : > { %10232 = vrot.lane.b32.xlu1 %v10231_v1, %s14066_s27  ;;  %10227 = vrot.lane.b32.xlu0 %v10226_v16, %s14067_s17 }
 0xa87   : > { %10237 = vrot.lane.b32.xlu1 %v10236_v5, %s14065_s19 }
 0xac4   : > { %v10123_v53 = vpop.permute.xlu0 %10122 }
 0xac5   : > { %v10125_v52 = vunpack.i.h.bf16 %v10123_v53  ;;  %v10124_v15 = vunpack.i.l.bf16 %v10123_v53 }
 0xac7   : > { %v6278_v25 = vsel %vm562_vm0, %v13239_v50, %v10125_v52  ;;  %v6302_v38 = vsel %vm562_vm0, %v13468_v63, %v10124_v15 }
 0xacc   : > { %v10133_v58 = vpop.permute.xlu0 %10132 }
 0xacd   : > { %v10128_v29 = vpop.permute.xlu1 %10127  ;;  %v10135_v33 = vunpack.i.h.bf16 %v10133_v58  ;;  %v10134_v12 = vunpack.i.l.bf16 %v10133_v58 }
 0xace   : > { %v10130_v46 = vunpack.i.h.bf16 %v10128_v29  ;;  %v10129_v36 = vunpack.i.l.bf16 %v10128_v29 }
 0xad0   : > { %v6286_v30 = vsel %vm1146_vm1, %v6278_v25, %v10130_v46  ;;  %v6310_v34 = vsel %vm1146_vm1, %v6302_v38, %v10129_v36 }
 0xad1   : > { %v10138_v21 = vpop.permute.xlu1 %10137  ;;  %v6318_v14 = vsel %vm1155_vm2, %v6310_v34, %v10134_v12  ;;  %v6294_v59 = vsel %vm1155_vm2, %v6286_v30, %v10135_v33  ;;  %v10143_v44 = vpop.permute.xlu0 %10142 }
 0xad2   : > { %v10140_v55 = vunpack.i.h.bf16 %v10138_v21  ;;  %v10139_v60 = vunpack.i.l.bf16 %v10138_v21  ;;  %6451 = vmatprep.mubr.f32.mxu1 %v6318_v14  ;;  %v10145_v3 = vunpack.i.h.bf16 %v10143_v44  ;;  %v10144_v37 = vunpack.i.l.bf16 %v10143_v44 }
 0xad3   : > { %6452 = vmatmul.mubr.f32.vlgmr.msra.gmra.mrb[96].mxu1 %v6294_v59 }
 0xad4   : > { %v6303_v50 = vsel %vm562_vm0, %v13455_v23, %v10139_v60  ;;  %v6279_v63 = vsel %vm562_vm0, %v13452_v17, %v10140_v55 }
 0xad5   : > { %v10148_v10 = vpop.permute.xlu1 %10147  ;;  %v10153_v27 = vpop.permute.xlu0 %10152  ;;  %v6311_v51 = vsel %vm1146_vm1, %v6303_v50, %v10144_v37  ;;  %v6287_v43 = vsel %vm1146_vm1, %v6279_v63, %v10145_v3 }
 0xad6   : > { %v10150_v19 = vunpack.i.h.bf16 %v10148_v10  ;;  %v10149_v39 = vunpack.i.l.bf16 %v10148_v10  ;;  %v10155_v0 = vunpack.i.h.bf16 %v10153_v27  ;;  %v10154_v54 = vunpack.i.l.bf16 %v10153_v27 }
 0xad8   : > { %v6319_v45 = vsel %vm1155_vm2, %v6311_v51, %v10149_v39  ;;  %v6295_v13 = vsel %vm1155_vm2, %v6287_v43, %v10150_v19  ;;  %v6304_v20 = vsel %vm562_vm0, %v13477_v2, %v10154_v54  ;;  %v6280_v56 = vsel %vm562_vm0, %v13457_v35, %v10155_v0 }
 0xad9   : > { %6456 = vmatprep.mubr.f32.mxu1 %v6319_v45  ;;  %v10158_v11 = vpop.permute.xlu1 %10157  ;;  %v10163_v17 = vpop.permute.xlu0 %10162 }
 0xada   : > { %v10160_v23 = vunpack.i.h.bf16 %v10158_v11  ;;  %v10159_v57 = vunpack.i.l.bf16 %v10158_v11  ;;  %6457 = vmatmul.mubr.f32.gmra.mrb[98].mxu1 %v6295_v13  ;;  %v10165_v8 = vunpack.i.h.bf16 %v10163_v17  ;;  %v10164_v24 = vunpack.i.l.bf16 %v10163_v17 }
 0xadc   : > { %v6312_v41 = vsel %vm1146_vm1, %v6304_v20, %v10159_v57  ;;  %v6288_v48 = vsel %vm1146_vm1, %v6280_v56, %v10160_v23 }
 0xadd   : > { %v10168_v28 = vpop.permute.xlu1 %10167  ;;  %v6320_v47 = vsel %vm1155_vm2, %v6312_v41, %v10164_v24  ;;  %v6296_v26 = vsel %vm1155_vm2, %v6288_v48, %v10165_v8  ;;  %v10173_v31 = vpop.permute.xlu0 %10172 }
 0xade   : > { %v10170_v7 = vunpack.i.h.bf16 %v10168_v28  ;;  %v10169_v32 = vunpack.i.l.bf16 %v10168_v28  ;;  %6461 = vmatprep.mubr.f32.mxu1 %v6320_v47  ;;  %v10175_v1 = vunpack.i.h.bf16 %v10173_v31  ;;  %v10174_v16 = vunpack.i.l.bf16 %v10173_v31 }
 0xadf   : > { %6462 = vmatmul.mubr.f32.gmra.mrb[100].mxu1 %v6296_v26 }
 0xae0   : > { %v6305_v2 = vsel %vm562_vm0, %v13492_v6, %v10169_v32  ;;  %v6281_v35 = vsel %vm562_vm0, %v13473_v18, %v10170_v7 }
 0xae1   : > { %v10178_v5 = vpop.permute.xlu1 %10177  ;;  %v10183_v15 = vpop.permute.xlu0 %10182  ;;  %v6313_v33 = vsel %vm1146_vm1, %v6305_v2, %v10174_v16  ;;  %v6289_v12 = vsel %vm1146_vm1, %v6281_v35, %v10175_v1 }
 0xae2   : > { %v10180_v53 = vunpack.i.h.bf16 %v10178_v5  ;;  %v10179_v52 = vunpack.i.l.bf16 %v10178_v5  ;;  %v10185_v58 = vunpack.i.h.bf16 %v10183_v15  ;;  %v10184_v29 = vunpack.i.l.bf16 %v10183_v15 }
 0xae4   : > { %v6321_v46 = vsel %vm1155_vm2, %v6313_v33, %v10179_v52  ;;  %v6297_v36 = vsel %vm1155_vm2, %v6289_v12, %v10180_v53  ;;  %v6306_v21 = vsel %vm562_vm0, %v13509_v61, %v10184_v29  ;;  %v6282_v14 = vsel %vm562_vm0, %v13490_v40, %v10185_v58 }
 0xae5   : > { %v10188_v25 = vpop.permute.xlu1 %10187  ;;  %6466 = vmatprep.mubr.f32.mxu1 %v6321_v46  ;;  %v10193_v30 = vpop.permute.xlu0 %10192 }
 0xae6   : > { %v10190_v6 = vunpack.i.h.bf16 %v10188_v25  ;;  %v10189_v38 = vunpack.i.l.bf16 %v10188_v25  ;;  %6467 = vmatmul.mubr.f32.gmra.mrb[102].mxu1 %v6297_v36  ;;  %v10195_v18 = vunpack.i.h.bf16 %v10193_v30  ;;  %v10194_v34 = vunpack.i.l.bf16 %v10193_v30  ;;  %v6967_v30 = vld [vmem:[%s14046_s14] sm:$0xff] }
 0xae8   : > { %v6314_v59 = vsel %vm1146_vm1, %v6306_v21, %v10189_v38  ;;  %v6290_v55 = vsel %vm1146_vm1, %v6282_v14, %v10190_v6  ;;  %v6983_v6 = vld [vmem:[%s14046_s14 + $0x80] sm:$0xff]  ;;  %v6984_v38 = vld [vmem:[%s14046_s14 + $0x88] sm:$0xff]  ;;  %v6985_v21 = vld [vmem:[%s14046_s14 + $0x90] sm:$0xff] }
 0xae9   : > { %v10198_v60 = vpop.permute.xlu1 %10197  ;;  %v6322_v44 = vsel %vm1155_vm2, %v6314_v59, %v10194_v34  ;;  %v6298_v3 = vsel %vm1155_vm2, %v6290_v55, %v10195_v18  ;;  %v10203_v63 = vpop.permute.xlu0 %10202  ;;  %v8972_v18 = vpack.c.bf16 %v6984_v38, %v6983_v6  ;;  %v6968_v34 = vld [vmem:[%s14046_s14 + $0x8] sm:$0xff]  ;;  %v6986_v14 = vld [vmem:[%s14046_s14 + $0x98] sm:$0xff] }
 0xaea   : > { %v10200_v37 = vunpack.i.h.bf16 %v10198_v60  ;;  %v10199_v50 = vunpack.i.l.bf16 %v10198_v60  ;;  %6471 = vmatprep.mubr.f32.mxu1 %v6322_v44  ;;  %v10205_v10 = vunpack.i.h.bf16 %v10203_v63  ;;  %v10204_v19 = vunpack.i.l.bf16 %v10203_v63  ;;  %v6969_v60 = vld [vmem:[%s14046_s14 + $0x10] sm:$0xff]  ;;  %v6970_v44 = vld [vmem:[%s14046_s14 + $0x18] sm:$0xff] }
 0xaeb   : > { %6472 = vmatmul.mubr.f32.gmra.mrb[104].mxu1 %v6298_v3  ;;  %v8974_v59 = vpack.c.bf16 %v6968_v34, %v6967_v30  ;;  %v8976_v55 = vpack.c.bf16 %v6986_v14, %v6985_v21  ;;  %v6987_v3 = vld [vmem:[%s14046_s14 + $0xa0] sm:$0xff]  ;;  %8973 = vmatprep.subr.bf16.mxu0 %v8972_v18  ;;  %v6997_v21 = vld [vmem:[%s14046_s14 + $0xf0] sm:$0xff]  ;;  %v6998_v14 = vld [vmem:[%s14046_s14 + $0xf8] sm:$0xff] }
 0xaec   : > { %v6307_v61 = vsel %vm562_vm0, %v13524_v49, %v10199_v50  ;;  %v6283_v40 = vsel %vm562_vm0, %v13505_v9, %v10200_v37  ;;  %v6988_v37 = vld [vmem:[%s14046_s14 + $0xa8] sm:$0xff]  ;;  %9012 = vmatprep.subr.bf16.mxu1 %v8972_v18  ;;  %v8978_v50 = vpack.c.bf16 %v6970_v44, %v6969_v60  ;;  %v9000_v60 = vpack.c.bf16 %v6998_v14, %v6997_v21  ;;  %v6982_v44 = vld [vmem:[%s14046_s14 + $0x78] sm:$0xff] }
 0xaed   : > { %v10208_v39 = vpop.permute.xlu1 %10207  ;;  %v10213_v54 = vpop.permute.xlu0 %10212  ;;  %v6315_v45 = vsel %vm1146_vm1, %v6307_v61, %v10204_v19  ;;  %v6291_v13 = vsel %vm1146_vm1, %v6283_v40, %v10205_v10  ;;  %8975 = vmatpush3.bf16.msra.mxu0 %v8974_v59  ;;  %9020 = vmatpush3.bf16.msra.mxu1 %v8974_v59  ;;  %v8980_v63 = vpack.c.bf16 %v6988_v37, %v6987_v3  ;;  %v6971_v10 = vld [vmem:[%s14046_s14 + $0x20] sm:$0xff]  ;;  %v6972_v19 = vld [vmem:[%s14046_s14 + $0x28] sm:$0xff]  ;;  %v6989_v61 = vld [vmem:[%s14046_s14 + $0xb0] sm:$0xff] }
 0xaee   : > { %v10210_v27 = vunpack.i.h.bf16 %v10208_v39  ;;  %v10209_v0 = vunpack.i.l.bf16 %v10208_v39  ;;  %v10215_v51 = vunpack.i.h.bf16 %v10213_v54  ;;  %v10214_v43 = vunpack.i.l.bf16 %v10213_v54  ;;  %8977 = vmatprep.subr.bf16.mxu0 %v8976_v55  ;;  %9013 = vmatprep.subr.bf16.mxu1 %v8976_v55  ;;  %v6990_v40 = vld [vmem:[%s14046_s14 + $0xb8] sm:$0xff] }
 0xaef   : > { %v8982_v39 = vpack.c.bf16 %v6972_v19, %v6971_v10  ;;  %v6974_v54 = vld [vmem:[%s14046_s14 + $0x38] sm:$0xff] }
 0xaf0   : > { %v6323_v11 = vsel %vm1155_vm2, %v6315_v45, %v10209_v0  ;;  %v6299_v23 = vsel %vm1155_vm2, %v6291_v13, %v10210_v27  ;;  %v6308_v20 = vsel %vm562_vm0, %v13538_v4, %v10214_v43  ;;  %v6284_v56 = vsel %vm562_vm0, %v13522_v62, %v10215_v51  ;;  %v6973_v0 = vld [vmem:[%s14046_s14 + $0x30] sm:$0xff]  ;;  %v6991_v51 = vld [vmem:[%s14046_s14 + $0xc0] sm:$0xff]  ;;  %v6992_v43 = vld [vmem:[%s14046_s14 + $0xc8] sm:$0xff] }
 0xaf1   : > { %v10218_v57 = vpop.permute.xlu1 %10217  ;;  %6476 = vmatprep.mubr.f32.mxu1 %v6323_v11  ;;  %v10223_v8 = vpop.permute.xlu0 %10222  ;;  %8979 = vmatpush3.bf16.msra.mxu0 %v8978_v50  ;;  %v8984_v27 = vpack.c.bf16 %v6990_v40, %v6989_v61  ;;  %v8986_v45 = vpack.c.bf16 %v6974_v54, %v6973_v0  ;;  %v8988_v13 = vpack.c.bf16 %v6992_v43, %v6991_v51  ;;  %v6975_v11 = vld [vmem:[%s14046_s14 + $0x40] sm:$0xff]  ;;  %v6663_v55 = vld [vmem:[#allocation3 + $0x8] sm:$0xff] }
 0xaf2   : > { %v10220_v49 = vunpack.i.h.bf16 %v10218_v57  ;;  %v10219_v17 = vunpack.i.l.bf16 %v10218_v57  ;;  %6477 = vmatmul.mubr.f32.gmra.mrb[106].mxu1 %v6299_v23  ;;  %v10225_v9 = vunpack.i.h.bf16 %v10223_v8  ;;  %v10224_v24 = vunpack.i.l.bf16 %v10223_v8  ;;  %8981 = vmatprep.subr.bf16.mxu0 %v8980_v63  ;;  %v6976_v23 = vld [vmem:[%s14046_s14 + $0x48] sm:$0xff] }
 0xaf3   : > { %9021 = vmatpush3.bf16.msra.mxu1 %v8978_v50  ;;  %v8990_v57 = vpack.c.bf16 %v6976_v23, %v6975_v11 }
 0xaf4   : > { %v6316_v41 = vsel %vm1146_vm1, %v6308_v20, %v10219_v17  ;;  %v6292_v48 = vsel %vm1146_vm1, %v6284_v56, %v10220_v49  ;;  %9014 = vmatprep.subr.bf16.mxu1 %v8980_v63  ;;  %v13707_v20 = vld [vmem:[%s14043_s11 + $0x2] ss:$0 sm:$0xff] }
 0xaf5   : > { %v10233_v28 = vpop.permute.xlu1 %10232  ;;  %v6324_v47 = vsel %vm1155_vm2, %v6316_v41, %v10224_v24  ;;  %v6300_v26 = vsel %vm1155_vm2, %v6292_v48, %v10225_v9  ;;  %v10228_v31 = vpop.permute.xlu0 %10227  ;;  %8983 = vmatpush3.bf16.msra.mxu0 %v8982_v39  ;;  %v13702_v9 = vld [vmem:[%s14042_s10 + $0x2] ss:$0 sm:$0xff] }
 0xaf6   : > { %v10235_v7 = vunpack.i.h.bf16 %v10233_v28  ;;  %v10234_v32 = vunpack.i.l.bf16 %v10233_v28  ;;  %6481 = vmatprep.mubr.f32.mxu1 %v6324_v47  ;;  %v10230_v1 = vunpack.i.h.bf16 %v10228_v31  ;;  %v10229_v16 = vunpack.i.l.bf16 %v10228_v31  ;;  %8985 = vmatprep.subr.bf16.mxu0 %v8984_v27 }
 0xaf7   : > { %6482 = vmatmul.mubr.f32.gmra.mrb[108].mxu1 %v6300_v26  ;;  %v6993_v26 = vld [vmem:[%s14046_s14 + $0xd0] sm:$0xff] }
 0xaf8   : > { %v6309_v4 = vsel %vm562_vm0, %v13547_v42, %v10234_v32  ;;  %v6285_v62 = vsel %vm562_vm0, %v13534_v22, %v10235_v7  ;;  %9022 = vmatpush3.bf16.msra.mxu1 %v8982_v39  ;;  %v6994_v7 = vld [vmem:[%s14046_s14 + $0xd8] sm:$0xff] }
 0xaf9   : > { %v10238_v2 = vpop.permute.xlu1 %10237  ;;  %v6317_v53 = vsel %vm1146_vm1, %v6309_v4, %v10229_v16  ;;  %v6293_v52 = vsel %vm1146_vm1, %v6285_v62, %v10230_v1  ;;  %9015 = vmatprep.subr.bf16.mxu1 %v8984_v27  ;;  %8987 = vmatpush3.bf16.msra.mxu0 %v8986_v45  ;;  %v8992_v31 = vpack.c.bf16 %v6994_v7, %v6993_v26  ;;  %v6977_v1 = vld [vmem:[%s14046_s14 + $0x50] sm:$0xff]  ;;  %v6978_v16 = vld [vmem:[%s14046_s14 + $0x58] sm:$0xff] }
 0xafa   : > { %v10240_v35 = vunpack.i.h.bf16 %v10238_v2  ;;  %v10239_v5 = vunpack.i.l.bf16 %v10238_v2  ;;  %8989 = vmatprep.subr.bf16.mxu0 %v8988_v13  ;;  %v8994_v62 = vpack.c.bf16 %v6978_v16, %v6977_v1 }
 0xafc   : > { %v6325_v15 = vsel %vm1155_vm2, %v6317_v53, %v10239_v5  ;;  %v6301_v58 = vsel %vm1155_vm2, %v6293_v52, %v10240_v35  ;;  %9023 = vmatpush3.bf16.msra.mxu1 %v8986_v45  ;;  %v6995_v5 = vld [vmem:[%s14046_s14 + $0xe0] sm:$0xff]  ;;  %v6996_v53 = vld [vmem:[%s14046_s14 + $0xe8] sm:$0xff] }
 0xafd   : > { %6486 = vmatprep.mubr.f32.mxu1 %v6325_v15  ;;  %9016 = vmatprep.subr.bf16.mxu1 %v8988_v13  ;;  %v6979_v52 = vld [vmem:[%s14046_s14 + $0x60] sm:$0xff] }
 0xafe   : > { %6487 = vmatmul.mubr.f32.gmra.mrb[110].mxu1 %v6301_v58  ;;  %8991 = vmatpush3.bf16.msra.mxu0 %v8990_v57  ;;  %v6671_v45 = vld [vmem:[#allocation3 + $0x9] sm:$0xff] }
 0xaff   : > { %8993 = vmatprep.subr.bf16.mxu0 %v8992_v31 }
 0xb00   : > { %9024 = vmatpush3.bf16.msra.mxu1 %v8990_v57 }
 0xb01   : > { %9017 = vmatprep.subr.bf16.mxu1 %v8992_v31 }
 0xb02   : > { %8995 = vmatpush3.bf16.msra.mxu0 %v8994_v62 }
 0xb04   : > { %9025 = vmatpush3.bf16.msra.mxu1 %v8994_v62 }
 0xb2f   : > { %v13625_v29 = vpop.f32.mrb[104].mxu0 }
 0xb30   : > { %v6558_v33 = vpop.f32.mrb[105].mxu0 }
 0xb3b   : > { %v13627_v42 = vpop.f32.mrb[106].mxu0 }
 0xb3c   : > { %v13629_v12 = vpop.f32.mrb[107].mxu0 }
 0xb47   : > { %v13631_v22 = vpop.f32.mrb[108].mxu0 }
 0xb48   : > { %v13633_v46 = vpop.f32.mrb[109].mxu0 }
 0xb50   : > { %v13635_v36 = vpop.f32.mrb[110].mxu0 }
 0xb51   : > { %v13637_v25 = vpop.f32.mrb[111].mxu0 }
 0xba6   : > { %v8304_v49 = vpop.f32.mrb[96].mxu1 }
 0xba7   : > { %v8305_v17 = vpop.f32.mrb[97].mxu1 }
 0xba8   : > { %v8306_v8 = vadd.f32 %v8305_v17, %v8304_v49 }
 0xbaa   : > { %v6559_v24 = vadd.f32 %v8306_v8, %v6558_v33  ;;  %v6980_v33 = vld [vmem:[%s14046_s14 + $0x68] sm:$0xff] }
 0xbab   : > { %v8998_v38 = vpack.c.bf16 %v6980_v33, %v6979_v52 }
 0xbac   : > { %v6603_v56 = vmul.f32 %v13702_v9, %v6559_v24 }
 0xbad   : > { %v8307_v41 = vpop.f32.mrb[98].mxu1 }
 0xbae   : > { %v6615_v48 = vadd.f32 %v13707_v20, %v6603_v56  ;;  %v8308_v28 = vpop.f32.mrb[99].mxu1 }
 0xbaf   : > { %v8309_v47 = vadd.f32 %v8308_v28, %v8307_v41 }
 0xbb0   : > { %vm6623_vm13 = vcmp.gt.f32.partialorder %v6615_v48, 0.0  ;;  %v6631_v32 = vmul.f32 0.01, %v6615_v48 }
 0xbb1   : > { %v6564_v4 = vadd.f32 %v13625_v29, %v8309_v47  ;;  %v8996_v29 = vpack.c.bf16 %v6996_v53, %v6995_v5 }
 0xbb2   : > { %v6639_v2 = vsel %vm6623_vm13, %v6615_v48, %v6631_v32  ;;  %v8310_v35 = vpop.f32.mrb[100].mxu1 }
 0xbb3   : > { %6647 = vst.msk [vmem:[#allocation3 + $0x20] sm:$0xff] %vm562_vm0, %v6639_v2  ;;  %v6604_v15 = vmul.f32 %v13702_v9, %v6564_v4  ;;  %v8311_v58 = vpop.f32.mrb[101].mxu1  ;;  %8997 = vmatprep.subr.bf16.mxu0 %v8996_v29  ;;  %9018 = vmatprep.subr.bf16.mxu1 %v8996_v29  ;;  %v6710_v4 = vld [vmem:[#allocation3 + $0xdf] sm:$0xff] }
 0xbb4   : > { %v8312_v6 = vadd.f32 %v8311_v58, %v8310_v35  ;;  %8999 = vmatpush3.bf16.msra.mxu0 %v8998_v38  ;;  %9026 = vmatpush3.bf16.msra.mxu1 %v8998_v38 }
 0xbb5   : > { %v6616_v30 = vadd.f32 %v13707_v20, %v6604_v15  ;;  %9001 = vmatprep.subr.bf16.mxu0 %v9000_v60  ;;  %9019 = vmatprep.subr.bf16.mxu1 %v9000_v60  ;;  %v6718_v15 = vld [vmem:[#allocation3 + $0xe0] sm:$0xff] }
 0xbb6   : > { %v6569_v18 = vadd.f32 %v8312_v6, %v13629_v12  ;;  %v6981_v12 = vld [vmem:[%s14046_s14 + $0x70] sm:$0xff] }
 0xbb7   : > { %vm6624_vm14 = vcmp.gt.f32.partialorder %v6616_v30, 0.0  ;;  %v6632_v34 = vmul.f32 0.01, %v6616_v30  ;;  %v9002_v50 = vpack.c.bf16 %v6982_v44, %v6981_v12 }
 0xbb8   : > { %v6605_v59 = vmul.f32 %v13702_v9, %v6569_v18 }
 0xbb9   : > { %v6640_v3 = vsel %vm6624_vm14, %v6616_v30, %v6632_v34  ;;  %v8313_v37 = vpop.f32.mrb[102].mxu1  ;;  %9003 = vmatpush3.bf16.msra.mxu0 %v9002_v50  ;;  %9027 = vmatpush3.bf16.msra.mxu1 %v9002_v50 }
 0xbba   : > { %6648 = vst.msk [vmem:[#allocation3 + $0x38] sm:$0xff] %vm562_vm0, %v6640_v3  ;;  %v6617_v63 = vadd.f32 %v13707_v20, %v6605_v59  ;;  %v8314_v10 = vpop.f32.mrb[103].mxu1  ;;  %v13755_v19 = vld [vmem:[#allocation3 + $0x21] sm:$0xff] }
 0xbbb   : > { %v8315_v61 = vadd.f32 %v8314_v10, %v8313_v37  ;;  %v10241_v40 = vpack.i.bf16 %v6663_v55, %v13755_v19  ;;  %v13763_v23 = vld [vmem:[#allocation3 + $0x1f] sm:$0xff] }
 0xbbc   : > { %vm6625_vm15 = vcmp.gt.f32.partialorder %v6617_v63, 0.0  ;;  %v6633_v39 = vmul.f32 0.01, %v6617_v63  ;;  %v13812_v50 = vld [vmem:[#allocation3 + $0x20] sm:$0xff] }
 0xbbd   : > { %v6574_v27 = vadd.f32 %v13627_v42, %v8315_v61  ;;  %10242 = vrot.lane.b32.xlu0 %v10241_v40, %s14066_s27 }
 0xbbe   : > { %v6641_v0 = vsel %vm6625_vm15, %v6617_v63, %v6633_v39  ;;  %v8316_v54 = vpop.f32.mrb[104].mxu1 }
 0xbbf   : > { %6649 = vst.msk [vmem:[#allocation3 + $0x50] sm:$0xff] %vm562_vm0, %v6641_v0  ;;  %v6606_v51 = vmul.f32 %v13702_v9, %v6574_v27  ;;  %v8317_v43 = vpop.f32.mrb[105].mxu1 }
 0xbc0   : > { %v8318_v13 = vadd.f32 %v8317_v43, %v8316_v54  ;;  %v7000_v43 = vld [vmem:[%s14046_s14 + $0x108] sm:$0xff] }
 0xbc1   : > { %v6618_v11 = vadd.f32 %v13707_v20, %v6606_v51  ;;  %v13765_v57 = vld [vmem:[#allocation3 + $0x38] sm:$0xff] }
 0xbc2   : > { %v13767_v49 = vld [vmem:[#allocation3 + $0x37] sm:$0xff]  ;;  %v6579_v42 = vadd.f32 %v8318_v13, %v13633_v46  ;;  %v10251_v17 = vpack.i.bf16 %v13763_v23, %v13765_v57 }
 0xbc3   : > { %v10246_v8 = vpack.i.bf16 %v6671_v45, %v13767_v49  ;;  %vm6626_vm3 = vcmp.gt.f32.partialorder %v6618_v11, 0.0  ;;  %v6634_v24 = vmul.f32 0.01, %v6618_v11 }
 0xbc4   : > { %v6607_v56 = vmul.f32 %v13702_v9, %v6579_v42  ;;  %10252 = vrot.lane.b32.xlu0 %v10251_v17, %s14065_s19 }
 0xbc5   : > { %10247 = vrot.lane.b32.xlu1 %v10246_v8, %s14067_s17  ;;  %v6642_v41 = vsel %vm6626_vm3, %v6618_v11, %v6634_v24  ;;  %v8319_v48 = vpop.f32.mrb[106].mxu1 }
 0xbc6   : > { %6650 = vst.msk [vmem:[#allocation3 + $0x68] sm:$0xff] %vm562_vm0, %v6642_v41  ;;  %v6619_v28 = vadd.f32 %v13707_v20, %v6607_v56  ;;  %v8320_v46 = vpop.f32.mrb[107].mxu1  ;;  %v13793_v30 = vld [vmem:[#allocation3 + $0x51] sm:$0xff] }
 0xbc7   : > { %v8321_v47 = vadd.f32 %v8320_v46, %v8319_v48  ;;  %v13804_v60 = vld [vmem:[#allocation3 + $0x50] sm:$0xff] }
 0xbc8   : > { %vm6627_vm4 = vcmp.gt.f32.partialorder %v6619_v28, 0.0  ;;  %v6635_v26 = vmul.f32 0.01, %v6619_v28  ;;  %v13847_v13 = vld [vmem:[#allocation3 + $0x4f] sm:$0xff] }
 0xbc9   : > { %v6584_v7 = vadd.f32 %v13631_v22, %v8321_v47 }
 0xbca   : > { %v6643_v32 = vsel %vm6627_vm4, %v6619_v28, %v6635_v26  ;;  %v8322_v31 = vpop.f32.mrb[108].mxu1 }
 0xbcb   : > { %6651 = vst.msk [vmem:[#allocation3 + $0x80] sm:$0xff] %vm562_vm0, %v6643_v32  ;;  %v6608_v1 = vmul.f32 %v13702_v9, %v6584_v7  ;;  %v8323_v16 = vpop.f32.mrb[109].mxu1 }
 0xbcc   : > { %v8324_v62 = vadd.f32 %v8323_v16, %v8322_v31 }
 0xbcd   : > { %v6620_v2 = vadd.f32 %v13707_v20, %v6608_v1  ;;  %v13782_v35 = vld [vmem:[#allocation3 + $0x67] sm:$0xff] }
 0xbce   : > { %v6589_v5 = vadd.f32 %v8324_v62, %v13637_v25  ;;  %v10256_v53 = vpack.i.bf16 %v6710_v4, %v13782_v35  ;;  %v13786_v22 = vld [vmem:[#allocation3 + $0x68] sm:$0xff] }
 0xbcf   : > { %vm6628_vm5 = vcmp.gt.f32.partialorder %v6620_v2, 0.0  ;;  %v6636_v52 = vmul.f32 0.01, %v6620_v2  ;;  %v10261_v25 = vpack.i.bf16 %v6718_v15, %v13786_v22  ;;  %v13799_v14 = vld [vmem:[#allocation3 + $0x69] sm:$0xff] }
 0xbd0   : > { %v6609_v58 = vmul.f32 %v13702_v9, %v6589_v5  ;;  %10257 = vrot.lane.b32.xlu1 %v10256_v53, %s14067_s17  ;;  %v10266_v44 = vpack.i.bf16 %v13804_v60, %v13799_v14  ;;  %v6655_v5 = vld [vmem:[#allocation3 + $0x7] sm:$0xff] }
 0xbd1   : > { %v6644_v29 = vsel %vm6628_vm5, %v6620_v2, %v6636_v52  ;;  %v8325_v33 = vpop.f32.mrb[110].mxu1 }
 0xbd2   : > { %6652 = vst.msk [vmem:[#allocation3 + $0x98] sm:$0xff] %vm562_vm0, %v6644_v29  ;;  %v6621_v6 = vadd.f32 %v13707_v20, %v6609_v58  ;;  %v8326_v38 = vpop.f32.mrb[111].mxu1  ;;  %v13795_v18 = vld [vmem:[#allocation3 + $0x7f] sm:$0xff] }
 0xbd3   : > { %v8327_v34 = vadd.f32 %v8326_v38, %v8325_v33  ;;  %v10271_v21 = vpack.i.bf16 %v13793_v30, %v13795_v18  ;;  %v13865_v48 = vld [vmem:[#allocation3 + $0x81] sm:$0xff] }
 0xbd4   : > { %vm6629_vm6 = vcmp.gt.f32.partialorder %v6621_v6, 0.0  ;;  %v6637_v59 = vmul.f32 0.01, %v6621_v6  ;;  %10262 = vrot.lane.b32.xlu1 %v10261_v25, %s14065_s19  ;;  %v13867_v28 = vld [vmem:[#allocation3 + $0x80] sm:$0xff]  ;;  %v10331_v46 = vpack.i.bf16 %v13786_v22, %v13865_v48 }
 0xbd5   : > { %v6594_v55 = vadd.f32 %v13635_v36, %v8327_v34  ;;  %10272 = vrot.lane.b32.xlu0 %v10271_v21, %s14067_s17  ;;  %v10321_v47 = vpack.i.bf16 %v13782_v35, %v13867_v28 }
 0xbd6   : > { %v6645_v12 = vsel %vm6629_vm6, %v6621_v6, %v6637_v59 }
 0xbd7   : > { %6653 = vst.msk [vmem:[#allocation3 + $0xb0] sm:$0xff] %vm562_vm0, %v6645_v12  ;;  %v6610_v3 = vmul.f32 %v13702_v9, %v6594_v55 }
 0xbd8   : > { %10267 = vrot.lane.b32.xlu1 %v10266_v44, %s14066_s27 }
 0xbd9   : > { %v6622_v37 = vadd.f32 %v13707_v20, %v6610_v3  ;;  %v13814_v63 = vld [vmem:[#allocation3 + $0x98] sm:$0xff] }
 0xbda   : > { %v10276_v36 = vpack.i.bf16 %v13814_v63, %v13812_v50  ;;  %v13818_v61 = vld [vmem:[#allocation3 + $0x99] sm:$0xff]  ;;  %v10341_v7 = vpack.i.bf16 %v13795_v18, %v13814_v63 }
 0xbdb   : > { %vm6630_vm7 = vcmp.gt.f32.partialorder %v6622_v37, 0.0  ;;  %v6638_v10 = vmul.f32 0.01, %v6622_v37  ;;  %v10281_v9 = vpack.i.bf16 %v13818_v61, %v13755_v19  ;;  %v13824_v20 = vld [vmem:[#allocation3 + $0x39] sm:$0xff]  ;;  %v6999_v19 = vld [vmem:[%s14046_s14 + $0x100] sm:$0xff]  ;;  %v10346_v1 = vpack.i.bf16 %v13867_v28, %v13818_v61 }
 0xbdc   : > { %10277 = vrot.lane.b32.xlu0 %v10276_v36, %s14066_s27  ;;  %v13845_v45 = vpack.c.bf16 %v7000_v43, %v6999_v19  ;;  %v13875_v26 = vld [vmem:[#allocation3 + $0x97] sm:$0xff] }
 0xbdd   : > { %v6646_v40 = vsel %vm6630_vm7, %v6622_v37, %v6638_v10  ;;  %v10336_v32 = vpack.i.bf16 %v13799_v14, %v13875_v26 }
 0xbde   : > { %6654 = vst.msk [vmem:[#allocation3 + $0xc8] sm:$0xff] %vm562_vm0, %v6646_v40  ;;  %v13826_v39 = vld [vmem:[#allocation3 + $0xb1] sm:$0xff]  ;;  %9005 = vmatprep.subr.bf16.mxu1 %v13845_v45  ;;  %v7001_v40 = vld [vmem:[%s14046_s14 + $0x110] sm:$0xff] }
 0xbdf   : > { %v10286_v27 = vpack.i.bf16 %v13826_v39, %v13824_v20  ;;  %v13830_v0 = vld [vmem:[#allocation3 + $0xaf] sm:$0xff] }
 0xbe0   : > { %10282 = vrot.lane.b32.xlu0 %v10281_v9, %s14067_s17  ;;  %v10291_v54 = vpack.i.bf16 %v13830_v0, %v13767_v49  ;;  %v13836_v51 = vld [vmem:[#allocation3 + $0xb0] sm:$0xff]  ;;  %v10351_v31 = vpack.i.bf16 %v13865_v48, %v13830_v0  ;;  %v7002_v9 = vld [vmem:[%s14046_s14 + $0x118] sm:$0xff] }
 0xbe1   : > { %10287 = vrot.lane.b32.xlu1 %v10286_v27, %s14066_s27  ;;  %v10296_v42 = vpack.i.bf16 %v13836_v51, %v13765_v57  ;;  %v10356_v16 = vpack.i.bf16 %v13875_v26, %v13836_v51 }
 0xbe4   : > { %10292 = vrot.lane.b32.xlu0 %v10291_v54, %s14065_s19 }
 0xbe5   : > { %v6709_v11 = vld [vmem:[#allocation3 + $0xc7] sm:$0xff] }
 0xbe6   : > { %v10306_v17 = vpack.i.bf16 %v6709_v11, %v13847_v13  ;;  %v13853_v8 = vld [vmem:[#allocation3 + $0xc8] sm:$0xff] }
 0xbe7   : > { %v10311_v24 = vpack.i.bf16 %v13853_v8, %v13804_v60  ;;  %v13859_v56 = vld [vmem:[#allocation3 + $0xc9] sm:$0xff] }
 0xbe8   : > { %10297 = vrot.lane.b32.xlu0 %v10296_v42, %s14066_s27  ;;  %10307 = vrot.lane.b32.xlu1 %v10306_v17, %s14067_s17  ;;  %v10316_v41 = vpack.i.bf16 %v13859_v56, %v13793_v30  ;;  %v13918_v42 = vpack.c.bf16 %v7002_v9, %v7001_v40 }
 0xbec   : > { %10302 = vrot.lane.b32.xlu0 %v10286_v27, %s14067_s17  ;;  %10312 = vrot.lane.b32.xlu1 %v10311_v24, %s14065_s19 }
 0xbf0   : > { %10327 = vrot.lane.b32.xlu0 %v10306_v17, %s14065_s19  ;;  %10317 = vrot.lane.b32.xlu1 %v10316_v41, %s14066_s27 }
 0xbf4   : > { %10332 = vrot.lane.b32.xlu0 %v10331_v46, %s14066_s27  ;;  %10322 = vrot.lane.b32.xlu1 %v10321_v47, %s14065_s19 }
 0xbf8   : > { %10342 = vrot.lane.b32.xlu0 %v10341_v7, %s14065_s19  ;;  %10337 = vrot.lane.b32.xlu1 %v10336_v32, %s14067_s17 }
 0xbfc   : > { %10352 = vrot.lane.b32.xlu0 %v10351_v31, %s14067_s17  ;;  %10347 = vrot.lane.b32.xlu1 %v10346_v1, %s14066_s27 }
 0xc00   : > { %10357 = vrot.lane.b32.xlu1 %v10356_v16, %s14065_s19 }
 0xc2f   : > { %v10243_v4 = vpop.permute.xlu0 %10242 }
 0xc30   : > { %v10245_v62 = vunpack.i.h.bf16 %v10243_v4  ;;  %v10244_v2 = vunpack.i.l.bf16 %v10243_v4 }
 0xc32   : > { %v6919_v6 = vsel %vm562_vm0, %v6655_v5, %v10245_v62  ;;  %v6943_v38 = vsel %vm562_vm0, %v13812_v50, %v10244_v2 }
 0xc36   : > { %v10253_v53 = vpop.permute.xlu0 %10252 }
 0xc37   : > { %v10248_v52 = vpop.permute.xlu1 %10247  ;;  %v10255_v15 = vunpack.i.h.bf16 %v10253_v53  ;;  %v10254_v58 = vunpack.i.l.bf16 %v10253_v53 }
 0xc38   : > { %v10250_v29 = vunpack.i.h.bf16 %v10248_v52  ;;  %v10249_v33 = vunpack.i.l.bf16 %v10248_v52 }
 0xc3a   : > { %v6927_v25 = vsel %vm1146_vm1, %v6919_v6, %v10250_v29  ;;  %v6951_v34 = vsel %vm1146_vm1, %v6943_v38, %v10249_v33 }
 0xc3b   : > { %v6959_v21 = vsel %vm1155_vm2, %v6951_v34, %v10254_v58  ;;  %v6935_v59 = vsel %vm1155_vm2, %v6927_v25, %v10255_v15 }
 0xc3c   : > { %7098 = vmatprep.mubr.f32.mxu0 %v6959_v21 }
 0xc3d   : > { %7099 = vmatmul.mubr.f32.vlgmr.msra.gmra.mrb[112].mxu0 %v6935_v59 }
 0xc42   : > { %v13901_v55 = vpop.permute.xlu1 %10257 }
 0xc43   : > { %v10260_v19 = vunpack.i.h.bf16 %v13901_v55  ;;  %v10259_v47 = vunpack.i.l.bf16 %v13901_v55 }
 0xc46   : > { %v13905_v44 = vpop.permute.xlu1 %10262 }
 0xc47   : > { %v13903_v12 = vpop.permute.xlu0 %10272  ;;  %v10265_v7 = vunpack.i.h.bf16 %v13905_v44  ;;  %v10264_v40 = vunpack.i.l.bf16 %v13905_v44 }
 0xc48   : > { %v10274_v9 = vunpack.i.l.bf16 %v13903_v12 }
 0xc4a   : > { %v13907_v37 = vpop.permute.xlu1 %10267 }
 0xc4b   : > { %v10270_v1 = vunpack.i.h.bf16 %v13907_v37  ;;  %v10269_v16 = vunpack.i.l.bf16 %v13907_v37 }
 0xc4d   : > { %v6922_v44 = vsel %vm562_vm0, %v13847_v13, %v10270_v1 }
 0xc4e   : > { %v10278_v3 = vpop.permute.xlu0 %10277 }
 0xc4f   : > { %v10280_v17 = vunpack.i.h.bf16 %v10278_v3  ;;  %v10279_v24 = vunpack.i.l.bf16 %v10278_v3 }
 0xc51   : > { %v6925_v29 = vsel %vm562_vm0, %v13875_v26, %v10280_v17  ;;  %v6920_v38 = vsel %vm562_vm0, %v13763_v23, %v10279_v24 }
 0xc52   : > { %v10283_v50 = vpop.permute.xlu0 %10282 }
 0xc53   : > { %v10288_v36 = vpop.permute.xlu1 %10287  ;;  %v10285_v32 = vunpack.i.h.bf16 %v10283_v50  ;;  %v10284_v31 = vunpack.i.l.bf16 %v10283_v50 }
 0xc54   : > { %v10290_v43 = vunpack.i.h.bf16 %v10288_v36  ;;  %v10289_v11 = vunpack.i.l.bf16 %v10288_v36 }
 0xc55   : > { %v6933_v25 = vsel %vm1146_vm1, %v6925_v29, %v10285_v32 }
 0xc56   : > { %v10293_v10 = vpop.permute.xlu0 %10292  ;;  %v6944_v15 = vsel %vm562_vm0, %v13765_v57, %v10289_v11  ;;  %v6949_v58 = vsel %vm562_vm0, %v13836_v51, %v10290_v43  ;;  %v6928_v57 = vsel %vm1146_vm1, %v6920_v38, %v10284_v31 }
 0xc57   : > { %v10295_v4 = vunpack.i.h.bf16 %v10293_v10  ;;  %v10294_v62 = vunpack.i.l.bf16 %v10293_v10 }
 0xc59   : > { %v6936_v3 = vsel %vm1155_vm2, %v6928_v57, %v10294_v62  ;;  %v6941_v23 = vsel %vm1155_vm2, %v6933_v25, %v10295_v4 }
 0xc5a   : > { %v13915_v27 = vpop.permute.xlu0 %10297  ;;  %v10308_v54 = vpop.permute.xlu1 %10307 }
 0xc5b   : > { %v10310_v41 = vunpack.i.h.bf16 %v10308_v54  ;;  %v10309_v46 = vunpack.i.l.bf16 %v10308_v54  ;;  %v10300_v51 = vunpack.i.h.bf16 %v13915_v27  ;;  %v10299_v59 = vunpack.i.l.bf16 %v13915_v27 }
 0xc5c   : > { %v6946_v27 = vsel %vm562_vm0, %v13786_v22, %v10269_v16 }
 0xc5d   : > { %v6952_v33 = vsel %vm1146_vm1, %v6944_v15, %v10309_v46  ;;  %v6957_v6 = vsel %vm1146_vm1, %v6949_v58, %v10310_v41  ;;  %v6921_v22 = vsel %vm562_vm0, %v13767_v49, %v10299_v59  ;;  %v6954_v16 = vsel %vm1146_vm1, %v6946_v27, %v10274_v9 }
 0xc5e   : > { %v10303_v2 = vpop.permute.xlu0 %10302  ;;  %v10313_v5 = vpop.permute.xlu1 %10312 }
 0xc5f   : > { %v10315_v53 = vunpack.i.h.bf16 %v10313_v5  ;;  %v10314_v52 = vunpack.i.l.bf16 %v10313_v5  ;;  %v10305_v37 = vunpack.i.h.bf16 %v10303_v2  ;;  %v10304_v50 = vunpack.i.l.bf16 %v10303_v2 }
 0xc60   : > { %v10275_v2 = vunpack.i.h.bf16 %v13903_v12 }
 0xc61   : > { %v6960_v34 = vsel %vm1155_vm2, %v6952_v33, %v10314_v52  ;;  %v6965_v21 = vsel %vm1155_vm2, %v6957_v6, %v10315_v53 }
 0xc62   : > { %v10328_v26 = vpop.permute.xlu0 %10327  ;;  %v10318_v55 = vpop.permute.xlu1 %10317  ;;  %7103 = vmatprep.mubr.f32.mxu0 %v6960_v34  ;;  %7128 = vmatprep.mubr.f32.mxu1 %v6965_v21 }
 0xc63   : > { %v10320_v36 = vunpack.i.h.bf16 %v10318_v55  ;;  %v10319_v10 = vunpack.i.l.bf16 %v10318_v55  ;;  %7104 = vmatmul.mubr.f32.gmra.mrb[114].mxu0 %v6936_v3  ;;  %7129 = vmatmul.mubr.f32.vlgmr.msra.gmra.mrb[112].mxu1 %v6941_v23  ;;  %v10329_v54 = vunpack.i.l.bf16 %v10328_v26  ;;  %v10330_v43 = vunpack.i.h.bf16 %v10328_v26 }
 0xc64   : > { %9007 = vmatpush3.bf16.msra.mxu1 %v13845_v45 }
 0xc65   : > { %v6945_v11 = vsel %vm562_vm0, %v13804_v60, %v10319_v10  ;;  %v6950_v17 = vsel %vm562_vm0, %v13853_v8, %v10320_v36  ;;  %9009 = vmatprep.subr.bf16.mxu1 %v13918_v42  ;;  %v6926_v60 = vsel %vm562_vm0, %v13830_v0, %v10300_v51  ;;  %v6929_v8 = vsel %vm1146_vm1, %v6921_v22, %v10304_v50 }
 0xc66   : > { %v10333_v24 = vpop.permute.xlu0 %10332  ;;  %v10323_v41 = vpop.permute.xlu1 %10322  ;;  %v6953_v46 = vsel %vm1146_vm1, %v6945_v11, %v10259_v47  ;;  %v6958_v45 = vsel %vm1146_vm1, %v6950_v17, %v10260_v19  ;;  %v6934_v31 = vsel %vm1146_vm1, %v6926_v60, %v10305_v37  ;;  %v6937_v19 = vsel %vm1155_vm2, %v6929_v8, %v10329_v54 }
 0xc67   : > { %v10324_v32 = vunpack.i.l.bf16 %v10323_v41  ;;  %v10334_v13 = vunpack.i.l.bf16 %v10333_v24  ;;  %v6961_v1 = vsel %vm1155_vm2, %v6953_v46, %v10264_v40  ;;  %v6966_v47 = vsel %vm1155_vm2, %v6958_v45, %v10265_v7 }
 0xc68   : > { %9011 = vmatpush3.bf16.msra.mxu1 %v13918_v42  ;;  %v10335_v49 = vunpack.i.h.bf16 %v10333_v24  ;;  %v10325_v4 = vunpack.i.h.bf16 %v10323_v41  ;;  %7108 = vmatprep.mubr.f32.mxu0 %v6961_v1  ;;  %v6942_v0 = vsel %vm1155_vm2, %v6934_v31, %v10330_v43  ;;  %v6930_v42 = vsel %vm1146_vm1, %v6922_v44, %v10275_v2 }
 0xc69   : > { %7133 = vmatprep.mubr.f32.mxu1 %v6966_v47  ;;  %v6962_v62 = vsel %vm1155_vm2, %v6954_v16, %v10324_v32  ;;  %7109 = vmatmul.mubr.f32.gmra.mrb[116].mxu0 %v6937_v19  ;;  %v6947_v58 = vsel %vm562_vm0, %v13867_v28, %v10334_v13 }
 0xc6a   : > { %7134 = vmatmul.mubr.f32.gmra.mrb[114].mxu1 %v6942_v0  ;;  %v10343_v5 = vpop.permute.xlu0 %10342  ;;  %v10338_v53 = vpop.permute.xlu1 %10337  ;;  %7113 = vmatprep.mubr.f32.mxu0 %v6962_v62  ;;  %v6938_v33 = vsel %vm1155_vm2, %v6930_v42, %v10325_v4  ;;  %v6923_v6 = vsel %vm562_vm0, %v13782_v35, %v10335_v49 }
 0xc6b   : > { %v10344_v52 = vunpack.i.l.bf16 %v10343_v5  ;;  %v10340_v7 = vunpack.i.h.bf16 %v10338_v53  ;;  %v10339_v15 = vunpack.i.l.bf16 %v10338_v53  ;;  %8576 = vmatprep.mubr.msk.f32.mxu1 %vm562_vm0, %v13824_v20  ;;  %v10345_v29 = vunpack.i.h.bf16 %v10343_v5 }
 0xc6d   : > { %v6955_v12 = vsel %vm1146_vm1, %v6947_v58, %v10339_v15  ;;  %7114 = vmatmul.mubr.f32.gmra.mrb[118].mxu0 %v6938_v33  ;;  %v6931_v34 = vsel %vm1146_vm1, %v6923_v6, %v10340_v7 }
 0xc6e   : > { %8577 = vmatmul.mubr.msk.f32.vlgmr.msra.gmra.mrb[116].mxu1 %vm562_vm0, %v13793_v30  ;;  %v10353_v38 = vpop.permute.xlu0 %10352  ;;  %v10348_v25 = vpop.permute.xlu1 %10347  ;;  %v6963_v20 = vsel %vm1155_vm2, %v6955_v12, %v10344_v52  ;;  %v6939_v35 = vsel %vm1155_vm2, %v6931_v34, %v10345_v29 }
 0xc6f   : > { %v10350_v21 = vunpack.i.h.bf16 %v10348_v25  ;;  %v10349_v28 = vunpack.i.l.bf16 %v10348_v25  ;;  %8579 = vmatprep.mubr.msk.f32.mxu1 %vm562_vm0, %v13799_v14  ;;  %7118 = vmatprep.mubr.f32.mxu0 %v6963_v20  ;;  %v10355_v57 = vunpack.i.h.bf16 %v10353_v38  ;;  %v10354_v51 = vunpack.i.l.bf16 %v10353_v38 }
 0xc71   : > { %v6948_v59 = vsel %vm562_vm0, %v13814_v63, %v10349_v28  ;;  %v6924_v30 = vsel %vm562_vm0, %v13795_v18, %v10350_v21  ;;  %7119 = vmatmul.mubr.f32.gmra.mrb[120].mxu0 %v6939_v35  ;;  %v10362_v18 = vld [vmem:[#allocation3 + $0xe1] sm:$0xff] }
 0xc72   : > { %8580 = vmatmul.mubr.msk.f32.gmra.mrb[118].mxu1 %vm562_vm0, %v13865_v48  ;;  %v10358_v26 = vpop.permute.xlu1 %10357  ;;  %v6956_v14 = vsel %vm1146_vm1, %v6948_v59, %v10354_v51  ;;  %v6932_v23 = vsel %vm1146_vm1, %v6924_v30, %v10355_v57 }
 0xc73   : > { %v10360_v55 = vunpack.i.h.bf16 %v10358_v26  ;;  %v10359_v3 = vunpack.i.l.bf16 %v10358_v26  ;;  %8582 = vmatprep.mubr.msk.f32.mxu1 %vm562_vm0, %v13818_v61 }
 0xc75   : > { %v6964_v37 = vsel %vm1155_vm2, %v6956_v14, %v10359_v3  ;;  %v6940_v63 = vsel %vm1155_vm2, %v6932_v23, %v10360_v55 }
 0xc76   : > { %8583 = vmatmul.mubr.msk.f32.gmra.mrb[120].mxu1 %vm562_vm0, %v13826_v39  ;;  %7123 = vmatprep.mubr.f32.mxu0 %v6964_v37 }
 0xc77   : > { %8585 = vmatprep.mubr.msk.f32.mxu1 %vm562_vm0, %v13859_v56  ;;  %7124 = vmatmul.mubr.f32.gmra.mrb[122].mxu0 %v6940_v63  ;;  %v7671_v56 = vld [vmem:[%s14047_s15] ss:$0 sm:$0xff] }
 0xc7a   : > { %8586 = vmatmul.mubr.msk.f32.gmra.mrb[122].mxu1 %vm562_vm0, %v10362_v18  ;;  %vm7244_vm0 = vcmask 97280  }
 0xd10   : > { %v8372_v61 = vpop.f32.mrb[112].mxu0 }
 0xd11   : > { %v8373_v48 = vpop.f32.mrb[113].mxu0 }
 0xd12   : > { %v8374_v50 = vadd.f32 %v8373_v48, %v8372_v61 }
 0xd14   : > { %v7101_v22 = vadd.f32 %v8374_v50, %v7671_v56 }
 0xd36   : > { %v8375_v36 = vpop.f32.mrb[114].mxu0  ;;  %v8390_v10 = vpop.f32.mrb[112].mxu1 }
 0xd37   : > { %v8376_v40 = vpop.f32.mrb[115].mxu0  ;;  %v8391_v9 = vpop.f32.mrb[113].mxu1 }
 0xd38   : > { %v8377_v54 = vadd.f32 %v8376_v40, %v8375_v36  ;;  %v8392_v27 = vadd.f32 %v8391_v9, %v8390_v10 }
 0xd3a   : > { %v7106_v41 = vadd.f32 %v8377_v54, %v7671_v56  ;;  %v7131_v12 = vadd.f32 %v8392_v27, %v7671_v56 }
 0xd3c   : > { %v8378_v43 = vpop.f32.mrb[116].mxu0 }
 0xd3d   : > { %v8393_v39 = vpop.f32.mrb[114].mxu1  ;;  %v8379_v11 = vpop.f32.mrb[117].mxu0 }
 0xd3e   : > { %v8394_v17 = vpop.f32.mrb[115].mxu1  ;;  %v8380_v44 = vadd.f32 %v8379_v11, %v8378_v43 }
 0xd3f   : > { %v8395_v24 = vadd.f32 %v8394_v17, %v8393_v39 }
 0xd40   : > { %v8381_v46 = vpop.f32.mrb[118].mxu0  ;;  %v7111_v19 = vadd.f32 %v8380_v44, %v7671_v56 }
 0xd41   : > { %v8578_v45 = vpop.f32.mrb[116].mxu1  ;;  %v8382_v32 = vpop.f32.mrb[119].mxu0  ;;  %v7136_v29 = vadd.f32 %v8395_v24, %v7671_v56 }
 0xd42   : > { %v7211_v60 = vadd.f32 %v8578_v45, %v7106_v41  ;;  %v7205_v8 = vpop.f32.mrb[117].mxu1  ;;  %v8383_v31 = vadd.f32 %v8382_v32, %v8381_v46 }
 0xd43   : > { %v7206_v16 = vadd.f32 %v7205_v8, %v7101_v22 }
 0xd44   : > { %7246 = vst.msk [vmem:[%s14011_s20 + $0x8] sm:$0xff] %vm7244_vm0, %v7211_v60  ;;  %v8384_v13 = vpop.f32.mrb[120].mxu0  ;;  %v7116_v1 = vadd.f32 %v8383_v31, %v7671_v56 }
 0xd45   : > { %7245 = vst.msk [vmem:[%s14011_s20] sm:$0xff] %vm7244_vm0, %v7206_v16  ;;  %v8581_v47 = vpop.f32.mrb[118].mxu1  ;;  %v8385_v49 = vpop.f32.mrb[121].mxu0 }
 0xd46   : > { %v7215_v4 = vpop.f32.mrb[119].mxu1  ;;  %v7221_v0 = vadd.f32 %v8581_v47, %v7116_v1  ;;  %v8386_v62 = vadd.f32 %v8385_v49, %v8384_v13 }
 0xd47   : > { %v7216_v2 = vadd.f32 %v7215_v4, %v7111_v19 }
 0xd48   : > { %7248 = vst.msk [vmem:[%s14011_s20 + $0x18] sm:$0xff] %vm7244_vm0, %v7221_v0  ;;  %v7121_v53 = vadd.f32 %v8386_v62, %v7671_v56 }
 0xd49   : > { %7247 = vst.msk [vmem:[%s14011_s20 + $0x10] sm:$0xff] %vm7244_vm0, %v7216_v2  ;;  %v8584_v5 = vpop.f32.mrb[120].mxu1 }
 0xd4a   : > { %v7225_v52 = vpop.f32.mrb[121].mxu1  ;;  %v8387_v7 = vpop.f32.mrb[122].mxu0 }
 0xd4b   : > { %v7226_v15 = vadd.f32 %v7225_v52, %v7121_v53  ;;  %v8388_v42 = vpop.f32.mrb[123].mxu0 }
 0xd4c   : > { %v8389_v58 = vadd.f32 %v8388_v42, %v8387_v7 }
 0xd4d   : > { %7249 = vst.msk [vmem:[%s14011_s20 + $0x20] sm:$0xff] %vm7244_vm0, %v7226_v15  ;;  %v8587_v33 = vpop.f32.mrb[122].mxu1 }
 0xd4e   : > { %v7126_v6 = vadd.f32 %v8389_v58, %v7671_v56  ;;  %v7241_v38 = vadd.f32 %v8587_v33, %v7136_v29  ;;  %v7235_v25 = vpop.f32.mrb[123].mxu1 }
 0xd4f   : > { %v7236_v20 = vadd.f32 %v7235_v25, %v7131_v12 }
 0xd50   : > { %v7231_v34 = vadd.f32 %v8584_v5, %v7126_v6  ;;  %7252 = vst.msk [vmem:[%s14011_s20 + $0x38] sm:$0xff] %vm7244_vm0, %v7241_v38 }
 0xd51   : > { %7251 = vst.msk [vmem:[%s14011_s20 + $0x30] sm:$0xff] %vm7244_vm0, %v7236_v20 }
 0xd52   : > { %7250 = vst.msk [vmem:[%s14011_s20 + $0x28] sm:$0xff] %vm7244_vm0, %v7231_v34 }
 0xd53 PF: > { %s14070_s25 = sld [smem:[#allocation4_spill]] }
 0xd59   : > { %s28_s24 = sadd.s32 1, %s14070_s25  }
 0xd5a   : > { %p25_p4 = scmp.ge.s32.totalorder %s28_s24, 4  }
 0xd5c   :  { %27 = sbr.rel (!%p25_p4) target bundleno = 4 (0x4), region = 137 }

</bundles_post_ra>
